<compile_context>
chip_gen: v5e
topology: v5e:2x2
jax: 0.10.0
libtpu: 0.0.40
codegen_flags: <defaults>
</compile_context>

<pallas_src>
import functools

import jax
import jax.numpy as jnp
from jax import lax
from jax.experimental import pallas as pl
from jax.experimental.pallas import tpu as pltpu


_MXU_MIN_C = 33  # below this channel count the 1x1 contractions run on the VPU


def _conv_stats_kernel(xpad_ref, w3_ref, y_ref, stats_ref, xcat_ref,
                       *, nb, h, w, c, d):
    """Pass 1: dilated 3x3 conv (fused 9-tap matmul) + per-block BN partials."""
    # Assemble the 9 dilated taps with pure slices (no reshape -> no per-tap
    # relayout copy of the whole image tile).
    t = 0
    for ky in range(3):
        for kx in range(3):
            xcat_ref[:, :, :, t * c:(t + 1) * c] = (
                xpad_ref[:, ky * d:ky * d + h, kx * d:kx * d + w, :])
            t += 1

    m = nb * h * w
    xc = xcat_ref[...].reshape(m, 9 * c)          # leading-dim collapse only
    conv = jnp.dot(xc, w3_ref[...], preferred_element_type=jnp.float32)

    y_ref[...] = conv.reshape(nb, h * w, c)
    stats_ref[0:1, :] = jnp.sum(conv, axis=0, keepdims=True)
    stats_ref[1:2, :] = jnp.sum(conv * conv, axis=0, keepdims=True)


def _bn_act_proj_kernel(y_ref, x_ref, scale_ref, shift_ref, w1_ref, ws_ref,
                        bias_ref, o_ref, *, nb, hw, c):
    """Pass 2: BN affine -> LeakyReLU(0.2) -> 1x1 conv + 1x1 shortcut + bias."""
    m = nb * hw
    y = y_ref[...].reshape(m, c)                        # f32 conv output
    yn = y * scale_ref[...] + shift_ref[...]            # BN (pre-folded affine)
    yn = jnp.where(yn >= 0, yn, 0.2 * yn)               # LeakyReLU(0.2)
    xs = x_ref[...].reshape(m, c)                       # bf16 shortcut input

    if c >= _MXU_MIN_C:
        z = (jnp.dot(yn.astype(jnp.bfloat16), w1_ref[...],
                     preferred_element_type=jnp.float32)
             + jnp.dot(xs, ws_ref[...], preferred_element_type=jnp.float32))
    else:
        # Tiny channel count: K=C would leave the systolic array almost empty;
        # do C broadcast-FMA chains on the VPU instead (f32).
        xf = xs.astype(jnp.float32)
        z = jnp.zeros((m, c), jnp.float32)
        for k in range(c):
            z = z + yn[:, k:k + 1] * w1_ref[k:k + 1, :].astype(jnp.float32)
            z = z + xf[:, k:k + 1] * ws_ref[k:k + 1, :].astype(jnp.float32)

    o_ref[...] = (z + bias_ref[...]).reshape(nb, hw, c)


def _vmem_limit_bytes():
    """Scoped-VMEM limit: generous on v5e/v6e (128 MiB), conservative on v7x."""
    try:
        cap = int(pltpu.get_tpu_info().vmem_capacity_bytes)
        return int(min(max(cap - 32 * 1024 * 1024, 32 * 1024 * 1024),
                       96 * 1024 * 1024))
    except Exception:
        return 32 * 1024 * 1024


def _pick_batch_block(n, per_image_bytes, budget_bytes):
    """Largest divisor of n whose per-step VMEM estimate fits the budget."""
    for cand in range(n, 0, -1):
        if n % cand == 0 and cand * per_image_bytes <= budget_bytes:
            return cand
    return 1


def resblock_forward(x_nchw, params, dilation=1):
    """ResBlock forward. x_nchw: (N, C, H, W) float32, params in torch layout."""
    d = int(dilation)
    n, c, h, w = x_nchw.shape
    hp, wp = h + 2 * d, w + 2 * d
    hw = h * w
    m_total = n * hw
    eps = 1e-5

    # ---- Layout glue (no FLOPs): NCHW -> NHWC, reflection pad, bf16 casts ----
    x_nhwc = jnp.transpose(x_nchw, (0, 2, 3, 1)).astype(jnp.float32)
    xpad = jnp.pad(x_nhwc, ((0, 0), (d, d), (d, d), (0, 0)),
                   mode="reflect").astype(jnp.bfloat16)
    x_flat = x_nhwc.reshape(n, hw, c).astype(jnp.bfloat16)

    # Torch OIHW -> matmul layouts (K-major, bf16 for the MXU).
    w3f = jnp.transpose(params["w3"], (2, 3, 1, 0)).reshape(9 * c, c)
    w3f = w3f.astype(jnp.bfloat16)                                     # (9C, C)
    w1 = jnp.transpose(params["w1"][:, :, 0, 0]).astype(jnp.bfloat16)  # (C, C)
    ws = jnp.transpose(params["ws"][:, :, 0, 0]).astype(jnp.bfloat16)  # (C, C)
    bias = (params["b1"] + params["bs"]).reshape(1, c).astype(jnp.float32)

    vmem_limit = _vmem_limit_bytes()
    # Dominant per-image VMEM in pass 1: padded tile (x2 buffers, bf16),
    # 9-tap scratch (bf16), conv output block (x2 buffers, f32).
    per_image = (2 * hp * wp * c * 2) + (hw * 9 * c * 2) + (2 * hw * c * 4)
    nb = _pick_batch_block(n, per_image, int(0.6 * vmem_limit))
    n_blocks = n // nb

    # ---------------- Pass 1: 3x3 conv + partial BN statistics ----------------
    y_conv, stats_parts = pl.pallas_call(
        functools.partial(_conv_stats_kernel, nb=nb, h=h, w=w, c=c, d=d),
        out_shape=(jax.ShapeDtypeStruct((n, hw, c), jnp.float32),
                   jax.ShapeDtypeStruct((n_blocks, 2, c), jnp.float32)),
        grid=(n_blocks,),
        in_specs=[pl.BlockSpec((nb, hp, wp, c), lambda i: (i, 0, 0, 0)),
                  pl.BlockSpec((9 * c, c), lambda i: (0, 0))],
        out_specs=(pl.BlockSpec((nb, hw, c), lambda i: (i, 0, 0)),
                   pl.BlockSpec((None, 2, c), lambda i: (i, 0, 0))),
        scratch_shapes=[pltpu.VMEM((nb, h, w, 9 * c), jnp.bfloat16)],
        compiler_params=pltpu.CompilerParams(
            dimension_semantics=("parallel",),
            vmem_limit_bytes=vmem_limit),
        cost_estimate=pl.CostEstimate(
            flops=2 * m_total * 9 * c * c + 4 * m_total * c,
            transcendentals=0,
            bytes_accessed=int(xpad.size * 2 + w3f.size * 2
                               + m_total * c * 4 + n_blocks * 2 * c * 4)),
    )(xpad, w3f)

    # ---- BN batch stats + affine folding (tiny; plain JAX between passes) ----
    # TODO(synk): for very large N*H*W switch to a centered / (mean, M2) style
    # accumulation to avoid E[x^2] - mean^2 cancellation.
    stats = jnp.sum(stats_parts, axis=0)                       # (2, C) f32
    mean = stats[0] / m_total
    var = jnp.maximum(stats[1] / m_total - mean * mean, 0.0)   # biased var
    rstd = lax.rsqrt(var + eps)
    scale = (params["bn_gamma"] * rstd).reshape(1, c).astype(jnp.float32)
    shift = (params["bn_beta"] - mean * params["bn_gamma"] * rstd)
    shift = shift.reshape(1, c).astype(jnp.float32)

    # ---------- Pass 2: BN affine -> LeakyReLU -> 1x1 convs + residual --------
    out_flat = pl.pallas_call(
        functools.partial(_bn_act_proj_kernel, nb=nb, hw=hw, c=c),
        out_shape=jax.ShapeDtypeStruct((n, hw, c), jnp.float32),
        grid=(n_blocks,),
        in_specs=[pl.BlockSpec((nb, hw, c), lambda i: (i, 0, 0)),
                  pl.BlockSpec((nb, hw, c), lambda i: (i, 0, 0)),
                  pl.BlockSpec((1, c), lambda i: (0, 0)),
                  pl.BlockSpec((1, c), lambda i: (0, 0)),
                  pl.BlockSpec((c, c), lambda i: (0, 0)),
                  pl.BlockSpec((c, c), lambda i: (0, 0)),
                  pl.BlockSpec((1, c), lambda i: (0, 0))],
        out_specs=pl.BlockSpec((nb, hw, c), lambda i: (i, 0, 0)),
        compiler_params=pltpu.CompilerParams(
            dimension_semantics=("parallel",),
            vmem_limit_bytes=vmem_limit),
        cost_estimate=pl.CostEstimate(
            flops=4 * m_total * c * c + 8 * m_total * c,
            transcendentals=0,
            bytes_accessed=int(m_total * c * (4 + 2 + 4)
                               + 2 * c * c * 2 + 3 * c * 4)),
    )(y_conv, x_flat, scale, shift, w1, ws, bias)

    # Layout glue: (N, H*W, C) -> NCHW.
    return jnp.transpose(out_flat.reshape(n, h, w, c), (0, 3, 1, 2))


def _reference(x_nchw, params, dilation=1):
    """Pure-JAX reference matching the PyTorch forward (training-mode BN)."""
    d = int(dilation)
    x = jnp.transpose(x_nchw, (0, 2, 3, 1)).astype(jnp.float32)
    xpad = jnp.pad(x, ((0, 0), (d, d), (d, d), (0, 0)), mode="reflect")
    w3_hwio = jnp.transpose(params["w3"], (2, 3, 1, 0))
    y = lax.conv_general_dilated(
        xpad, w3_hwio, window_strides=(1, 1), padding="VALID",
        rhs_dilation=(d, d), dimension_numbers=("NHWC", "HWIO", "NHWC"),
        precision=lax.Precision.HIGHEST)
    mean = jnp.mean(y, axis=(0, 1, 2), keepdims=True)
    var = jnp.mean((y - mean) ** 2, axis=(0, 1, 2), keepdims=True)
    y = (y - mean) * lax.rsqrt(var + 1e-5)
    y = y * params["bn_gamma"] + params["bn_beta"]
    y = jnp.where(y >= 0, y, 0.2 * y)
    y = jnp.einsum("nhwc,oc->nhwo", y, params["w1"][:, :, 0, 0],
                   precision=lax.Precision.HIGHEST) + params["b1"]
    sc = jnp.einsum("nhwc,oc->nhwo", x, params["ws"][:, :, 0, 0],
                    precision=lax.Precision.HIGHEST) + params["bs"]
    return jnp.transpose(y + sc, (0, 3, 1, 2))


def _init_params(key, dim):
    """Deterministic synthetic params, shapes matching the PyTorch module."""
    ks = jax.random.split(key, 6)

    def u(k, shape, fan_in):
        bound = 1.0 / (fan_in ** 0.5)
        return jax.random.uniform(k, shape, jnp.float32, -bound, bound)

    return {
        "w3": u(ks[0], (dim, dim, 3, 3), dim * 9),   # Conv2d 3x3, bias=False
        "bn_gamma": jnp.ones((dim,), jnp.float32),   # BatchNorm2d defaults
        "bn_beta": jnp.zeros((dim,), jnp.float32),
        "w1": u(ks[1], (dim, dim, 1, 1), dim),       # Conv2d 1x1
        "b1": u(ks[2], (dim,), dim),
        "ws": u(ks[3], (dim, dim, 1, 1), dim),       # shortcut Conv2d 1x1
        "bs": u(ks[4], (dim,), dim),
    }


if __name__ == "__main__":
    key = jax.random.PRNGKey(0)
    kx, kp = jax.random.split(key)

    N, C, H, W = 2, 4, 16, 16
    dilation = 1
    x = jax.random.normal(kx, (N, C, H, W), jnp.float32)
    params = _init_params(kp, C)

    out = resblock_forward(x, params, dilation=dilation)
    out = jax.block_until_ready(out)

    ref = jax.block_until_ready(_reference(x, params, dilation=dilation))
    assert out.shape == (N, C, H, W)
    # Kernel runs a bf16 MXU data path (f32 accumulation); reference is f32 at
    # Precision.HIGHEST, so the tolerance is set for bf16-level agreement.
    assert jnp.allclose(out, ref, atol=5e-2, rtol=5e-2), \
        float(jnp.max(jnp.abs(out - ref)))

    print("KERNEL_OK")
</pallas_src>

<mosaic_0001>
module attributes {stable_mosaic.version = 11 : i64} {
  func.func @_conv_stats_kernel(%arg0: i32, %arg1: memref<2x18x18x4xbf16, #tpu.memory_space<vmem>>, %arg2: memref<36x4xbf16, #tpu.memory_space<vmem>>, %arg3: memref<2x256x4xf32, #tpu.memory_space<vmem>>, %arg4: memref<1x2x4xf32, #tpu.memory_space<vmem>>, %arg5: memref<2x16x16x36xbf16, #tpu.memory_space<vmem>>) attributes {dimension_semantics = [#tpu.dimension_semantics<parallel>], iteration_bounds = array<i64: 1>, scalar_prefetch = 0 : i64, scratch_operands = 1 : i64, tpu.core_type = #tpu.core_type<tc>, window_params = [{transform_indices = @transform_0, window_bounds = array<i64: 2, 18, 18, 4>}, {pipeline_mode = #tpu.pipeline_mode<synchronous>, transform_indices = @transform_1, window_bounds = array<i64: 36, 4>}, {transform_indices = @transform_2, window_bounds = array<i64: 2, 256, 4>}, {transform_indices = @transform_3, window_bounds = array<i64: 1, 2, 4>}]} {
    %c0 = arith.constant 0 : index
    %c0_0 = arith.constant 0 : index
    %c0_1 = arith.constant 0 : index
    %c0_2 = arith.constant 0 : index
    %0 = vector.load %arg1[%c0, %c0_0, %c0_1, %c0_2] : memref<2x18x18x4xbf16, #tpu.memory_space<vmem>>, vector<2x16x16x4xbf16>
    %c0_3 = arith.constant 0 : index
    %c0_4 = arith.constant 0 : index
    %c0_5 = arith.constant 0 : index
    %c0_6 = arith.constant 0 : index
    %1 = vector.load %arg5[%c0_3, %c0_4, %c0_5, %c0_6] : memref<2x16x16x36xbf16, #tpu.memory_space<vmem>>, vector<2x16x16x4xbf16>
    tpu.vector_store %arg5[%c0_3, %c0_4, %c0_5, %c0_6], %0 {strides = array<i32>} : memref<2x16x16x36xbf16, #tpu.memory_space<vmem>>, vector<2x16x16x4xbf16>,
    %c0_7 = arith.constant 0 : index
    %c0_8 = arith.constant 0 : index
    %c1 = arith.constant 1 : index
    %c0_9 = arith.constant 0 : index
    %2 = vector.load %arg1[%c0_7, %c0_8, %c1, %c0_9] : memref<2x18x18x4xbf16, #tpu.memory_space<vmem>>, vector<2x16x16x4xbf16>
    %c0_10 = arith.constant 0 : index
    %c0_11 = arith.constant 0 : index
    %c0_12 = arith.constant 0 : index
    %c4 = arith.constant 4 : index
    %3 = vector.load %arg5[%c0_10, %c0_11, %c0_12, %c4] : memref<2x16x16x36xbf16, #tpu.memory_space<vmem>>, vector<2x16x16x4xbf16>
    tpu.vector_store %arg5[%c0_10, %c0_11, %c0_12, %c4], %2 {strides = array<i32>} : memref<2x16x16x36xbf16, #tpu.memory_space<vmem>>, vector<2x16x16x4xbf16>,
    %c0_13 = arith.constant 0 : index
    %c0_14 = arith.constant 0 : index
    %c2 = arith.constant 2 : index
    %c0_15 = arith.constant 0 : index
    %4 = vector.load %arg1[%c0_13, %c0_14, %c2, %c0_15] : memref<2x18x18x4xbf16, #tpu.memory_space<vmem>>, vector<2x16x16x4xbf16>
    %c0_16 = arith.constant 0 : index
    %c0_17 = arith.constant 0 : index
    %c0_18 = arith.constant 0 : index
    %c8 = arith.constant 8 : index
    %5 = vector.load %arg5[%c0_16, %c0_17, %c0_18, %c8] : memref<2x16x16x36xbf16, #tpu.memory_space<vmem>>, vector<2x16x16x4xbf16>
    tpu.vector_store %arg5[%c0_16, %c0_17, %c0_18, %c8], %4 {strides = array<i32>} : memref<2x16x16x36xbf16, #tpu.memory_space<vmem>>, vector<2x16x16x4xbf16>,
    %c0_19 = arith.constant 0 : index
    %c1_20 = arith.constant 1 : index
    %c0_21 = arith.constant 0 : index
    %c0_22 = arith.constant 0 : index
    %6 = vector.load %arg1[%c0_19, %c1_20, %c0_21, %c0_22] : memref<2x18x18x4xbf16, #tpu.memory_space<vmem>>, vector<2x16x16x4xbf16>
    %c0_23 = arith.constant 0 : index
    %c0_24 = arith.constant 0 : index
    %c0_25 = arith.constant 0 : index
    %c12 = arith.constant 12 : index
    %7 = vector.load %arg5[%c0_23, %c0_24, %c0_25, %c12] : memref<2x16x16x36xbf16, #tpu.memory_space<vmem>>, vector<2x16x16x4xbf16>
    tpu.vector_store %arg5[%c0_23, %c0_24, %c0_25, %c12], %6 {strides = array<i32>} : memref<2x16x16x36xbf16, #tpu.memory_space<vmem>>, vector<2x16x16x4xbf16>,
    %c0_26 = arith.constant 0 : index
    %c1_27 = arith.constant 1 : index
    %c1_28 = arith.constant 1 : index
    %c0_29 = arith.constant 0 : index
    %8 = vector.load %arg1[%c0_26, %c1_27, %c1_28, %c0_29] : memref<2x18x18x4xbf16, #tpu.memory_space<vmem>>, vector<2x16x16x4xbf16>
    %c0_30 = arith.constant 0 : index
    %c0_31 = arith.constant 0 : index
    %c0_32 = arith.constant 0 : index
    %c16 = arith.constant 16 : index
    %9 = vector.load %arg5[%c0_30, %c0_31, %c0_32, %c16] : memref<2x16x16x36xbf16, #tpu.memory_space<vmem>>, vector<2x16x16x4xbf16>
    tpu.vector_store %arg5[%c0_30, %c0_31, %c0_32, %c16], %8 {strides = array<i32>} : memref<2x16x16x36xbf16, #tpu.memory_space<vmem>>, vector<2x16x16x4xbf16>,
    %c0_33 = arith.constant 0 : index
    %c1_34 = arith.constant 1 : index
    %c2_35 = arith.constant 2 : index
    %c0_36 = arith.constant 0 : index
    %10 = vector.load %arg1[%c0_33, %c1_34, %c2_35, %c0_36] : memref<2x18x18x4xbf16, #tpu.memory_space<vmem>>, vector<2x16x16x4xbf16>
    %c0_37 = arith.constant 0 : index
    %c0_38 = arith.constant 0 : index
    %c0_39 = arith.constant 0 : index
    %c20 = arith.constant 20 : index
    %11 = vector.load %arg5[%c0_37, %c0_38, %c0_39, %c20] : memref<2x16x16x36xbf16, #tpu.memory_space<vmem>>, vector<2x16x16x4xbf16>
    tpu.vector_store %arg5[%c0_37, %c0_38, %c0_39, %c20], %10 {strides = array<i32>} : memref<2x16x16x36xbf16, #tpu.memory_space<vmem>>, vector<2x16x16x4xbf16>,
    %c0_40 = arith.constant 0 : index
    %c2_41 = arith.constant 2 : index
    %c0_42 = arith.constant 0 : index
    %c0_43 = arith.constant 0 : index
    %12 = vector.load %arg1[%c0_40, %c2_41, %c0_42, %c0_43] : memref<2x18x18x4xbf16, #tpu.memory_space<vmem>>, vector<2x16x16x4xbf16>
    %c0_44 = arith.constant 0 : index
    %c0_45 = arith.constant 0 : index
    %c0_46 = arith.constant 0 : index
    %c24 = arith.constant 24 : index
    %13 = vector.load %arg5[%c0_44, %c0_45, %c0_46, %c24] : memref<2x16x16x36xbf16, #tpu.memory_space<vmem>>, vector<2x16x16x4xbf16>
    tpu.vector_store %arg5[%c0_44, %c0_45, %c0_46, %c24], %12 {strides = array<i32>} : memref<2x16x16x36xbf16, #tpu.memory_space<vmem>>, vector<2x16x16x4xbf16>,
    %c0_47 = arith.constant 0 : index
    %c2_48 = arith.constant 2 : index
    %c1_49 = arith.constant 1 : index
    %c0_50 = arith.constant 0 : index
    %14 = vector.load %arg1[%c0_47, %c2_48, %c1_49, %c0_50] : memref<2x18x18x4xbf16, #tpu.memory_space<vmem>>, vector<2x16x16x4xbf16>
    %c0_51 = arith.constant 0 : index
    %c0_52 = arith.constant 0 : index
    %c0_53 = arith.constant 0 : index
    %c28 = arith.constant 28 : index
    %15 = vector.load %arg5[%c0_51, %c0_52, %c0_53, %c28] : memref<2x16x16x36xbf16, #tpu.memory_space<vmem>>, vector<2x16x16x4xbf16>
    tpu.vector_store %arg5[%c0_51, %c0_52, %c0_53, %c28], %14 {strides = array<i32>} : memref<2x16x16x36xbf16, #tpu.memory_space<vmem>>, vector<2x16x16x4xbf16>,
    %c0_54 = arith.constant 0 : index
    %c2_55 = arith.constant 2 : index
    %c2_56 = arith.constant 2 : index
    %c0_57 = arith.constant 0 : index
    %16 = vector.load %arg1[%c0_54, %c2_55, %c2_56, %c0_57] : memref<2x18x18x4xbf16, #tpu.memory_space<vmem>>, vector<2x16x16x4xbf16>
    %c0_58 = arith.constant 0 : index
    %c0_59 = arith.constant 0 : index
    %c0_60 = arith.constant 0 : index
    %c32 = arith.constant 32 : index
    %17 = vector.load %arg5[%c0_58, %c0_59, %c0_60, %c32] : memref<2x16x16x36xbf16, #tpu.memory_space<vmem>>, vector<2x16x16x4xbf16>
    tpu.vector_store %arg5[%c0_58, %c0_59, %c0_60, %c32], %16 {strides = array<i32>} : memref<2x16x16x36xbf16, #tpu.memory_space<vmem>>, vector<2x16x16x4xbf16>,
    %c0_61 = arith.constant 0 : index
    %c0_62 = arith.constant 0 : index
    %c0_63 = arith.constant 0 : index
    %c0_64 = arith.constant 0 : index
    %18 = vector.load %arg5[%c0_61, %c0_62, %c0_63, %c0_64] : memref<2x16x16x36xbf16, #tpu.memory_space<vmem>>, vector<2x16x16x36xbf16>
    %19 = vector.shape_cast %18 : vector<2x16x16x36xbf16> to vector<512x36xbf16>
    %c0_65 = arith.constant 0 : index
    %c0_66 = arith.constant 0 : index
    %20 = vector.load %arg2[%c0_65, %c0_66] : memref<36x4xbf16, #tpu.memory_space<vmem>>, vector<36x4xbf16>
    %cst = arith.constant dense<0.000000e+00> : vector<512x4xf32>
    %21 = tpu.matmul %19, %20, %cst {dimension_numbers = #tpu.dot_dimension_numbers<[1], [0], [0], [1], [0, 0, 1, 1], [], []>} : vector<512x36xbf16>, vector<36x4xbf16>, vector<512x4xf32> -> vector<512x4xf32>
    %22 = vector.shape_cast %21 : vector<512x4xf32> to vector<2x256x4xf32>
    %c0_67 = arith.constant 0 : index
    %c0_68 = arith.constant 0 : index
    %c0_69 = arith.constant 0 : index
    %23 = vector.load %arg3[%c0_67, %c0_68, %c0_69] : memref<2x256x4xf32, #tpu.memory_space<vmem>>, vector<2x256x4xf32>
    tpu.vector_store %arg3[%c0_67, %c0_68, %c0_69], %22 {strides = array<i32>} : memref<2x256x4xf32, #tpu.memory_space<vmem>>, vector<2x256x4xf32>,
    %cst_70 = arith.constant dense<0.000000e+00> : vector<4xf32>
    %24 = vector.multi_reduction <add>, %21, %cst_70 [0] : vector<512x4xf32> to vector<4xf32>
    %25 = vector.shape_cast %24 : vector<4xf32> to vector<1x4xf32>
    %c0_71 = arith.constant 0 : index
    %c0_72 = arith.constant 0 : index
    %c0_73 = arith.constant 0 : index
    %26 = vector.load %arg4[%c0_71, %c0_72, %c0_73] : memref<1x2x4xf32, #tpu.memory_space<vmem>>, vector<1x1x4xf32>
    %27 = vector.shape_cast %26 : vector<1x1x4xf32> to vector<1x4xf32>
    %28 = vector.shape_cast %25 : vector<1x4xf32> to vector<1x1x4xf32>
    tpu.vector_store %arg4[%c0_71, %c0_72, %c0_73], %28 {strides = array<i32>} : memref<1x2x4xf32, #tpu.memory_space<vmem>>, vector<1x1x4xf32>,
    %29 = arith.mulf %21, %21 : vector<512x4xf32>
    %cst_74 = arith.constant dense<0.000000e+00> : vector<4xf32>
    %30 = vector.multi_reduction <add>, %29, %cst_74 [0] : vector<512x4xf32> to vector<4xf32>
    %31 = vector.shape_cast %30 : vector<4xf32> to vector<1x4xf32>
    %c0_75 = arith.constant 0 : index
    %c1_76 = arith.constant 1 : index
    %c0_77 = arith.constant 0 : index
    %32 = vector.load %arg4[%c0_75, %c1_76, %c0_77] : memref<1x2x4xf32, #tpu.memory_space<vmem>>, vector<1x1x4xf32>
    %33 = vector.shape_cast %32 : vector<1x1x4xf32> to vector<1x4xf32>
    %34 = vector.shape_cast %31 : vector<1x4xf32> to vector<1x1x4xf32>
    tpu.vector_store %arg4[%c0_75, %c1_76, %c0_77], %34 {strides = array<i32>} : memref<1x2x4xf32, #tpu.memory_space<vmem>>, vector<1x1x4xf32>,
    return
  }
  func.func @transform_0(%arg0: i32) -> (i32, i32, i32, i32) {
    %c0_i32 = arith.constant 0 : i32
    %c0_i32_0 = arith.constant 0 : i32
    %c0_i32_1 = arith.constant 0 : i32
    %c0_i32_2 = arith.constant 0 : i32
    return %arg0, %c0_i32, %c0_i32_0, %c0_i32_1 : i32, i32, i32, i32
  }
  func.func @transform_1(%arg0: i32) -> (i32, i32) {
    %c0_i32 = arith.constant 0 : i32
    %c0_i32_0 = arith.constant 0 : i32
    %c0_i32_1 = arith.constant 0 : i32
    return %c0_i32, %c0_i32_0 : i32, i32
  }
  func.func @transform_2(%arg0: i32) -> (i32, i32, i32) {
    %c0_i32 = arith.constant 0 : i32
    %c0_i32_0 = arith.constant 0 : i32
    %c0_i32_1 = arith.constant 0 : i32
    return %arg0, %c0_i32, %c0_i32_0 : i32, i32, i32
  }
  func.func @transform_3(%arg0: i32) -> (i32, i32, i32) {
    %c0_i32 = arith.constant 0 : i32
    %c0_i32_0 = arith.constant 0 : i32
    %c0_i32_1 = arith.constant 0 : i32
    return %arg0, %c0_i32, %c0_i32_0 : i32, i32, i32
  }
}

</mosaic_0001>

<bundles_post_ra>
// kernel: tpu_custom_call.1
= control target key start
LH: loop header
LB: loop body
LE: loop exit
PB: predicated region body
PF: predicated region fallthrough
CT: control target
= control target key end

     0   :  { %vm240_vm0 = vsmask.f32 3328  ;;  %vm241_vm1 = vsmask.f32 7440  ;;  %s8090_s5 = smov 4   ;;  %s13225_s0 = inlined_call_operand.vmem [shape: bf16[2,18,18,4], index: 0, kind: input, shape index: {}]   ;;  %s13226_s1 = inlined_call_operand.vmem [shape: bf16[36,4], index: 1, kind: input, shape index: {}]   ;;  %s13227_s2 = inlined_call_operand.vmem [shape: f32[2,256,4], index: 2, kind: output, shape index: {0}]   ;;  %s13228_s3 = inlined_call_operand.hbm [shape: f32[1,2,4], index: 3, kind: output, shape index: {1}]  }
   0x1   :  { %v147_v0 = vld [vmem:[%s13225_s0 + $0xc] sm:$0xf]  ;;  %v148_v1 = vld [vmem:[%s13225_s0 + $0x10] sm:$0xf]  ;;  %v144_v6 = vld [vmem:[%s13225_s0] sm:$0xf] }
   0x2   :  { %v268_v2 = vshrl.u32 %v147_v0, 16  ;;  %v271_v3 = vshll.u32 %v147_v0, 16  ;;  %v277_v4 = vshll.u32 %v148_v1, 16  ;;  %v281_v5 = vshrl.u32 %v148_v1, 16  ;;  %v145_v7 = vld [vmem:[%s13225_s0 + $0x4] sm:$0xf]  ;;  %vm8142_vm2 = vmor %vm240_vm0, %vm241_vm1 }
   0x3   :  { %v244_v10 = vshrl.u32 %v144_v6, 16  ;;  %v149_v11 = vld [vmem:[%s13225_s0 + $0x14] sm:$0x1]  ;;  %v247_v13 = vshll.u32 %v144_v6, 16  ;;  %v253_v14 = vshll.u32 %v145_v7, 16  ;;  %v257_v15 = vshrl.u32 %v145_v7, 16 }
   0x4   :  { %v270_v8 = vrot.slane %v268_v2, 4  ;;  %v273_v9 = vrot.slane %v271_v3, 5  ;;  %v283_v12 = vrot.slane %v281_v5, 4  ;;  %v146_v16 = vld [vmem:[%s13225_s0 + $0x8] sm:$0x1]  ;;  %v279_v18 = vrot.slane %v277_v4, 5 }
   0x5   :  { %v246_v19 = vrot.slane %v244_v10, 4  ;;  %v287_v20 = vshll.u32 %v149_v11, 16  ;;  %v154_v21 = vld [vmem:[%s13225_s0 + $0x28] sm:$0xf]  ;;  %v249_v23 = vrot.slane %v247_v13, 5  ;;  %v255_v24 = vrot.slane %v253_v14, 5 }
   0x6   :  { %v274_v17 = vor.u32 %v273_v9, %v270_v8  ;;  %v259_v25 = vrot.slane %v257_v15, 4  ;;  %v263_v26 = vshll.u32 %v146_v16, 16  ;;  %v284_v28 = vor.u32 %v283_v12, %v279_v18  ;;  %v153_v30 = vld [vmem:[%s13225_s0 + $0x24] sm:$0xf]  ;;  %v155_v33 = vld [vmem:[%s13225_s0 + $0x2c] sm:$0x1] }
   0x7   :  { %v325_v29 = vshll.u32 %v154_v21, 16  ;;  %v250_v31 = vor.u32 %v249_v23, %v246_v19  ;;  %v329_v34 = vshrl.u32 %v154_v21, 16  ;;  %v150_v35 = vld [vmem:[%s13225_s0 + $0x18] sm:$0xf]  ;;  %v289_v37 = vrot.slane %v287_v20, 5 }
   0x8   :  { %v275_v27 = vrot.slane %v274_v17, 4  ;;  %v260_v32 = vor.u32 %v259_v25, %v255_v24  ;;  %v316_v38 = vshrl.u32 %v153_v30, 16  ;;  %v265_v40 = vrot.slane %v263_v26, 5  ;;  %v151_v43 = vld [vmem:[%s13225_s0 + $0x1c] sm:$0xf] }
   0x9   :  { %v251_v39 = vrot.slane %v250_v31, 4  ;;  %v8158_v41 = vrot.slane %v325_v29, 5  ;;  %v331_v42 = vrot.slane %v329_v34, 4  ;;  %v285_v44 = vrot.slane %v284_v28, 4  ;;  %v159_v52 = vld [vmem:[%s13225_s0 + $0x3c] sm:$0xf] }
   0xa   :  { %v280_v36 = vsel %vm8142_vm2, %v275_v27, %v279_v18  ;;  %v335_v45 = vshll.u32 %v155_v33, 16  ;;  %v319_v46 = vshll.u32 %v153_v30, 16  ;;  %v292_v47 = vshrl.u32 %v150_v35, 16  ;;  %v157_v63 = vld [vmem:[%s13225_s0 + $0x34] sm:$0xf] }
   0xb   :  { %1015 = vrot.lane.b32.xlu1 %v280_v36, %s8090_s5  ;;  %v256_v48 = vsel %vm8142_vm2, %v251_v39, %v255_v24  ;;  %v261_v49 = vrot.slane %v260_v32, 4  ;;  %v318_v50 = vrot.slane %v316_v38, 4  ;;  %v295_v51 = vshll.u32 %v150_v35, 16  ;;  %v152_v2 = vld [vmem:[%s13225_s0 + $0x20] sm:$0x1] }
   0xc   :  { %1011 = vrot.lane.b32.xlu0 %v256_v48, %s8090_s5  ;;  %v321_v53 = vrot.slane %v319_v46, 5  ;;  %v294_v54 = vrot.slane %v292_v47, 4  ;;  %v301_v55 = vshll.u32 %v151_v43, 16  ;;  %v305_v56 = vshrl.u32 %v151_v43, 16  ;;  %v163_v10 = vld [vmem:[%s13225_s0 + $0x4c] sm:$0xf] }
   0xd   :  { %v332_v57 = vor.u32 %v331_v42, %v8158_v41  ;;  %v297_v58 = vrot.slane %v295_v51, 5  ;;  %v290_v59 = vsel %vm8142_vm2, %v285_v44, %v289_v37  ;;  %v364_v61 = vshrl.u32 %v159_v52, 16  ;;  %v160_v16 = vld [vmem:[%s13225_s0 + $0x40] sm:$0xf]  ;;  %v158_v17 = vld [vmem:[%s13225_s0 + $0x38] sm:$0x1] }
   0xe   :  { %v307_v60 = vrot.slane %v305_v56, 4  ;;  %v367_v62 = vshll.u32 %v159_v52, 16  ;;  %v303_v1 = vrot.slane %v301_v55, 5  ;;  %v266_v3 = vsel %vm8142_vm2, %v261_v49, %v265_v40  ;;  %v162_v18 = vld [vmem:[%s13225_s0 + $0x48] sm:$0xf] }
   0xf   :  { %v298_v0 = vor.u32 %v297_v58, %v294_v54  ;;  %v337_v4 = vrot.slane %v335_v45, 5  ;;  %v322_v5 = vor.u32 %v321_v53, %v318_v50  ;;  %v333_v6 = vrot.slane %v332_v57, 4  ;;  %v156_v23 = vld [vmem:[%s13225_s0 + $0x30] sm:$0xf] }
  0x10   :  { %v349_v8 = vshll.u32 %v157_v63, 16  ;;  %v353_v9 = vshrl.u32 %v157_v63, 16  ;;  %v366_v11 = vrot.slane %v364_v61, 4  ;;  %v369_v12 = vrot.slane %v367_v62, 5 }
  0x11   :  { %v299_v7 = vrot.slane %v298_v0, 4  ;;  %v308_v13 = vor.u32 %v307_v60, %v303_v1  ;;  %v311_v14 = vshll.u32 %v152_v2, 16  ;;  %v323_v19 = vrot.slane %v322_v5, 4 }
  0x12   :  { %v397_v20 = vshll.u32 %v163_v10, 16  ;;  %v401_v21 = vshrl.u32 %v163_v10, 16  ;;  %v8200_v24 = vrot.slane %v349_v8, 5  ;;  %v355_v25 = vrot.slane %v353_v9, 4 }
  0x13   :  { %1017 = vrot.lane.b32.xlu1 %v290_v59, %s8090_s5  ;;  %v304_v15 = vsel %vm8142_vm2, %v299_v7, %v303_v1  ;;  %v309_v26 = vrot.slane %v308_v13, 4  ;;  %v313_v27 = vrot.slane %v311_v14, 5 }
  0x14   :  { %1013 = vrot.lane.b32.xlu0 %v266_v3, %s8090_s5  ;;  %1019 = vrot.lane.b32.xlu2 %v304_v15, %s8090_s5 }
  0x15   :  { %9 = vsyncpa [#allocation4], 0  ;;  %v338_v28 = vsel %vm8142_vm2, %v333_v6, %v337_v4  ;;  %v370_v29 = vor.u32 %v369_v12, %v366_v11  ;;  %v373_v30 = vshll.u32 %v160_v16, 16  ;;  %v377_v31 = vshrl.u32 %v160_v16, 16  ;;  %v164_v35 = vld [vmem:[%s13225_s0 + $0x50] sm:$0x1] }
  0x16   :  { %v359_v32 = vshll.u32 %v158_v17, 16  ;;  %v388_v33 = vshrl.u32 %v162_v18, 16  ;;  %v340_v34 = vshrl.u32 %v156_v23, 16  ;;  %v8207_v36 = vrot.slane %v397_v20, 5  ;;  %v168_v49 = vld [vmem:[%s13225_s0 + $0x60] sm:$0xf] }
  0x17   :  { %v403_v37 = vrot.slane %v401_v21, 4  ;;  %v391_v38 = vshll.u32 %v162_v18, 16  ;;  %v343_v39 = vshll.u32 %v156_v23, 16  ;;  %v328_v40 = vsel %vm8142_vm2, %v323_v19, %v8158_v41  ;;  %v166_v53 = vld [vmem:[%s13225_s0 + $0x58] sm:$0xf]  ;;  %s8091_s18 = smov 8  }
  0x18   :  { %v356_v42 = vor.u32 %v355_v25, %v8200_v24  ;;  %v314_v43 = vsel %vm8142_vm2, %v309_v26, %v313_v27  ;;  %v342_v44 = vrot.slane %v340_v34, 4  ;;  %v371_v45 = vrot.slane %v370_v29, 4  ;;  %v161_v61 = vld [vmem:[%s13225_s0 + $0x44] sm:$0x1]  ;;  %v165_v3 = vld [vmem:[%s13225_s0 + $0x54] sm:$0xf] }
  0x19   :  { %v375_v46 = vrot.slane %v373_v30, 5  ;;  %v345_v47 = vrot.slane %v343_v39, 5  ;;  %v407_v48 = vshll.u32 %v164_v35, 16  ;;  %v404_v41 = vor.u32 %v403_v37, %v8207_v36  ;;  %v169_v6 = vld [vmem:[%s13225_s0 + $0x64] sm:$0xf]  ;;  %s8092_s6 = smov 12  }
  0x1a   :  { %v390_v50 = vrot.slane %v388_v33, 4  ;;  %v393_v51 = vrot.slane %v391_v38, 5  ;;  %v357_v54 = vrot.slane %v356_v42, 4  ;;  %v361_v55 = vrot.slane %v359_v32, 5  ;;  %v167_v11 = vld [vmem:[%s13225_s0 + $0x5c] sm:$0x1] }
  0x1b   :  { %1025 = vrot.lane.b32.xlu1 %v338_v28, %s8090_s5  ;;  %v346_v52 = vor.u32 %v345_v47, %v342_v44  ;;  %v379_v56 = vrot.slane %v377_v31, 4  ;;  %v376_v57 = vsel %vm8142_vm2, %v371_v45, %v375_v46  ;;  %v436_v59 = vshrl.u32 %v168_v49, 16  ;;  %v172_v14 = vld [vmem:[%s13225_s0 + $0x70] sm:$0xf]  ;;  %v171_v20 = vld [vmem:[%s13225_s0 + $0x6c] sm:$0xf] }
  0x1c   :  { %1023 = vrot.lane.b32.xlu0 %v328_v40, %s8090_s5  ;;  %1021 = vrot.lane.b32.xlu2 %v314_v43, %s8090_s5  ;;  %v439_v60 = vshll.u32 %v168_v49, 16  ;;  %v421_v62 = vshll.u32 %v166_v53, 16  ;;  %v425_v63 = vshrl.u32 %v166_v53, 16  ;;  %v405_v0 = vrot.slane %v404_v41, 4  ;;  %v177_v34 = vld [vmem:[%s13225_s0 + $0x84] sm:$0xf] }
  0x1d   :  { %v347_v58 = vrot.slane %v346_v52, 4  ;;  %v409_v1 = vrot.slane %v407_v48, 5  ;;  %v394_v2 = vor.u32 %v393_v51, %v390_v50  ;;  %v362_v4 = vsel %vm8142_vm2, %v357_v54, %v361_v55  ;;  %v175_v50 = vld [vmem:[%s13225_s0 + $0x7c] sm:$0xf]  ;;  %v170_v51 = vld [vmem:[%s13225_s0 + $0x68] sm:$0x1] }
  0x1e   :  { %v380_v7 = vor.u32 %v379_v56, %v375_v46  ;;  %v383_v8 = vshll.u32 %v161_v61, 16  ;;  %v438_v9 = vrot.slane %v436_v59, 4  ;;  %v441_v10 = vrot.slane %v439_v60, 5  ;;  %v173_v46 = vld [vmem:[%s13225_s0 + $0x74] sm:$0x1]  ;;  %s8093_s21 = smov 16  }
  0x1f   :  { %v352_v5 = vsel %vm8142_vm2, %v347_v58, %v8200_v24  ;;  %v8245_v12 = vrot.slane %v421_v62, 5  ;;  %v427_v13 = vrot.slane %v425_v63, 4  ;;  %v412_v15 = vshrl.u32 %v165_v3, 16  ;;  %v174_v56 = vld [vmem:[%s13225_s0 + $0x78] sm:$0xf]  ;;  %s8094_s22 = smov 20  }
  0x20   :  { %v415_v16 = vshll.u32 %v165_v3, 16  ;;  %v410_v17 = vsel %vm8142_vm2, %v405_v0, %v409_v1  ;;  %v395_v18 = vrot.slane %v394_v2, 4  ;;  %v445_v19 = vshll.u32 %v169_v6, 16  ;;  %v178_v60 = vld [vmem:[%s13225_s0 + $0x88] sm:$0xf]  ;;  %s8095_s27 = smov 24  }
  0x21   :  { %v381_v21 = vrot.slane %v380_v7, 4  ;;  %v385_v23 = vrot.slane %v383_v8, 5  ;;  %v414_v24 = vrot.slane %v412_v15, 4  ;;  %v442_v26 = vor.u32 %v441_v10, %v438_v9  ;;  %v181_v8 = vld [vmem:[%s13225_s0 + $0x94] sm:$0xf]  ;;  %s8096_s19 = smov 28  }
  0x22   :  { %v417_v25 = vrot.slane %v415_v16, 5  ;;  %v431_v27 = vshll.u32 %v167_v11, 16  ;;  %v469_v28 = vshll.u32 %v172_v14, 16  ;;  %v473_v29 = vshrl.u32 %v172_v14, 16  ;;  %v176_v11 = vld [vmem:[%s13225_s0 + $0x80] sm:$0x1] }
  0x23   :  { %1031 = vrot.lane.b32.xlu1 %v376_v57, %s8090_s5  ;;  %v428_v30 = vor.u32 %v427_v13, %v8245_v12  ;;  %v460_v31 = vshrl.u32 %v171_v20, 16  ;;  %v463_v32 = vshll.u32 %v171_v20, 16  ;;  %v447_v33 = vrot.slane %v445_v19, 5  ;;  %v180_v16 = vld [vmem:[%s13225_s0 + $0x90] sm:$0xf]  ;;  %s8097_s26 = smov 32  }
  0x24   :  { %1029 = vrot.lane.b32.xlu0 %v362_v4, %s8090_s5  ;;  %1027 = vrot.lane.b32.xlu2 %v352_v5, %s8090_s5  ;;  %v400_v35 = vsel %vm8142_vm2, %v395_v18, %v8207_v36  ;;  %v449_v37 = vshrl.u32 %v169_v6, 16  ;;  %v386_v38 = vsel %vm8142_vm2, %v381_v21, %v385_v23  ;;  %v418_v39 = vor.u32 %v417_v25, %v414_v24  ;;  %s7225_s4 = sshll.u32 %s13228_s3, 4  ;;  %s7226_s4 = int_to_ptr.hbm [resolvable:$true] %s7225_s4 }
  0x25   :  { %v443_v40 = vrot.slane %v442_v26, 4  ;;  %v433_v42 = vrot.slane %v431_v27, 5  ;;  %v8267_v43 = vrot.slane %v469_v28, 5  ;;  %v475_v44 = vrot.slane %v473_v29, 4 }
  0x26   :  { %v429_v45 = vrot.slane %v428_v30, 4  ;;  %v462_v47 = vrot.slane %v460_v31, 4  ;;  %v465_v48 = vrot.slane %v463_v32, 5  ;;  %v508_v49 = vshrl.u32 %v177_v34, 16 }
  0x27   :  { %v511_v36 = vshll.u32 %v177_v34, 16  ;;  %v419_v41 = vrot.slane %v418_v39, 4  ;;  %v451_v52 = vrot.slane %v449_v37, 4  ;;  %v448_v53 = vsel %vm8142_vm2, %v443_v40, %v447_v33  ;;  %v186_v37 = vld [vmem:[%s13225_s0 + $0xa8] sm:$0xf] }
  0x28   :  { %v476_v54 = vor.u32 %v475_v44, %v8267_v43  ;;  %v479_v55 = vshll.u32 %v173_v46, 16  ;;  %v434_v57 = vsel %vm8142_vm2, %v429_v45, %v433_v42  ;;  %v466_v58 = vor.u32 %v465_v48, %v462_v47  ;;  %v179_v46 = vld [vmem:[%s13225_s0 + $0x8c] sm:$0x1] }
  0x29   :  { %v510_v59 = vrot.slane %v508_v49, 4  ;;  %v513_v61 = vrot.slane %v511_v36, 5  ;;  %v493_v62 = vshll.u32 %v175_v50, 16  ;;  %v497_v63 = vshrl.u32 %v175_v50, 16  ;;  %v183_v50 = vld [vmem:[%s13225_s0 + $0x9c] sm:$0xf] }
  0x2a   :  { %v455_v0 = vshll.u32 %v170_v51, 16  ;;  %v424_v1 = vsel %vm8142_vm2, %v419_v41, %v8245_v12  ;;  %v452_v2 = vor.u32 %v451_v52, %v447_v33  ;;  %v484_v3 = vshrl.u32 %v174_v56, 16 }
  0x2b   :  { %1037 = vrot.lane.b32.xlu1 %v410_v17, %s8090_s5  ;;  %v487_v4 = vshll.u32 %v174_v56, 16  ;;  %v477_v5 = vrot.slane %v476_v54, 4  ;;  %v481_v6 = vrot.slane %v479_v55, 5  ;;  %v517_v7 = vshll.u32 %v178_v60, 16  ;;  %v190_v56 = vld [vmem:[%s13225_s0 + $0xb8] sm:$0xf] }
  0x2c   :  { %1035 = vrot.lane.b32.xlu0 %v400_v35, %s8090_s5  ;;  %1033 = vrot.lane.b32.xlu2 %v386_v38, %s8090_s5  ;;  %v467_v9 = vrot.slane %v466_v58, 4  ;;  %v514_v10 = vor.u32 %v513_v61, %v510_v59  ;;  %v8303_v12 = vrot.slane %v493_v62, 5  ;;  %v499_v13 = vrot.slane %v497_v63, 4  ;;  %v182_v35 = vld [vmem:[%s13225_s0 + $0x98] sm:$0x1] }
  0x2d   :  { %v453_v14 = vrot.slane %v452_v2, 4  ;;  %v457_v15 = vrot.slane %v455_v0, 5  ;;  %v486_v17 = vrot.slane %v484_v3, 4  ;;  %v489_v18 = vrot.slane %v487_v4, 5  ;;  %v187_v63 = vld [vmem:[%s13225_s0 + $0xac] sm:$0xf] }
  0x2e   :  { %v482_v19 = vsel %vm8142_vm2, %v477_v5, %v481_v6  ;;  %v541_v20 = vshll.u32 %v181_v8, 16  ;;  %v545_v21 = vshrl.u32 %v181_v8, 16  ;;  %v519_v23 = vrot.slane %v517_v7, 5  ;;  %v185_v2 = vld [vmem:[%s13225_s0 + $0xa4] sm:$0x1] }
  0x2f   :  { %v521_v24 = vshrl.u32 %v178_v60, 16  ;;  %v500_v25 = vor.u32 %v499_v13, %v8303_v12  ;;  %v503_v26 = vshll.u32 %v176_v11, 16  ;;  %v532_v27 = vshrl.u32 %v180_v16, 16  ;;  %v189_v8 = vld [vmem:[%s13225_s0 + $0xb4] sm:$0xf] }
  0x30   :  { %v535_v28 = vshll.u32 %v180_v16, 16  ;;  %v472_v29 = vsel %vm8142_vm2, %v467_v9, %v8267_v43  ;;  %v515_v30 = vrot.slane %v514_v10, 4  ;;  %v458_v31 = vsel %vm8142_vm2, %v453_v14, %v457_v15  ;;  %v184_v43 = vld [vmem:[%s13225_s0 + $0xa0] sm:$0xf] }
  0x31   :  { %v490_v32 = vor.u32 %v489_v18, %v486_v17  ;;  %v8317_v33 = vrot.slane %v541_v20, 5  ;;  %v547_v34 = vrot.slane %v545_v21, 4  ;;  %v501_v38 = vrot.slane %v500_v25, 4  ;;  %v191_v18 = vld [vmem:[%s13225_s0 + $0xbc] sm:$0x1] }
  0x32   :  { %v505_v39 = vrot.slane %v503_v26, 5  ;;  %v534_v40 = vrot.slane %v532_v27, 4  ;;  %v537_v42 = vrot.slane %v535_v28, 5  ;;  %v520_v44 = vsel %vm8142_vm2, %v515_v30, %v519_v23  ;;  %v195_v28 = vld [vmem:[%s13225_s0 + $0xe4] sm:$0xf] }
  0x33   :  { %1043 = vrot.lane.b32.xlu1 %v448_v53, %s8090_s5  ;;  %v491_v45 = vrot.slane %v490_v32, 4  ;;  %v523_v47 = vrot.slane %v521_v24, 4  ;;  %v548_v48 = vor.u32 %v547_v34, %v8317_v33  ;;  %v551_v49 = vshll.u32 %v182_v35, 16 }
  0x34   :  { %1041 = vrot.lane.b32.xlu0 %v434_v57, %s8090_s5  ;;  %1039 = vrot.lane.b32.xlu2 %v424_v1, %s8090_s5  ;;  %v580_v36 = vshrl.u32 %v186_v37, 16  ;;  %v583_v41 = vshll.u32 %v186_v37, 16  ;;  %v565_v51 = vshll.u32 %v184_v43, 16  ;;  %v569_v52 = vshrl.u32 %v184_v43, 16  ;;  %v192_v43 = vld [vmem:[%s13225_s0 + $0xd8] sm:$0xf] }
  0x35   :  { %v506_v53 = vsel %vm8142_vm2, %v501_v38, %v505_v39  ;;  %v538_v54 = vor.u32 %v537_v42, %v534_v40  ;;  %v527_v55 = vshll.u32 %v179_v46, 16  ;;  %v496_v57 = vsel %vm8142_vm2, %v491_v45, %v8303_v12 }
  0x36   :  { %v524_v58 = vor.u32 %v523_v47, %v519_v23  ;;  %v556_v59 = vshrl.u32 %v183_v50, 16  ;;  %v559_v60 = vshll.u32 %v183_v50, 16  ;;  %v549_v61 = vrot.slane %v548_v48, 4  ;;  %v199_v50 = vld [vmem:[%s13225_s0 + $0xf4] sm:$0xf] }
  0x37   :  { %v553_v62 = vrot.slane %v551_v49, 5  ;;  %v582_v0 = vrot.slane %v580_v36, 4  ;;  %v585_v1 = vrot.slane %v583_v41, 5  ;;  %v8354_v3 = vrot.slane %v565_v51, 5  ;;  %v188_v49 = vld [vmem:[%s13225_s0 + $0xb0] sm:$0x1] }
  0x38   :  { %v571_v4 = vrot.slane %v569_v52, 4  ;;  %v613_v5 = vshll.u32 %v190_v56, 16  ;;  %v617_v6 = vshrl.u32 %v190_v56, 16  ;;  %v539_v7 = vrot.slane %v538_v54, 4  ;;  %v196_v54 = vld [vmem:[%s13225_s0 + $0xe8] sm:$0xf] }
  0x39   :  { %v525_v9 = vrot.slane %v524_v58, 4  ;;  %v529_v10 = vrot.slane %v527_v55, 5  ;;  %v558_v11 = vrot.slane %v556_v59, 4  ;;  %v561_v12 = vrot.slane %v559_v60, 5  ;;  %v194_v59 = vld [vmem:[%s13225_s0 + $0xe0] sm:$0x1] }
  0x3a   :  { %v554_v13 = vsel %vm8142_vm2, %v549_v61, %v553_v62  ;;  %v586_v14 = vor.u32 %v585_v1, %v582_v0  ;;  %v589_v15 = vshll.u32 %v187_v63, 16  ;;  %v575_v16 = vshll.u32 %v185_v2, 16 }
  0x3b   :  { %1049 = vrot.lane.b32.xlu1 %v482_v19, %s8090_s5  ;;  %v572_v17 = vor.u32 %v571_v4, %v8354_v3  ;;  %v8367_v19 = vrot.slane %v613_v5, 5  ;;  %v619_v20 = vrot.slane %v617_v6, 4  ;;  %v604_v21 = vshrl.u32 %v189_v8, 16  ;;  %v198_v4 = vld [vmem:[%s13225_s0 + $0xf0] sm:$0xf] }
  0x3c   :  { %1047 = vrot.lane.b32.xlu0 %v472_v29, %s8090_s5  ;;  %1045 = vrot.lane.b32.xlu2 %v458_v31, %s8090_s5  ;;  %v607_v23 = vshll.u32 %v189_v8, 16  ;;  %v544_v24 = vsel %vm8142_vm2, %v539_v7, %v8317_v33  ;;  %v593_v25 = vshrl.u32 %v187_v63, 16  ;;  %v530_v26 = vsel %vm8142_vm2, %v525_v9, %v529_v10  ;;  %v193_v29 = vld [vmem:[%s13225_s0 + $0xdc] sm:$0xf]  ;;  %v200_v63 = vld [vmem:[%s13225_s0 + $0xf8] sm:$0x1] }
  0x3d   :  { %v562_v27 = vor.u32 %v561_v12, %v558_v11  ;;  %v587_v30 = vrot.slane %v586_v14, 4  ;;  %v591_v31 = vrot.slane %v589_v15, 5  ;;  %v623_v32 = vshll.u32 %v191_v18, 16 }
  0x3e   :  { %v573_v34 = vrot.slane %v572_v17, 4  ;;  %v577_v35 = vrot.slane %v575_v16, 5  ;;  %v620_v33 = vor.u32 %v619_v20, %v8367_v19  ;;  %v606_v37 = vrot.slane %v604_v21, 4  ;;  %v204_v20 = vld [vmem:[%s13225_s0 + $0x108] sm:$0xf] }
  0x3f   :  { %v609_v38 = vrot.slane %v607_v23, 5  ;;  %v652_v39 = vshrl.u32 %v195_v28, 16  ;;  %v655_v40 = vshll.u32 %v195_v28, 16  ;;  %v637_v42 = vshll.u32 %v193_v29, 16 }
  0x40   :  { %v641_v45 = vshrl.u32 %v193_v29, 16  ;;  %v595_v46 = vrot.slane %v593_v25, 4  ;;  %v592_v47 = vsel %vm8142_vm2, %v587_v30, %v591_v31  ;;  %v625_v48 = vrot.slane %v623_v32, 5 }
  0x41   :  { %v578_v36 = vsel %vm8142_vm2, %v573_v34, %v577_v35  ;;  %v621_v41 = vrot.slane %v620_v33, 4  ;;  %v628_v51 = vshrl.u32 %v192_v43, 16  ;;  %v631_v52 = vshll.u32 %v192_v43, 16  ;;  %v201_v43 = vld [vmem:[%s13225_s0 + $0xfc] sm:$0xf] }
  0x42   :  { %v654_v55 = vrot.slane %v652_v39, 4  ;;  %v657_v56 = vrot.slane %v655_v40, 5  ;;  %v643_v60 = vrot.slane %v641_v45, 4  ;;  %v596_v61 = vor.u32 %v595_v46, %v591_v31  ;;  %v208_v39 = vld [vmem:[%s13225_s0 + $0x118] sm:$0xf] }
  0x43   :  { %1055 = vrot.lane.b32.xlu1 %v520_v44, %s8090_s5  ;;  %v563_v44 = vrot.slane %v562_v27, 4  ;;  %v599_v62 = vshll.u32 %v188_v49, 16  ;;  %v685_v0 = vshll.u32 %v199_v50, 16  ;;  %v689_v1 = vshrl.u32 %v199_v50, 16  ;;  %v17_v45 = vld [vmem:[%s13225_s0 + $0xc] sm:$0xf] }
  0x44   :  { %1053 = vrot.lane.b32.xlu0 %v506_v53, %s8090_s5  ;;  %1051 = vrot.lane.b32.xlu2 %v496_v57, %s8090_s5  ;;  %v610_v53 = vor.u32 %v609_v38, %v606_v37  ;;  %v8400_v57 = vrot.slane %v637_v42, 5  ;;  %v661_v2 = vshll.u32 %v196_v54, 16  ;;  %v630_v5 = vrot.slane %v628_v51, 4  ;;  %v19_v42 = vld [vmem:[%s13225_s0 + $0x18] sm:$0xf] }
  0x45   :  { %v568_v58 = vsel %vm8142_vm2, %v563_v44, %v8354_v3  ;;  %v633_v3 = vrot.slane %v631_v52, 5  ;;  %v626_v6 = vsel %vm8142_vm2, %v621_v41, %v625_v48  ;;  %v658_v8 = vor.u32 %v657_v56, %v654_v55  ;;  %v8453_v44 = vld [vmem:[%s13225_s0 + $0x10c] sm:$0xf]  ;;  %v15_v46 = vld [vmem:[%s13225_s0] sm:$0xf] }
  0x46   :  { %v611_v7 = vrot.slane %v610_v53, 4  ;;  %v647_v9 = vshll.u32 %v194_v59, 16  ;;  %v644_v10 = vor.u32 %v643_v60, %v8400_v57  ;;  %v597_v11 = vrot.slane %v596_v61, 4  ;;  %v197_v49 = vld [vmem:[%s13225_s0 + $0xec] sm:$0x1] }
  0x47   :  { %v601_v12 = vrot.slane %v599_v62, 5  ;;  %v8420_v14 = vrot.slane %v685_v0, 5  ;;  %v691_v15 = vrot.slane %v689_v1, 4  ;;  %v676_v16 = vshrl.u32 %v198_v4, 16  ;;  %v203_v53 = vld [vmem:[%s13225_s0 + $0x104] sm:$0x1] }
  0x48   :  { %v679_v17 = vshll.u32 %v198_v4, 16  ;;  %v634_v18 = vor.u32 %v633_v3, %v630_v5  ;;  %v616_v21 = vsel %vm8142_vm2, %v611_v7, %v8367_v19  ;;  %v659_v23 = vrot.slane %v658_v8, 4  ;;  %v207_v56 = vld [vmem:[%s13225_s0 + $0x114] sm:$0xf]  ;;  %v209_v3 = vld [vmem:[%s13225_s0 + $0x11c] sm:$0x1] }
  0x49   :  { %v665_v25 = vshrl.u32 %v196_v54, 16  ;;  %v645_v27 = vrot.slane %v644_v10, 4  ;;  %v649_v28 = vrot.slane %v647_v9, 5  ;;  %v602_v29 = vsel %vm8142_vm2, %v597_v11, %v601_v12  ;;  %v20_v9 = vld [vmem:[%s13225_s0 + $0x1c] sm:$0xf] }
  0x4a   :  { %v692_v31 = vor.u32 %v691_v15, %v8420_v14  ;;  %v678_v19 = vrot.slane %v676_v16, 4  ;;  %v681_v32 = vrot.slane %v679_v17, 5  ;;  %v724_v34 = vshrl.u32 %v204_v20, 16  ;;  %v18_v10 = vld [vmem:[%s13225_s0 + $0x10] sm:$0xf] }
  0x4b   :  { %1061 = vrot.lane.b32.xlu1 %v554_v13, %s8090_s5  ;;  %v695_v13 = vshll.u32 %v200_v63, 16  ;;  %v635_v35 = vrot.slane %v634_v18, 4  ;;  %v727_v33 = vshll.u32 %v204_v20, 16  ;;  %v667_v40 = vrot.slane %v665_v25, 4  ;;  %v16_v16 = vld [vmem:[%s13225_s0 + $0x4] sm:$0xf] }
  0x4c   :  { %1059 = vrot.lane.b32.xlu0 %v544_v24, %s8090_s5  ;;  %1057 = vrot.lane.b32.xlu2 %v530_v26, %s8090_s5  ;;  %v8428_v24 = vrot.slane %v661_v2, 5  ;;  %v202_v26 = vld [vmem:[%s13225_s0 + $0x100] sm:$0xf]  ;;  %vm79_vm3 = vcmask 27648   ;;  %v682_v48 = vor.u32 %v681_v32, %v678_v19  ;;  %v761_v41 = vshrl.u32 %v208_v39, 16 }
  0x4d   :  { %v8436_v30 = vrot.slane %v695_v13, 5  ;;  %v709_v37 = vshll.u32 %v202_v26, 16  ;;  %v713_v38 = vshrl.u32 %v202_v26, 16  ;;  %84 = vst.msk [vmem:[#allocation2 + $0x10] sm:$0xf] %vm79_vm3, %v19_v42  ;;  %v650_v50 = vsel %vm8142_vm2, %v645_v27, %v649_v28 }
  0x4e   :  { %82 = vst.msk [vmem:[#allocation2 + $0x8] sm:$0xf] %vm79_vm3, %v17_v45  ;;  %v693_v51 = vrot.slane %v692_v31, 4  ;;  %v726_v52 = vrot.slane %v724_v34, 4  ;;  %v729_v54 = vrot.slane %v727_v33, 5  ;;  %v703_v59 = vshll.u32 %v201_v43, 16 }
  0x4f   :  { %80 = vst.msk [vmem:[#allocation2] sm:$0xf] %vm79_vm3, %v15_v46  ;;  %v8475_v55 = vrot.slane %v709_v37, 5  ;;  %v640_v60 = vsel %vm8142_vm2, %v635_v35, %v8400_v57  ;;  %v715_v61 = vrot.slane %v713_v38, 4  ;;  %v668_v62 = vor.u32 %v667_v40, %v8428_v24  ;;  %v213_v57 = vld [vmem:[%s13225_s0 + $0x12c] sm:$0xf] }
  0x50   :  { %v671_v63 = vshll.u32 %v197_v49, 16  ;;  %v683_v0 = vrot.slane %v682_v48, 4  ;;  %v733_v1 = vshll.u32 %v8453_v44, 16  ;;  %v763_v4 = vrot.slane %v761_v41, 4  ;;  %85 = vst.msk [vmem:[#allocation2 + $0x14] sm:$0xf] %vm79_vm3, %v20_v9 }
  0x51   :  { %v719_v5 = vshll.u32 %v203_v53, 16  ;;  %v705_v8 = vrot.slane %v703_v59, 5  ;;  %v730_v11 = vor.u32 %v729_v54, %v726_v52  ;;  %v716_v12 = vor.u32 %v715_v61, %v8475_v55  ;;  %83 = vst.msk [vmem:[#allocation2 + $0xc] sm:$0xf] %vm79_vm3, %v18_v10  ;;  %v217_v40 = vld [vmem:[%s13225_s0 + $0x13c] sm:$0xf] }
  0x52   :  { %v669_v13 = vrot.slane %v668_v62, 4  ;;  %v673_v15 = vrot.slane %v671_v63, 5  ;;  %v698_v17 = vsel %vm8142_vm2, %v693_v51, %v8436_v30  ;;  %v767_v20 = vshll.u32 %v209_v3, 16  ;;  %81 = vst.msk [vmem:[#allocation2 + $0x4] sm:$0xf] %vm79_vm3, %v16_v16 }
  0x53   :  { %1067 = vrot.lane.b32.xlu1 %v592_v47, %s8090_s5  ;;  %v664_v47 = vsel %vm8142_vm2, %v659_v23, %v8428_v24  ;;  %v737_v23 = vshrl.u32 %v8453_v44, 16  ;;  %v796_v24 = vshrl.u32 %v213_v57, 16  ;;  %v688_v25 = vsel %vm8142_vm2, %v683_v0, %v8420_v14  ;;  %v23_v44 = vld [vmem:[%s13225_s0 + $0x30] sm:$0xf]  ;;  %v22_v45 = vld [vmem:[%s13225_s0 + $0x28] sm:$0xf] }
  0x54   :  { %1065 = vrot.lane.b32.xlu0 %v578_v36, %s8090_s5  ;;  %1063 = vrot.lane.b32.xlu2 %v568_v58, %s8090_s5  ;;  %v757_v36 = vshll.u32 %v208_v39, 16  ;;  %v700_v58 = vshrl.u32 %v201_v43, 16  ;;  %v8517_v26 = vrot.slane %v733_v1, 5  ;;  %v721_v27 = vrot.slane %v719_v5, 5  ;;  %88 = vst.msk [vmem:[#allocation2 + $0x20] sm:$0xf] %vm79_vm3, %v23_v44 }
  0x55   :  { %v731_v30 = vrot.slane %v730_v11, 4  ;;  %v717_v31 = vrot.slane %v716_v12, 4  ;;  %v674_v19 = vsel %vm8142_vm2, %v669_v13, %v673_v15  ;;  %v8527_v35 = vrot.slane %v767_v20, 5  ;;  %v21_v46 = vld [vmem:[%s13225_s0 + $0x24] sm:$0xf] }
  0x56   :  { %v8486_v2 = vrot.slane %v757_v36, 5  ;;  %v702_v7 = vrot.slane %v700_v58, 4  ;;  %vm1203_vm4 = vcmask 60448   ;;  %v8529_v33 = vrot.slane %v796_v24, 4  ;;  %v8555_v36 = vld [vmem:[%s13225_s0 + $0x130] sm:$0xf] }
  0x57   :  { %v799_v37 = vshll.u32 %v213_v57, 16  ;;  %v739_v43 = vrot.slane %v737_v23, 4  ;;  %v736_v48 = vsel %vm8142_vm2, %v731_v30, %v8517_v26  ;;  %v206_v41 = vld [vmem:[%s13225_s0 + $0x110] sm:$0x1]  ;;  %v833_v51 = vshrl.u32 %v217_v40, 16 }
  0x58   :  { %v764_v18 = vor.u32 %v763_v4, %v8486_v2  ;;  %v706_v28 = vor.u32 %v705_v8, %v702_v7  ;;  %87 = vst.msk [vmem:[#allocation2 + $0x1c] sm:$0xf] %vm79_vm3, %v22_v45  ;;  %v722_v52 = vsel %vm8142_vm2, %v717_v31, %v721_v27  ;;  %v212_v54 = vld [vmem:[%s13225_s0 + $0x128] sm:$0x1]  ;;  %v743_v1 = vshll.u32 %v206_v41, 16 }
  0x59   :  { %v801_v58 = vrot.slane %v799_v37, 5  ;;  %86 = vst.msk [vmem:[#allocation2 + $0x18] sm:$0xf] %vm79_vm3, %v21_v46  ;;  %v740_v0 = vor.u32 %v739_v43, %v8517_v26  ;;  %v835_v5 = vrot.slane %v833_v51, 4  ;;  %v805_v7 = vshll.u32 %v8555_v36, 16 }
  0x5a   :  { %v8525_v34 = vrot.slane %v764_v18, 4  ;;  %v707_v42 = vrot.slane %v706_v28, 4  ;;  %v791_v8 = vshll.u32 %v212_v54, 16  ;;  %v218_v9 = vld [vmem:[%s13225_s0 + $0x140] sm:$0x1]  ;;  %v745_v18 = vrot.slane %v743_v1, 5 }
  0x5b   :  { %1073 = vrot.lane.b32.xlu1 %v626_v6, %s8090_s5  ;;  %v748_v6 = vshrl.u32 %v207_v56, 16  ;;  %v26_v12 = vld [vmem:[%s13225_s0 + $0x40] sm:$0xf]  ;;  %v25_v13 = vld [vmem:[%s13225_s0 + $0x3c] sm:$0xf]  ;;  %v802_v15 = vor.u32 %v801_v58, %v8529_v33  ;;  %v839_v24 = vshll.u32 %v218_v9, 16 }
  0x5c   :  { %1071 = vrot.lane.b32.xlu0 %v616_v21, %s8090_s5  ;;  %1069 = vrot.lane.b32.xlu2 %v602_v29, %s8090_s5  ;;  %v751_v21 = vshll.u32 %v207_v56, 16  ;;  %v211_v29 = vld [vmem:[%s13225_s0 + $0x124] sm:$0xf]  ;;  %v216_v56 = vld [vmem:[%s13225_s0 + $0x138] sm:$0xf]  ;;  %v712_v62 = vsel %vm8142_vm2, %v707_v42, %v8475_v55  ;;  %v770_v55 = vsel %vm8142_vm2, %v8525_v34, %v8527_v35  ;;  %v809_v27 = vshrl.u32 %v8555_v36, 16 }
  0x5d   :  { %v750_v32 = vrot.slane %v748_v6, 4  ;;  %v781_v38 = vshll.u32 %v211_v29, 16  ;;  %v785_v39 = vshrl.u32 %v211_v29, 16  ;;  %v820_v3 = vshrl.u32 %v216_v56, 16  ;;  %91 = vst.msk [vmem:[#allocation2 + $0x2c] sm:$0xf] %vm79_vm3, %v26_v12 }
  0x5e   :  { %v753_v14 = vrot.slane %v751_v21, 5  ;;  %v823_v6 = vshll.u32 %v216_v56, 16  ;;  %v24_v20 = vld [vmem:[%s13225_s0 + $0x34] sm:$0xf]  ;;  %90 = vst.msk [vmem:[#allocation2 + $0x28] sm:$0xf] %vm79_vm3, %v25_v13 }
  0x5f   :  { %v8570_v59 = vrot.slane %v781_v38, 5  ;;  %v787_v63 = vrot.slane %v785_v39, 4  ;;  %v222_v30 = vld [vmem:[%s13225_s0 + $0x150] sm:$0xf]  ;;  %v220_v31 = vld [vmem:[%s13225_s0 + $0x148] sm:$0xf] }
  0x60   :  { %v754_v53 = vor.u32 %v753_v14, %v750_v32  ;;  %v825_v26 = vrot.slane %v823_v6, 5  ;;  %89 = vst.msk [vmem:[#allocation2 + $0x24] sm:$0xf] %vm79_vm3, %v24_v20  ;;  %v807_v32 = vrot.slane %v805_v7, 5  ;;  %v793_v34 = vrot.slane %v791_v8, 5 }
  0x61   :  { %v788_v16 = vor.u32 %v787_v63, %v8570_v59  ;;  %v8621_v33 = vrot.slane %v839_v24, 5  ;;  %v868_v39 = vshrl.u32 %v222_v30, 16  ;;  %v853_v42 = vshll.u32 %v220_v31, 16  ;;  %v29_v46 = vld [vmem:[%s13225_s0 + $0x54] sm:$0xf] }
  0x62   :  { %v755_v57 = vrot.slane %v754_v53, 4  ;;  %v857_v43 = vshrl.u32 %v220_v31, 16  ;;  %v811_v45 = vrot.slane %v809_v27, 4  ;;  %94 = vst.msk [vmem:[#allocation2 + $0x38] sm:$0xf] %vm79_vm3, %v29_v46  ;;  %vm1460_vm5 = vcmask 1042432  }
  0x63   :  { %1079 = vrot.lane.b32.xlu1 %v664_v47, %s8090_s5  ;;  %v210_v47 = vld [vmem:[%s13225_s0 + $0x120] sm:$0xf]  ;;  %v219_v51 = vld [vmem:[%s13225_s0 + $0x144] sm:$0xf]  ;;  %v8651_v53 = vld [vmem:[%s13225_s0 + $0x154] sm:$0xf] }
  0x64   :  { %1077 = vrot.lane.b32.xlu0 %v650_v50, %s8090_s5  ;;  %1075 = vrot.lane.b32.xlu2 %v640_v60, %s8090_s5  ;;  %v829_v50 = vshll.u32 %v217_v40, 16  ;;  %v772_v60 = vshrl.u32 %v210_v47, 16  ;;  %v775_v61 = vshll.u32 %v210_v47, 16  ;;  %v760_v28 = vsel %vm8142_vm2, %v755_v57, %v8486_v2  ;;  %v215_v47 = vld [vmem:[%s13225_s0 + $0x134] sm:$0x1] }
  0x65   :  { %v789_v2 = vrot.slane %v788_v16, 4  ;;  %v871_v40 = vshll.u32 %v222_v30, 16  ;;  %v870_v54 = vrot.slane %v868_v39, 4  ;;  %v815_v63 = vshll.u32 %v215_v47, 16  ;;  %v221_v7 = vld [vmem:[%s13225_s0 + $0x14c] sm:$0x1] }
  0x66   :  { %v8578_v4 = vrot.slane %v829_v50, 5  ;;  %v774_v10 = vrot.slane %v772_v60, 4  ;;  %v777_v11 = vrot.slane %v775_v61, 5  ;;  %v27_v50 = vld [vmem:[%s13225_s0 + $0x48] sm:$0xf]  ;;  %v847_v1 = vshll.u32 %v219_v51, 16 }
  0x67   :  { %v794_v56 = vsel %vm8142_vm2, %v789_v2, %v793_v34  ;;  %v226_v60 = vld [vmem:[%s13225_s0 + $0x160] sm:$0xf]  ;;  %v225_v61 = vld [vmem:[%s13225_s0 + $0x15c] sm:$0xf]  ;;  %92 = vst.msk [vmem:[#allocation2 + $0x30] sm:$0xf] %vm79_vm3, %v27_v50 }
  0x68   :  { %v836_v23 = vor.u32 %v835_v5, %v8578_v4  ;;  %v778_v29 = vor.u32 %v777_v11, %v774_v10  ;;  %v873_v5 = vrot.slane %v871_v40, 5  ;;  %v859_v6 = vrot.slane %v857_v43, 4  ;;  %v32_v11 = vld [vmem:[%s13225_s0 + $0x64] sm:$0xf]  ;;  %v31_v12 = vld [vmem:[%s13225_s0 + $0x60] sm:$0xf] }
  0x69   :  { %v901_v8 = vshll.u32 %v226_v60, 16  ;;  %v905_v9 = vshrl.u32 %v226_v60, 16  ;;  %v895_v10 = vshll.u32 %v225_v61, 16  ;;  %97 = vst.msk [vmem:[#allocation2 + $0x44] sm:$0xf] %vm79_vm3, %v32_v11  ;;  %v863_v24 = vshll.u32 %v221_v7, 16 }
  0x6a   :  { %v8619_v14 = vrot.slane %v836_v23, 4  ;;  %v779_v44 = vrot.slane %v778_v29, 4  ;;  %96 = vst.msk [vmem:[#allocation2 + $0x40] sm:$0xf] %vm79_vm3, %v31_v12  ;;  %v227_v29 = vld [vmem:[%s13225_s0 + $0x164] sm:$0x1] }
  0x6b   :  { %1085 = vrot.lane.b32.xlu1 %v698_v17, %s8090_s5  ;;  %v741_v17 = vrot.slane %v740_v0, 4  ;;  %v844_v0 = vshrl.u32 %v219_v51, 16  ;;  %v8704_v31 = vrot.slane %v901_v8, 5  ;;  %v897_v2 = vrot.slane %v895_v10, 5  ;;  %v229_v43 = vld [vmem:[%s13225_s0 + $0x16c] sm:$0xf] }
  0x6c   :  { %1083 = vrot.lane.b32.xlu0 %v688_v25, %s8090_s5  ;;  %1081 = vrot.lane.b32.xlu2 %v674_v19, %s8090_s5  ;;  %v822_v25 = vrot.slane %v820_v3, 4  ;;  %v803_v19 = vrot.slane %v802_v15, 4  ;;  %v784_v58 = vsel %vm8142_vm2, %v779_v44, %v8570_v59  ;;  %v877_v3 = vshll.u32 %v8651_v53, 16  ;;  %v228_v44 = vld [vmem:[%s13225_s0 + $0x168] sm:$0xf] }
  0x6d   :  { %v746_v35 = vsel %vm8142_vm2, %v741_v17, %v745_v18  ;;  %v8668_v59 = vrot.slane %v853_v42, 5  ;;  %v817_v15 = vrot.slane %v815_v63, 5  ;;  %v846_v16 = vrot.slane %v844_v0, 4  ;;  %v35_v46 = vld [vmem:[%s13225_s0 + $0x78] sm:$0xf] }
  0x6e   :  { %v1020_v49 = vpop.permute.xlu2 %1019  ;;  %v826_v37 = vor.u32 %v825_v26, %v822_v25  ;;  %v808_v36 = vsel %vm8142_vm2, %v803_v19, %v807_v32  ;;  %v849_v17 = vrot.slane %v847_v1, 5  ;;  %v842_v20 = vsel %vm8142_vm2, %v8619_v14, %v8621_v33  ;;  %v30_v26 = vld [vmem:[%s13225_s0 + $0x58] sm:$0xf]  ;;  %v34_v47 = vld [vmem:[%s13225_s0 + $0x70] sm:$0xf] }
  0x6f   :  { %1208 = vst.msk [vmem:[#allocation2 + $0x10] sm:$0xf] %vm1203_vm4, %v1020_v49  ;;  %v860_v23 = vor.u32 %v859_v6, %v8668_v59  ;;  %v8693_v27 = vrot.slane %v877_v3, 5  ;;  %v907_v19 = vrot.slane %v905_v9, 4  ;;  %v929_v60 = vshrl.u32 %v229_v43, 16 }
  0x70   :  { %v850_v14 = vor.u32 %v849_v17, %v846_v16  ;;  %95 = vst.msk [vmem:[#allocation2 + $0x3c] sm:$0xf] %vm79_vm3, %v30_v26  ;;  %v234_v16 = vld [vmem:[%s13225_s0 + $0x180] sm:$0xf]  ;;  %v38_v17 = vld [vmem:[%s13225_s0 + $0x88] sm:$0xf] }
  0x71   :  { %v861_v33 = vrot.slane %v860_v23, 4  ;;  %100 = vst.msk [vmem:[#allocation2 + $0x50] sm:$0xf] %vm79_vm3, %v35_v46  ;;  %v931_v12 = vrot.slane %v929_v60, 4  ;;  %v238_v46 = vld [vmem:[%s13225_s0 + $0x190] sm:$0xf] }
  0x72   :  { %99 = vst.msk [vmem:[#allocation2 + $0x4c] sm:$0xf] %vm79_vm3, %v34_v47  ;;  %v41_v47 = vld [vmem:[%s13225_s0 + $0x9c] sm:$0xf]  ;;  %v997_v60 = vshll.u32 %v238_v46, 16  ;;  %vm1461_vm6 = vcmask 1046532  }
  0x73   :  { %1091 = vrot.lane.b32.xlu1 %v736_v48, %s8090_s5  ;;  %v28_v48 = vld [vmem:[%s13225_s0 + $0x4c] sm:$0xf]  ;;  %103 = vst.msk [vmem:[#allocation2 + $0x5c] sm:$0xf] %vm79_vm3, %v38_v17  ;;  %vm8874_vm7 = vmor %vm1460_vm5, %vm1461_vm6  ;;  %vm1879_vm8 = vcmask 93248   ;;  %vm2265_vm9 = vcmask 126048  }
  0x74   :  { %1089 = vrot.lane.b32.xlu0 %v722_v52, %s8090_s5  ;;  %1087 = vrot.lane.b32.xlu2 %v712_v62, %s8090_s5  ;;  %93 = vst.msk [vmem:[#allocation2 + $0x34] sm:$0xf] %vm79_vm3, %v28_v48  ;;  %v8646_v52 = vrot.slane %v826_v37, 4  ;;  %v812_v62 = vor.u32 %v811_v45, %v807_v32  ;;  %v231_v32 = vld [vmem:[%s13225_s0 + $0x174] sm:$0xf]  ;;  %v865_v37 = vrot.slane %v863_v24, 5  ;;  %v908_v45 = vor.u32 %v907_v19, %v8704_v31 }
  0x75   :  { %v940_v40 = vshrl.u32 %v231_v32, 16  ;;  %v943_v42 = vshll.u32 %v231_v32, 16  ;;  %v964_v19 = vshrl.u32 %v234_v16, 16  ;;  %v967_v32 = vshll.u32 %v234_v16, 16  ;;  %106 = vst.msk [vmem:[#allocation2 + $0x68] sm:$0xf] %vm79_vm3, %v41_v47 }
  0x76   :  { %v1022_v21 = vpop.permute.xlu2 %1021  ;;  %v813_v13 = vrot.slane %v812_v62, 4  ;;  %v832_v30 = vsel %vm8142_vm2, %v8646_v52, %v8578_v4  ;;  %v919_v62 = vshll.u32 %v228_v44, 16  ;;  %v866_v63 = vsel %vm8142_vm2, %v861_v33, %v865_v37 }
  0x77   :  { %1209 = vst.msk [vmem:[#allocation2 + $0x14] sm:$0xf] %vm1203_vm4, %v1022_v21  ;;  %v874_v21 = vor.u32 %v873_v5, %v870_v54  ;;  %v224_v54 = vld [vmem:[%s13225_s0 + $0x158] sm:$0x1]  ;;  %v909_v0 = vrot.slane %v908_v45, 4  ;;  %v942_v7 = vrot.slane %v940_v40, 4 }
  0x78   :  { %v818_v34 = vsel %vm8142_vm2, %v813_v13, %v817_v15  ;;  %v945_v8 = vrot.slane %v943_v42, 5  ;;  %v235_v13 = vld [vmem:[%s13225_s0 + $0x184] sm:$0xf]  ;;  %v921_v15 = vrot.slane %v919_v62, 5  ;;  %vm3386_vm10 = vcmask 158848  }
  0x79   :  { %v875_v4 = vrot.slane %v874_v21, 4  ;;  %v37_v21 = vld [vmem:[%s13225_s0 + $0x84] sm:$0xf]  ;;  %vm4059_vm11 = vcmask 191648   ;;  %vm4445_vm12 = vcmask 224448   ;;  %vm6645_vm13 = vcmask 1041408  }
  0x7a   :  { %102 = vst.msk [vmem:[#allocation2 + $0x58] sm:$0xf] %vm79_vm3, %v37_v21  ;;  %v42_v21 = vld [vmem:[%s13225_s0 + $0xa0] sm:$0xf]  ;;  %vm5566_vm14 = vcmask 257248   ;;  %vm6239_vm15 = vcmask 290048  }
  0x7b   :  { %1097 = vrot.lane.b32.xlu1 %v770_v55, %s8090_s5  ;;  %v892_v55 = vshrl.u32 %v225_v61, 16  ;;  %v880_v52 = vsel %vm8142_vm2, %v875_v4, %v8693_v27  ;;  %v916_v61 = vshrl.u32 %v228_v44, 16  ;;  %v969_v44 = vrot.slane %v967_v32, 5  ;;  %107 = vst.msk [vmem:[#allocation2 + $0x6c] sm:$0xf] %vm79_vm3, %v42_v21 }
  0x7c   :  { %1095 = vrot.lane.b32.xlu0 %v760_v28, %s8090_s5  ;;  %1093 = vrot.lane.b32.xlu2 %v746_v35, %s8090_s5  ;;  %v881_v28 = vshrl.u32 %v8651_v53, 16  ;;  %vm6548_vm0 = vcmask 293888   ;;  %vm6818_vm1 = vcmask 31744  }
  0x7d   :  { %v1016_v38 = vpop.permute.xlu1 %1015  ;;  %v894_v35 = vrot.slane %v892_v55, 4 }
  0x7e   :  { %1206 = vst.msk [vmem:[#allocation2 + $0x8] sm:$0xf] %vm1203_vm4, %v1016_v38  ;;  %v1012_v49 = vpop.permute.xlu0 %1011  ;;  %v1028_v41 = vpop.permute.xlu2 %1027  ;;  %v911_v38 = vshll.u32 %v227_v29, 16  ;;  %v883_v50 = vrot.slane %v881_v28, 4  ;;  %v977_v28 = vshrl.u32 %v235_v13, 16 }
  0x7f   :  { %1204 = vst.msk [vmem:[#allocation2] sm:$0xf] %vm1203_vm4, %v1012_v49  ;;  %v898_v48 = vor.u32 %v897_v2, %v894_v35  ;;  %v851_v49 = vrot.slane %v850_v14, 4  ;;  %v36_v29 = vld [vmem:[%s13225_s0 + $0x7c] sm:$0xf] }
  0x80   :  { %1212 = vst.msk [vmem:[#allocation2 + $0x20] sm:$0xf] %vm1203_vm4, %v1028_v41  ;;  %v8737_v41 = vld [vmem:[%s13225_s0 + $0x170] sm:$0x1]  ;;  %v913_v1 = vrot.slane %v911_v38, 5  ;;  %v884_v6 = vor.u32 %v883_v50, %v8693_v27  ;;  %v973_v27 = vshll.u32 %v235_v13, 16 }
  0x81   :  { %v899_v5 = vrot.slane %v898_v48, 4  ;;  %v856_v3 = vsel %vm8142_vm2, %v851_v49, %v8668_v59  ;;  %v935_v55 = vshll.u32 %v8737_v41, 16  ;;  %v918_v59 = vrot.slane %v916_v61, 4  ;;  %101 = vst.msk [vmem:[#allocation2 + $0x54] sm:$0xf] %vm79_vm3, %v36_v29 }
  0x82   :  { %v914_v24 = vsel %vm8142_vm2, %v909_v0, %v913_v1  ;;  %v236_v38 = vld [vmem:[%s13225_s0 + $0x188] sm:$0x1]  ;;  %v979_v40 = vrot.slane %v977_v28, 4  ;;  %v40_v48 = vld [vmem:[%s13225_s0 + $0x94] sm:$0xf]  ;;  %v1001_v61 = vshrl.u32 %v238_v46, 16 }
  0x83   :  { %1103 = vrot.lane.b32.xlu1 %v808_v36, %s8090_s5  ;;  %v8732_v36 = vld [vmem:[%s13225_s0 + $0x178] sm:$0xf]  ;;  %v904_v35 = vsel %vm8142_vm2, %v899_v5, %v8704_v31  ;;  %v937_v37 = vrot.slane %v935_v55, 5  ;;  %v966_v31 = vrot.slane %v964_v19, 4  ;;  %v983_v49 = vshll.u32 %v236_v38, 16 }
  0x84   :  { %1101 = vrot.lane.b32.xlu0 %v794_v56, %s8090_s5  ;;  %1099 = vrot.lane.b32.xlu2 %v784_v58, %s8090_s5  ;;  %v33_v56 = vld [vmem:[%s13225_s0 + $0x6c] sm:$0xf]  ;;  %v925_v58 = vshll.u32 %v229_v43, 16  ;;  %v949_v9 = vshll.u32 %v8732_v36, 16  ;;  %v953_v14 = vshrl.u32 %v8732_v36, 16  ;;  %v1003_v55 = vrot.slane %v1001_v61, 4 }
  0x85   :  { %v1018_v57 = vpop.permute.xlu1 %1017  ;;  %98 = vst.msk [vmem:[#allocation2 + $0x48] sm:$0xf] %vm79_vm3, %v33_v56  ;;  %v233_v36 = vld [vmem:[%s13225_s0 + $0x17c] sm:$0x1]  ;;  %v237_v56 = vld [vmem:[%s13225_s0 + $0x18c] sm:$0xf] }
  0x86   :  { %1207 = vst.msk [vmem:[#allocation2 + $0xc] sm:$0xf] %vm1203_vm4, %v1018_v57  ;;  %v1014_v18 = vpop.permute.xlu0 %1013  ;;  %v1034_v25 = vpop.permute.xlu2 %1033  ;;  %v887_v57 = vshll.u32 %v224_v54, 16  ;;  %v8762_v11 = vrot.slane %v925_v58, 5  ;;  %v951_v2 = vrot.slane %v949_v9, 5  ;;  %v955_v41 = vrot.slane %v953_v14, 4 }
  0x87   :  { %1205 = vst.msk [vmem:[#allocation2 + $0x4] sm:$0xf] %vm1203_vm4, %v1014_v18  ;;  %v885_v18 = vrot.slane %v884_v6, 4  ;;  %v39_v54 = vld [vmem:[%s13225_s0 + $0x90] sm:$0xf]  ;;  %v970_v58 = vor.u32 %v969_v44, %v966_v31  ;;  %v959_v1 = vshll.u32 %v233_v36, 16 }
  0x88   :  { %1215 = vst.msk [vmem:[#allocation2 + $0x2c] sm:$0xf] %vm1203_vm4, %v1034_v25  ;;  %v946_v25 = vor.u32 %v945_v8, %v942_v7  ;;  %v956_v0 = vor.u32 %v955_v41, %v951_v2  ;;  %v988_v5 = vshrl.u32 %v237_v56, 16  ;;  %v8837_v9 = vrot.slane %v997_v60, 5  ;;  %v46_v14 = vld [vmem:[%s13225_s0 + $0xb8] sm:$0xf] }
  0x89   :  { %105 = vst.msk [vmem:[#allocation2 + $0x64] sm:$0xf] %vm79_vm3, %v40_v48  ;;  %v971_v8 = vrot.slane %v970_v58, 4  ;;  %v961_v13 = vrot.slane %v959_v1, 5  ;;  %v1273_v31 = vld [vmem:[%s13225_s0 + $0x14] sm:$0x1] }
  0x8a   :  { %v947_v33 = vrot.slane %v946_v25, 4  ;;  %104 = vst.msk [vmem:[#allocation2 + $0x60] sm:$0xf] %vm79_vm3, %v39_v54  ;;  %v1475_v47 = vrot.slane %v1273_v31, 5  ;;  %v1271_v48 = vld [vmem:[%s13225_s0 + $0xc] sm:$0xe] }
  0x8b   :  { %1109 = vrot.lane.b32.xlu1 %v842_v20, %s8090_s5  ;;  %v889_v20 = vrot.slane %v887_v57, 5  ;;  %v985_v57 = vrot.slane %v983_v49, 5  ;;  %111 = vst.msk [vmem:[#allocation2 + $0x7c] sm:$0xf] %vm79_vm3, %v46_v14  ;;  %v1270_v49 = vld [vmem:[%s13225_s0 + $0x8] sm:$0x1] }
  0x8c   :  { %1107 = vrot.lane.b32.xlu0 %v832_v30, %s8090_s5  ;;  %1105 = vrot.lane.b32.xlu2 %v818_v34, %s8090_s5  ;;  %v932_v30 = vor.u32 %v931_v12, %v8762_v11  ;;  %v922_v34 = vor.u32 %v921_v15, %v918_v59  ;;  %v957_v12 = vrot.slane %v956_v0, 4  ;;  %v990_v59 = vrot.slane %v988_v5, 4  ;;  %v50_v41 = vld [vmem:[%s13225_s0 + $0xe8] sm:$0xf]  ;;  %v1275_v58 = vld [vmem:[%s13225_s0 + $0x1c] sm:$0xf] }
  0x8d   :  { %v1026_v39 = vpop.permute.xlu1 %1025  ;;  %v890_v4 = vsel %vm8142_vm2, %v885_v18, %v889_v20  ;;  %v239_v18 = vld [vmem:[%s13225_s0 + $0x194] sm:$0x1]  ;;  %115 = vst.msk [vmem:[#allocation2 + $0x8c] sm:$0xf] %vm79_vm3, %v50_v41  ;;  %v48_v61 = vld [vmem:[%s13225_s0 + $0xdc] sm:$0xf] }
  0x8e   :  { %1211 = vst.msk [vmem:[#allocation2 + $0x1c] sm:$0xf] %vm1203_vm4, %v1026_v39  ;;  %v1024_v51 = vpop.permute.xlu0 %1023  ;;  %v1040_v53 = vpop.permute.xlu2 %1039  ;;  %v8800_v39 = vrot.slane %v973_v27, 5  ;;  %v933_v43 = vrot.slane %v932_v30, 4  ;;  %v923_v45 = vrot.slane %v922_v34, 4  ;;  %v1007_v27 = vshll.u32 %v239_v18, 16 }
  0x8f   :  { %1210 = vst.msk [vmem:[#allocation2 + $0x18] sm:$0xf] %vm1203_vm4, %v1024_v51  ;;  %v952_v51 = vsel %vm8142_vm2, %v947_v33, %v951_v2  ;;  %v962_v28 = vsel %vm8142_vm2, %v957_v12, %v961_v13  ;;  %v47_v2 = vld [vmem:[%s13225_s0 + $0xd8] sm:$0xf]  ;;  %v1479_v1 = vrot.slane %v1275_v58, 5 }
  0x90   :  { %1218 = vst.msk [vmem:[#allocation2 + $0x38] sm:$0xf] %vm1203_vm4, %v1040_v53  ;;  %v938_v62 = vsel %vm8142_vm2, %v933_v43, %v937_v37  ;;  %v976_v25 = vsel %vm8142_vm2, %v971_v8, %v8800_v39  ;;  %v1009_v33 = vrot.slane %v1007_v27, 5  ;;  %v45_v43 = vld [vmem:[%s13225_s0 + $0xb4] sm:$0xf] }
  0x91   :  { %112 = vst.msk [vmem:[#allocation2 + $0x80] sm:$0xf] %vm79_vm3, %v47_v2  ;;  %v51_v18 = vld [vmem:[%s13225_s0 + $0xf0] sm:$0xf]  ;;  %v1279_v27 = vld [vmem:[%s13225_s0 + $0x2c] sm:$0x1] }
  0x92   :  { %110 = vst.msk [vmem:[#allocation2 + $0x78] sm:$0xf] %vm79_vm3, %v45_v43  ;;  %v57_v58 = vld [vmem:[%s13225_s0 + $0x114] sm:$0xf] }
  0x93   :  { %1115 = vrot.lane.b32.xlu1 %v880_v52, %s8090_s5  ;;  %v980_v52 = vor.u32 %v979_v40, %v8800_v39  ;;  %113 = vst.msk [vmem:[#allocation2 + $0x84] sm:$0xf] %vm79_vm3, %v48_v61 }
  0x94   :  { %1113 = vrot.lane.b32.xlu0 %v866_v63, %s8090_s5  ;;  %1111 = vrot.lane.b32.xlu2 %v856_v3, %s8090_s5  ;;  %v928_v63 = vsel %vm8142_vm2, %v923_v45, %v8762_v11  ;;  %v991_v3 = vshll.u32 %v237_v56, 16  ;;  %v43_v11 = vld [vmem:[%s13225_s0 + $0xa8] sm:$0xf]  ;;  %116 = vst.msk [vmem:[#allocation2 + $0x90] sm:$0xf] %vm79_vm3, %v51_v18 }
  0x95   :  { %v1032_v10 = vpop.permute.xlu1 %1031  ;;  %v981_v6 = vrot.slane %v980_v52, 4  ;;  %108 = vst.msk [vmem:[#allocation2 + $0x70] sm:$0xf] %vm79_vm3, %v43_v11  ;;  %v1481_v11 = vrot.slane %v1479_v1, 4 }
  0x96   :  { %1214 = vst.msk [vmem:[#allocation2 + $0x28] sm:$0xf] %vm1203_vm4, %v1032_v10  ;;  %v1030_v23 = vpop.permute.xlu0 %1029  ;;  %v1046_v26 = vpop.permute.xlu2 %1045  ;;  %v44_v10 = vld [vmem:[%s13225_s0 + $0xac] sm:$0xf]  ;;  %v993_v15 = vrot.slane %v991_v3, 5 }
  0x97   :  { %1213 = vst.msk [vmem:[#allocation2 + $0x24] sm:$0xf] %vm1203_vm4, %v1030_v23  ;;  %v986_v17 = vsel %vm8142_vm2, %v981_v6, %v985_v57  ;;  %v1268_v23 = vld [vmem:[%s13225_s0] sm:$0xe]  ;;  %v1276_v57 = vld [vmem:[%s13225_s0 + $0x20] sm:$0x1] }
  0x98   :  { %1221 = vst.msk [vmem:[#allocation2 + $0x44] sm:$0xf] %vm1203_vm4, %v1046_v26  ;;  %v1004_v26 = vor.u32 %v1003_v55, %v8837_v9  ;;  %v994_v29 = vor.u32 %v993_v15, %v990_v59  ;;  %v7236_v30 = vrot.slane %v1268_v23, 9  ;;  %v53_v55 = vld [vmem:[%s13225_s0 + $0xfc] sm:$0xf]  ;;  %v1482_v12 = vrot.slane %v1276_v57, 5 }
  0x99   :  { %109 = vst.msk [vmem:[#allocation2 + $0x74] sm:$0xf] %vm79_vm3, %v44_v10  ;;  %v52_v10 = vld [vmem:[%s13225_s0 + $0xf4] sm:$0xf]  ;;  %v61_v57 = vld [vmem:[%s13225_s0 + $0x12c] sm:$0xf] }
  0x9a   :  { %v995_v37 = vrot.slane %v994_v29, 4  ;;  %118 = vst.msk [vmem:[#allocation2 + $0x98] sm:$0xf] %vm79_vm3, %v53_v55  ;;  %v1483_v21 = vsel %vm8874_vm7, %v1481_v11, %v1482_v12  ;;  %v56_v29 = vld [vmem:[%s13225_s0 + $0x10c] sm:$0xf] }
  0x9b   :  { %1121 = vrot.lane.b32.xlu1 %v914_v24, %s8090_s5  ;;  %v1269_v24 = vld [vmem:[%s13225_s0 + $0x4] sm:$0xf]  ;;  %117 = vst.msk [vmem:[#allocation2 + $0x94] sm:$0xf] %vm79_vm3, %v52_v10 }
  0x9c   :  { %1119 = vrot.lane.b32.xlu0 %v904_v35, %s8090_s5  ;;  %1117 = vrot.lane.b32.xlu2 %v890_v4, %s8090_s5  ;;  %v1465_v19 = vrot.slane %v1269_v24, 5  ;;  %v1272_v35 = vld [vmem:[%s13225_s0 + $0x10] sm:$0xf]  ;;  %v1005_v4 = vrot.slane %v1004_v26, 4  ;;  %v1000_v45 = vsel %vm8142_vm2, %v995_v37, %v8837_v9  ;;  %v1281_v9 = vld [vmem:[%s13225_s0 + $0x34] sm:$0xf] }
  0x9d   :  { %v1038_v42 = vpop.permute.xlu1 %1037  ;;  %v1472_v40 = vrot.slane %v1272_v35, 5  ;;  %v1280_v26 = vld [vmem:[%s13225_s0 + $0x30] sm:$0xe]  ;;  %v1489_v35 = vrot.slane %v1279_v27, 5  ;;  %121 = vst.msk [vmem:[#allocation2 + $0xa4] sm:$0xf] %vm79_vm3, %v56_v29 }
  0x9e   :  { %1217 = vst.msk [vmem:[#allocation2 + $0x34] sm:$0xf] %vm1203_vm4, %v1038_v42  ;;  %v1036_v50 = vpop.permute.xlu0 %1035  ;;  %v1052_v53 = vpop.permute.xlu2 %1051  ;;  %v1466_v39 = vsel %vm8874_vm7, %v7236_v30, %v1465_v19  ;;  %v1010_v44 = vsel %vm8142_vm2, %v1005_v4, %v1009_v33  ;;  %v1467_v52 = vrot.slane %v1465_v19, 4  ;;  %v55_v30 = vld [vmem:[%s13225_s0 + $0x108] sm:$0xf]  ;;  %v7240_v19 = vrot.slane %v1280_v26, 9 }
  0x9f   :  { %1216 = vst.msk [vmem:[#allocation2 + $0x30] sm:$0xf] %vm1203_vm4, %v1036_v50  ;;  %v1474_v46 = vrot.slane %v1472_v40, 4  ;;  %v49_v50 = vld [vmem:[%s13225_s0 + $0xe4] sm:$0xf] }
  0xa0   :  { %1224 = vst.msk [vmem:[#allocation2 + $0x50] sm:$0xf] %vm1203_vm4, %v1052_v53  ;;  %v1468_v53 = vrot.slane %v1270_v49, 5  ;;  %v1284_v4 = vld [vmem:[%s13225_s0 + $0x40] sm:$0xf] }
  0xa1   :  { %v1476_v56 = vsel %vm8874_vm7, %v1474_v46, %v1475_v47  ;;  %114 = vst.msk [vmem:[#allocation2 + $0x88] sm:$0xf] %vm79_vm3, %v49_v50  ;;  %v54_v37 = vld [vmem:[%s13225_s0 + $0x100] sm:$0xf]  ;;  %v1283_v46 = vld [vmem:[%s13225_s0 + $0x3c] sm:$0xe] }
  0xa2   :  { %v1469_v5 = vsel %vm8874_vm7, %v1467_v52, %v1468_v53  ;;  %120 = vst.msk [vmem:[#allocation2 + $0xa0] sm:$0xf] %vm79_vm3, %v55_v30  ;;  %v59_v49 = vld [vmem:[%s13225_s0 + $0x120] sm:$0xf]  ;;  %v1293_v11 = vld [vmem:[%s13225_s0 + $0x64] sm:$0xf] }
  0xa3   :  { %1127 = vrot.lane.b32.xlu1 %v952_v51, %s8090_s5  ;;  %v7237_v51 = vrot.slane %v1271_v48, 9  ;;  %119 = vst.msk [vmem:[#allocation2 + $0x9c] sm:$0xf] %vm79_vm3, %v54_v37  ;;  %v1290_v48 = vld [vmem:[%s13225_s0 + $0x58] sm:$0xf] }
  0xa4   :  { %1125 = vrot.lane.b32.xlu0 %v938_v62, %s8090_s5  ;;  %1123 = vrot.lane.b32.xlu2 %v928_v63, %s8090_s5  ;;  %v1277_v62 = vld [vmem:[%s13225_s0 + $0x24] sm:$0xe]  ;;  %v1278_v63 = vld [vmem:[%s13225_s0 + $0x28] sm:$0xf]  ;;  %124 = vst.msk [vmem:[#allocation2 + $0xb0] sm:$0xf] %vm79_vm3, %v59_v49 }
  0xa5   :  { %v1044_v7 = vpop.permute.xlu1 %1043  ;;  %v1473_v0 = vsel %vm8874_vm7, %v7237_v51, %v1472_v40  ;;  %v7239_v3 = vrot.slane %v1277_v62, 9  ;;  %v1486_v6 = vrot.slane %v1278_v63, 5  ;;  %v7241_v51 = vrot.slane %v1283_v46, 9  ;;  %122 = vst.msk [vmem:[#allocation2 + $0xa8] sm:$0xf] %vm79_vm3, %v57_v58 }
  0xa6   :  { %1220 = vst.msk [vmem:[#allocation2 + $0x40] sm:$0xf] %vm1203_vm4, %v1044_v7  ;;  %v1042_v16 = vpop.permute.xlu0 %1041  ;;  %v1058_v20 = vpop.permute.xlu2 %1057  ;;  %v1274_v7 = vld [vmem:[%s13225_s0 + $0x18] sm:$0xe]  ;;  %v1299_v26 = vld [vmem:[%s13225_s0 + $0x7c] sm:$0xf] }
  0xa7   :  { %1219 = vst.msk [vmem:[#allocation2 + $0x3c] sm:$0xf] %vm1203_vm4, %v1042_v16  ;;  %v7238_v13 = vrot.slane %v1274_v7, 9  ;;  %v1487_v15 = vsel %vm8874_vm7, %v7239_v3, %v1486_v6  ;;  %v1493_v16 = vrot.slane %v1281_v9, 5  ;;  %v65_v27 = vld [vmem:[%s13225_s0 + $0x144] sm:$0xf] }
  0xa8   :  { %1227 = vst.msk [vmem:[#allocation2 + $0x5c] sm:$0xf] %vm1203_vm4, %v1058_v20  ;;  %v1282_v20 = vld [vmem:[%s13225_s0 + $0x38] sm:$0x1] }
  0xa9   :  { %v1480_v23 = vsel %vm8874_vm7, %v7238_v13, %v1479_v1  ;;  %v1495_v24 = vrot.slane %v1493_v16, 4  ;;  %v1494_v40 = vsel %vm8874_vm7, %v7240_v19, %v1493_v16  ;;  %v1289_v1 = vld [vmem:[%s13225_s0 + $0x54] sm:$0xe]  ;;  %126 = vst.msk [vmem:[#allocation2 + $0xb8] sm:$0xf] %vm79_vm3, %v61_v57 }
  0xaa   :  { %v7243_v7 = vrot.slane %v1289_v1, 9  ;;  %v60_v13 = vld [vmem:[%s13225_s0 + $0x124] sm:$0xf]  ;;  %130 = vst.msk [vmem:[#allocation2 + $0xc8] sm:$0xf] %vm79_vm3, %v65_v27 }
  0xab   :  { %1133 = vrot.lane.b32.xlu1 %v986_v17, %s8090_s5  ;;  %125 = vst.msk [vmem:[#allocation2 + $0xb4] sm:$0xf] %vm79_vm3, %v60_v13  ;;  %v1308_v1 = vld [vmem:[%s13225_s0 + $0xa0] sm:$0xf] }
  0xac   :  { %1131 = vrot.lane.b32.xlu0 %v976_v25, %s8090_s5  ;;  %1129 = vrot.lane.b32.xlu2 %v962_v28, %s8090_s5  ;;  %v1496_v25 = vrot.slane %v1282_v20, 5 }
  0xad   :  { %v1050_v32 = vpop.permute.xlu1 %1049 }
  0xae   :  { %1223 = vst.msk [vmem:[#allocation2 + $0x4c] sm:$0xf] %vm1203_vm4, %v1050_v32  ;;  %v1048_v38 = vpop.permute.xlu0 %1047  ;;  %v1064_v42 = vpop.permute.xlu2 %1063  ;;  %v1488_v32 = vrot.slane %v1486_v6, 4  ;;  %v1497_v14 = vsel %vm8874_vm7, %v1495_v24, %v1496_v25  ;;  %v62_v6 = vld [vmem:[%s13225_s0 + $0x130] sm:$0xf] }
  0xaf   :  { %1222 = vst.msk [vmem:[#allocation2 + $0x48] sm:$0xf] %vm1203_vm4, %v1048_v38  ;;  %v1286_v38 = vld [vmem:[%s13225_s0 + $0x48] sm:$0xe]  ;;  %v1292_v24 = vld [vmem:[%s13225_s0 + $0x60] sm:$0xe] }
  0xb0   :  { %1230 = vst.msk [vmem:[#allocation2 + $0x68] sm:$0xf] %vm1203_vm4, %v1064_v42  ;;  %v1500_v42 = vrot.slane %v1284_v4, 5  ;;  %v1490_v43 = vsel %vm8874_vm7, %v1488_v32, %v1489_v35  ;;  %v7242_v31 = vrot.slane %v1286_v38, 9  ;;  %v7244_v19 = vrot.slane %v1292_v24, 9 }
  0xb1   :  { %127 = vst.msk [vmem:[#allocation2 + $0xbc] sm:$0xf] %vm79_vm3, %v62_v6  ;;  %v63_v4 = vld [vmem:[%s13225_s0 + $0x138] sm:$0xf] }
  0xb2   :  { %v1502_v41 = vrot.slane %v1500_v42, 4  ;;  %v1501_v62 = vsel %vm8874_vm7, %v7241_v51, %v1500_v42  ;;  %128 = vst.msk [vmem:[#allocation2 + $0xc0] sm:$0xf] %vm79_vm3, %v63_v4  ;;  %v1298_v42 = vld [vmem:[%s13225_s0 + $0x78] sm:$0xe] }
  0xb3   :  { %1687 = vrot.lane.b32.xlu1 %v1466_v39, %s8091_s18  ;;  %v1287_v39 = vld [vmem:[%s13225_s0 + $0x4c] sm:$0xf]  ;;  %v7246_v46 = vrot.slane %v1298_v42, 9  ;;  %v66_v51 = vld [vmem:[%s13225_s0 + $0x148] sm:$0xf] }
  0xb4   :  { %1137 = vrot.lane.b32.xlu0 %v1010_v44, %s8090_s5  ;;  %1135 = vrot.lane.b32.xlu2 %v1000_v45, %s8090_s5  ;;  %v1507_v44 = vrot.slane %v1287_v39, 5  ;;  %v1285_v45 = vld [vmem:[%s13225_s0 + $0x44] sm:$0x1]  ;;  %131 = vst.msk [vmem:[#allocation2 + $0xcc] sm:$0xf] %vm79_vm3, %v66_v51 }
  0xb5   :  { %v1056_v36 = vpop.permute.xlu1 %1055  ;;  %v1503_v50 = vrot.slane %v1285_v45, 5  ;;  %v67_v45 = vld [vmem:[%s13225_s0 + $0x150] sm:$0xf]  ;;  %v1317_v42 = vld [vmem:[%s13225_s0 + $0xdc] sm:$0xf] }
  0xb6   :  { %1226 = vst.msk [vmem:[#allocation2 + $0x58] sm:$0xf] %vm1203_vm4, %v1056_v36  ;;  %v1054_v54 = vpop.permute.xlu0 %1053  ;;  %v1070_v60 = vpop.permute.xlu2 %1069  ;;  %v58_v36 = vld [vmem:[%s13225_s0 + $0x118] sm:$0xf]  ;;  %v1508_v53 = vsel %vm8874_vm7, %v7242_v31, %v1507_v44 }
  0xb7   :  { %1225 = vst.msk [vmem:[#allocation2 + $0x54] sm:$0xf] %vm1203_vm4, %v1054_v54  ;;  %v1514_v54 = vrot.slane %v1290_v48, 5  ;;  %v1504_v61 = vsel %vm8874_vm7, %v1502_v41, %v1503_v50  ;;  %v1302_v41 = vld [vmem:[%s13225_s0 + $0x88] sm:$0xf] }
  0xb8   :  { %1233 = vst.msk [vmem:[#allocation2 + $0x74] sm:$0xf] %vm1203_vm4, %v1070_v60  ;;  %v1291_v60 = vld [vmem:[%s13225_s0 + $0x5c] sm:$0x1] }
  0xb9   :  { %123 = vst.msk [vmem:[#allocation2 + $0xac] sm:$0xf] %vm79_vm3, %v58_v36  ;;  %v1516_v63 = vrot.slane %v1514_v54, 4  ;;  %v1515_v16 = vsel %vm8874_vm7, %v7243_v7, %v1514_v54 }
  0xba   :  { %132 = vst.msk [vmem:[#allocation2 + $0xd0] sm:$0xf] %vm79_vm3, %v67_v45 }
  0xbb   :  { %1693 = vrot.lane.b32.xlu1 %v1476_v56, %s8091_s18 }
  0xbc   :  { %1691 = vrot.lane.b32.xlu0 %v1473_v0, %s8091_s18  ;;  %1689 = vrot.lane.b32.xlu2 %v1469_v5, %s8091_s18  ;;  %v1517_v0 = vrot.slane %v1291_v60, 5  ;;  %v1288_v5 = vld [vmem:[%s13225_s0 + $0x50] sm:$0x1] }
  0xbd   :  { %v1062_v8 = vpop.permute.xlu1 %1061  ;;  %v1510_v9 = vrot.slane %v1288_v5, 5  ;;  %v71_v5 = vld [vmem:[%s13225_s0 + $0x168] sm:$0xf] }
  0xbe   :  { %1229 = vst.msk [vmem:[#allocation2 + $0x64] sm:$0xf] %vm1203_vm4, %v1062_v8  ;;  %v1060_v59 = vpop.permute.xlu0 %1059  ;;  %v1076_v17 = vpop.permute.xlu2 %1075  ;;  %v1509_v8 = vrot.slane %v1507_v44, 4  ;;  %v1518_v10 = vsel %vm8874_vm7, %v1516_v63, %v1517_v0  ;;  %v68_v44 = vld [vmem:[%s13225_s0 + $0x154] sm:$0xf] }
  0xbf   :  { %1228 = vst.msk [vmem:[#allocation2 + $0x60] sm:$0xf] %vm1203_vm4, %v1060_v59  ;;  %v1295_v59 = vld [vmem:[%s13225_s0 + $0x6c] sm:$0xe]  ;;  %v1301_v63 = vld [vmem:[%s13225_s0 + $0x84] sm:$0xe] }
  0xc0   :  { %1236 = vst.msk [vmem:[#allocation2 + $0x80] sm:$0xf] %vm1203_vm4, %v1076_v17  ;;  %v1521_v17 = vrot.slane %v1293_v11, 5  ;;  %v1511_v18 = vsel %vm8874_vm7, %v1509_v8, %v1510_v9  ;;  %v7245_v20 = vrot.slane %v1295_v59, 9  ;;  %v7247_v7 = vrot.slane %v1301_v63, 9 }
  0xc1   :  { %133 = vst.msk [vmem:[#allocation2 + $0xd4] sm:$0xf] %vm79_vm3, %v68_v44  ;;  %v69_v11 = vld [vmem:[%s13225_s0 + $0x15c] sm:$0xf] }
  0xc2   :  { %v1523_v29 = vrot.slane %v1521_v17, 4  ;;  %v1522_v38 = vsel %vm8874_vm7, %v7244_v19, %v1521_v17  ;;  %136 = vst.msk [vmem:[#allocation2 + $0xe0] sm:$0xf] %vm79_vm3, %v71_v5  ;;  %v1307_v17 = vld [vmem:[%s13225_s0 + $0x9c] sm:$0xe] }
  0xc3   :  { %1699 = vrot.lane.b32.xlu1 %v1487_v15, %s8091_s18  ;;  %v1296_v15 = vld [vmem:[%s13225_s0 + $0x70] sm:$0xf]  ;;  %134 = vst.msk [vmem:[#allocation2 + $0xd8] sm:$0xf] %vm79_vm3, %v69_v11  ;;  %v7249_v24 = vrot.slane %v1307_v17, 9 }
  0xc4   :  { %1697 = vrot.lane.b32.xlu0 %v1483_v21, %s8091_s18  ;;  %1695 = vrot.lane.b32.xlu2 %v1480_v23, %s8091_s18  ;;  %v1528_v21 = vrot.slane %v1296_v15, 5  ;;  %v1294_v23 = vld [vmem:[%s13225_s0 + $0x68] sm:$0x1]  ;;  %v72_v19 = vld [vmem:[%s13225_s0 + $0x16c] sm:$0xf] }
  0xc5   :  { %v1068_v28 = vpop.permute.xlu1 %1067  ;;  %v1524_v30 = vrot.slane %v1294_v23, 5  ;;  %v73_v23 = vld [vmem:[%s13225_s0 + $0x174] sm:$0xf]  ;;  %137 = vst.msk [vmem:[#allocation2 + $0xe4] sm:$0xf] %vm79_vm3, %v72_v19 }
  0xc6   :  { %1232 = vst.msk [vmem:[#allocation2 + $0x70] sm:$0xf] %vm1203_vm4, %v1068_v28  ;;  %v1066_v2 = vpop.permute.xlu0 %1065  ;;  %v1082_v33 = vpop.permute.xlu2 %1081  ;;  %v64_v28 = vld [vmem:[%s13225_s0 + $0x13c] sm:$0xf]  ;;  %v1529_v35 = vsel %vm8874_vm7, %v7245_v20, %v1528_v21  ;;  %v1324_v19 = vld [vmem:[%s13225_s0 + $0xf8] sm:$0x1] }
  0xc7   :  { %1231 = vst.msk [vmem:[#allocation2 + $0x6c] sm:$0xf] %vm1203_vm4, %v1066_v2  ;;  %v1535_v2 = vrot.slane %v1299_v26, 5  ;;  %v1525_v37 = vsel %vm8874_vm7, %v1523_v29, %v1524_v30  ;;  %v1311_v29 = vld [vmem:[%s13225_s0 + $0xac] sm:$0xf] }
  0xc8   :  { %1239 = vst.msk [vmem:[#allocation2 + $0x8c] sm:$0xf] %vm1203_vm4, %v1082_v33  ;;  %v1300_v33 = vld [vmem:[%s13225_s0 + $0x80] sm:$0x1] }
  0xc9   :  { %129 = vst.msk [vmem:[#allocation2 + $0xc4] sm:$0xf] %vm79_vm3, %v64_v28  ;;  %v1537_v39 = vrot.slane %v1535_v2, 4  ;;  %v1536_v54 = vsel %vm8874_vm7, %v7246_v46, %v1535_v2 }
  0xca   :  { %138 = vst.msk [vmem:[#allocation2 + $0xe8] sm:$0xf] %vm79_vm3, %v73_v23 }
  0xcb   :  { %1705 = vrot.lane.b32.xlu1 %v1497_v14, %s8091_s18 }
  0xcc   :  { %1703 = vrot.lane.b32.xlu0 %v1494_v40, %s8091_s18  ;;  %1701 = vrot.lane.b32.xlu2 %v1490_v43, %s8091_s18  ;;  %v1538_v40 = vrot.slane %v1300_v33, 5  ;;  %v1297_v43 = vld [vmem:[%s13225_s0 + $0x74] sm:$0x1] }
  0xcd   :  { %v1074_v47 = vpop.permute.xlu1 %1073  ;;  %v1531_v48 = vrot.slane %v1297_v43, 5  ;;  %v77_v43 = vld [vmem:[%s13225_s0 + $0x18c] sm:$0xf] }
  0xce   :  { %1235 = vst.msk [vmem:[#allocation2 + $0x7c] sm:$0xf] %vm1203_vm4, %v1074_v47  ;;  %v1072_v52 = vpop.permute.xlu0 %1071  ;;  %v1088_v56 = vpop.permute.xlu2 %1087  ;;  %v1530_v47 = vrot.slane %v1528_v21, 4  ;;  %v1539_v36 = vsel %vm8874_vm7, %v1537_v39, %v1538_v40  ;;  %v74_v21 = vld [vmem:[%s13225_s0 + $0x178] sm:$0xf] }
  0xcf   :  { %1234 = vst.msk [vmem:[#allocation2 + $0x78] sm:$0xf] %vm1203_vm4, %v1072_v52  ;;  %v1304_v52 = vld [vmem:[%s13225_s0 + $0x90] sm:$0xe]  ;;  %v1310_v39 = vld [vmem:[%s13225_s0 + $0xa8] sm:$0xe] }
  0xd0   :  { %1242 = vst.msk [vmem:[#allocation2 + $0x98] sm:$0xf] %vm1203_vm4, %v1088_v56  ;;  %v1542_v56 = vrot.slane %v1302_v41, 5  ;;  %v1532_v58 = vsel %vm8874_vm7, %v1530_v47, %v1531_v48  ;;  %v7248_v60 = vrot.slane %v1304_v52, 9  ;;  %v7250_v46 = vrot.slane %v1310_v39, 9 }
  0xd1   :  { %139 = vst.msk [vmem:[#allocation2 + $0xec] sm:$0xf] %vm79_vm3, %v74_v21  ;;  %v75_v41 = vld [vmem:[%s13225_s0 + $0x180] sm:$0xf] }
  0xd2   :  { %v1544_v6 = vrot.slane %v1542_v56, 4  ;;  %v1543_v59 = vsel %vm8874_vm7, %v7247_v7, %v1542_v56  ;;  %142 = vst.msk [vmem:[#allocation2 + $0xf8] sm:$0xf] %vm79_vm3, %v77_v43  ;;  %v1316_v56 = vld [vmem:[%s13225_s0 + $0xd8] sm:$0xe] }
  0xd3   :  { %1711 = vrot.lane.b32.xlu1 %v1508_v53, %s8091_s18  ;;  %v1305_v53 = vld [vmem:[%s13225_s0 + $0x94] sm:$0xf]  ;;  %140 = vst.msk [vmem:[#allocation2 + $0xf0] sm:$0xf] %vm79_vm3, %v75_v41 }
  0xd4   :  { %1709 = vrot.lane.b32.xlu0 %v1504_v61, %s8091_s18  ;;  %1707 = vrot.lane.b32.xlu2 %v1501_v62, %s8091_s18  ;;  %v1549_v61 = vrot.slane %v1305_v53, 5  ;;  %v1303_v62 = vld [vmem:[%s13225_s0 + $0x8c] sm:$0x1]  ;;  %v1323_v7 = vld [vmem:[%s13225_s0 + $0xf4] sm:$0xf] }
  0xd5   :  { %v1080_v3 = vpop.permute.xlu1 %1079  ;;  %v1545_v57 = vrot.slane %v1303_v62, 5  ;;  %v1591_v11 = vrot.slane %v1323_v7, 5 }
  0xd6   :  { %1238 = vst.msk [vmem:[#allocation2 + $0x88] sm:$0xf] %vm1203_vm4, %v1080_v3  ;;  %v1078_v55 = vpop.permute.xlu0 %1077  ;;  %v1094_v12 = vpop.permute.xlu2 %1093  ;;  %v70_v3 = vld [vmem:[%s13225_s0 + $0x160] sm:$0xf]  ;;  %v1550_v9 = vsel %vm8874_vm7, %v7248_v60, %v1549_v61 }
  0xd7   :  { %1237 = vst.msk [vmem:[#allocation2 + $0x84] sm:$0xf] %vm1203_vm4, %v1078_v55  ;;  %v1556_v55 = vrot.slane %v1308_v1, 5  ;;  %v1546_v13 = vsel %vm8874_vm7, %v1544_v6, %v1545_v57  ;;  %v1322_v57 = vld [vmem:[%s13225_s0 + $0xf0] sm:$0xe] }
  0xd8   :  { %1245 = vst.msk [vmem:[#allocation2 + $0xa4] sm:$0xf] %vm1203_vm4, %v1094_v12  ;;  %v1309_v12 = vld [vmem:[%s13225_s0 + $0xa4] sm:$0x1] }
  0xd9   :  { %135 = vst.msk [vmem:[#allocation2 + $0xdc] sm:$0xf] %vm79_vm3, %v70_v3  ;;  %v1558_v15 = vrot.slane %v1556_v55, 4  ;;  %v1557_v2 = vsel %vm8874_vm7, %v7249_v24, %v1556_v55  ;;  %v1320_v3 = vld [vmem:[%s13225_s0 + $0xe8] sm:$0xf] }
  0xdb   :  { %1717 = vrot.lane.b32.xlu1 %v1518_v10, %s8091_s18 }
  0xdc   :  { %1715 = vrot.lane.b32.xlu0 %v1515_v16, %s8091_s18  ;;  %1713 = vrot.lane.b32.xlu2 %v1511_v18, %s8091_s18  ;;  %v1559_v16 = vrot.slane %v1309_v12, 5  ;;  %v1306_v18 = vld [vmem:[%s13225_s0 + $0x98] sm:$0x1]  ;;  %v1321_v12 = vld [vmem:[%s13225_s0 + $0xec] sm:$0x1] }
  0xdd   :  { %v1086_v25 = vpop.permute.xlu1 %1085  ;;  %v1552_v26 = vrot.slane %v1306_v18, 5  ;;  %v1587_v17 = vrot.slane %v1321_v12, 5 }
  0xde   :  { %1241 = vst.msk [vmem:[#allocation2 + $0x94] sm:$0xf] %vm1203_vm4, %v1086_v25  ;;  %v1084_v32 = vpop.permute.xlu0 %1083  ;;  %v1100_v14 = vpop.permute.xlu2 %1099  ;;  %v1551_v25 = vrot.slane %v1549_v61, 4  ;;  %v1560_v28 = vsel %vm8874_vm7, %v1558_v15, %v1559_v16  ;;  %v7252_v61 = vrot.slane %v1316_v56, 9  ;;  %v1326_v15 = vld [vmem:[%s13225_s0 + $0x100] sm:$0xf] }
  0xdf   :  { %1240 = vst.msk [vmem:[#allocation2 + $0x90] sm:$0xf] %vm1203_vm4, %v1084_v32  ;;  %v1313_v32 = vld [vmem:[%s13225_s0 + $0xb4] sm:$0xe]  ;;  %v1598_v23 = vrot.slane %v1326_v15, 5 }
  0xe0   :  { %1248 = vst.msk [vmem:[#allocation2 + $0xb0] sm:$0xf] %vm1203_vm4, %v1100_v14  ;;  %v1563_v14 = vrot.slane %v1311_v29, 5  ;;  %v1553_v4 = vsel %vm8874_vm7, %v1551_v25, %v1552_v26  ;;  %v7251_v33 = vrot.slane %v1313_v32, 9  ;;  %v1327_v25 = vld [vmem:[%s13225_s0 + $0x104] sm:$0x1] }
  0xe1   :  { %v1601_v29 = vrot.slane %v1327_v25, 5  ;;  %v1336_v56 = vld [vmem:[%s13225_s0 + $0x128] sm:$0x1] }
  0xe2   :  { %v1565_v44 = vrot.slane %v1563_v14, 4  ;;  %v1564_v52 = vsel %vm8874_vm7, %v7250_v46, %v1563_v14  ;;  %v1594_v14 = vrot.slane %v1324_v19, 5  ;;  %v1330_v46 = vld [vmem:[%s13225_s0 + $0x110] sm:$0x1] }
  0xe3   :  { %1723 = vrot.lane.b32.xlu1 %v1529_v35, %s8091_s18  ;;  %v1314_v35 = vld [vmem:[%s13225_s0 + $0xb8] sm:$0xf]  ;;  %v1608_v41 = vrot.slane %v1330_v46, 5 }
  0xe4   :  { %1721 = vrot.lane.b32.xlu0 %v1525_v37, %s8091_s18  ;;  %1719 = vrot.lane.b32.xlu2 %v1522_v38, %s8091_s18  ;;  %v1570_v37 = vrot.slane %v1314_v35, 5  ;;  %v1312_v38 = vld [vmem:[%s13225_s0 + $0xb0] sm:$0x1] }
  0xe5   :  { %v1092_v31 = vpop.permute.xlu1 %1091  ;;  %v1566_v45 = vrot.slane %v1312_v38, 5  ;;  %v1329_v38 = vld [vmem:[%s13225_s0 + $0x10c] sm:$0xf] }
  0xe6   :  { %1244 = vst.msk [vmem:[#allocation2 + $0xa0] sm:$0xf] %vm1203_vm4, %v1092_v31  ;;  %v1090_v49 = vpop.permute.xlu0 %1089  ;;  %v1106_v50 = vpop.permute.xlu2 %1105  ;;  %v76_v31 = vld [vmem:[%s13225_s0 + $0x184] sm:$0xf]  ;;  %v1571_v48 = vsel %vm8874_vm7, %v7251_v33, %v1570_v37  ;;  %v1572_v62 = vrot.slane %v1570_v37, 4  ;;  %v1605_v43 = vrot.slane %v1329_v38, 5 }
  0xe7   :  { %1243 = vst.msk [vmem:[#allocation2 + $0x9c] sm:$0xf] %vm1203_vm4, %v1090_v49  ;;  %v1577_v49 = vrot.slane %v1317_v42, 5  ;;  %v1567_v51 = vsel %vm8874_vm7, %v1565_v44, %v1566_v45  ;;  %v1331_v37 = vld [vmem:[%s13225_s0 + $0x114] sm:$0xe] }
  0xe8   :  { %1251 = vst.msk [vmem:[#allocation2 + $0xbc] sm:$0xf] %vm1203_vm4, %v1106_v50  ;;  %v1318_v50 = vld [vmem:[%s13225_s0 + $0xe0] sm:$0x1]  ;;  %v7257_v44 = vrot.slane %v1331_v37, 9 }
  0xe9   :  { %141 = vst.msk [vmem:[#allocation2 + $0xf4] sm:$0xf] %vm79_vm3, %v76_v31  ;;  %v1579_v53 = vrot.slane %v1577_v49, 4 }
  0xeb   :  { %1729 = vrot.lane.b32.xlu1 %v1539_v36, %s8091_s18 }
  0xec   :  { %1727 = vrot.lane.b32.xlu0 %v1536_v54, %s8091_s18  ;;  %1725 = vrot.lane.b32.xlu2 %v1532_v58, %s8091_s18  ;;  %v1580_v54 = vrot.slane %v1318_v50, 5  ;;  %v1315_v58 = vld [vmem:[%s13225_s0 + $0xbc] sm:$0x1] }
  0xed   :  { %v1098_v0 = vpop.permute.xlu1 %1097  ;;  %v1573_v63 = vrot.slane %v1315_v58, 5 }
  0xee   :  { %1247 = vst.msk [vmem:[#allocation2 + $0xac] sm:$0xf] %vm1203_vm4, %v1098_v0  ;;  %v1096_v8 = vpop.permute.xlu0 %1095  ;;  %v1112_v10 = vpop.permute.xlu2 %1111  ;;  %v78_v0 = vld [vmem:[%s13225_s0 + $0x190] sm:$0xf]  ;;  %v1581_v5 = vsel %vm8874_vm7, %v1579_v53, %v1580_v54 }
  0xef   :  { %1246 = vst.msk [vmem:[#allocation2 + $0xa8] sm:$0xf] %vm1203_vm4, %v1096_v8  ;;  %v1578_v8 = vsel %vm8874_vm7, %v7252_v61, %v1577_v49  ;;  %v1574_v55 = vsel %vm8874_vm7, %v1572_v62, %v1573_v63  ;;  %v1335_v49 = vld [vmem:[%s13225_s0 + $0x124] sm:$0xf]  ;;  %v1622_v62 = vrot.slane %v1336_v56, 5 }
  0xf0   :  { %1254 = vst.msk [vmem:[#allocation2 + $0xc8] sm:$0xf] %vm1203_vm4, %v1112_v10  ;;  %v7254_v10 = vrot.slane %v1322_v57, 9  ;;  %v1619_v53 = vrot.slane %v1335_v49, 5  ;;  %v1334_v63 = vld [vmem:[%s13225_s0 + $0x120] sm:$0xe] }
  0xf1   :  { %143 = vst.msk [vmem:[#allocation2 + $0xfc] sm:$0xf] %vm79_vm3, %v78_v0  ;;  %v1333_v0 = vld [vmem:[%s13225_s0 + $0x11c] sm:$0x1] }
  0xf2   :  { %v1592_v21 = vsel %vm8874_vm7, %v7254_v10, %v1591_v11  ;;  %v1621_v61 = vrot.slane %v1619_v53, 4  ;;  %v1341_v10 = vld [vmem:[%s13225_s0 + $0x13c] sm:$0xf] }
  0xf3   :  { %1735 = vrot.lane.b32.xlu1 %v1550_v9, %s8091_s18  ;;  %v1584_v9 = vrot.slane %v1320_v3, 5  ;;  %v1633_v15 = vrot.slane %v1341_v10, 5 }
  0xf4   :  { %1733 = vrot.lane.b32.xlu0 %v1546_v13, %s8091_s18  ;;  %1731 = vrot.lane.b32.xlu2 %v1543_v59, %s8091_s18  ;;  %v1319_v13 = vld [vmem:[%s13225_s0 + $0xe4] sm:$0xe]  ;;  %v1623_v7 = vsel %vm8874_vm7, %v1621_v61, %v1622_v62  ;;  %v1354_v62 = vld [vmem:[%s13225_s0 + $0x170] sm:$0x1] }
  0xf5   :  { %v1104_v20 = vpop.permute.xlu1 %1103  ;;  %v1586_v16 = vrot.slane %v1584_v9, 4  ;;  %v7253_v18 = vrot.slane %v1319_v13, 9  ;;  %v1635_v37 = vrot.slane %v1633_v15, 4 }
  0xf6   :  { %1250 = vst.msk [vmem:[#allocation2 + $0xb8] sm:$0xf] %vm1203_vm4, %v1104_v20  ;;  %v1102_v27 = vpop.permute.xlu0 %1101  ;;  %v1118_v30 = vpop.permute.xlu2 %1117 }
  0xf7   :  { %1249 = vst.msk [vmem:[#allocation2 + $0xb4] sm:$0xf] %vm1203_vm4, %v1102_v27  ;;  %v1588_v26 = vsel %vm8874_vm7, %v1586_v16, %v1587_v17  ;;  %v1585_v27 = vsel %vm8874_vm7, %v7253_v18, %v1584_v9  ;;  %v1339_v16 = vld [vmem:[%s13225_s0 + $0x134] sm:$0x1]  ;;  %v1337_v17 = vld [vmem:[%s13225_s0 + $0x12c] sm:$0xe] }
  0xf8   :  { %1257 = vst.msk [vmem:[#allocation2 + $0xd4] sm:$0xf] %vm1203_vm4, %v1118_v30  ;;  %v1325_v30 = vld [vmem:[%s13225_s0 + $0xfc] sm:$0xe] }
  0xf9   :  { %v7255_v35 = vrot.slane %v1325_v30, 9 }
  0xfb   :  { %1741 = vrot.lane.b32.xlu1 %v1560_v28, %s8091_s18  ;;  %v1600_v28 = vrot.slane %v1598_v23, 4  ;;  %v1599_v42 = vsel %vm8874_vm7, %v7255_v35, %v1598_v23  ;;  %v1629_v23 = vrot.slane %v1339_v16, 5 }
  0xfc   :  { %1739 = vrot.lane.b32.xlu0 %v1557_v2, %s8091_s18  ;;  %1737 = vrot.lane.b32.xlu2 %v1553_v4, %s8091_s18  ;;  %v1593_v2 = vrot.slane %v1591_v11, 4 }
  0xfd   :  { %v1110_v40 = vpop.permute.xlu1 %1109  ;;  %v1602_v33 = vsel %vm8874_vm7, %v1600_v28, %v1601_v29  ;;  %v1345_v29 = vld [vmem:[%s13225_s0 + $0x14c] sm:$0x1] }
  0xfe   :  { %1253 = vst.msk [vmem:[#allocation2 + $0xc4] sm:$0xf] %vm1203_vm4, %v1110_v40  ;;  %v1108_v47 = vpop.permute.xlu0 %1107  ;;  %v1124_v36 = vpop.permute.xlu2 %1123  ;;  %v1332_v40 = vld [vmem:[%s13225_s0 + $0x118] sm:$0xf]  ;;  %v1595_v31 = vsel %vm8874_vm7, %v1593_v2, %v1594_v14  ;;  %v1643_v35 = vrot.slane %v1345_v29, 5 }
  0xff   :  { %1252 = vst.msk [vmem:[#allocation2 + $0xc0] sm:$0xf] %vm1203_vm4, %v1108_v47  ;;  %v1612_v45 = vrot.slane %v1332_v40, 5  ;;  %v1328_v47 = vld [vmem:[%s13225_s0 + $0x108] sm:$0xe] }
 0x100   :  { %1260 = vst.msk [vmem:[#allocation2 + $0xe0] sm:$0xf] %vm1203_vm4, %v1124_v36  ;;  %v1607_v36 = vrot.slane %v1605_v43, 4  ;;  %v7256_v50 = vrot.slane %v1328_v47, 9  ;;  %v1343_v2 = vld [vmem:[%s13225_s0 + $0x144] sm:$0xe] }
 0x101   :  { %v1614_v3 = vrot.slane %v1612_v45, 4  ;;  %v1342_v14 = vld [vmem:[%s13225_s0 + $0x140] sm:$0x1] }
 0x102   :  { %v1609_v58 = vsel %vm8874_vm7, %v1607_v36, %v1608_v41  ;;  %v1636_v38 = vrot.slane %v1342_v14, 5  ;;  %v1348_v36 = vld [vmem:[%s13225_s0 + $0x158] sm:$0x1]  ;;  %v1346_v41 = vld [vmem:[%s13225_s0 + $0x150] sm:$0xe] }
 0x103   :  { %1747 = vrot.lane.b32.xlu1 %v1571_v48, %s8091_s18 }
 0x104   :  { %1745 = vrot.lane.b32.xlu0 %v1567_v51, %s8091_s18  ;;  %1743 = vrot.lane.b32.xlu2 %v1564_v52, %s8091_s18  ;;  %v1613_v52 = vsel %vm8874_vm7, %v7257_v44, %v1612_v45  ;;  %v1350_v44 = vld [vmem:[%s13225_s0 + $0x160] sm:$0xf]  ;;  %v1637_v47 = vsel %vm8874_vm7, %v1635_v37, %v1636_v38  ;;  %v1361_v37 = vld [vmem:[%s13225_s0 + $0x18c] sm:$0xe] }
 0x105   :  { %v1116_v60 = vpop.permute.xlu1 %1115  ;;  %v1654_v49 = vrot.slane %v1350_v44, 5  ;;  %v1360_v38 = vld [vmem:[%s13225_s0 + $0x188] sm:$0x1] }
 0x106   :  { %1256 = vst.msk [vmem:[#allocation2 + $0xd0] sm:$0xf] %vm1203_vm4, %v1116_v60  ;;  %v1114_v1 = vpop.permute.xlu0 %1113  ;;  %v1130_v6 = vpop.permute.xlu2 %1129  ;;  %v1606_v60 = vsel %vm8874_vm7, %v7256_v50, %v1605_v43 }
 0x107   :  { %1255 = vst.msk [vmem:[#allocation2 + $0xcc] sm:$0xf] %vm1203_vm4, %v1114_v1 }
 0x108   :  { %1263 = vst.msk [vmem:[#allocation2 + $0xec] sm:$0xf] %vm1203_vm4, %v1130_v6  ;;  %v1615_v6 = vrot.slane %v1333_v0, 5 }
 0x10a   :  { %v1616_v13 = vsel %vm8874_vm7, %v1614_v3, %v1615_v6  ;;  %v1352_v3 = vld [vmem:[%s13225_s0 + $0x168] sm:$0xe]  ;;  %v1351_v6 = vld [vmem:[%s13225_s0 + $0x164] sm:$0x1] }
 0x10b   :  { %1753 = vrot.lane.b32.xlu1 %v1581_v5, %s8091_s18  ;;  %v7258_v5 = vrot.slane %v1334_v63, 9 }
 0x10c   :  { %1751 = vrot.lane.b32.xlu0 %v1578_v8, %s8091_s18  ;;  %1749 = vrot.lane.b32.xlu2 %v1574_v55, %s8091_s18  ;;  %v1338_v8 = vld [vmem:[%s13225_s0 + $0x130] sm:$0xf]  ;;  %v1340_v55 = vld [vmem:[%s13225_s0 + $0x138] sm:$0xe] }
 0x10d   :  { %v1122_v59 = vpop.permute.xlu1 %1121  ;;  %v1620_v11 = vsel %vm8874_vm7, %v7258_v5, %v1619_v53  ;;  %v1626_v12 = vrot.slane %v1338_v8, 5  ;;  %v1650_v53 = vrot.slane %v1348_v36, 5  ;;  %v1664_v5 = vrot.slane %v1354_v62, 5  ;;  %v7270_v36 = vld [vmem:[%s13225_s0 + $0x18] sm:$0xf] }
 0x10e   :  { %1259 = vst.msk [vmem:[#allocation2 + $0xdc] sm:$0xf] %vm1203_vm4, %v1122_v59  ;;  %v1120_v20 = vpop.permute.xlu0 %1119  ;;  %v1136_v24 = vpop.permute.xlu2 %1135  ;;  %v7260_v59 = vrot.slane %v1340_v55, 9  ;;  %v1656_v8 = vrot.slane %v1654_v49, 4 }
 0x10f   :  { %1258 = vst.msk [vmem:[#allocation2 + $0xd8] sm:$0xf] %vm1203_vm4, %v1120_v20  ;;  %v1344_v20 = vld [vmem:[%s13225_s0 + $0x148] sm:$0xf] }
 0x110   :  { %1266 = vst.msk [vmem:[#allocation2 + $0xf8] sm:$0xf] %vm1203_vm4, %v1136_v24  ;;  %v7259_v24 = vrot.slane %v1337_v17, 9 }
 0x112   :  { %v1627_v19 = vsel %vm8874_vm7, %v7259_v24, %v1626_v12 }
 0x113   :  { %1759 = vrot.lane.b32.xlu1 %v1592_v21, %s8091_s18  ;;  %v1628_v21 = vrot.slane %v1626_v12, 4 }
 0x114   :  { %1757 = vrot.lane.b32.xlu0 %v1588_v26, %s8091_s18  ;;  %1755 = vrot.lane.b32.xlu2 %v1585_v27, %s8091_s18  ;;  %v1634_v26 = vsel %vm8874_vm7, %v7260_v59, %v1633_v15  ;;  %v1640_v27 = vrot.slane %v1344_v20, 5  ;;  %v1359_v59 = vld [vmem:[%s13225_s0 + $0x184] sm:$0xf] }
 0x115   :  { %v1128_v32 = vpop.permute.xlu1 %1127  ;;  %v1630_v30 = vsel %vm8874_vm7, %v1628_v21, %v1629_v23  ;;  %v1675_v20 = vrot.slane %v1359_v59, 5  ;;  %v1357_v21 = vld [vmem:[%s13225_s0 + $0x17c] sm:$0x1]  ;;  %v1355_v23 = vld [vmem:[%s13225_s0 + $0x174] sm:$0xe] }
 0x116   :  { %1262 = vst.msk [vmem:[#allocation2 + $0xe8] sm:$0xf] %vm1203_vm4, %v1128_v32  ;;  %v1126_v4 = vpop.permute.xlu0 %1125  ;;  %v1690_v39 = vpop.permute.xlu2 %1689  ;;  %v1642_v32 = vrot.slane %v1640_v27, 4  ;;  %v7280_v59 = vld [vmem:[%s13225_s0 + $0x54] sm:$0xf] }
 0x117   :  { %1261 = vst.msk [vmem:[#allocation2 + $0xe4] sm:$0xf] %vm1203_vm4, %v1126_v4 }
 0x118   :  { %1881 = vst.msk [vmem:[#allocation2 + $0x4] sm:$0xf] %vm1879_vm8, %v1690_v39  ;;  %v1644_v40 = vsel %vm8874_vm7, %v1642_v32, %v1643_v35  ;;  %v1363_v35 = vld [vmem:[%s13225_s0 + $0x194] sm:$0x1] }
 0x11b   :  { %1765 = vrot.lane.b32.xlu1 %v1602_v33, %s8091_s18  ;;  %v7261_v33 = vrot.slane %v1343_v2, 9 }
 0x11c   :  { %1763 = vrot.lane.b32.xlu0 %v1599_v42, %s8091_s18  ;;  %1761 = vrot.lane.b32.xlu2 %v1595_v31, %s8091_s18  ;;  %v1347_v42 = vld [vmem:[%s13225_s0 + $0x154] sm:$0xf]  ;;  %v1349_v31 = vld [vmem:[%s13225_s0 + $0x15c] sm:$0xe] }
 0x11d   :  { %v1134_v48 = vpop.permute.xlu1 %1133  ;;  %v1641_v45 = vsel %vm8874_vm7, %v7261_v33, %v1640_v27  ;;  %v1647_v46 = vrot.slane %v1347_v42, 5  ;;  %v1671_v27 = vrot.slane %v1357_v21, 5  ;;  %v1685_v33 = vrot.slane %v1363_v35, 5  ;;  %v7283_v21 = vld [vmem:[%s13225_s0 + $0x64] sm:$0xf] }
 0x11e   :  { %1265 = vst.msk [vmem:[#allocation2 + $0xf4] sm:$0xf] %vm1203_vm4, %v1134_v48  ;;  %v1132_v51 = vpop.permute.xlu0 %1131  ;;  %v1696_v54 = vpop.permute.xlu2 %1695  ;;  %v7263_v48 = vrot.slane %v1349_v31, 9  ;;  %v1677_v42 = vrot.slane %v1675_v20, 4  ;;  %v7290_v35 = vld [vmem:[%s13225_s0 + $0x90] sm:$0xf] }
 0x11f   :  { %1264 = vst.msk [vmem:[#allocation2 + $0xf0] sm:$0xf] %vm1203_vm4, %v1132_v51  ;;  %v1353_v51 = vld [vmem:[%s13225_s0 + $0x16c] sm:$0xf] }
 0x120   :  { %1884 = vst.msk [vmem:[#allocation2 + $0x10] sm:$0xf] %vm1879_vm8, %v1696_v54  ;;  %v7262_v54 = vrot.slane %v1346_v41, 9 }
 0x122   :  { %v1648_v0 = vsel %vm8874_vm7, %v7262_v54, %v1647_v46  ;;  %v7273_v54 = vld [vmem:[%s13225_s0 + $0x28] sm:$0xf] }
 0x123   :  { %1771 = vrot.lane.b32.xlu1 %v1613_v52, %s8091_s18  ;;  %v1649_v52 = vrot.slane %v1647_v46, 4 }
 0x124   :  { %1769 = vrot.lane.b32.xlu0 %v1609_v58, %s8091_s18  ;;  %1767 = vrot.lane.b32.xlu2 %v1606_v60, %s8091_s18  ;;  %v1655_v58 = vsel %vm8874_vm7, %v7263_v48, %v1654_v49  ;;  %v1661_v60 = vrot.slane %v1353_v51, 5  ;;  %v7268_v51 = vld [vmem:[%s13225_s0 + $0xc] sm:$0xf] }
 0x125   :  { %v1688_v1 = vpop.permute.xlu1 %1687  ;;  %v1651_v63 = vsel %vm8874_vm7, %v1649_v52, %v1650_v53 }
 0x126   :  { %1880 = vst.msk [vmem:[#allocation2] sm:$0xf] %vm1879_vm8, %v1688_v1  ;;  %v1138_v57 = vpop.permute.xlu0 %1137  ;;  %v1702_v9 = vpop.permute.xlu2 %1701  ;;  %v1663_v1 = vrot.slane %v1661_v60, 4 }
 0x127   :  { %1267 = vst.msk [vmem:[#allocation2 + $0xfc] sm:$0xf] %vm1203_vm4, %v1138_v57 }
 0x128   :  { %1887 = vst.msk [vmem:[#allocation2 + $0x1c] sm:$0xf] %vm1879_vm8, %v1702_v9  ;;  %v1657_v9 = vrot.slane %v1351_v6, 5  ;;  %v1665_v10 = vsel %vm8874_vm7, %v1663_v1, %v1664_v5  ;;  %v7275_v1 = vld [vmem:[%s13225_s0 + $0x34] sm:$0xf] }
 0x129   :  { %v7274_v5 = vld [vmem:[%s13225_s0 + $0x30] sm:$0xf] }
 0x12a   :  { %v1658_v17 = vsel %vm8874_vm7, %v1656_v8, %v1657_v9  ;;  %v7278_v8 = vld [vmem:[%s13225_s0 + $0x48] sm:$0xf]  ;;  %v7277_v9 = vld [vmem:[%s13225_s0 + $0x40] sm:$0xf] }
 0x12b   :  { %1777 = vrot.lane.b32.xlu1 %v1623_v7, %s8091_s18  ;;  %v7264_v7 = vrot.slane %v1352_v3, 9 }
 0x12c   :  { %1775 = vrot.lane.b32.xlu0 %v1620_v11, %s8091_s18  ;;  %1773 = vrot.lane.b32.xlu2 %v1616_v13, %s8091_s18  ;;  %v1356_v11 = vld [vmem:[%s13225_s0 + $0x178] sm:$0xf]  ;;  %v1358_v13 = vld [vmem:[%s13225_s0 + $0x180] sm:$0xe] }
 0x12d   :  { %v1694_v18 = vpop.permute.xlu1 %1693  ;;  %v1662_v15 = vsel %vm8874_vm7, %v7264_v7, %v1661_v60  ;;  %v1668_v16 = vrot.slane %v1356_v11, 5  ;;  %v7271_v60 = vld [vmem:[%s13225_s0 + $0x1c] sm:$0xf]  ;;  %v7282_v11 = vld [vmem:[%s13225_s0 + $0x60] sm:$0xf] }
 0x12e   :  { %1883 = vst.msk [vmem:[#allocation2 + $0xc] sm:$0xf] %vm1879_vm8, %v1694_v18  ;;  %v1692_v25 = vpop.permute.xlu0 %1691  ;;  %v1708_v28 = vpop.permute.xlu2 %1707  ;;  %v7266_v18 = vrot.slane %v1358_v13, 9  ;;  %v7281_v13 = vld [vmem:[%s13225_s0 + $0x58] sm:$0xf] }
 0x12f   :  { %1882 = vst.msk [vmem:[#allocation2 + $0x8] sm:$0xf] %vm1879_vm8, %v1692_v25  ;;  %v1362_v25 = vld [vmem:[%s13225_s0 + $0x190] sm:$0xf] }
 0x130   :  { %1890 = vst.msk [vmem:[#allocation2 + $0x28] sm:$0xf] %vm1879_vm8, %v1708_v28  ;;  %v7265_v28 = vrot.slane %v1355_v23, 9 }
 0x132   :  { %v1669_v14 = vsel %vm8874_vm7, %v7265_v28, %v1668_v16  ;;  %v7286_v28 = vld [vmem:[%s13225_s0 + $0x78] sm:$0xf] }
 0x133   :  { %1783 = vrot.lane.b32.xlu1 %v1634_v26, %s8091_s18  ;;  %v1670_v26 = vrot.slane %v1668_v16, 4 }
 0x134   :  { %1781 = vrot.lane.b32.xlu0 %v1630_v30, %s8091_s18  ;;  %1779 = vrot.lane.b32.xlu2 %v1627_v19, %s8091_s18  ;;  %v1676_v30 = vsel %vm8874_vm7, %v7266_v18, %v1675_v20  ;;  %v1682_v19 = vrot.slane %v1362_v25, 5  ;;  %v7284_v20 = vld [vmem:[%s13225_s0 + $0x6c] sm:$0xf]  ;;  %v7288_v25 = vld [vmem:[%s13225_s0 + $0x84] sm:$0xf] }
 0x135   :  { %v1700_v4 = vpop.permute.xlu1 %1699  ;;  %v1672_v2 = vsel %vm8874_vm7, %v1670_v26, %v1671_v27  ;;  %v7287_v27 = vld [vmem:[%s13225_s0 + $0x7c] sm:$0xf] }
 0x136   :  { %1886 = vst.msk [vmem:[#allocation2 + $0x18] sm:$0xf] %vm1879_vm8, %v1700_v4  ;;  %v1698_v39 = vpop.permute.xlu0 %1697  ;;  %v1714_v43 = vpop.permute.xlu2 %1713  ;;  %v1684_v4 = vrot.slane %v1682_v19, 4 }
 0x137   :  { %1885 = vst.msk [vmem:[#allocation2 + $0x14] sm:$0xf] %vm1879_vm8, %v1698_v39 }
 0x138   :  { %1893 = vst.msk [vmem:[#allocation2 + $0x34] sm:$0xf] %vm1879_vm8, %v1714_v43  ;;  %v1678_v43 = vrot.slane %v1360_v38, 5  ;;  %v1686_v44 = vsel %vm8874_vm7, %v1684_v4, %v1685_v33  ;;  %v7294_v33 = vld [vmem:[%s13225_s0 + $0xa8] sm:$0xf] }
 0x139   :  { %v7293_v38 = vld [vmem:[%s13225_s0 + $0xa0] sm:$0xf] }
 0x13b   :  { %1789 = vrot.lane.b32.xlu1 %v1644_v40, %s8091_s18  ;;  %v7267_v40 = vrot.slane %v1361_v37, 9 }
 0x13c   :  { %1787 = vrot.lane.b32.xlu0 %v1641_v45, %s8091_s18  ;;  %1785 = vrot.lane.b32.xlu2 %v1637_v47, %s8091_s18  ;;  %v1679_v47 = vsel %vm8874_vm7, %v1677_v42, %v1678_v43  ;;  %v7297_v43 = vld [vmem:[%s13225_s0 + $0xb8] sm:$0xf] }
 0x13d   :  { %v1706_v50 = vpop.permute.xlu1 %1705  ;;  %v1683_v46 = vsel %vm8874_vm7, %v7267_v40, %v1682_v19  ;;  %v7291_v19 = vld [vmem:[%s13225_s0 + $0x94] sm:$0xf] }
 0x13e   :  { %1889 = vst.msk [vmem:[#allocation2 + $0x24] sm:$0xf] %vm1879_vm8, %v1706_v50  ;;  %v1704_v56 = vpop.permute.xlu0 %1703  ;;  %v1720_v61 = vpop.permute.xlu2 %1719  ;;  %v7269_v50 = vld [vmem:[%s13225_s0 + $0x10] sm:$0xf] }
 0x13f   :  { %1888 = vst.msk [vmem:[#allocation2 + $0x20] sm:$0xf] %vm1879_vm8, %v1704_v56 }
 0x140   :  { %1896 = vst.msk [vmem:[#allocation2 + $0x40] sm:$0xf] %vm1879_vm8, %v1720_v61 }
 0x143   :  { %1795 = vrot.lane.b32.xlu1 %v1655_v58, %s8091_s18  ;;  %v7272_v58 = vld [vmem:[%s13225_s0 + $0x24] sm:$0xf] }
 0x144   :  { %1793 = vrot.lane.b32.xlu0 %v1651_v63, %s8091_s18  ;;  %1791 = vrot.lane.b32.xlu2 %v1648_v0, %s8091_s18  ;;  %v7276_v63 = vld [vmem:[%s13225_s0 + $0x3c] sm:$0xf] }
 0x145   :  { %v1712_v57 = vpop.permute.xlu1 %1711 }
 0x146   :  { %1892 = vst.msk [vmem:[#allocation2 + $0x30] sm:$0xf] %vm1879_vm8, %v1712_v57  ;;  %v1710_v55 = vpop.permute.xlu0 %1709  ;;  %v1726_v12 = vpop.permute.xlu2 %1725  ;;  %v7279_v57 = vld [vmem:[%s13225_s0 + $0x4c] sm:$0xf] }
 0x147   :  { %1891 = vst.msk [vmem:[#allocation2 + $0x2c] sm:$0xf] %vm1879_vm8, %v1710_v55 }
 0x148   :  { %1899 = vst.msk [vmem:[#allocation2 + $0x4c] sm:$0xf] %vm1879_vm8, %v1726_v12 }
 0x14b   :  { %1801 = vrot.lane.b32.xlu1 %v1665_v10, %s8091_s18 }
 0x14c   :  { %1799 = vrot.lane.b32.xlu0 %v1662_v15, %s8091_s18  ;;  %1797 = vrot.lane.b32.xlu2 %v1658_v17, %s8091_s18  ;;  %v7285_v17 = vld [vmem:[%s13225_s0 + $0x70] sm:$0xf] }
 0x14d   :  { %v1718_v24 = vpop.permute.xlu1 %1717 }
 0x14e   :  { %1895 = vst.msk [vmem:[#allocation2 + $0x3c] sm:$0xf] %vm1879_vm8, %v1718_v24  ;;  %v1716_v29 = vpop.permute.xlu0 %1715  ;;  %v1732_v32 = vpop.permute.xlu2 %1731 }
 0x14f   :  { %1894 = vst.msk [vmem:[#allocation2 + $0x38] sm:$0xf] %vm1879_vm8, %v1716_v29 }
 0x150   :  { %1902 = vst.msk [vmem:[#allocation2 + $0x58] sm:$0xf] %vm1879_vm8, %v1732_v32 }
 0x153   :  { %1807 = vrot.lane.b32.xlu1 %v1676_v30, %s8091_s18 }
 0x154   :  { %1805 = vrot.lane.b32.xlu0 %v1672_v2, %s8091_s18  ;;  %1803 = vrot.lane.b32.xlu2 %v1669_v14, %s8091_s18  ;;  %v7289_v2 = vld [vmem:[%s13225_s0 + $0x88] sm:$0xf] }
 0x155   :  { %v1724_v39 = vpop.permute.xlu1 %1723 }
 0x156   :  { %1898 = vst.msk [vmem:[#allocation2 + $0x48] sm:$0xf] %vm1879_vm8, %v1724_v39  ;;  %v1722_v31 = vpop.permute.xlu0 %1721  ;;  %v1738_v45 = vpop.permute.xlu2 %1737  ;;  %v7292_v39 = vld [vmem:[%s13225_s0 + $0x9c] sm:$0xf] }
 0x157   :  { %1897 = vst.msk [vmem:[#allocation2 + $0x44] sm:$0xf] %vm1879_vm8, %v1722_v31 }
 0x158   :  { %1905 = vst.msk [vmem:[#allocation2 + $0x64] sm:$0xf] %vm1879_vm8, %v1738_v45  ;;  %v7295_v45 = vld [vmem:[%s13225_s0 + $0xac] sm:$0xf] }
 0x15b   :  { %1813 = vrot.lane.b32.xlu1 %v1686_v44, %s8091_s18  ;;  %v7296_v44 = vld [vmem:[%s13225_s0 + $0xb4] sm:$0xf] }
 0x15c   :  { %1811 = vrot.lane.b32.xlu0 %v1683_v46, %s8091_s18  ;;  %1809 = vrot.lane.b32.xlu2 %v1679_v47, %s8091_s18 }
 0x15d   :  { %v1730_v48 = vpop.permute.xlu1 %1729 }
 0x15e   :  { %1901 = vst.msk [vmem:[#allocation2 + $0x54] sm:$0xf] %vm1879_vm8, %v1730_v48  ;;  %v1728_v49 = vpop.permute.xlu0 %1727  ;;  %v1744_v41 = vpop.permute.xlu2 %1743  ;;  %v7300_v48 = vld [vmem:[%s13225_s0 + $0xe4] sm:$0xf] }
 0x15f   :  { %1900 = vst.msk [vmem:[#allocation2 + $0x50] sm:$0xf] %vm1879_vm8, %v1728_v49 }
 0x160   :  { %1908 = vst.msk [vmem:[#allocation2 + $0x70] sm:$0xf] %vm1879_vm8, %v1744_v41  ;;  %v7298_v41 = vld [vmem:[%s13225_s0 + $0xc0] sm:$0xf] }
 0x163   :  { %2077 = vrot.lane.b32.xlu1 %v7270_v36, %s8092_s6  ;;  %v7299_v36 = vld [vmem:[%s13225_s0 + $0xc4] sm:$0xf] }
 0x164   :  { %2075 = vrot.lane.b32.xlu0 %v7269_v50, %s8092_s6  ;;  %2073 = vrot.lane.b32.xlu2 %v7268_v51, %s8092_s6 }
 0x165   :  { %v1736_v52 = vpop.permute.xlu1 %1735 }
 0x166   :  { %1904 = vst.msk [vmem:[#allocation2 + $0x60] sm:$0xf] %vm1879_vm8, %v1736_v52  ;;  %v1734_v53 = vpop.permute.xlu0 %1733  ;;  %v1750_v56 = vpop.permute.xlu2 %1749  ;;  %v7303_v52 = vld [vmem:[%s13225_s0 + $0xf4] sm:$0xf] }
 0x167   :  { %1903 = vst.msk [vmem:[#allocation2 + $0x5c] sm:$0xf] %vm1879_vm8, %v1734_v53 }
 0x168   :  { %1911 = vst.msk [vmem:[#allocation2 + $0x7c] sm:$0xf] %vm1879_vm8, %v1750_v56  ;;  %v7301_v56 = vld [vmem:[%s13225_s0 + $0xe8] sm:$0xf] }
 0x16b   :  { %2083 = vrot.lane.b32.xlu1 %v7273_v54, %s8092_s6  ;;  %v7302_v54 = vld [vmem:[%s13225_s0 + $0xf0] sm:$0xf] }
 0x16c   :  { %2081 = vrot.lane.b32.xlu0 %v7272_v58, %s8092_s6  ;;  %2079 = vrot.lane.b32.xlu2 %v7271_v60, %s8092_s6 }
 0x16d   :  { %v1742_v61 = vpop.permute.xlu1 %1741 }
 0x16e   :  { %1907 = vst.msk [vmem:[#allocation2 + $0x6c] sm:$0xf] %vm1879_vm8, %v1742_v61  ;;  %v1740_v62 = vpop.permute.xlu0 %1739  ;;  %v1756_v0 = vpop.permute.xlu2 %1755  ;;  %v7306_v61 = vld [vmem:[%s13225_s0 + $0x108] sm:$0xf] }
 0x16f   :  { %1906 = vst.msk [vmem:[#allocation2 + $0x68] sm:$0xf] %vm1879_vm8, %v1740_v62 }
 0x170   :  { %1914 = vst.msk [vmem:[#allocation2 + $0x88] sm:$0xf] %vm1879_vm8, %v1756_v0  ;;  %v7304_v0 = vld [vmem:[%s13225_s0 + $0xfc] sm:$0xf] }
 0x173   :  { %2089 = vrot.lane.b32.xlu1 %v7276_v63, %s8092_s6  ;;  %v7305_v63 = vld [vmem:[%s13225_s0 + $0x100] sm:$0xf] }
 0x174   :  { %2087 = vrot.lane.b32.xlu0 %v7275_v1, %s8092_s6  ;;  %2085 = vrot.lane.b32.xlu2 %v7274_v5, %s8092_s6 }
 0x175   :  { %v1748_v3 = vpop.permute.xlu1 %1747 }
 0x176   :  { %1910 = vst.msk [vmem:[#allocation2 + $0x78] sm:$0xf] %vm1879_vm8, %v1748_v3  ;;  %v1746_v6 = vpop.permute.xlu0 %1745  ;;  %v1762_v7 = vpop.permute.xlu2 %1761  ;;  %v7309_v3 = vld [vmem:[%s13225_s0 + $0x118] sm:$0xf] }
 0x177   :  { %1909 = vst.msk [vmem:[#allocation2 + $0x74] sm:$0xf] %vm1879_vm8, %v1746_v6 }
 0x178   :  { %1917 = vst.msk [vmem:[#allocation2 + $0x94] sm:$0xf] %vm1879_vm8, %v1762_v7  ;;  %v7307_v7 = vld [vmem:[%s13225_s0 + $0x10c] sm:$0xf] }
 0x17b   :  { %2095 = vrot.lane.b32.xlu1 %v7279_v57, %s8092_s6  ;;  %v7308_v57 = vld [vmem:[%s13225_s0 + $0x114] sm:$0xf] }
 0x17c   :  { %2093 = vrot.lane.b32.xlu0 %v7278_v8, %s8092_s6  ;;  %2091 = vrot.lane.b32.xlu2 %v7277_v9, %s8092_s6 }
 0x17d   :  { %v1754_v55 = vpop.permute.xlu1 %1753 }
 0x17e   :  { %1913 = vst.msk [vmem:[#allocation2 + $0x84] sm:$0xf] %vm1879_vm8, %v1754_v55  ;;  %v1752_v10 = vpop.permute.xlu0 %1751  ;;  %v1768_v12 = vpop.permute.xlu2 %1767  ;;  %v7312_v55 = vld [vmem:[%s13225_s0 + $0x12c] sm:$0xf] }
 0x17f   :  { %1912 = vst.msk [vmem:[#allocation2 + $0x80] sm:$0xf] %vm1879_vm8, %v1752_v10 }
 0x180   :  { %1920 = vst.msk [vmem:[#allocation2 + $0xa0] sm:$0xf] %vm1879_vm8, %v1768_v12  ;;  %v7310_v12 = vld [vmem:[%s13225_s0 + $0x120] sm:$0xf] }
 0x183   :  { %2101 = vrot.lane.b32.xlu1 %v7282_v11, %s8092_s6  ;;  %v7311_v11 = vld [vmem:[%s13225_s0 + $0x124] sm:$0xf] }
 0x184   :  { %2099 = vrot.lane.b32.xlu0 %v7281_v13, %s8092_s6  ;;  %2097 = vrot.lane.b32.xlu2 %v7280_v59, %s8092_s6 }
 0x185   :  { %v1760_v15 = vpop.permute.xlu1 %1759 }
 0x186   :  { %1916 = vst.msk [vmem:[#allocation2 + $0x90] sm:$0xf] %vm1879_vm8, %v1760_v15  ;;  %v1758_v16 = vpop.permute.xlu0 %1757  ;;  %v1774_v18 = vpop.permute.xlu2 %1773  ;;  %v7315_v15 = vld [vmem:[%s13225_s0 + $0x13c] sm:$0xf] }
 0x187   :  { %1915 = vst.msk [vmem:[#allocation2 + $0x8c] sm:$0xf] %vm1879_vm8, %v1758_v16 }
 0x188   :  { %1923 = vst.msk [vmem:[#allocation2 + $0xac] sm:$0xf] %vm1879_vm8, %v1774_v18  ;;  %v7313_v18 = vld [vmem:[%s13225_s0 + $0x130] sm:$0xf] }
 0x18b   :  { %2107 = vrot.lane.b32.xlu1 %v7285_v17, %s8092_s6  ;;  %v7314_v17 = vld [vmem:[%s13225_s0 + $0x138] sm:$0xf] }
 0x18c   :  { %2105 = vrot.lane.b32.xlu0 %v7284_v20, %s8092_s6  ;;  %2103 = vrot.lane.b32.xlu2 %v7283_v21, %s8092_s6 }
 0x18d   :  { %v1766_v23 = vpop.permute.xlu1 %1765 }
 0x18e   :  { %1919 = vst.msk [vmem:[#allocation2 + $0x9c] sm:$0xf] %vm1879_vm8, %v1766_v23  ;;  %v1764_v24 = vpop.permute.xlu0 %1763  ;;  %v1780_v26 = vpop.permute.xlu2 %1779  ;;  %v7318_v23 = vld [vmem:[%s13225_s0 + $0x150] sm:$0xf] }
 0x18f   :  { %1918 = vst.msk [vmem:[#allocation2 + $0x98] sm:$0xf] %vm1879_vm8, %v1764_v24 }
 0x190   :  { %1926 = vst.msk [vmem:[#allocation2 + $0xb8] sm:$0xf] %vm1879_vm8, %v1780_v26  ;;  %v7316_v26 = vld [vmem:[%s13225_s0 + $0x144] sm:$0xf] }
 0x193   :  { %2113 = vrot.lane.b32.xlu1 %v7288_v25, %s8092_s6  ;;  %v7317_v25 = vld [vmem:[%s13225_s0 + $0x148] sm:$0xf] }
 0x194   :  { %2111 = vrot.lane.b32.xlu0 %v7287_v27, %s8092_s6  ;;  %2109 = vrot.lane.b32.xlu2 %v7286_v28, %s8092_s6 }
 0x195   :  { %v1772_v29 = vpop.permute.xlu1 %1771 }
 0x196   :  { %1922 = vst.msk [vmem:[#allocation2 + $0xa8] sm:$0xf] %vm1879_vm8, %v1772_v29  ;;  %v1770_v30 = vpop.permute.xlu0 %1769  ;;  %v1786_v32 = vpop.permute.xlu2 %1785  ;;  %v7321_v29 = vld [vmem:[%s13225_s0 + $0x160] sm:$0xf] }
 0x197   :  { %1921 = vst.msk [vmem:[#allocation2 + $0xa4] sm:$0xf] %vm1879_vm8, %v1770_v30 }
 0x198   :  { %1929 = vst.msk [vmem:[#allocation2 + $0xc4] sm:$0xf] %vm1879_vm8, %v1786_v32  ;;  %v7319_v32 = vld [vmem:[%s13225_s0 + $0x154] sm:$0xf] }
 0x19b   :  { %2119 = vrot.lane.b32.xlu1 %v7291_v19, %s8092_s6  ;;  %v7320_v19 = vld [vmem:[%s13225_s0 + $0x15c] sm:$0xf] }
 0x19c   :  { %2117 = vrot.lane.b32.xlu0 %v7290_v35, %s8092_s6  ;;  %2115 = vrot.lane.b32.xlu2 %v7289_v2, %s8092_s6 }
 0x19d   :  { %v1778_v14 = vpop.permute.xlu1 %1777 }
 0x19e   :  { %1925 = vst.msk [vmem:[#allocation2 + $0xb4] sm:$0xf] %vm1879_vm8, %v1778_v14  ;;  %v1776_v4 = vpop.permute.xlu0 %1775  ;;  %v1792_v37 = vpop.permute.xlu2 %1791  ;;  %v7324_v14 = vld [vmem:[%s13225_s0 + $0x174] sm:$0xf] }
 0x19f   :  { %1924 = vst.msk [vmem:[#allocation2 + $0xb0] sm:$0xf] %vm1879_vm8, %v1776_v4 }
 0x1a0   :  { %1932 = vst.msk [vmem:[#allocation2 + $0xd0] sm:$0xf] %vm1879_vm8, %v1792_v37  ;;  %v7322_v37 = vld [vmem:[%s13225_s0 + $0x168] sm:$0xf] }
 0x1a3   :  { %2125 = vrot.lane.b32.xlu1 %v7294_v33, %s8092_s6  ;;  %v7323_v33 = vld [vmem:[%s13225_s0 + $0x16c] sm:$0xf] }
 0x1a4   :  { %2123 = vrot.lane.b32.xlu0 %v7293_v38, %s8092_s6  ;;  %2121 = vrot.lane.b32.xlu2 %v7292_v39, %s8092_s6  ;;  %v7333_v39 = vld [vmem:[%s13225_s0 + $0x10] sm:$0xf] }
 0x1a5   :  { %v1784_v40 = vpop.permute.xlu1 %1783 }
 0x1a6   :  { %1928 = vst.msk [vmem:[#allocation2 + $0xc0] sm:$0xf] %vm1879_vm8, %v1784_v40  ;;  %v1782_v42 = vpop.permute.xlu0 %1781  ;;  %v1798_v31 = vpop.permute.xlu2 %1797 }
 0x1a7   :  { %1927 = vst.msk [vmem:[#allocation2 + $0xbc] sm:$0xf] %vm1879_vm8, %v1782_v42  ;;  %v7327_v42 = vld [vmem:[%s13225_s0 + $0x184] sm:$0xf] }
 0x1a8   :  { %1935 = vst.msk [vmem:[#allocation2 + $0xdc] sm:$0xf] %vm1879_vm8, %v1798_v31  ;;  %v2436_v31 = vshll.u32 %v7333_v39, 16 }
 0x1ab   :  { %2131 = vrot.lane.b32.xlu1 %v7297_v43, %s8092_s6 }
 0x1ac   :  { %2129 = vrot.lane.b32.xlu0 %v7296_v44, %s8092_s6  ;;  %2127 = vrot.lane.b32.xlu2 %v7295_v45, %s8092_s6  ;;  %v2440_v44 = vshrl.u32 %v7333_v39, 16  ;;  %v7332_v45 = vld [vmem:[%s13225_s0 + $0xc] sm:$0xf] }
 0x1ad   :  { %v1790_v46 = vpop.permute.xlu1 %1789 }
 0x1ae   :  { %1931 = vst.msk [vmem:[#allocation2 + $0xcc] sm:$0xf] %vm1879_vm8, %v1790_v46  ;;  %v1788_v47 = vpop.permute.xlu0 %1787  ;;  %v1804_v49 = vpop.permute.xlu2 %1803  ;;  %v7326_v46 = vld [vmem:[%s13225_s0 + $0x180] sm:$0xf] }
 0x1af   :  { %1930 = vst.msk [vmem:[#allocation2 + $0xc8] sm:$0xf] %vm1879_vm8, %v1788_v47  ;;  %v7325_v47 = vld [vmem:[%s13225_s0 + $0x178] sm:$0xf] }
 0x1b0   :  { %1938 = vst.msk [vmem:[#allocation2 + $0xe8] sm:$0xf] %vm1879_vm8, %v1804_v49  ;;  %v2430_v49 = vshll.u32 %v7332_v45, 16 }
 0x1b3   :  { %2137 = vrot.lane.b32.xlu1 %v7300_v48, %s8092_s6  ;;  %v2427_v48 = vshrl.u32 %v7332_v45, 16 }
 0x1b4   :  { %2135 = vrot.lane.b32.xlu0 %v7299_v36, %s8092_s6  ;;  %2133 = vrot.lane.b32.xlu2 %v7298_v41, %s8092_s6  ;;  %v9867_v36 = vrot.slane %v2436_v31, 5  ;;  %v2442_v41 = vrot.slane %v2440_v44, 4  ;;  %v7343_v44 = vld [vmem:[%s13225_s0 + $0x38] sm:$0x1] }
 0x1b5   :  { %v1796_v50 = vpop.permute.xlu1 %1795 }
 0x1b6   :  { %1934 = vst.msk [vmem:[#allocation2 + $0xd8] sm:$0xf] %vm1879_vm8, %v1796_v50  ;;  %v1794_v51 = vpop.permute.xlu0 %1793  ;;  %v1810_v53 = vpop.permute.xlu2 %1809 }
 0x1b7   :  { %1933 = vst.msk [vmem:[#allocation2 + $0xd4] sm:$0xf] %vm1879_vm8, %v1794_v51  ;;  %v7334_v51 = vld [vmem:[%s13225_s0 + $0x14] sm:$0x1] }
 0x1b8   :  { %1941 = vst.msk [vmem:[#allocation2 + $0xf4] sm:$0xf] %vm1879_vm8, %v1810_v53  ;;  %v7336_v53 = vld [vmem:[%s13225_s0 + $0x1c] sm:$0xf] }
 0x1bb   :  { %2143 = vrot.lane.b32.xlu1 %v7303_v52, %s8092_s6  ;;  %v7338_v52 = vld [vmem:[%s13225_s0 + $0x24] sm:$0xf] }
 0x1bc   :  { %2141 = vrot.lane.b32.xlu0 %v7302_v54, %s8092_s6  ;;  %2139 = vrot.lane.b32.xlu2 %v7301_v56, %s8092_s6  ;;  %v7330_v54 = vld [vmem:[%s13225_s0 + $0x198] sm:$0xf]  ;;  %v2429_v56 = vrot.slane %v2427_v48, 4  ;;  %v7347_v48 = vld [vmem:[%s13225_s0 + $0x48] sm:$0xf] }
 0x1bd   :  { %v1802_v58 = vpop.permute.xlu1 %1801 }
 0x1be   :  { %1937 = vst.msk [vmem:[#allocation2 + $0xe4] sm:$0xf] %vm1879_vm8, %v1802_v58  ;;  %v1800_v60 = vpop.permute.xlu0 %1799  ;;  %v2074_v62 = vpop.permute.xlu2 %2073  ;;  %v2432_v58 = vrot.slane %v2430_v49, 5 }
 0x1bf   :  { %1936 = vst.msk [vmem:[#allocation2 + $0xe0] sm:$0xf] %vm1879_vm8, %v1800_v60 }
 0x1c0   :  { %2266 = vst.msk [vmem:[#allocation2] sm:$0xf] %vm2265_vm9, %v2074_v62  ;;  %v2446_v62 = vshll.u32 %v7334_v51, 16  ;;  %v2518_v51 = vshll.u32 %v7343_v44, 16  ;;  %v7352_v44 = vld [vmem:[%s13225_s0 + $0x5c] sm:$0x1] }
 0x1c3   :  { %2149 = vrot.lane.b32.xlu1 %v7306_v61, %s8092_s6  ;;  %v2443_v61 = vor.u32 %v2442_v41, %v9867_v36 }
 0x1c4   :  { %2147 = vrot.lane.b32.xlu0 %v7305_v63, %s8092_s6  ;;  %2145 = vrot.lane.b32.xlu2 %v7304_v0, %s8092_s6  ;;  %v2475_v0 = vshrl.u32 %v7338_v52, 16 }
 0x1c5   :  { %v1808_v1 = vpop.permute.xlu1 %1807 }
 0x1c6   :  { %1940 = vst.msk [vmem:[#allocation2 + $0xf0] sm:$0xf] %vm1879_vm8, %v1808_v1  ;;  %v1806_v5 = vpop.permute.xlu0 %1805  ;;  %v2080_v6 = vpop.permute.xlu2 %2079  ;;  %v2478_v1 = vshll.u32 %v7338_v52, 16 }
 0x1c7   :  { %1939 = vst.msk [vmem:[#allocation2 + $0xec] sm:$0xf] %vm1879_vm8, %v1806_v5  ;;  %v7335_v5 = vld [vmem:[%s13225_s0 + $0x18] sm:$0xf] }
 0x1c8   :  { %2269 = vst.msk [vmem:[#allocation2 + $0xc] sm:$0xf] %vm2265_vm9, %v2080_v6  ;;  %v2464_v6 = vshrl.u32 %v7336_v53, 16 }
 0x1cb   :  { %2155 = vrot.lane.b32.xlu1 %v7309_v3, %s8092_s6  ;;  %v2460_v3 = vshll.u32 %v7336_v53, 16 }
 0x1cc   :  { %2153 = vrot.lane.b32.xlu0 %v7308_v57, %s8092_s6  ;;  %2151 = vrot.lane.b32.xlu2 %v7307_v7, %s8092_s6  ;;  %v7329_v57 = vld [vmem:[%s13225_s0 + $0x190] sm:$0xf]  ;;  %v2433_v7 = vor.u32 %v2432_v58, %v2429_v56 }
 0x1cd   :  { %v1814_v8 = vpop.permute.xlu1 %1813 }
 0x1ce   :  { %1943 = vst.msk [vmem:[#allocation2 + $0xfc] sm:$0xf] %vm1879_vm8, %v1814_v8  ;;  %v1812_v9 = vpop.permute.xlu0 %1811  ;;  %v2086_v10 = vpop.permute.xlu2 %2085  ;;  %v7328_v8 = vld [vmem:[%s13225_s0 + $0x18c] sm:$0xf] }
 0x1cf   :  { %1942 = vst.msk [vmem:[#allocation2 + $0xf8] sm:$0xf] %vm1879_vm8, %v1812_v9  ;;  %v7342_v9 = vld [vmem:[%s13225_s0 + $0x34] sm:$0xf] }
 0x1d0   :  { %2272 = vst.msk [vmem:[#allocation2 + $0x18] sm:$0xf] %vm2265_vm9, %v2086_v10  ;;  %v2454_v10 = vshll.u32 %v7335_v5, 16 }
 0x1d3   :  { %2161 = vrot.lane.b32.xlu1 %v7312_v55, %s8092_s6  ;;  %v2451_v55 = vshrl.u32 %v7335_v5, 16 }
 0x1d4   :  { %2159 = vrot.lane.b32.xlu0 %v7311_v11, %s8092_s6  ;;  %2157 = vrot.lane.b32.xlu2 %v7310_v12, %s8092_s6  ;;  %v2444_v11 = vrot.slane %v2443_v61, 4  ;;  %v2448_v12 = vrot.slane %v2446_v62, 5  ;;  %v2547_v61 = vshrl.u32 %v7347_v48, 16  ;;  %v2550_v62 = vshll.u32 %v7347_v48, 16 }
 0x1d5   :  { %v2078_v13 = vpop.permute.xlu1 %2077 }
 0x1d6   :  { %2268 = vst.msk [vmem:[#allocation2 + $0x8] sm:$0xf] %vm2265_vm9, %v2078_v13  ;;  %v2076_v59 = vpop.permute.xlu0 %2075  ;;  %v2092_v16 = vpop.permute.xlu2 %2091  ;;  %v2477_v13 = vrot.slane %v2475_v0, 4 }
 0x1d7   :  { %2267 = vst.msk [vmem:[#allocation2 + $0x4] sm:$0xf] %vm2265_vm9, %v2076_v59  ;;  %v2480_v59 = vrot.slane %v2478_v1, 5 }
 0x1d8   :  { %2275 = vst.msk [vmem:[#allocation2 + $0x24] sm:$0xf] %vm2265_vm9, %v2092_v16  ;;  %v7339_v16 = vld [vmem:[%s13225_s0 + $0x28] sm:$0xf] }
 0x1d9   :  { %v2488_v39 = vshrl.u32 %v7339_v16, 16 }
 0x1db   :  { %2167 = vrot.lane.b32.xlu1 %v7315_v15, %s8092_s6  ;;  %v2490_v53 = vrot.slane %v2488_v39, 4 }
 0x1dc   :  { %2165 = vrot.lane.b32.xlu0 %v7314_v17, %s8092_s6  ;;  %2163 = vrot.lane.b32.xlu2 %v7313_v18, %s8092_s6  ;;  %v9903_v17 = vrot.slane %v2460_v3, 5  ;;  %v2466_v18 = vrot.slane %v2464_v6, 4 }
 0x1dd   :  { %v2084_v20 = vpop.permute.xlu1 %2083 }
 0x1de   :  { %2271 = vst.msk [vmem:[#allocation2 + $0x14] sm:$0xf] %vm2265_vm9, %v2084_v20  ;;  %v2082_v21 = vpop.permute.xlu0 %2081  ;;  %v2098_v24 = vpop.permute.xlu2 %2097  ;;  %v7337_v20 = vld [vmem:[%s13225_s0 + $0x20] sm:$0x1] }
 0x1df   :  { %2270 = vst.msk [vmem:[#allocation2 + $0x10] sm:$0xf] %vm2265_vm9, %v2082_v21  ;;  %v2508_v21 = vshll.u32 %v7342_v9, 16 }
 0x1e0   :  { %2278 = vst.msk [vmem:[#allocation2 + $0x30] sm:$0xf] %vm2265_vm9, %v2098_v24  ;;  %v2434_v24 = vrot.slane %v2433_v7, 4 }
 0x1e3   :  { %2173 = vrot.lane.b32.xlu1 %v7318_v23, %s8092_s6  ;;  %v2512_v23 = vshrl.u32 %v7342_v9, 16 }
 0x1e4   :  { %2171 = vrot.lane.b32.xlu0 %v7317_v25, %s8092_s6  ;;  %2169 = vrot.lane.b32.xlu2 %v7316_v26, %s8092_s6  ;;  %v7341_v25 = vld [vmem:[%s13225_s0 + $0x30] sm:$0xf]  ;;  %v2453_v26 = vrot.slane %v2451_v55, 4 }
 0x1e5   :  { %v2090_v27 = vpop.permute.xlu1 %2089 }
 0x1e6   :  { %2274 = vst.msk [vmem:[#allocation2 + $0x20] sm:$0xf] %vm2265_vm9, %v2090_v27  ;;  %v2088_v28 = vpop.permute.xlu0 %2087  ;;  %v2104_v30 = vpop.permute.xlu2 %2103  ;;  %v2456_v27 = vrot.slane %v2454_v10, 5 }
 0x1e7   :  { %2273 = vst.msk [vmem:[#allocation2 + $0x1c] sm:$0xf] %vm2265_vm9, %v2088_v28 }
 0x1e8   :  { %2281 = vst.msk [vmem:[#allocation2 + $0x3c] sm:$0xf] %vm2265_vm9, %v2104_v30  ;;  %v2481_v30 = vor.u32 %v2480_v59, %v2477_v13  ;;  %v2552_v13 = vrot.slane %v2550_v62, 5 }
 0x1eb   :  { %2179 = vrot.lane.b32.xlu1 %v7321_v29, %s8092_s6  ;;  %v2449_v29 = vsel %vm8142_vm2, %v2444_v11, %v2448_v12  ;;  %v7348_v11 = vld [vmem:[%s13225_s0 + $0x4c] sm:$0xf]  ;;  %v2549_v12 = vrot.slane %v2547_v61, 4 }
 0x1ec   :  { %2177 = vrot.lane.b32.xlu0 %v7320_v19, %s8092_s6  ;;  %2175 = vrot.lane.b32.xlu2 %v7319_v32, %s8092_s6  ;;  %v2484_v19 = vshll.u32 %v7339_v16, 16 }
 0x1ed   :  { %v2096_v35 = vpop.permute.xlu1 %2095 }
 0x1ee   :  { %2277 = vst.msk [vmem:[#allocation2 + $0x2c] sm:$0xf] %vm2265_vm9, %v2096_v35  ;;  %v2094_v2 = vpop.permute.xlu0 %2093  ;;  %v2110_v4 = vpop.permute.xlu2 %2109  ;;  %v2467_v35 = vor.u32 %v2466_v18, %v9903_v17  ;;  %v2486_v31 = vrot.slane %v2484_v19, 5 }
 0x1ef   :  { %2276 = vst.msk [vmem:[#allocation2 + $0x28] sm:$0xf] %vm2265_vm9, %v2094_v2  ;;  %v2470_v2 = vshll.u32 %v7337_v20, 16  ;;  %v7350_v20 = vld [vmem:[%s13225_s0 + $0x54] sm:$0xf] }
 0x1f0   :  { %2284 = vst.msk [vmem:[#allocation2 + $0x48] sm:$0xf] %vm2265_vm9, %v2110_v4  ;;  %v2514_v4 = vrot.slane %v2512_v23, 4  ;;  %v2491_v55 = vor.u32 %v2490_v53, %v2486_v31 }
 0x1f3   :  { %2185 = vrot.lane.b32.xlu1 %v7324_v14, %s8092_s6  ;;  %v9919_v14 = vrot.slane %v2508_v21, 5 }
 0x1f4   :  { %2183 = vrot.lane.b32.xlu0 %v7323_v33, %s8092_s6  ;;  %2181 = vrot.lane.b32.xlu2 %v7322_v37, %s8092_s6  ;;  %v2499_v33 = vshrl.u32 %v7341_v25, 16  ;;  %v2502_v37 = vshll.u32 %v7341_v25, 16 }
 0x1f5   :  { %v2102_v38 = vpop.permute.xlu1 %2101  ;;  %v2515_v49 = vor.u32 %v2514_v4, %v9919_v14  ;;  %v2571_v4 = vshrl.u32 %v7350_v20, 16 }
 0x1f6   :  { %2280 = vst.msk [vmem:[#allocation2 + $0x38] sm:$0xf] %vm2265_vm9, %v2102_v38  ;;  %v2100_v40 = vpop.permute.xlu0 %2099  ;;  %v2116_v43 = vpop.permute.xlu2 %2115  ;;  %v2439_v38 = vsel %vm8142_vm2, %v2434_v24, %v9867_v36  ;;  %v2501_v36 = vrot.slane %v2499_v33, 4  ;;  %v2504_v41 = vrot.slane %v2502_v37, 5  ;;  %v2574_v33 = vshll.u32 %v7350_v20, 16 }
 0x1f7   :  { %2279 = vst.msk [vmem:[#allocation2 + $0x34] sm:$0xf] %vm2265_vm9, %v2100_v40  ;;  %v7331_v40 = vld [vmem:[%s13225_s0 + $0x19c] sm:$0xf]  ;;  %v2516_v3 = vrot.slane %v2515_v49, 4  ;;  %v2573_v49 = vrot.slane %v2571_v4, 4 }
 0x1f8   :  { %2287 = vst.msk [vmem:[#allocation2 + $0x54] sm:$0xf] %vm2265_vm9, %v2116_v43  ;;  %v2482_v43 = vrot.slane %v2481_v30, 4  ;;  %v2505_v6 = vor.u32 %v2504_v41, %v2501_v36  ;;  %v2556_v30 = vshll.u32 %v7348_v11, 16  ;;  %v2576_v36 = vrot.slane %v2574_v33, 5 }
 0x1fa   :  { %v2487_v58 = vsel %vm8142_vm2, %v2482_v43, %v2486_v31  ;;  %v2506_v25 = vrot.slane %v2505_v6, 4  ;;  %v2558_v31 = vrot.slane %v2556_v30, 5 }
 0x1fb   :  { %2191 = vrot.lane.b32.xlu1 %v7327_v42, %s8092_s6  ;;  %v2457_v42 = vor.u32 %v2456_v27, %v2453_v26  ;;  %v2492_v26 = vrot.slane %v2491_v55, 4 }
 0x1fc   :  { %2189 = vrot.lane.b32.xlu0 %v7326_v46, %s8092_s6  ;;  %2187 = vrot.lane.b32.xlu2 %v7325_v47, %s8092_s6  ;;  %v2468_v46 = vrot.slane %v2467_v35, 4  ;;  %v2472_v47 = vrot.slane %v2470_v2, 5  ;;  %v2511_v39 = vsel %vm8142_vm2, %v2506_v25, %v9919_v14  ;;  %v7356_v14 = vld [vmem:[%s13225_s0 + $0x6c] sm:$0xf] }
 0x1fd   :  { %v2108_v50 = vpop.permute.xlu1 %2107  ;;  %v2458_v52 = vrot.slane %v2457_v42, 4  ;;  %v2619_v61 = vshrl.u32 %v7356_v14, 16  ;;  %v2622_v62 = vshll.u32 %v7356_v14, 16 }
 0x1fe   :  { %2283 = vst.msk [vmem:[#allocation2 + $0x44] sm:$0xf] %vm2265_vm9, %v2108_v50  ;;  %v2106_v60 = vpop.permute.xlu0 %2105  ;;  %v2122_v63 = vpop.permute.xlu2 %2121  ;;  %v7345_v50 = vld [vmem:[%s13225_s0 + $0x40] sm:$0xf]  ;;  %v2473_v0 = vsel %vm8142_vm2, %v2468_v46, %v2472_v47 }
 0x1ff   :  { %2282 = vst.msk [vmem:[#allocation2 + $0x40] sm:$0xf] %vm2265_vm9, %v2106_v60  ;;  %v2532_v1 = vshll.u32 %v7345_v50, 16  ;;  %v2536_v5 = vshrl.u32 %v7345_v50, 16  ;;  %v2463_v9 = vsel %vm8142_vm2, %v2458_v52, %v9903_v17  ;;  %v7351_v17 = vld [vmem:[%s13225_s0 + $0x58] sm:$0xf] }
 0x200   :  { %2290 = vst.msk [vmem:[#allocation2 + $0x60] sm:$0xf] %vm2265_vm9, %v2122_v63  ;;  %v7340_v63 = vld [vmem:[%s13225_s0 + $0x2c] sm:$0x1]  ;;  %v2584_v35 = vshrl.u32 %v7351_v17, 16  ;;  %v2590_v52 = vshll.u32 %v7352_v44, 16 }
 0x201   :  { %v2494_v10 = vshll.u32 %v7340_v63, 16  ;;  %v9963_v16 = vrot.slane %v2532_v1, 5  ;;  %v2538_v18 = vrot.slane %v2536_v5, 4  ;;  %v7349_v63 = vld [vmem:[%s13225_s0 + $0x50] sm:$0x1]  ;;  %v2577_v1 = vor.u32 %v2576_v36, %v2573_v49 }
 0x202   :  { %v2586_v46 = vrot.slane %v2584_v35, 4 }
 0x203   :  { %2197 = vrot.lane.b32.xlu1 %v7330_v54, %s8092_s6  ;;  %v7344_v54 = vld [vmem:[%s13225_s0 + $0x3c] sm:$0xf]  ;;  %v2496_v27 = vrot.slane %v2494_v10, 5  ;;  %v2539_v37 = vor.u32 %v2538_v18, %v9963_v16  ;;  %v2578_v18 = vrot.slane %v2577_v1, 4  ;;  %v7358_v1 = vld [vmem:[%s13225_s0 + $0x74] sm:$0x1] }
 0x204   :  { %2195 = vrot.lane.b32.xlu0 %v7329_v57, %s8092_s6  ;;  %2193 = vrot.lane.b32.xlu2 %v7328_v8, %s8092_s6  ;;  %v2523_v57 = vshrl.u32 %v7344_v54, 16  ;;  %v2526_v7 = vshll.u32 %v7344_v54, 16  ;;  %v2520_v8 = vrot.slane %v2518_v51, 5  ;;  %v7354_v51 = vld [vmem:[%s13225_s0 + $0x64] sm:$0xf] }
 0x205   :  { %v2114_v15 = vpop.permute.xlu1 %2113  ;;  %v2497_v42 = vsel %vm8142_vm2, %v2492_v26, %v2496_v27  ;;  %v2540_v41 = vrot.slane %v2539_v37, 4  ;;  %v2604_v5 = vshll.u32 %v7354_v51, 16  ;;  %v7359_v27 = vld [vmem:[%s13225_s0 + $0x78] sm:$0xf] }
 0x206   :  { %2286 = vst.msk [vmem:[#allocation2 + $0x50] sm:$0xf] %vm2265_vm9, %v2114_v15  ;;  %v2112_v28 = vpop.permute.xlu0 %2111  ;;  %v2128_v32 = vpop.permute.xlu2 %2127  ;;  %v7346_v15 = vld [vmem:[%s13225_s0 + $0x44] sm:$0x1]  ;;  %v2525_v21 = vrot.slane %v2523_v57, 4  ;;  %v2528_v23 = vrot.slane %v2526_v7, 5  ;;  %v2521_v24 = vsel %vm8142_vm2, %v2516_v3, %v2520_v8 }
 0x207   :  { %2285 = vst.msk [vmem:[#allocation2 + $0x4c] sm:$0xf] %vm2265_vm9, %v2112_v28  ;;  %v2542_v2 = vshll.u32 %v7346_v15, 16  ;;  %v2608_v3 = vshrl.u32 %v7354_v51, 16  ;;  %v2566_v8 = vshll.u32 %v7349_v63, 16 }
 0x208   :  { %2293 = vst.msk [vmem:[#allocation2 + $0x6c] sm:$0xf] %vm2265_vm9, %v2128_v32  ;;  %v2580_v32 = vshll.u32 %v7351_v17, 16  ;;  %v10022_v17 = vrot.slane %v2604_v5, 5 }
 0x209   :  { %v2544_v48 = vrot.slane %v2542_v2, 5  ;;  %v2610_v20 = vrot.slane %v2608_v3, 4  ;;  %v2568_v26 = vrot.slane %v2566_v8, 5 }
 0x20b   :  { %3196 = vrot.lane.b32.xlu1 %v2449_v29, %s8093_s21  ;;  %v2553_v29 = vor.u32 %v2552_v13, %v2549_v12  ;;  %v2545_v6 = vsel %vm8142_vm2, %v2540_v41, %v2544_v48  ;;  %v2592_v12 = vrot.slane %v2590_v52, 5  ;;  %v2621_v13 = vrot.slane %v2619_v61, 4  ;;  %v7361_v48 = vld [vmem:[%s13225_s0 + $0x80] sm:$0x1]  ;;  %v7365_v41 = vld [vmem:[%s13225_s0 + $0x90] sm:$0xf] }
 0x20c   :  { %3194 = vrot.lane.b32.xlu0 %v2439_v38, %s8093_s21  ;;  %2199 = vrot.lane.b32.xlu2 %v7331_v40, %s8092_s6  ;;  %v2529_v38 = vor.u32 %v2528_v23, %v2525_v21  ;;  %v2560_v40 = vshrl.u32 %v7348_v11, 16  ;;  %v7355_v21 = vld [vmem:[%s13225_s0 + $0x68] sm:$0x1]  ;;  %v2611_v4 = vor.u32 %v2610_v20, %v10022_v17  ;;  %v2691_v63 = vshrl.u32 %v7365_v41, 16 }
 0x20d   :  { %v2120_v45 = vpop.permute.xlu1 %2119  ;;  %v2554_v43 = vrot.slane %v2553_v29, 4  ;;  %v2614_v33 = vshll.u32 %v7355_v21, 16  ;;  %v7363_v52 = vld [vmem:[%s13225_s0 + $0x88] sm:$0xf] }
 0x20e   :  { %2289 = vst.msk [vmem:[#allocation2 + $0x5c] sm:$0xf] %vm2265_vm9, %v2120_v45  ;;  %v2118_v56 = vpop.permute.xlu0 %2117  ;;  %v2134_v60 = vpop.permute.xlu2 %2133  ;;  %v9988_v45 = vrot.slane %v2580_v32, 5  ;;  %v2530_v50 = vrot.slane %v2529_v38, 4  ;;  %v2562_v53 = vrot.slane %v2560_v40, 4  ;;  %v2646_v40 = vshll.u32 %v7359_v27, 16 }
 0x20f   :  { %2288 = vst.msk [vmem:[#allocation2 + $0x58] sm:$0xf] %vm2265_vm9, %v2118_v56  ;;  %v2559_v56 = vsel %vm8142_vm2, %v2554_v43, %v2558_v31  ;;  %v2612_v36 = vrot.slane %v2611_v4, 4  ;;  %v2616_v14 = vrot.slane %v2614_v33, 5  ;;  %v2676_v3 = vshll.u32 %v7363_v52, 16 }
 0x210   :  { %2296 = vst.msk [vmem:[#allocation2 + $0x78] sm:$0xf] %vm2265_vm9, %v2134_v60  ;;  %v2535_v57 = vsel %vm8142_vm2, %v2530_v50, %v9963_v16  ;;  %v2563_v7 = vor.u32 %v2562_v53, %v2558_v31  ;;  %v7357_v16 = vld [vmem:[%s13225_s0 + $0x70] sm:$0xf]  ;;  %v2648_v51 = vrot.slane %v2646_v40, 5  ;;  %v2662_v53 = vshll.u32 %v7361_v48, 16 }
 0x211   :  { %v2628_v35 = vshll.u32 %v7357_v16, 16  ;;  %v2632_v43 = vshrl.u32 %v7357_v16, 16  ;;  %v2617_v5 = vsel %vm8142_vm2, %v2612_v36, %v2616_v14  ;;  %v7364_v16 = vld [vmem:[%s13225_s0 + $0x8c] sm:$0x1]  ;;  %v10081_v20 = vrot.slane %v2676_v3, 5 }
 0x212   :  { %v2564_v25 = vrot.slane %v2563_v7, 4  ;;  %v2686_v33 = vshll.u32 %v7364_v16, 16  ;;  %v7370_v48 = vld [vmem:[%s13225_s0 + $0xa4] sm:$0x1] }
 0x213   :  { %3202 = vrot.lane.b32.xlu1 %v2487_v58, %s8093_s21  ;;  %v2587_v58 = vor.u32 %v2586_v46, %v9988_v45 }
 0x214   :  { %3200 = vrot.lane.b32.xlu0 %v2473_v0, %s8093_s21  ;;  %3198 = vrot.lane.b32.xlu2 %v2463_v9, %s8093_s21  ;;  %v7353_v0 = vld [vmem:[%s13225_s0 + $0x60] sm:$0xf]  ;;  %v7360_v9 = vld [vmem:[%s13225_s0 + $0x7c] sm:$0xf]  ;;  %v2569_v31 = vsel %vm8142_vm2, %v2564_v25, %v2568_v26 }
 0x215   :  { %v2126_v59 = vpop.permute.xlu1 %2125  ;;  %v2595_v55 = vshrl.u32 %v7353_v0, 16  ;;  %v2598_v10 = vshll.u32 %v7353_v0, 16  ;;  %v2588_v11 = vrot.slane %v2587_v58, 4  ;;  %v2652_v23 = vshll.u32 %v7360_v9, 16  ;;  %v7362_v58 = vld [vmem:[%s13225_s0 + $0x84] sm:$0xf] }
 0x216   :  { %2292 = vst.msk [vmem:[#allocation2 + $0x68] sm:$0xf] %vm2265_vm9, %v2126_v59  ;;  %v2124_v28 = vpop.permute.xlu0 %2123  ;;  %v2140_v19 = vpop.permute.xlu2 %2139  ;;  %v2624_v59 = vrot.slane %v2622_v62, 5  ;;  %v2694_v0 = vshll.u32 %v7365_v41, 16  ;;  %v2667_v8 = vshrl.u32 %v7362_v58, 16  ;;  %v2688_v41 = vrot.slane %v2686_v33, 5 }
 0x217   :  { %2291 = vst.msk [vmem:[#allocation2 + $0x64] sm:$0xf] %vm2265_vm9, %v2124_v28  ;;  %v2597_v28 = vrot.slane %v2595_v55, 4  ;;  %v2600_v29 = vrot.slane %v2598_v10, 5  ;;  %v10038_v37 = vrot.slane %v2652_v23, 5  ;;  %v2664_v55 = vrot.slane %v2662_v53, 5 }
 0x218   :  { %2299 = vst.msk [vmem:[#allocation2 + $0x84] sm:$0xf] %vm2265_vm9, %v2140_v19  ;;  %v2593_v19 = vsel %vm8142_vm2, %v2588_v11, %v2592_v12  ;;  %v2625_v32 = vor.u32 %v2624_v59, %v2621_v13  ;;  %v2638_v12 = vshll.u32 %v7358_v1, 16  ;;  %v7366_v13 = vld [vmem:[%s13225_s0 + $0x94] sm:$0xf]  ;;  %v2693_v59 = vrot.slane %v2691_v63, 4 }
 0x219   :  { %v2601_v44 = vor.u32 %v2600_v29, %v2597_v28  ;;  %v7368_v23 = vld [vmem:[%s13225_s0 + $0x9c] sm:$0xf]  ;;  %v7372_v53 = vld [vmem:[%s13225_s0 + $0xac] sm:$0xf]  ;;  %v7367_v1 = vld [vmem:[%s13225_s0 + $0x98] sm:$0x1] }
 0x21a   :  { %v2626_v46 = vrot.slane %v2625_v32, 4  ;;  %v2640_v29 = vrot.slane %v2638_v12, 5  ;;  %v2700_v32 = vshll.u32 %v7366_v13, 16 }
 0x21b   :  { %3208 = vrot.lane.b32.xlu1 %v2521_v24, %s8093_s21  ;;  %v2656_v24 = vshrl.u32 %v7360_v9, 16  ;;  %v2670_v9 = vshll.u32 %v7362_v58, 16 }
 0x21c   :  { %3206 = vrot.lane.b32.xlu0 %v2511_v39, %s8093_s21  ;;  %3204 = vrot.lane.b32.xlu2 %v2497_v42, %s8093_s21  ;;  %v2643_v39 = vshrl.u32 %v7359_v27, 16  ;;  %v2583_v42 = vsel %vm8142_vm2, %v2578_v18, %v9988_v45 }
 0x21d   :  { %v2132_v47 = vpop.permute.xlu1 %2131  ;;  %v2658_v38 = vrot.slane %v2656_v24, 4  ;;  %v2669_v24 = vrot.slane %v2667_v8, 4  ;;  %v2672_v25 = vrot.slane %v2670_v9, 5 }
 0x21e   :  { %2295 = vst.msk [vmem:[#allocation2 + $0x74] sm:$0xf] %vm2265_vm9, %v2132_v47  ;;  %v2130_v54 = vpop.permute.xlu0 %2129  ;;  %v2146_v60 = vpop.permute.xlu2 %2145  ;;  %v2630_v47 = vrot.slane %v2628_v35, 5  ;;  %v2645_v50 = vrot.slane %v2643_v39, 4  ;;  %v2718_v39 = vshll.u32 %v7368_v23, 16 }
 0x21f   :  { %2294 = vst.msk [vmem:[#allocation2 + $0x70] sm:$0xf] %vm2265_vm9, %v2130_v54  ;;  %v2659_v45 = vor.u32 %v2658_v38, %v10038_v37  ;;  %v2602_v54 = vrot.slane %v2601_v44, 4  ;;  %v2715_v38 = vshrl.u32 %v7368_v23, 16 }
 0x220   :  { %2302 = vst.msk [vmem:[#allocation2 + $0x90] sm:$0xf] %vm2265_vm9, %v2146_v60  ;;  %v2631_v61 = vsel %vm8142_vm2, %v2626_v46, %v2630_v47  ;;  %v2649_v7 = vor.u32 %v2648_v51, %v2645_v50  ;;  %v2720_v50 = vrot.slane %v2718_v39, 5 }
 0x221   :  { %v2607_v10 = vsel %vm8142_vm2, %v2602_v54, %v10022_v17  ;;  %v7369_v17 = vld [vmem:[%s13225_s0 + $0xa0] sm:$0xf]  ;;  %v2734_v54 = vshll.u32 %v7370_v48, 16 }
 0x222   :  { %v2650_v27 = vrot.slane %v2649_v7, 4  ;;  %v2728_v4 = vshrl.u32 %v7369_v17, 16 }
 0x223   :  { %3214 = vrot.lane.b32.xlu1 %v2559_v56, %s8093_s21  ;;  %v2634_v56 = vrot.slane %v2632_v43, 4 }
 0x224   :  { %3212 = vrot.lane.b32.xlu0 %v2545_v6, %s8093_s21  ;;  %3210 = vrot.lane.b32.xlu2 %v2535_v57, %s8093_s21  ;;  %v2680_v6 = vshrl.u32 %v7363_v52, 16  ;;  %v2660_v57 = vrot.slane %v2659_v45, 4  ;;  %v2655_v43 = vsel %vm8142_vm2, %v2650_v27, %v10038_v37  ;;  %v2730_v36 = vrot.slane %v2728_v4, 4  ;;  %v7374_v37 = vld [vmem:[%s13225_s0 + $0xb4] sm:$0xf] }
 0x225   :  { %v2138_v15 = vpop.permute.xlu1 %2137  ;;  %v2635_v11 = vor.u32 %v2634_v56, %v2630_v47  ;;  %v2702_v47 = vrot.slane %v2700_v32, 5  ;;  %v2717_v45 = vrot.slane %v2715_v38, 4  ;;  %v2763_v63 = vshrl.u32 %v7374_v37, 16 }
 0x226   :  { %2298 = vst.msk [vmem:[#allocation2 + $0x80] sm:$0xf] %vm2265_vm9, %v2138_v15  ;;  %v2136_v30 = vpop.permute.xlu0 %2135  ;;  %v2152_v2 = vpop.permute.xlu2 %2151  ;;  %v2696_v15 = vrot.slane %v2694_v0, 5  ;;  %v2682_v21 = vrot.slane %v2680_v6, 4  ;;  %v2665_v26 = vsel %vm8142_vm2, %v2660_v57, %v2664_v55  ;;  %v2766_v0 = vshll.u32 %v7374_v37, 16 }
 0x227   :  { %2297 = vst.msk [vmem:[#allocation2 + $0x7c] sm:$0xf] %vm2265_vm9, %v2136_v30  ;;  %v2636_v28 = vrot.slane %v2635_v11, 4  ;;  %v2721_v3 = vor.u32 %v2720_v50, %v2717_v45  ;;  %v2748_v6 = vshll.u32 %v7372_v53, 16  ;;  %v2752_v57 = vshrl.u32 %v7372_v53, 16 }
 0x228   :  { %2305 = vst.msk [vmem:[#allocation2 + $0x9c] sm:$0xf] %vm2265_vm9, %v2152_v2  ;;  %v2724_v2 = vshll.u32 %v7369_v17, 16  ;;  %v2683_v40 = vor.u32 %v2682_v21, %v10081_v20  ;;  %v2710_v55 = vshll.u32 %v7367_v1, 16 }
 0x229   :  { %v2641_v44 = vsel %vm8142_vm2, %v2636_v28, %v2640_v29  ;;  %v2722_v21 = vrot.slane %v2721_v3, 4  ;;  %v10140_v17 = vrot.slane %v2748_v6, 5  ;;  %v2754_v23 = vrot.slane %v2752_v57, 4  ;;  %v7377_v29 = vld [vmem:[%s13225_s0 + $0xc0] sm:$0xf] }
 0x22a   :  { %v2684_v51 = vrot.slane %v2683_v40, 4  ;;  %v2712_v28 = vrot.slane %v2710_v55, 5  ;;  %v7376_v3 = vld [vmem:[%s13225_s0 + $0xbc] sm:$0x1] }
 0x22b   :  { %3220 = vrot.lane.b32.xlu1 %v2593_v19, %s8093_s21  ;;  %v2697_v19 = vor.u32 %v2696_v15, %v2693_v59  ;;  %v2736_v59 = vrot.slane %v2734_v54, 5  ;;  %v2765_v15 = vrot.slane %v2763_v63, 4  ;;  %v2755_v38 = vor.u32 %v2754_v23, %v10140_v17  ;;  %v7381_v54 = vld [vmem:[%s13225_s0 + $0xe8] sm:$0xf] }
 0x22c   :  { %3218 = vrot.lane.b32.xlu0 %v2583_v42, %s8093_s21  ;;  %3216 = vrot.lane.b32.xlu2 %v2569_v31, %s8093_s21  ;;  %v2673_v42 = vor.u32 %v2672_v25, %v2669_v24  ;;  %v2704_v31 = vshrl.u32 %v7366_v13, 16  ;;  %v2689_v7 = vsel %vm8142_vm2, %v2684_v51, %v2688_v41  ;;  %v7373_v24 = vld [vmem:[%s13225_s0 + $0xb0] sm:$0x1]  ;;  %v7379_v41 = vld [vmem:[%s13225_s0 + $0xc8] sm:$0x1]  ;;  %v2820_v57 = vshll.u32 %v7381_v54, 16 }
 0x22d   :  { %v2144_v49 = vpop.permute.xlu1 %2143  ;;  %v2698_v46 = vrot.slane %v2697_v19, 4  ;;  %v2758_v39 = vshll.u32 %v7373_v24, 16  ;;  %v2756_v50 = vrot.slane %v2755_v38, 4  ;;  %v7383_v51 = vld [vmem:[%s13225_s0 + $0xf0] sm:$0xf] }
 0x22e   :  { %2301 = vst.msk [vmem:[#allocation2 + $0x8c] sm:$0xf] %vm2265_vm9, %v2144_v49  ;;  %v2142_v60 = vpop.permute.xlu0 %2141  ;;  %v2158_v62 = vpop.permute.xlu2 %2157  ;;  %v10106_v49 = vrot.slane %v2724_v2, 5  ;;  %v2674_v52 = vrot.slane %v2673_v42, 4  ;;  %v2706_v56 = vrot.slane %v2704_v31, 4  ;;  %v2790_v31 = vshll.u32 %v7377_v29, 16 }
 0x22f   :  { %2300 = vst.msk [vmem:[#allocation2 + $0x88] sm:$0xf] %vm2265_vm9, %v2142_v60  ;;  %v2703_v60 = vsel %vm8142_vm2, %v2698_v46, %v2702_v47  ;;  %v2760_v37 = vrot.slane %v2758_v39, 5  ;;  %v2835_v1 = vshrl.u32 %v7383_v51, 16  ;;  %v10199_v23 = vrot.slane %v2820_v57, 5 }
 0x230   :  { %2308 = vst.msk [vmem:[#allocation2 + $0xa8] sm:$0xf] %vm2265_vm9, %v2158_v62  ;;  %v2679_v8 = vsel %vm8142_vm2, %v2674_v52, %v10081_v20  ;;  %v2707_v9 = vor.u32 %v2706_v56, %v2702_v47  ;;  %v7375_v20 = vld [vmem:[%s13225_s0 + $0xb8] sm:$0xf]  ;;  %v2792_v53 = vrot.slane %v2790_v31, 5  ;;  %v2806_v56 = vshll.u32 %v7379_v41, 16 }
 0x231   :  { %v2772_v4 = vshll.u32 %v7375_v20, 16  ;;  %v2776_v46 = vshrl.u32 %v7375_v20, 16  ;;  %v2761_v6 = vsel %vm8142_vm2, %v2756_v50, %v2760_v37  ;;  %v7382_v20 = vld [vmem:[%s13225_s0 + $0xec] sm:$0x1]  ;;  %v7388_v41 = vld [vmem:[%s13225_s0 + $0x104] sm:$0x1] }
 0x232   :  { %v2708_v27 = vrot.slane %v2707_v9, 4  ;;  %v2830_v39 = vshll.u32 %v7382_v20, 16 }
 0x233   :  { %3226 = vrot.lane.b32.xlu1 %v2631_v61, %s8093_s21  ;;  %v2731_v61 = vor.u32 %v2730_v36, %v10106_v49 }
 0x234   :  { %3224 = vrot.lane.b32.xlu0 %v2617_v5, %s8093_s21  ;;  %3222 = vrot.lane.b32.xlu2 %v2607_v10, %s8093_s21  ;;  %v7371_v5 = vld [vmem:[%s13225_s0 + $0xa8] sm:$0xf]  ;;  %v7378_v10 = vld [vmem:[%s13225_s0 + $0xc4] sm:$0xf]  ;;  %v2713_v47 = vsel %vm8142_vm2, %v2708_v27, %v2712_v28 }
 0x235   :  { %v2150_v18 = vpop.permute.xlu1 %2149  ;;  %v2739_v11 = vshrl.u32 %v7371_v5, 16  ;;  %v2742_v12 = vshll.u32 %v7371_v5, 16  ;;  %v2732_v13 = vrot.slane %v2731_v61, 4  ;;  %v2796_v25 = vshll.u32 %v7378_v10, 16  ;;  %v7380_v61 = vld [vmem:[%s13225_s0 + $0xe4] sm:$0xf] }
 0x236   :  { %2304 = vst.msk [vmem:[#allocation2 + $0x98] sm:$0xf] %vm2265_vm9, %v2150_v18  ;;  %v2148_v30 = vpop.permute.xlu0 %2147  ;;  %v2164_v35 = vpop.permute.xlu2 %2163  ;;  %v2768_v18 = vrot.slane %v2766_v0, 5  ;;  %v2838_v5 = vshll.u32 %v7383_v51, 16  ;;  %v2811_v55 = vshrl.u32 %v7380_v61, 16  ;;  %v2832_v51 = vrot.slane %v2830_v39, 5 }
 0x237   :  { %2303 = vst.msk [vmem:[#allocation2 + $0x94] sm:$0xf] %vm2265_vm9, %v2148_v30  ;;  %v2741_v30 = vrot.slane %v2739_v11, 4  ;;  %v2744_v19 = vrot.slane %v2742_v12, 5  ;;  %v10156_v40 = vrot.slane %v2796_v25, 5  ;;  %v2808_v11 = vrot.slane %v2806_v56, 5 }
 0x238   :  { %2311 = vst.msk [vmem:[#allocation2 + $0xb4] sm:$0xf] %vm2265_vm9, %v2164_v35  ;;  %v2737_v35 = vsel %vm8142_vm2, %v2732_v13, %v2736_v59  ;;  %v2769_v2 = vor.u32 %v2768_v18, %v2765_v15  ;;  %v2782_v59 = vshll.u32 %v7376_v3, 16  ;;  %v7384_v15 = vld [vmem:[%s13225_s0 + $0xf4] sm:$0xf]  ;;  %v2837_v18 = vrot.slane %v2835_v1, 4 }
 0x239   :  { %v2745_v48 = vor.u32 %v2744_v19, %v2741_v30  ;;  %v7386_v25 = vld [vmem:[%s13225_s0 + $0xfc] sm:$0xf]  ;;  %v7390_v56 = vld [vmem:[%s13225_s0 + $0x10c] sm:$0xf]  ;;  %v7385_v3 = vld [vmem:[%s13225_s0 + $0xf8] sm:$0x1] }
 0x23a   :  { %v2770_v36 = vrot.slane %v2769_v2, 4  ;;  %v2784_v19 = vrot.slane %v2782_v59, 5  ;;  %v2844_v2 = vshll.u32 %v7384_v15, 16 }
 0x23b   :  { %3232 = vrot.lane.b32.xlu1 %v2665_v26, %s8093_s21  ;;  %v2800_v26 = vshrl.u32 %v7378_v10, 16  ;;  %v2814_v10 = vshll.u32 %v7380_v61, 16 }
 0x23c   :  { %3230 = vrot.lane.b32.xlu0 %v2655_v43, %s8093_s21  ;;  %3228 = vrot.lane.b32.xlu2 %v2641_v44, %s8093_s21  ;;  %v2787_v43 = vshrl.u32 %v7377_v29, 16  ;;  %v2727_v44 = vsel %vm8142_vm2, %v2722_v21, %v10106_v49 }
 0x23d   :  { %v2156_v14 = vpop.permute.xlu1 %2155  ;;  %v2802_v42 = vrot.slane %v2800_v26, 4  ;;  %v2813_v26 = vrot.slane %v2811_v55, 4  ;;  %v2816_v27 = vrot.slane %v2814_v10, 5 }
 0x23e   :  { %2307 = vst.msk [vmem:[#allocation2 + $0xa4] sm:$0xf] %vm2265_vm9, %v2156_v14  ;;  %v2154_v58 = vpop.permute.xlu0 %2153  ;;  %v2170_v62 = vpop.permute.xlu2 %2169  ;;  %v2774_v14 = vrot.slane %v2772_v4, 5  ;;  %v2789_v52 = vrot.slane %v2787_v43, 4  ;;  %v2862_v43 = vshll.u32 %v7386_v25, 16 }
 0x23f   :  { %2306 = vst.msk [vmem:[#allocation2 + $0xa0] sm:$0xf] %vm2265_vm9, %v2154_v58  ;;  %v2803_v49 = vor.u32 %v2802_v42, %v10156_v40  ;;  %v2746_v58 = vrot.slane %v2745_v48, 4  ;;  %v2859_v42 = vshrl.u32 %v7386_v25, 16 }
 0x240   :  { %2314 = vst.msk [vmem:[#allocation2 + $0xc0] sm:$0xf] %vm2265_vm9, %v2170_v62  ;;  %v2775_v63 = vsel %vm8142_vm2, %v2770_v36, %v2774_v14  ;;  %v2793_v9 = vor.u32 %v2792_v53, %v2789_v52  ;;  %v2864_v52 = vrot.slane %v2862_v43, 5 }
 0x241   :  { %v2751_v12 = vsel %vm8142_vm2, %v2746_v58, %v10140_v17  ;;  %v7387_v17 = vld [vmem:[%s13225_s0 + $0x100] sm:$0xf]  ;;  %v2878_v58 = vshll.u32 %v7388_v41, 16 }
 0x242   :  { %v2794_v29 = vrot.slane %v2793_v9, 4  ;;  %v2872_v38 = vshrl.u32 %v7387_v17, 16 }
 0x243   :  { %3238 = vrot.lane.b32.xlu1 %v2703_v60, %s8093_s21  ;;  %v2778_v60 = vrot.slane %v2776_v46, 4 }
 0x244   :  { %3236 = vrot.lane.b32.xlu0 %v2689_v7, %s8093_s21  ;;  %3234 = vrot.lane.b32.xlu2 %v2679_v8, %s8093_s21  ;;  %v2824_v7 = vshrl.u32 %v7381_v54, 16  ;;  %v2804_v8 = vrot.slane %v2803_v49, 4  ;;  %v2799_v46 = vsel %vm8142_vm2, %v2794_v29, %v10156_v40  ;;  %v2874_v50 = vrot.slane %v2872_v38, 4  ;;  %v7392_v40 = vld [vmem:[%s13225_s0 + $0x114] sm:$0xf] }
 0x245   :  { %v2162_v16 = vpop.permute.xlu1 %2161  ;;  %v2779_v13 = vor.u32 %v2778_v60, %v2774_v14  ;;  %v2846_v14 = vrot.slane %v2844_v2, 5  ;;  %v2861_v49 = vrot.slane %v2859_v42, 4  ;;  %v2907_v1 = vshrl.u32 %v7392_v40, 16 }
 0x246   :  { %2310 = vst.msk [vmem:[#allocation2 + $0xb0] sm:$0xf] %vm2265_vm9, %v2162_v16  ;;  %v2160_v32 = vpop.permute.xlu0 %2159  ;;  %v2176_v33 = vpop.permute.xlu2 %2175  ;;  %v2840_v16 = vrot.slane %v2838_v5, 5  ;;  %v2826_v24 = vrot.slane %v2824_v7, 4  ;;  %v2809_v28 = vsel %vm8142_vm2, %v2804_v8, %v2808_v11  ;;  %v2910_v5 = vshll.u32 %v7392_v40, 16 }
 0x247   :  { %2309 = vst.msk [vmem:[#allocation2 + $0xac] sm:$0xf] %vm2265_vm9, %v2160_v32  ;;  %v2780_v30 = vrot.slane %v2779_v13, 4  ;;  %v2865_v57 = vor.u32 %v2864_v52, %v2861_v49  ;;  %v2892_v7 = vshll.u32 %v7390_v56, 16  ;;  %v2896_v8 = vshrl.u32 %v7390_v56, 16 }
 0x248   :  { %2317 = vst.msk [vmem:[#allocation2 + $0xcc] sm:$0xf] %vm2265_vm9, %v2176_v33  ;;  %v2868_v33 = vshll.u32 %v7387_v17, 16  ;;  %v2827_v31 = vor.u32 %v2826_v24, %v10199_v23  ;;  %v2854_v11 = vshll.u32 %v7385_v3, 16 }
 0x249   :  { %v2785_v48 = vsel %vm8142_vm2, %v2780_v30, %v2784_v19  ;;  %v2866_v24 = vrot.slane %v2865_v57, 4  ;;  %v10258_v17 = vrot.slane %v2892_v7, 5  ;;  %v2898_v25 = vrot.slane %v2896_v8, 4  ;;  %v7395_v19 = vld [vmem:[%s13225_s0 + $0x120] sm:$0xf] }
 0x24a   :  { %v2828_v53 = vrot.slane %v2827_v31, 4  ;;  %v2856_v30 = vrot.slane %v2854_v11, 5  ;;  %v7394_v57 = vld [vmem:[%s13225_s0 + $0x11c] sm:$0x1] }
 0x24b   :  { %3244 = vrot.lane.b32.xlu1 %v2737_v35, %s8093_s21  ;;  %v2841_v35 = vor.u32 %v2840_v16, %v2837_v18  ;;  %v2880_v18 = vrot.slane %v2878_v58, 5  ;;  %v2909_v16 = vrot.slane %v2907_v1, 4  ;;  %v2899_v42 = vor.u32 %v2898_v25, %v10258_v17  ;;  %v7399_v58 = vld [vmem:[%s13225_s0 + $0x130] sm:$0xf] }
 0x24c   :  { %3242 = vrot.lane.b32.xlu0 %v2727_v44, %s8093_s21  ;;  %3240 = vrot.lane.b32.xlu2 %v2713_v47, %s8093_s21  ;;  %v2817_v44 = vor.u32 %v2816_v27, %v2813_v26  ;;  %v2848_v47 = vshrl.u32 %v7384_v15, 16  ;;  %v2833_v9 = vsel %vm8142_vm2, %v2828_v53, %v2832_v51  ;;  %v7391_v26 = vld [vmem:[%s13225_s0 + $0x110] sm:$0x1]  ;;  %v7397_v51 = vld [vmem:[%s13225_s0 + $0x128] sm:$0x1]  ;;  %v2964_v8 = vshll.u32 %v7399_v58, 16 }
 0x24d   :  { %v2168_v45 = vpop.permute.xlu1 %2167  ;;  %v2842_v36 = vrot.slane %v2841_v35, 4  ;;  %v2902_v43 = vshll.u32 %v7391_v26, 16  ;;  %v2900_v52 = vrot.slane %v2899_v42, 4  ;;  %v7401_v53 = vld [vmem:[%s13225_s0 + $0x138] sm:$0xf] }
 0x24e   :  { %2313 = vst.msk [vmem:[#allocation2 + $0xbc] sm:$0xf] %vm2265_vm9, %v2168_v45  ;;  %v2166_v62 = vpop.permute.xlu0 %2165  ;;  %v2182_v0 = vpop.permute.xlu2 %2181  ;;  %v10224_v45 = vrot.slane %v2868_v33, 5  ;;  %v2818_v54 = vrot.slane %v2817_v44, 4  ;;  %v2850_v60 = vrot.slane %v2848_v47, 4  ;;  %v2934_v47 = vshll.u32 %v7395_v19, 16 }
 0x24f   :  { %2312 = vst.msk [vmem:[#allocation2 + $0xb8] sm:$0xf] %vm2265_vm9, %v2166_v62  ;;  %v2847_v62 = vsel %vm8142_vm2, %v2842_v36, %v2846_v14  ;;  %v2904_v40 = vrot.slane %v2902_v43, 5  ;;  %v2979_v3 = vshrl.u32 %v7401_v53, 16  ;;  %v10317_v25 = vrot.slane %v2964_v8, 5 }
 0x250   :  { %2320 = vst.msk [vmem:[#allocation2 + $0xd8] sm:$0xf] %vm2265_vm9, %v2182_v0  ;;  %v2823_v55 = vsel %vm8142_vm2, %v2818_v54, %v10199_v23  ;;  %v2851_v10 = vor.u32 %v2850_v60, %v2846_v14  ;;  %v7393_v23 = vld [vmem:[%s13225_s0 + $0x118] sm:$0xf]  ;;  %v2936_v56 = vrot.slane %v2934_v47, 5  ;;  %v2950_v60 = vshll.u32 %v7397_v51, 16 }
 0x251   :  { %v2916_v38 = vshll.u32 %v7393_v23, 16  ;;  %v2920_v36 = vshrl.u32 %v7393_v23, 16  ;;  %v2905_v7 = vsel %vm8142_vm2, %v2900_v52, %v2904_v40  ;;  %v7400_v23 = vld [vmem:[%s13225_s0 + $0x134] sm:$0x1]  ;;  %v7406_v51 = vld [vmem:[%s13225_s0 + $0x14c] sm:$0x1] }
 0x252   :  { %v2852_v29 = vrot.slane %v2851_v10, 4  ;;  %v2974_v43 = vshll.u32 %v7400_v23, 16 }
 0x253   :  { %3250 = vrot.lane.b32.xlu1 %v2775_v63, %s8093_s21  ;;  %v2875_v63 = vor.u32 %v2874_v50, %v10224_v45 }
 0x254   :  { %3248 = vrot.lane.b32.xlu0 %v2761_v6, %s8093_s21  ;;  %3246 = vrot.lane.b32.xlu2 %v2751_v12, %s8093_s21  ;;  %v7389_v6 = vld [vmem:[%s13225_s0 + $0x108] sm:$0xf]  ;;  %v7396_v12 = vld [vmem:[%s13225_s0 + $0x124] sm:$0xf]  ;;  %v2857_v14 = vsel %vm8142_vm2, %v2852_v29, %v2856_v30 }
 0x255   :  { %v2174_v21 = vpop.permute.xlu1 %2173  ;;  %v2883_v13 = vshrl.u32 %v7389_v6, 16  ;;  %v2886_v59 = vshll.u32 %v7389_v6, 16  ;;  %v2876_v15 = vrot.slane %v2875_v63, 4  ;;  %v2940_v27 = vshll.u32 %v7396_v12, 16  ;;  %v7398_v63 = vld [vmem:[%s13225_s0 + $0x12c] sm:$0xf] }
 0x256   :  { %2316 = vst.msk [vmem:[#allocation2 + $0xc8] sm:$0xf] %vm2265_vm9, %v2174_v21  ;;  %v2172_v32 = vpop.permute.xlu0 %2171  ;;  %v2188_v4 = vpop.permute.xlu2 %2187  ;;  %v2912_v21 = vrot.slane %v2910_v5, 5  ;;  %v2982_v6 = vshll.u32 %v7401_v53, 16  ;;  %v2955_v11 = vshrl.u32 %v7398_v63, 16  ;;  %v2976_v53 = vrot.slane %v2974_v43, 5 }
 0x257   :  { %2315 = vst.msk [vmem:[#allocation2 + $0xc4] sm:$0xf] %vm2265_vm9, %v2172_v32  ;;  %v2885_v32 = vrot.slane %v2883_v13, 4  ;;  %v2888_v35 = vrot.slane %v2886_v59, 5  ;;  %v10274_v31 = vrot.slane %v2940_v27, 5  ;;  %v2952_v13 = vrot.slane %v2950_v60, 5 }
 0x258   :  { %2323 = vst.msk [vmem:[#allocation2 + $0xe4] sm:$0xf] %vm2265_vm9, %v2188_v4  ;;  %v2881_v4 = vsel %vm8142_vm2, %v2876_v15, %v2880_v18  ;;  %v2913_v33 = vor.u32 %v2912_v21, %v2909_v16  ;;  %v2926_v18 = vshll.u32 %v7394_v57, 16  ;;  %v7402_v16 = vld [vmem:[%s13225_s0 + $0x13c] sm:$0xf]  ;;  %v2981_v21 = vrot.slane %v2979_v3, 4 }
 0x259   :  { %v2889_v41 = vor.u32 %v2888_v35, %v2885_v32  ;;  %v7404_v27 = vld [vmem:[%s13225_s0 + $0x144] sm:$0xf]  ;;  %v7408_v60 = vld [vmem:[%s13225_s0 + $0x154] sm:$0xf]  ;;  %v7403_v57 = vld [vmem:[%s13225_s0 + $0x140] sm:$0x1] }
 0x25a   :  { %v2914_v50 = vrot.slane %v2913_v33, 4  ;;  %v2928_v35 = vrot.slane %v2926_v18, 5  ;;  %v2988_v33 = vshll.u32 %v7402_v16, 16 }
 0x25b   :  { %3256 = vrot.lane.b32.xlu1 %v2809_v28, %s8093_s21  ;;  %v2944_v28 = vshrl.u32 %v7396_v12, 16  ;;  %v2958_v12 = vshll.u32 %v7398_v63, 16 }
 0x25c   :  { %3254 = vrot.lane.b32.xlu0 %v2799_v46, %s8093_s21  ;;  %3252 = vrot.lane.b32.xlu2 %v2785_v48, %s8093_s21  ;;  %v2931_v46 = vshrl.u32 %v7395_v19, 16  ;;  %v2871_v48 = vsel %vm8142_vm2, %v2866_v24, %v10224_v45 }
 0x25d   :  { %v2180_v37 = vpop.permute.xlu1 %2179  ;;  %v2946_v44 = vrot.slane %v2944_v28, 4  ;;  %v2957_v28 = vrot.slane %v2955_v11, 4  ;;  %v2960_v29 = vrot.slane %v2958_v12, 5 }
 0x25e   :  { %2319 = vst.msk [vmem:[#allocation2 + $0xd4] sm:$0xf] %vm2265_vm9, %v2180_v37  ;;  %v2178_v61 = vpop.permute.xlu0 %2177  ;;  %v2194_v0 = vpop.permute.xlu2 %2193  ;;  %v2918_v37 = vrot.slane %v2916_v38, 5  ;;  %v2933_v54 = vrot.slane %v2931_v46, 4  ;;  %v3006_v46 = vshll.u32 %v7404_v27, 16 }
 0x25f   :  { %2318 = vst.msk [vmem:[#allocation2 + $0xd0] sm:$0xf] %vm2265_vm9, %v2178_v61  ;;  %v2947_v45 = vor.u32 %v2946_v44, %v10274_v31  ;;  %v2890_v61 = vrot.slane %v2889_v41, 4  ;;  %v3003_v44 = vshrl.u32 %v7404_v27, 16 }
 0x260   :  { %2326 = vst.msk [vmem:[#allocation2 + $0xf0] sm:$0xf] %vm2265_vm9, %v2194_v0  ;;  %v2919_v1 = vsel %vm8142_vm2, %v2914_v50, %v2918_v37  ;;  %v2937_v10 = vor.u32 %v2936_v56, %v2933_v54  ;;  %v3008_v54 = vrot.slane %v3006_v46, 5 }
 0x261   :  { %v2895_v59 = vsel %vm8142_vm2, %v2890_v61, %v10258_v17  ;;  %v7405_v17 = vld [vmem:[%s13225_s0 + $0x148] sm:$0xf]  ;;  %v3022_v61 = vshll.u32 %v7406_v51, 16 }
 0x262   :  { %v2938_v19 = vrot.slane %v2937_v10, 4  ;;  %v3016_v42 = vshrl.u32 %v7405_v17, 16 }
 0x263   :  { %3262 = vrot.lane.b32.xlu1 %v2847_v62, %s8093_s21  ;;  %v2922_v62 = vrot.slane %v2920_v36, 4 }
 0x264   :  { %3260 = vrot.lane.b32.xlu0 %v2833_v9, %s8093_s21  ;;  %3258 = vrot.lane.b32.xlu2 %v2823_v55, %s8093_s21  ;;  %v2968_v9 = vshrl.u32 %v7399_v58, 16  ;;  %v2948_v55 = vrot.slane %v2947_v45, 4  ;;  %v2943_v36 = vsel %vm8142_vm2, %v2938_v19, %v10274_v31  ;;  %v3018_v52 = vrot.slane %v3016_v42, 4  ;;  %v7410_v31 = vld [vmem:[%s13225_s0 + $0x15c] sm:$0xf] }
 0x265   :  { %v2186_v20 = vpop.permute.xlu1 %2185  ;;  %v2923_v15 = vor.u32 %v2922_v62, %v2918_v37  ;;  %v2990_v37 = vrot.slane %v2988_v33, 5  ;;  %v3005_v45 = vrot.slane %v3003_v44, 4  ;;  %v3051_v3 = vshrl.u32 %v7410_v31, 16 }
 0x266   :  { %2322 = vst.msk [vmem:[#allocation2 + $0xe0] sm:$0xf] %vm2265_vm9, %v2186_v20  ;;  %v2184_v2 = vpop.permute.xlu0 %2183  ;;  %v2200_v39 = vpop.permute.xlu2 %2199  ;;  %v2984_v20 = vrot.slane %v2982_v6, 5  ;;  %v2970_v26 = vrot.slane %v2968_v9, 4  ;;  %v2953_v30 = vsel %vm8142_vm2, %v2948_v55, %v2952_v13  ;;  %v3054_v6 = vshll.u32 %v7410_v31, 16 }
 0x267   :  { %2321 = vst.msk [vmem:[#allocation2 + $0xdc] sm:$0xf] %vm2265_vm9, %v2184_v2  ;;  %v2924_v32 = vrot.slane %v2923_v15, 4  ;;  %v3009_v8 = vor.u32 %v3008_v54, %v3005_v45  ;;  %v3036_v9 = vshll.u32 %v7408_v60, 16  ;;  %v3040_v55 = vshrl.u32 %v7408_v60, 16 }
 0x268   :  { %2329 = vst.msk [vmem:[#allocation2 + $0xfc] sm:$0xf] %vm2265_vm9, %v2200_v39  ;;  %v3012_v39 = vshll.u32 %v7405_v17, 16  ;;  %v2971_v47 = vor.u32 %v2970_v26, %v10317_v25  ;;  %v2998_v13 = vshll.u32 %v7403_v57, 16 }
 0x269   :  { %v2929_v41 = vsel %vm8142_vm2, %v2924_v32, %v2928_v35  ;;  %v3010_v26 = vrot.slane %v3009_v8, 4  ;;  %v10376_v17 = vrot.slane %v3036_v9, 5  ;;  %v3042_v27 = vrot.slane %v3040_v55, 4  ;;  %v7413_v35 = vld [vmem:[%s13225_s0 + $0x168] sm:$0xf] }
 0x26a   :  { %v2972_v56 = vrot.slane %v2971_v47, 4  ;;  %v3000_v32 = vrot.slane %v2998_v13, 5  ;;  %v7412_v8 = vld [vmem:[%s13225_s0 + $0x164] sm:$0x1] }
 0x26b   :  { %3268 = vrot.lane.b32.xlu1 %v2881_v4, %s8093_s21  ;;  %v2985_v4 = vor.u32 %v2984_v20, %v2981_v21  ;;  %v3024_v21 = vrot.slane %v3022_v61, 5  ;;  %v3053_v20 = vrot.slane %v3051_v3, 4  ;;  %v3043_v44 = vor.u32 %v3042_v27, %v10376_v17  ;;  %v7417_v61 = vld [vmem:[%s13225_s0 + $0x178] sm:$0xf] }
 0x26c   :  { %3266 = vrot.lane.b32.xlu0 %v2871_v48, %s8093_s21  ;;  %3264 = vrot.lane.b32.xlu2 %v2857_v14, %s8093_s21  ;;  %v2961_v48 = vor.u32 %v2960_v29, %v2957_v28  ;;  %v2992_v14 = vshrl.u32 %v7402_v16, 16  ;;  %v2977_v10 = vsel %vm8142_vm2, %v2972_v56, %v2976_v53  ;;  %v7409_v28 = vld [vmem:[%s13225_s0 + $0x158] sm:$0x1]  ;;  %v7415_v53 = vld [vmem:[%s13225_s0 + $0x170] sm:$0x1]  ;;  %v3108_v55 = vshll.u32 %v7417_v61, 16 }
 0x26d   :  { %v2192_v49 = vpop.permute.xlu1 %2191  ;;  %v2986_v50 = vrot.slane %v2985_v4, 4  ;;  %v3046_v46 = vshll.u32 %v7409_v28, 16  ;;  %v3044_v54 = vrot.slane %v3043_v44, 4  ;;  %v7419_v56 = vld [vmem:[%s13225_s0 + $0x180] sm:$0xf] }
 0x26e   :  { %2325 = vst.msk [vmem:[#allocation2 + $0xec] sm:$0xf] %vm2265_vm9, %v2192_v49  ;;  %v2190_v0 = vpop.permute.xlu0 %2189  ;;  %v3199_v5 = vpop.permute.xlu2 %3198  ;;  %v10342_v49 = vrot.slane %v3012_v39, 5  ;;  %v2962_v58 = vrot.slane %v2961_v48, 4  ;;  %v2994_v62 = vrot.slane %v2992_v14, 4  ;;  %v3078_v14 = vshll.u32 %v7413_v35, 16 }
 0x26f   :  { %2324 = vst.msk [vmem:[#allocation2 + $0xe8] sm:$0xf] %vm2265_vm9, %v2190_v0  ;;  %v2991_v0 = vsel %vm8142_vm2, %v2986_v50, %v2990_v37  ;;  %v3048_v31 = vrot.slane %v3046_v46, 5  ;;  %v3123_v57 = vshrl.u32 %v7419_v56, 16  ;;  %v7423_v28 = vld [vmem:[%s13225_s0 + $0x190] sm:$0xf] }
 0x270   :  { %3389 = vst.msk [vmem:[#allocation2 + $0x8] sm:$0xf] %vm3386_vm10, %v3199_v5  ;;  %v2967_v11 = vsel %vm8142_vm2, %v2962_v58, %v10317_v25  ;;  %v2995_v12 = vor.u32 %v2994_v62, %v2990_v37  ;;  %v7411_v25 = vld [vmem:[%s13225_s0 + $0x160] sm:$0xf]  ;;  %v3080_v60 = vrot.slane %v3078_v14, 5  ;;  %v3094_v62 = vshll.u32 %v7415_v53, 16 }
 0x271   :  { %v3060_v42 = vshll.u32 %v7411_v25, 16  ;;  %v3064_v50 = vshrl.u32 %v7411_v25, 16  ;;  %v3049_v9 = vsel %vm8142_vm2, %v3044_v54, %v3048_v31  ;;  %v10432_v25 = vrot.slane %v3108_v55, 5 }
 0x272   :  { %v2996_v19 = vrot.slane %v2995_v12, 4  ;;  %v3160_v44 = vshrl.u32 %v7423_v28, 16 }
 0x273   :  { %3274 = vrot.lane.b32.xlu1 %v2919_v1, %s8093_s21  ;;  %v3019_v1 = vor.u32 %v3018_v52, %v10342_v49 }
 0x274   :  { %3272 = vrot.lane.b32.xlu0 %v2905_v7, %s8093_s21  ;;  %3270 = vrot.lane.b32.xlu2 %v2895_v59, %s8093_s21  ;;  %v7407_v7 = vld [vmem:[%s13225_s0 + $0x150] sm:$0xf]  ;;  %v7414_v59 = vld [vmem:[%s13225_s0 + $0x16c] sm:$0xf]  ;;  %v3001_v37 = vsel %vm8142_vm2, %v2996_v19, %v3000_v32 }
 0x275   :  { %v2198_v24 = vpop.permute.xlu1 %2197  ;;  %v3027_v15 = vshrl.u32 %v7407_v7, 16  ;;  %v3030_v18 = vshll.u32 %v7407_v7, 16  ;;  %v3020_v16 = vrot.slane %v3019_v1, 4  ;;  %v3084_v29 = vshll.u32 %v7414_v59, 16  ;;  %v7416_v1 = vld [vmem:[%s13225_s0 + $0x174] sm:$0xf] }
 0x276   :  { %2328 = vst.msk [vmem:[#allocation2 + $0xf8] sm:$0xf] %vm2265_vm9, %v2198_v24  ;;  %v2196_v2 = vpop.permute.xlu0 %2195  ;;  %v3205_v38 = vpop.permute.xlu2 %3204  ;;  %v3056_v24 = vrot.slane %v3054_v6, 5  ;;  %v3126_v7 = vshll.u32 %v7419_v56, 16  ;;  %v3099_v13 = vshrl.u32 %v7416_v1, 16 }
 0x277   :  { %2327 = vst.msk [vmem:[#allocation2 + $0xf4] sm:$0xf] %vm2265_vm9, %v2196_v2  ;;  %v3029_v2 = vrot.slane %v3027_v15, 4  ;;  %v3032_v4 = vrot.slane %v3030_v18, 5  ;;  %v10392_v47 = vrot.slane %v3084_v29, 5  ;;  %v3096_v15 = vrot.slane %v3094_v62, 5 }
 0x278   :  { %3392 = vst.msk [vmem:[#allocation2 + $0x14] sm:$0xf] %vm3386_vm10, %v3205_v38  ;;  %v3025_v38 = vsel %vm8142_vm2, %v3020_v16, %v3024_v21  ;;  %v3057_v39 = vor.u32 %v3056_v24, %v3053_v20  ;;  %v3070_v21 = vshll.u32 %v7412_v8, 16  ;;  %v3125_v20 = vrot.slane %v3123_v57, 4  ;;  %v7425_v57 = vld [vmem:[%s13225_s0 + $0x198] sm:$0xf] }
 0x279   :  { %v3033_v51 = vor.u32 %v3032_v4, %v3029_v2  ;;  %v3128_v24 = vrot.slane %v3126_v7, 5  ;;  %v3101_v29 = vrot.slane %v3099_v13, 4  ;;  %v7422_v4 = vld [vmem:[%s13225_s0 + $0x18c] sm:$0xf]  ;;  %v3171_v13 = vshrl.u32 %v7425_v57, 16 }
 0x27a   :  { %v3058_v52 = vrot.slane %v3057_v39, 4  ;;  %v3072_v2 = vrot.slane %v3070_v21, 5  ;;  %v3150_v14 = vshll.u32 %v7422_v4, 16 }
 0x27b   :  { %3280 = vrot.lane.b32.xlu1 %v2953_v30, %s8093_s21  ;;  %v3088_v30 = vshrl.u32 %v7414_v59, 16  ;;  %v3102_v59 = vshll.u32 %v7416_v1, 16 }
 0x27c   :  { %3278 = vrot.lane.b32.xlu0 %v2943_v36, %s8093_s21  ;;  %3276 = vrot.lane.b32.xlu2 %v2929_v41, %s8093_s21  ;;  %v3075_v36 = vshrl.u32 %v7413_v35, 16  ;;  %v3015_v41 = vsel %vm8142_vm2, %v3010_v26, %v10342_v49  ;;  %v7420_v26 = vld [vmem:[%s13225_s0 + $0x184] sm:$0xf] }
 0x27d   :  { %v3197_v40 = vpop.permute.xlu1 %3196  ;;  %v3090_v48 = vrot.slane %v3088_v30, 4  ;;  %v3104_v30 = vrot.slane %v3102_v59, 5  ;;  %v3132_v39 = vshll.u32 %v7420_v26, 16  ;;  %v3174_v59 = vshll.u32 %v7425_v57, 16 }
 0x27e   :  { %3388 = vst.msk [vmem:[#allocation2 + $0x4] sm:$0xf] %vm3386_vm10, %v3197_v40  ;;  %v3195_v63 = vpop.permute.xlu0 %3194  ;;  %v3211_v5 = vpop.permute.xlu2 %3210  ;;  %v3062_v40 = vrot.slane %v3060_v42, 5  ;;  %v3077_v58 = vrot.slane %v3075_v36, 4  ;;  %v3147_v36 = vshrl.u32 %v7422_v4, 16 }
 0x27f   :  { %3387 = vst.msk [vmem:[#allocation2] sm:$0xf] %vm3386_vm10, %v3195_v63  ;;  %v3091_v49 = vor.u32 %v3090_v48, %v10392_v47  ;;  %v3034_v63 = vrot.slane %v3033_v51, 4 }
 0x280   :  { %3395 = vst.msk [vmem:[#allocation2 + $0x20] sm:$0xf] %vm3386_vm10, %v3211_v5  ;;  %v3063_v3 = vsel %vm8142_vm2, %v3058_v52, %v3062_v40  ;;  %v3081_v12 = vor.u32 %v3080_v60, %v3077_v58  ;;  %v3152_v58 = vrot.slane %v3150_v14, 5 }
 0x281   :  { %v3039_v18 = vsel %vm8142_vm2, %v3034_v63, %v10376_v17  ;;  %v7418_v17 = vld [vmem:[%s13225_s0 + $0x17c] sm:$0x1] }
 0x282   :  { %v3082_v32 = vrot.slane %v3081_v12, 4  ;;  %v3118_v48 = vshll.u32 %v7418_v17, 16 }
 0x283   :  { %3286 = vrot.lane.b32.xlu1 %v2991_v0, %s8093_s21  ;;  %v3066_v0 = vrot.slane %v3064_v50, 4 }
 0x284   :  { %3284 = vrot.lane.b32.xlu0 %v2977_v10, %s8093_s21  ;;  %3282 = vrot.lane.b32.xlu2 %v2967_v11, %s8093_s21  ;;  %v3112_v10 = vshrl.u32 %v7417_v61, 16  ;;  %v3092_v11 = vrot.slane %v3091_v49, 4  ;;  %v3087_v50 = vsel %vm8142_vm2, %v3082_v32, %v10392_v47  ;;  %v3120_v56 = vrot.slane %v3118_v48, 5  ;;  %v7424_v49 = vld [vmem:[%s13225_s0 + $0x194] sm:$0x1] }
 0x285   :  { %v3203_v23 = vpop.permute.xlu1 %3202  ;;  %v3067_v16 = vor.u32 %v3066_v0, %v3062_v40  ;;  %v3134_v40 = vrot.slane %v3132_v39, 5  ;;  %v3149_v47 = vrot.slane %v3147_v36, 4  ;;  %v7426_v61 = vld [vmem:[%s13225_s0 + $0x19c] sm:$0xf]  ;;  %v7429_v32 = vld [vmem:[%s13225_s0 + $0x10] sm:$0xf] }
 0x286   :  { %3391 = vst.msk [vmem:[#allocation2 + $0x10] sm:$0xf] %vm3386_vm10, %v3203_v23  ;;  %v3201_v33 = vpop.permute.xlu0 %3200  ;;  %v3217_v43 = vpop.permute.xlu2 %3216  ;;  %v3114_v27 = vrot.slane %v3112_v10, 4  ;;  %v3097_v19 = vsel %vm8142_vm2, %v3092_v11, %v3096_v15  ;;  %v3180_v55 = vshll.u32 %v7426_v61, 16  ;;  %v3184_v10 = vshrl.u32 %v7426_v61, 16 }
 0x287   :  { %3390 = vst.msk [vmem:[#allocation2 + $0xc] sm:$0xf] %vm3386_vm10, %v3201_v33  ;;  %v3068_v35 = vrot.slane %v3067_v16, 4  ;;  %v3153_v8 = vor.u32 %v3152_v58, %v3149_v47 }
 0x288   :  { %3398 = vst.msk [vmem:[#allocation2 + $0x2c] sm:$0xf] %vm3386_vm10, %v3217_v43  ;;  %v3156_v43 = vshll.u32 %v7423_v28, 16  ;;  %v3115_v46 = vor.u32 %v3114_v27, %v10432_v25  ;;  %v3176_v27 = vrot.slane %v3174_v59, 5 }
 0x289   :  { %v3073_v51 = vsel %vm8142_vm2, %v3068_v35, %v3072_v2  ;;  %v3154_v21 = vrot.slane %v3153_v8, 4  ;;  %v7436_v8 = vld [vmem:[%s13225_s0 + $0x2c] sm:$0x1] }
 0x28a   :  { %v10457_v53 = vrot.slane %v3156_v43, 5  ;;  %v3116_v31 = vrot.slane %v3115_v46, 4 }
 0x28b   :  { %3292 = vrot.lane.b32.xlu1 %v3025_v38, %s8093_s21  ;;  %v3129_v38 = vor.u32 %v3128_v24, %v3125_v20  ;;  %v3182_v20 = vrot.slane %v3180_v55, 5  ;;  %v3186_v24 = vrot.slane %v3184_v10, 4  ;;  %v7441_v10 = vld [vmem:[%s13225_s0 + $0x40] sm:$0xf] }
 0x28c   :  { %3290 = vrot.lane.b32.xlu0 %v3015_v41, %s8093_s21  ;;  %3288 = vrot.lane.b32.xlu2 %v3001_v37, %s8093_s21  ;;  %v3105_v41 = vor.u32 %v3104_v30, %v3101_v29  ;;  %v3136_v37 = vshrl.u32 %v7420_v26, 16  ;;  %v3121_v7 = vsel %vm8142_vm2, %v3116_v31, %v3120_v56  ;;  %v7427_v29 = vld [vmem:[%s13225_s0 + $0x1a0] sm:$0x1]  ;;  %v3159_v35 = vsel %vm8142_vm2, %v3154_v21, %v10457_v53  ;;  %v7430_v31 = vld [vmem:[%s13225_s0 + $0x14] sm:$0x1] }
 0x28d   :  { %v3209_v45 = vpop.permute.xlu1 %3208  ;;  %v3130_v52 = vrot.slane %v3129_v38, 4  ;;  %v3187_v2 = vor.u32 %v3186_v24, %v3182_v20  ;;  %v3190_v4 = vshll.u32 %v7427_v29, 16  ;;  %v3648_v58 = vrot.slane %v7430_v31, 5  ;;  %v7442_v21 = vld [vmem:[%s13225_s0 + $0x44] sm:$0x1] }
 0x28e   :  { %3394 = vst.msk [vmem:[#allocation2 + $0x1c] sm:$0xf] %vm3386_vm10, %v3209_v45  ;;  %v3207_v5 = vpop.permute.xlu0 %3206  ;;  %v3223_v6 = vpop.permute.xlu2 %3222  ;;  %v3162_v45 = vrot.slane %v3160_v44, 4  ;;  %v3106_v60 = vrot.slane %v3105_v41, 4  ;;  %v3138_v62 = vrot.slane %v3136_v37, 4 }
 0x28f   :  { %3393 = vst.msk [vmem:[#allocation2 + $0x18] sm:$0xf] %vm3386_vm10, %v3207_v5  ;;  %v3135_v0 = vsel %vm8142_vm2, %v3130_v52, %v3134_v40  ;;  %v3166_v5 = vshll.u32 %v7424_v49, 16  ;;  %v7432_v44 = vld [vmem:[%s13225_s0 + $0x1c] sm:$0xf]  ;;  %v3188_v46 = vrot.slane %v3187_v2, 4 }
 0x290   :  { %3401 = vst.msk [vmem:[#allocation2 + $0x38] sm:$0xf] %vm3386_vm10, %v3223_v6  ;;  %v3163_v1 = vor.u32 %v3162_v45, %v10457_v53  ;;  %v7421_v6 = vld [vmem:[%s13225_s0 + $0x188] sm:$0x1]  ;;  %v3139_v11 = vor.u32 %v3138_v62, %v3134_v40  ;;  %v3192_v48 = vrot.slane %v3190_v4, 5 }
 0x291   :  { %v3142_v12 = vshll.u32 %v7421_v6, 16  ;;  %v7435_v62 = vld [vmem:[%s13225_s0 + $0x28] sm:$0xf]  ;;  %v7446_v4 = vld [vmem:[%s13225_s0 + $0x54] sm:$0xe] }
 0x292   :  { %v3164_v15 = vrot.slane %v3163_v1, 4  ;;  %v3193_v52 = vsel %vm8142_vm2, %v3188_v46, %v3192_v48  ;;  %v7438_v1 = vld [vmem:[%s13225_s0 + $0x34] sm:$0xf]  ;;  %v7445_v46 = vld [vmem:[%s13225_s0 + $0x50] sm:$0x1] }
 0x293   :  { %3298 = vrot.lane.b32.xlu1 %v3063_v3, %s8093_s21  ;;  %v3144_v26 = vrot.slane %v3142_v12, 5  ;;  %v3662_v12 = vrot.slane %v7436_v8, 5  ;;  %v7443_v48 = vld [vmem:[%s13225_s0 + $0x48] sm:$0xe] }
 0x294   :  { %3296 = vrot.lane.b32.xlu0 %v3049_v9, %s8093_s21  ;;  %3294 = vrot.lane.b32.xlu2 %v3039_v18, %s8093_s21  ;;  %v3111_v9 = vsel %vm8142_vm2, %v3106_v60, %v10432_v25  ;;  %v3168_v18 = vrot.slane %v3166_v5, 5  ;;  %v3173_v25 = vrot.slane %v3171_v13, 4 }
 0x295   :  { %v3215_v23 = vpop.permute.xlu1 %3214 }
 0x296   :  { %3397 = vst.msk [vmem:[#allocation2 + $0x28] sm:$0xf] %vm3386_vm10, %v3215_v23  ;;  %v3213_v33 = vpop.permute.xlu0 %3212  ;;  %v3229_v42 = vpop.permute.xlu2 %3228  ;;  %v3140_v23 = vrot.slane %v3139_v11, 4  ;;  %v3169_v17 = vsel %vm8142_vm2, %v3164_v15, %v3168_v18  ;;  %v3177_v38 = vor.u32 %v3176_v27, %v3173_v25  ;;  %v3673_v18 = vrot.slane %v7441_v10, 5  ;;  %v7440_v25 = vld [vmem:[%s13225_s0 + $0x3c] sm:$0xe] }
 0x297   :  { %3396 = vst.msk [vmem:[#allocation2 + $0x24] sm:$0xf] %vm3386_vm10, %v3213_v33  ;;  %v7439_v27 = vld [vmem:[%s13225_s0 + $0x38] sm:$0x1] }
 0x298   :  { %3404 = vst.msk [vmem:[#allocation2 + $0x44] sm:$0xf] %vm3386_vm10, %v3229_v42  ;;  %v3145_v33 = vsel %vm8142_vm2, %v3140_v23, %v3144_v26  ;;  %v3645_v42 = vrot.slane %v7429_v32, 5  ;;  %v3178_v36 = vrot.slane %v3177_v38, 4  ;;  %v3675_v23 = vrot.slane %v3673_v18, 4 }
 0x299   :  { %v3676_v26 = vrot.slane %v7442_v21, 5 }
 0x29a   :  { %v3183_v40 = vsel %vm8142_vm2, %v3178_v36, %v3182_v20  ;;  %v3647_v47 = vrot.slane %v3645_v42, 4 }
 0x29b   :  { %3304 = vrot.lane.b32.xlu1 %v3097_v19, %s8093_s21  ;;  %v7428_v19 = vld [vmem:[%s13225_s0 + $0xc] sm:$0xe]  ;;  %v3677_v32 = vsel %vm8874_vm7, %v3675_v23, %v3676_v26  ;;  %v7460_v26 = vld [vmem:[%s13225_s0 + $0x8c] sm:$0x1] }
 0x29c   :  { %3302 = vrot.lane.b32.xlu0 %v3087_v50, %s8093_s21  ;;  %3300 = vrot.lane.b32.xlu2 %v3073_v51, %s8093_s21  ;;  %v7524_v39 = vrot.slane %v7428_v19, 9  ;;  %v3652_v50 = vrot.slane %v7432_v44, 5  ;;  %v7433_v51 = vld [vmem:[%s13225_s0 + $0x20] sm:$0x1]  ;;  %v3649_v6 = vsel %vm8874_vm7, %v3647_v47, %v3648_v58  ;;  %v7449_v47 = vld [vmem:[%s13225_s0 + $0x60] sm:$0xe] }
 0x29d   :  { %v3221_v54 = vpop.permute.xlu1 %3220  ;;  %v3655_v45 = vrot.slane %v7433_v51, 5  ;;  %v7448_v58 = vld [vmem:[%s13225_s0 + $0x5c] sm:$0x1] }
 0x29e   :  { %3400 = vst.msk [vmem:[#allocation2 + $0x34] sm:$0xf] %vm3386_vm10, %v3221_v54  ;;  %v3219_v63 = vpop.permute.xlu0 %3218  ;;  %v3235_v3 = vpop.permute.xlu2 %3234  ;;  %v3646_v41 = vsel %vm8874_vm7, %v7524_v39, %v3645_v42  ;;  %v3654_v53 = vrot.slane %v3652_v50, 4  ;;  %v7431_v54 = vld [vmem:[%s13225_s0 + $0x18] sm:$0xe] }
 0x29f   :  { %3399 = vst.msk [vmem:[#allocation2 + $0x30] sm:$0xf] %vm3386_vm10, %v3219_v63  ;;  %v7525_v49 = vrot.slane %v7431_v54, 9 }
 0x2a0   :  { %3407 = vst.msk [vmem:[#allocation2 + $0x50] sm:$0xf] %vm3386_vm10, %v3235_v3  ;;  %v3656_v61 = vsel %vm8874_vm7, %v3654_v53, %v3655_v45  ;;  %v3659_v3 = vrot.slane %v7435_v62, 5  ;;  %v7451_v45 = vld [vmem:[%s13225_s0 + $0x68] sm:$0x1] }
 0x2a1   :  { %v3653_v5 = vsel %vm8874_vm7, %v7525_v49, %v3652_v50  ;;  %v3683_v50 = vrot.slane %v7445_v46, 5  ;;  %v3697_v49 = vrot.slane %v7451_v45, 5 }
 0x2a2   :  { %v3661_v11 = vrot.slane %v3659_v3, 4 }
 0x2a3   :  { %3310 = vrot.lane.b32.xlu1 %v3135_v0, %s8093_s21  ;;  %v7437_v0 = vld [vmem:[%s13225_s0 + $0x30] sm:$0xe] }
 0x2a4   :  { %3308 = vrot.lane.b32.xlu0 %v3121_v7, %s8093_s21  ;;  %3306 = vrot.lane.b32.xlu2 %v3111_v9, %s8093_s21  ;;  %v7527_v57 = vrot.slane %v7437_v0, 9  ;;  %v3666_v7 = vrot.slane %v7438_v1, 5  ;;  %v7434_v9 = vld [vmem:[%s13225_s0 + $0x24] sm:$0xe]  ;;  %v3663_v20 = vsel %vm8874_vm7, %v3661_v11, %v3662_v12  ;;  %v7454_v11 = vld [vmem:[%s13225_s0 + $0x74] sm:$0x1] }
 0x2a5   :  { %v3227_v16 = vpop.permute.xlu1 %3226  ;;  %v7526_v13 = vrot.slane %v7434_v9, 9  ;;  %v7452_v12 = vld [vmem:[%s13225_s0 + $0x6c] sm:$0xe] }
 0x2a6   :  { %3403 = vst.msk [vmem:[#allocation2 + $0x40] sm:$0xf] %vm3386_vm10, %v3227_v16  ;;  %v3225_v28 = vpop.permute.xlu0 %3224  ;;  %v3241_v30 = vpop.permute.xlu2 %3240  ;;  %v3667_v15 = vsel %vm8874_vm7, %v7527_v57, %v3666_v7  ;;  %v3668_v29 = vrot.slane %v3666_v7, 4  ;;  %v7456_v57 = vld [vmem:[%s13225_s0 + $0x7c] sm:$0xf] }
 0x2a7   :  { %3402 = vst.msk [vmem:[#allocation2 + $0x3c] sm:$0xf] %vm3386_vm10, %v3225_v28  ;;  %v3660_v24 = vsel %vm8874_vm7, %v7526_v13, %v3659_v3  ;;  %v3708_v10 = vrot.slane %v7456_v57, 5 }
 0x2a8   :  { %3410 = vst.msk [vmem:[#allocation2 + $0x5c] sm:$0xf] %vm3386_vm10, %v3241_v30  ;;  %v3669_v30 = vrot.slane %v7439_v27, 5 }
 0x2aa   :  { %v3670_v42 = vsel %vm8874_vm7, %v3668_v29, %v3669_v30  ;;  %v7458_v29 = vld [vmem:[%s13225_s0 + $0x84] sm:$0xe]  ;;  %v7457_v30 = vld [vmem:[%s13225_s0 + $0x80] sm:$0x1] }
 0x2ab   :  { %3316 = vrot.lane.b32.xlu1 %v3169_v17, %s8093_s21  ;;  %v7528_v17 = vrot.slane %v7440_v25, 9 }
 0x2ac   :  { %3314 = vrot.lane.b32.xlu0 %v3159_v35, %s8093_s21  ;;  %3312 = vrot.lane.b32.xlu2 %v3145_v33, %s8093_s21  ;;  %v7444_v35 = vld [vmem:[%s13225_s0 + $0x4c] sm:$0xf]  ;;  %v7447_v33 = vld [vmem:[%s13225_s0 + $0x58] sm:$0xf] }
 0x2ad   :  { %v3233_v43 = vpop.permute.xlu1 %3232  ;;  %v3674_v38 = vsel %vm8874_vm7, %v7528_v17, %v3673_v18  ;;  %v3680_v39 = vrot.slane %v7444_v35, 5  ;;  %v3687_v44 = vrot.slane %v7447_v33, 5  ;;  %v3704_v18 = vrot.slane %v7454_v11, 5 }
 0x2ae   :  { %3406 = vst.msk [vmem:[#allocation2 + $0x4c] sm:$0xf] %vm3386_vm10, %v3233_v43  ;;  %v3231_v14 = vpop.permute.xlu0 %3230  ;;  %v3247_v37 = vpop.permute.xlu2 %3246  ;;  %v7530_v43 = vrot.slane %v7446_v4, 9  ;;  %v3718_v17 = vrot.slane %v7460_v26, 5  ;;  %v3710_v35 = vrot.slane %v3708_v10, 4 }
 0x2af   :  { %3405 = vst.msk [vmem:[#allocation2 + $0x48] sm:$0xf] %vm3386_vm10, %v3231_v14  ;;  %v7450_v14 = vld [vmem:[%s13225_s0 + $0x64] sm:$0xf]  ;;  %v3689_v62 = vrot.slane %v3687_v44, 4 }
 0x2b0   :  { %3413 = vst.msk [vmem:[#allocation2 + $0x68] sm:$0xf] %vm3386_vm10, %v3247_v37  ;;  %v7529_v37 = vrot.slane %v7443_v48, 9 }
 0x2b2   :  { %v3681_v31 = vsel %vm8874_vm7, %v7529_v37, %v3680_v39 }
 0x2b3   :  { %3867 = vrot.lane.b32.xlu1 %v3646_v41, %s8094_s22  ;;  %v3682_v41 = vrot.slane %v3680_v39, 4 }
 0x2b4   :  { %3320 = vrot.lane.b32.xlu0 %v3193_v52, %s8093_s21  ;;  %3318 = vrot.lane.b32.xlu2 %v3183_v40, %s8093_s21  ;;  %v3688_v52 = vsel %vm8874_vm7, %v7530_v43, %v3687_v44  ;;  %v3694_v40 = vrot.slane %v7450_v14, 5  ;;  %v7465_v43 = vld [vmem:[%s13225_s0 + $0xa0] sm:$0xf] }
 0x2b5   :  { %v3239_v56 = vpop.permute.xlu1 %3238  ;;  %v3684_v54 = vsel %vm8874_vm7, %v3682_v41, %v3683_v50  ;;  %v3729_v14 = vrot.slane %v7465_v43, 5  ;;  %v7463_v41 = vld [vmem:[%s13225_s0 + $0x98] sm:$0x1]  ;;  %v7461_v50 = vld [vmem:[%s13225_s0 + $0x90] sm:$0xe] }
 0x2b6   :  { %3409 = vst.msk [vmem:[#allocation2 + $0x58] sm:$0xf] %vm3386_vm10, %v3239_v56  ;;  %v3237_v60 = vpop.permute.xlu0 %3236  ;;  %v3253_v63 = vpop.permute.xlu2 %3252  ;;  %v3696_v56 = vrot.slane %v3694_v40, 4 }
 0x2b7   :  { %3408 = vst.msk [vmem:[#allocation2 + $0x54] sm:$0xf] %vm3386_vm10, %v3237_v60 }
 0x2b8   :  { %3416 = vst.msk [vmem:[#allocation2 + $0x74] sm:$0xf] %vm3386_vm10, %v3253_v63  ;;  %v3690_v63 = vrot.slane %v7448_v58, 5  ;;  %v3698_v1 = vsel %vm8874_vm7, %v3696_v56, %v3697_v49  ;;  %v7469_v49 = vld [vmem:[%s13225_s0 + $0xb0] sm:$0x1] }
 0x2ba   :  { %v3691_v9 = vsel %vm8874_vm7, %v3689_v62, %v3690_v63  ;;  %v7467_v62 = vld [vmem:[%s13225_s0 + $0xa8] sm:$0xe]  ;;  %v7466_v63 = vld [vmem:[%s13225_s0 + $0xa4] sm:$0x1] }
 0x2bb   :  { %3873 = vrot.lane.b32.xlu1 %v3656_v61, %s8094_s22  ;;  %v7531_v61 = vrot.slane %v7449_v47, 9 }
 0x2bc   :  { %3871 = vrot.lane.b32.xlu0 %v3653_v5, %s8094_s22  ;;  %3869 = vrot.lane.b32.xlu2 %v3649_v6, %s8094_s22  ;;  %v7453_v5 = vld [vmem:[%s13225_s0 + $0x70] sm:$0xf]  ;;  %v7455_v6 = vld [vmem:[%s13225_s0 + $0x78] sm:$0xe] }
 0x2bd   :  { %v3245_v55 = vpop.permute.xlu1 %3244  ;;  %v3695_v7 = vsel %vm8874_vm7, %v7531_v61, %v3694_v40  ;;  %v3701_v8 = vrot.slane %v7453_v5, 5  ;;  %v3725_v40 = vrot.slane %v7463_v41, 5  ;;  %v3739_v61 = vrot.slane %v7469_v49, 5 }
 0x2be   :  { %3412 = vst.msk [vmem:[#allocation2 + $0x64] sm:$0xf] %vm3386_vm10, %v3245_v55  ;;  %v3243_v59 = vpop.permute.xlu0 %3242  ;;  %v3259_v16 = vpop.permute.xlu2 %3258  ;;  %v7533_v55 = vrot.slane %v7455_v6, 9  ;;  %v3731_v5 = vrot.slane %v3729_v14, 4 }
 0x2bf   :  { %3411 = vst.msk [vmem:[#allocation2 + $0x60] sm:$0xf] %vm3386_vm10, %v3243_v59  ;;  %v7459_v59 = vld [vmem:[%s13225_s0 + $0x88] sm:$0xf] }
 0x2c0   :  { %3419 = vst.msk [vmem:[#allocation2 + $0x80] sm:$0xf] %vm3386_vm10, %v3259_v16  ;;  %v7532_v16 = vrot.slane %v7452_v12, 9 }
 0x2c2   :  { %v3702_v27 = vsel %vm8874_vm7, %v7532_v16, %v3701_v8 }
 0x2c3   :  { %3879 = vrot.lane.b32.xlu1 %v3667_v15, %s8094_s22  ;;  %v3703_v15 = vrot.slane %v3701_v8, 4 }
 0x2c4   :  { %3877 = vrot.lane.b32.xlu0 %v3663_v20, %s8094_s22  ;;  %3875 = vrot.lane.b32.xlu2 %v3660_v24, %s8094_s22  ;;  %v3709_v20 = vsel %vm8874_vm7, %v7533_v55, %v3708_v10  ;;  %v3715_v24 = vrot.slane %v7459_v59, 5  ;;  %v7474_v55 = vld [vmem:[%s13225_s0 + $0xc4] sm:$0xf] }
 0x2c5   :  { %v3251_v28 = vpop.permute.xlu1 %3250  ;;  %v3705_v25 = vsel %vm8874_vm7, %v3703_v15, %v3704_v18  ;;  %v3750_v59 = vrot.slane %v7474_v55, 5  ;;  %v7472_v15 = vld [vmem:[%s13225_s0 + $0xbc] sm:$0x1]  ;;  %v7470_v18 = vld [vmem:[%s13225_s0 + $0xb4] sm:$0xe] }
 0x2c6   :  { %3415 = vst.msk [vmem:[#allocation2 + $0x70] sm:$0xf] %vm3386_vm10, %v3251_v28  ;;  %v3249_v19 = vpop.permute.xlu0 %3248  ;;  %v3265_v2 = vpop.permute.xlu2 %3264  ;;  %v3717_v28 = vrot.slane %v3715_v24, 4 }
 0x2c7   :  { %3414 = vst.msk [vmem:[#allocation2 + $0x6c] sm:$0xf] %vm3386_vm10, %v3249_v19 }
 0x2c8   :  { %3422 = vst.msk [vmem:[#allocation2 + $0x8c] sm:$0xf] %vm3386_vm10, %v3265_v2  ;;  %v3711_v2 = vrot.slane %v7457_v30, 5  ;;  %v3719_v33 = vsel %vm8874_vm7, %v3717_v28, %v3718_v17  ;;  %v7478_v17 = vld [vmem:[%s13225_s0 + $0xec] sm:$0x1] }
 0x2ca   :  { %v3712_v48 = vsel %vm8874_vm7, %v3710_v35, %v3711_v2  ;;  %v7476_v35 = vld [vmem:[%s13225_s0 + $0xe4] sm:$0xe]  ;;  %v7475_v2 = vld [vmem:[%s13225_s0 + $0xc8] sm:$0x1] }
 0x2cb   :  { %3885 = vrot.lane.b32.xlu1 %v3677_v32, %s8094_s22  ;;  %v7534_v32 = vrot.slane %v7458_v29, 9 }
 0x2cc   :  { %3883 = vrot.lane.b32.xlu0 %v3674_v38, %s8094_s22  ;;  %3881 = vrot.lane.b32.xlu2 %v3670_v42, %s8094_s22  ;;  %v7462_v38 = vld [vmem:[%s13225_s0 + $0x94] sm:$0xf]  ;;  %v7464_v42 = vld [vmem:[%s13225_s0 + $0x9c] sm:$0xe] }
 0x2cd   :  { %v3257_v36 = vpop.permute.xlu1 %3256  ;;  %v3716_v44 = vsel %vm8874_vm7, %v7534_v32, %v3715_v24  ;;  %v3722_v46 = vrot.slane %v7462_v38, 5  ;;  %v3746_v24 = vrot.slane %v7472_v15, 5  ;;  %v3760_v32 = vrot.slane %v7478_v17, 5 }
 0x2ce   :  { %3418 = vst.msk [vmem:[#allocation2 + $0x7c] sm:$0xf] %vm3386_vm10, %v3257_v36  ;;  %v3255_v51 = vpop.permute.xlu0 %3254  ;;  %v3271_v53 = vpop.permute.xlu2 %3270  ;;  %v7536_v36 = vrot.slane %v7464_v42, 9  ;;  %v3752_v38 = vrot.slane %v3750_v59, 4 }
 0x2cf   :  { %3417 = vst.msk [vmem:[#allocation2 + $0x78] sm:$0xf] %vm3386_vm10, %v3255_v51  ;;  %v7468_v51 = vld [vmem:[%s13225_s0 + $0xac] sm:$0xf] }
 0x2d0   :  { %3425 = vst.msk [vmem:[#allocation2 + $0x98] sm:$0xf] %vm3386_vm10, %v3271_v53  ;;  %v7535_v53 = vrot.slane %v7461_v50, 9 }
 0x2d2   :  { %v3723_v58 = vsel %vm8874_vm7, %v7535_v53, %v3722_v46 }
 0x2d3   :  { %3891 = vrot.lane.b32.xlu1 %v3688_v52, %s8094_s22  ;;  %v3724_v52 = vrot.slane %v3722_v46, 4 }
 0x2d4   :  { %3889 = vrot.lane.b32.xlu0 %v3684_v54, %s8094_s22  ;;  %3887 = vrot.lane.b32.xlu2 %v3681_v31, %s8094_s22  ;;  %v3730_v54 = vsel %vm8874_vm7, %v7536_v36, %v3729_v14  ;;  %v3736_v31 = vrot.slane %v7468_v51, 5  ;;  %v7483_v36 = vld [vmem:[%s13225_s0 + $0x100] sm:$0xf] }
 0x2d5   :  { %v3263_v60 = vpop.permute.xlu1 %3262  ;;  %v3726_v47 = vsel %vm8874_vm7, %v3724_v52, %v3725_v40  ;;  %v3771_v51 = vrot.slane %v7483_v36, 5  ;;  %v7481_v52 = vld [vmem:[%s13225_s0 + $0xf8] sm:$0x1]  ;;  %v7479_v40 = vld [vmem:[%s13225_s0 + $0xf0] sm:$0xe] }
 0x2d6   :  { %3421 = vst.msk [vmem:[#allocation2 + $0x88] sm:$0xf] %vm3386_vm10, %v3263_v60  ;;  %v3261_v0 = vpop.permute.xlu0 %3260  ;;  %v3277_v3 = vpop.permute.xlu2 %3276  ;;  %v3738_v60 = vrot.slane %v3736_v31, 4 }
 0x2d7   :  { %3420 = vst.msk [vmem:[#allocation2 + $0x84] sm:$0xf] %vm3386_vm10, %v3261_v0 }
 0x2d8   :  { %3428 = vst.msk [vmem:[#allocation2 + $0xa4] sm:$0xf] %vm3386_vm10, %v3277_v3  ;;  %v3732_v3 = vrot.slane %v7466_v63, 5  ;;  %v3740_v57 = vsel %vm8874_vm7, %v3738_v60, %v3739_v61  ;;  %v7487_v61 = vld [vmem:[%s13225_s0 + $0x110] sm:$0x1] }
 0x2da   :  { %v3733_v12 = vsel %vm8874_vm7, %v3731_v5, %v3732_v3  ;;  %v7485_v5 = vld [vmem:[%s13225_s0 + $0x108] sm:$0xe]  ;;  %v7484_v3 = vld [vmem:[%s13225_s0 + $0x104] sm:$0x1] }
 0x2db   :  { %3897 = vrot.lane.b32.xlu1 %v3698_v1, %s8094_s22  ;;  %v7537_v1 = vrot.slane %v7467_v62, 9 }
 0x2dc   :  { %3895 = vrot.lane.b32.xlu0 %v3695_v7, %s8094_s22  ;;  %3893 = vrot.lane.b32.xlu2 %v3691_v9, %s8094_s22  ;;  %v7471_v7 = vld [vmem:[%s13225_s0 + $0xb8] sm:$0xf]  ;;  %v7473_v9 = vld [vmem:[%s13225_s0 + $0xc0] sm:$0xe] }
 0x2dd   :  { %v3269_v13 = vpop.permute.xlu1 %3268  ;;  %v3737_v10 = vsel %vm8874_vm7, %v7537_v1, %v3736_v31  ;;  %v3743_v11 = vrot.slane %v7471_v7, 5  ;;  %v3767_v31 = vrot.slane %v7481_v52, 5  ;;  %v3781_v1 = vrot.slane %v7487_v61, 5 }
 0x2de   :  { %3424 = vst.msk [vmem:[#allocation2 + $0x94] sm:$0xf] %vm3386_vm10, %v3269_v13  ;;  %v3267_v21 = vpop.permute.xlu0 %3266  ;;  %v3283_v23 = vpop.permute.xlu2 %3282  ;;  %v7539_v13 = vrot.slane %v7473_v9, 9  ;;  %v3773_v7 = vrot.slane %v3771_v51, 4 }
 0x2df   :  { %3423 = vst.msk [vmem:[#allocation2 + $0x90] sm:$0xf] %vm3386_vm10, %v3267_v21  ;;  %v7477_v21 = vld [vmem:[%s13225_s0 + $0xe8] sm:$0xf] }
 0x2e0   :  { %3431 = vst.msk [vmem:[#allocation2 + $0xb0] sm:$0xf] %vm3386_vm10, %v3283_v23  ;;  %v7538_v23 = vrot.slane %v7470_v18, 9 }
 0x2e2   :  { %v3744_v30 = vsel %vm8874_vm7, %v7538_v23, %v3743_v11 }
 0x2e3   :  { %3903 = vrot.lane.b32.xlu1 %v3709_v20, %s8094_s22  ;;  %v3745_v20 = vrot.slane %v3743_v11, 4  ;;  %v7489_v11 = vld [vmem:[%s13225_s0 + $0x118] sm:$0xf] }
 0x2e4   :  { %3901 = vrot.lane.b32.xlu0 %v3705_v25, %s8094_s22  ;;  %3899 = vrot.lane.b32.xlu2 %v3702_v27, %s8094_s22  ;;  %v3751_v25 = vsel %vm8874_vm7, %v7539_v13, %v3750_v59  ;;  %v3757_v27 = vrot.slane %v7477_v21, 5  ;;  %v7492_v13 = vld [vmem:[%s13225_s0 + $0x124] sm:$0xf]  ;;  %v3785_v15 = vrot.slane %v7489_v11, 5 }
 0x2e5   :  { %v3275_v19 = vpop.permute.xlu1 %3274  ;;  %v3747_v29 = vsel %vm8874_vm7, %v3745_v20, %v3746_v24  ;;  %v3792_v21 = vrot.slane %v7492_v13, 5  ;;  %v7490_v20 = vld [vmem:[%s13225_s0 + $0x11c] sm:$0x1]  ;;  %v7488_v24 = vld [vmem:[%s13225_s0 + $0x114] sm:$0xe] }
 0x2e6   :  { %3427 = vst.msk [vmem:[#allocation2 + $0xa0] sm:$0xf] %vm3386_vm10, %v3275_v19  ;;  %v3273_v4 = vpop.permute.xlu0 %3272  ;;  %v3289_v39 = vpop.permute.xlu2 %3288  ;;  %v3759_v19 = vrot.slane %v3757_v27, 4 }
 0x2e7   :  { %3426 = vst.msk [vmem:[#allocation2 + $0x9c] sm:$0xf] %vm3386_vm10, %v3273_v4 }
 0x2e8   :  { %3434 = vst.msk [vmem:[#allocation2 + $0xbc] sm:$0xf] %vm3386_vm10, %v3289_v39  ;;  %v3753_v39 = vrot.slane %v7475_v2, 5  ;;  %v3761_v43 = vsel %vm8874_vm7, %v3759_v19, %v3760_v32  ;;  %v7496_v32 = vld [vmem:[%s13225_s0 + $0x134] sm:$0x1] }
 0x2ea   :  { %v3754_v50 = vsel %vm8874_vm7, %v3752_v38, %v3753_v39  ;;  %v7494_v38 = vld [vmem:[%s13225_s0 + $0x12c] sm:$0xe]  ;;  %v7493_v39 = vld [vmem:[%s13225_s0 + $0x128] sm:$0x1] }
 0x2eb   :  { %3909 = vrot.lane.b32.xlu1 %v3719_v33, %s8094_s22  ;;  %v7540_v33 = vrot.slane %v7476_v35, 9 }
 0x2ec   :  { %3907 = vrot.lane.b32.xlu0 %v3716_v44, %s8094_s22  ;;  %3905 = vrot.lane.b32.xlu2 %v3712_v48, %s8094_s22  ;;  %v7480_v44 = vld [vmem:[%s13225_s0 + $0xf4] sm:$0xf]  ;;  %v7482_v48 = vld [vmem:[%s13225_s0 + $0xfc] sm:$0xe] }
 0x2ed   :  { %v3281_v37 = vpop.permute.xlu1 %3280  ;;  %v3758_v14 = vsel %vm8874_vm7, %v7540_v33, %v3757_v27  ;;  %v3764_v41 = vrot.slane %v7480_v44, 5  ;;  %v3788_v27 = vrot.slane %v7490_v20, 5  ;;  %v3802_v33 = vrot.slane %v7496_v32, 5 }
 0x2ee   :  { %3430 = vst.msk [vmem:[#allocation2 + $0xac] sm:$0xf] %vm3386_vm10, %v3281_v37  ;;  %v3279_v45 = vpop.permute.xlu0 %3278  ;;  %v3295_v56 = vpop.permute.xlu2 %3294  ;;  %v7542_v37 = vrot.slane %v7482_v48, 9  ;;  %v3794_v44 = vrot.slane %v3792_v21, 4 }
 0x2ef   :  { %3429 = vst.msk [vmem:[#allocation2 + $0xa8] sm:$0xf] %vm3386_vm10, %v3279_v45  ;;  %v7486_v45 = vld [vmem:[%s13225_s0 + $0x10c] sm:$0xf] }
 0x2f0   :  { %3437 = vst.msk [vmem:[#allocation2 + $0xc8] sm:$0xf] %vm3386_vm10, %v3295_v56  ;;  %v7541_v56 = vrot.slane %v7479_v40, 9 }
 0x2f2   :  { %v3765_v63 = vsel %vm8874_vm7, %v7541_v56, %v3764_v41 }
 0x2f3   :  { %3915 = vrot.lane.b32.xlu1 %v3730_v54, %s8094_s22  ;;  %v3766_v54 = vrot.slane %v3764_v41, 4 }
 0x2f4   :  { %3913 = vrot.lane.b32.xlu0 %v3726_v47, %s8094_s22  ;;  %3911 = vrot.lane.b32.xlu2 %v3723_v58, %s8094_s22  ;;  %v3772_v47 = vsel %vm8874_vm7, %v7542_v37, %v3771_v51  ;;  %v3778_v58 = vrot.slane %v7486_v45, 5  ;;  %v7501_v37 = vld [vmem:[%s13225_s0 + $0x148] sm:$0xf] }
 0x2f5   :  { %v3287_v0 = vpop.permute.xlu1 %3286  ;;  %v3768_v62 = vsel %vm8874_vm7, %v3766_v54, %v3767_v31  ;;  %v3813_v45 = vrot.slane %v7501_v37, 5  ;;  %v7499_v54 = vld [vmem:[%s13225_s0 + $0x140] sm:$0x1]  ;;  %v7497_v31 = vld [vmem:[%s13225_s0 + $0x138] sm:$0xe] }
 0x2f6   :  { %3433 = vst.msk [vmem:[#allocation2 + $0xb8] sm:$0xf] %vm3386_vm10, %v3287_v0  ;;  %v3285_v6 = vpop.permute.xlu0 %3284  ;;  %v3301_v8 = vpop.permute.xlu2 %3300  ;;  %v3780_v0 = vrot.slane %v3778_v58, 4 }
 0x2f7   :  { %3432 = vst.msk [vmem:[#allocation2 + $0xb4] sm:$0xf] %vm3386_vm10, %v3285_v6 }
 0x2f8   :  { %3440 = vst.msk [vmem:[#allocation2 + $0xd4] sm:$0xf] %vm3386_vm10, %v3301_v8  ;;  %v3774_v8 = vrot.slane %v7484_v3, 5  ;;  %v3782_v55 = vsel %vm8874_vm7, %v3780_v0, %v3781_v1  ;;  %v7505_v1 = vld [vmem:[%s13225_s0 + $0x158] sm:$0x1] }
 0x2fa   :  { %v3775_v18 = vsel %vm8874_vm7, %v3773_v7, %v3774_v8  ;;  %v7503_v7 = vld [vmem:[%s13225_s0 + $0x150] sm:$0xe]  ;;  %v7502_v8 = vld [vmem:[%s13225_s0 + $0x14c] sm:$0x1] }
 0x2fb   :  { %3921 = vrot.lane.b32.xlu1 %v3740_v57, %s8094_s22  ;;  %v7543_v57 = vrot.slane %v7485_v5, 9  ;;  %v3816_v11 = vrot.slane %v7502_v8, 5 }
 0x2fc   :  { %3919 = vrot.lane.b32.xlu0 %v3737_v10, %s8094_s22  ;;  %3917 = vrot.lane.b32.xlu2 %v3733_v12, %s8094_s22  ;;  %v7491_v10 = vld [vmem:[%s13225_s0 + $0x120] sm:$0xe] }
 0x2fd   :  { %v3293_v16 = vpop.permute.xlu1 %3292  ;;  %v3779_v59 = vsel %vm8874_vm7, %v7543_v57, %v3778_v58  ;;  %v3809_v58 = vrot.slane %v7499_v54, 5  ;;  %v3823_v57 = vrot.slane %v7505_v1, 5 }
 0x2fe   :  { %3436 = vst.msk [vmem:[#allocation2 + $0xc4] sm:$0xf] %vm3386_vm10, %v3293_v16  ;;  %v3291_v26 = vpop.permute.xlu0 %3290  ;;  %v3307_v28 = vpop.permute.xlu2 %3306  ;;  %v7545_v16 = vrot.slane %v7491_v10, 9  ;;  %v3815_v10 = vrot.slane %v3813_v45, 4 }
 0x2ff   :  { %3435 = vst.msk [vmem:[#allocation2 + $0xc0] sm:$0xf] %vm3386_vm10, %v3291_v26  ;;  %v7495_v26 = vld [vmem:[%s13225_s0 + $0x130] sm:$0xf] }
 0x300   :  { %3443 = vst.msk [vmem:[#allocation2 + $0xe0] sm:$0xf] %vm3386_vm10, %v3307_v28  ;;  %v7544_v28 = vrot.slane %v7488_v24, 9  ;;  %v3817_v24 = vsel %vm8874_vm7, %v3815_v10, %v3816_v11  ;;  %v7521_v10 = vld [vmem:[%s13225_s0 + $0x198] sm:$0xe] }
 0x301   :  { %v7520_v11 = vld [vmem:[%s13225_s0 + $0x194] sm:$0x1] }
 0x302   :  { %v3786_v2 = vsel %vm8874_vm7, %v7544_v28, %v3785_v15 }
 0x303   :  { %3927 = vrot.lane.b32.xlu1 %v3751_v25, %s8094_s22  ;;  %v3787_v25 = vrot.slane %v3785_v15, 4 }
 0x304   :  { %3925 = vrot.lane.b32.xlu0 %v3747_v29, %s8094_s22  ;;  %3923 = vrot.lane.b32.xlu2 %v3744_v30, %s8094_s22  ;;  %v3793_v29 = vsel %vm8874_vm7, %v7545_v16, %v3792_v21  ;;  %v3799_v30 = vrot.slane %v7495_v26, 5  ;;  %v7510_v16 = vld [vmem:[%s13225_s0 + $0x16c] sm:$0xf] }
 0x305   :  { %v3299_v4 = vpop.permute.xlu1 %3298  ;;  %v3789_v35 = vsel %vm8874_vm7, %v3787_v25, %v3788_v27  ;;  %v3834_v26 = vrot.slane %v7510_v16, 5  ;;  %v7508_v25 = vld [vmem:[%s13225_s0 + $0x164] sm:$0x1]  ;;  %v7506_v27 = vld [vmem:[%s13225_s0 + $0x15c] sm:$0xe] }
 0x306   :  { %3439 = vst.msk [vmem:[#allocation2 + $0xd0] sm:$0xf] %vm3386_vm10, %v3299_v4  ;;  %v3297_v42 = vpop.permute.xlu0 %3296  ;;  %v3313_v46 = vpop.permute.xlu2 %3312  ;;  %v3801_v4 = vrot.slane %v3799_v30, 4 }
 0x307   :  { %3438 = vst.msk [vmem:[#allocation2 + $0xcc] sm:$0xf] %vm3386_vm10, %v3297_v42 }
 0x308   :  { %3446 = vst.msk [vmem:[#allocation2 + $0xec] sm:$0xf] %vm3386_vm10, %v3313_v46  ;;  %v3795_v46 = vrot.slane %v7493_v39, 5  ;;  %v3803_v36 = vsel %vm8874_vm7, %v3801_v4, %v3802_v33  ;;  %v7514_v33 = vld [vmem:[%s13225_s0 + $0x17c] sm:$0x1] }
 0x30a   :  { %v3796_v40 = vsel %vm8874_vm7, %v3794_v44, %v3795_v46  ;;  %v7512_v44 = vld [vmem:[%s13225_s0 + $0x174] sm:$0xe]  ;;  %v7511_v46 = vld [vmem:[%s13225_s0 + $0x170] sm:$0x1] }
 0x30b   :  { %3933 = vrot.lane.b32.xlu1 %v3761_v43, %s8094_s22  ;;  %v7546_v43 = vrot.slane %v7494_v38, 9 }
 0x30c   :  { %3931 = vrot.lane.b32.xlu0 %v3758_v14, %s8094_s22  ;;  %3929 = vrot.lane.b32.xlu2 %v3754_v50, %s8094_s22  ;;  %v7498_v14 = vld [vmem:[%s13225_s0 + $0x13c] sm:$0xf]  ;;  %v7500_v50 = vld [vmem:[%s13225_s0 + $0x144] sm:$0xe] }
 0x30d   :  { %v3305_v53 = vpop.permute.xlu1 %3304  ;;  %v3800_v51 = vsel %vm8874_vm7, %v7546_v43, %v3799_v30  ;;  %v3806_v52 = vrot.slane %v7498_v14, 5  ;;  %v3830_v30 = vrot.slane %v7508_v25, 5  ;;  %v3844_v43 = vrot.slane %v7514_v33, 5  ;;  %v7558_v25 = vld [vmem:[%s13225_s0 + $0x24] sm:$0xf] }
 0x30e   :  { %3442 = vst.msk [vmem:[#allocation2 + $0xdc] sm:$0xf] %vm3386_vm10, %v3305_v53  ;;  %v3303_v49 = vpop.permute.xlu0 %3302  ;;  %v3319_v60 = vpop.permute.xlu2 %3318  ;;  %v7548_v53 = vrot.slane %v7500_v50, 9  ;;  %v3836_v14 = vrot.slane %v3834_v26, 4 }
 0x30f   :  { %3441 = vst.msk [vmem:[#allocation2 + $0xd8] sm:$0xf] %vm3386_vm10, %v3303_v49  ;;  %v7504_v49 = vld [vmem:[%s13225_s0 + $0x154] sm:$0xf] }
 0x310   :  { %3449 = vst.msk [vmem:[#allocation2 + $0xf8] sm:$0xf] %vm3386_vm10, %v3319_v60  ;;  %v7547_v60 = vrot.slane %v7497_v31, 9 }
 0x312   :  { %v3807_v3 = vsel %vm8874_vm7, %v7547_v60, %v3806_v52 }
 0x313   :  { %3939 = vrot.lane.b32.xlu1 %v3772_v47, %s8094_s22  ;;  %v3808_v47 = vrot.slane %v3806_v52, 4 }
 0x314   :  { %3937 = vrot.lane.b32.xlu0 %v3768_v62, %s8094_s22  ;;  %3935 = vrot.lane.b32.xlu2 %v3765_v63, %s8094_s22  ;;  %v3814_v62 = vsel %vm8874_vm7, %v7548_v53, %v3813_v45  ;;  %v3820_v63 = vrot.slane %v7504_v49, 5  ;;  %v7519_v53 = vld [vmem:[%s13225_s0 + $0x190] sm:$0xf] }
 0x315   :  { %v3311_v6 = vpop.permute.xlu1 %3310  ;;  %v3810_v5 = vsel %vm8874_vm7, %v3808_v47, %v3809_v58  ;;  %v3855_v49 = vrot.slane %v7519_v53, 5  ;;  %v7517_v47 = vld [vmem:[%s13225_s0 + $0x188] sm:$0x1]  ;;  %v7515_v58 = vld [vmem:[%s13225_s0 + $0x180] sm:$0xe] }
 0x316   :  { %3445 = vst.msk [vmem:[#allocation2 + $0xe8] sm:$0xf] %vm3386_vm10, %v3311_v6  ;;  %v3309_v9 = vpop.permute.xlu0 %3308  ;;  %v3870_v12 = vpop.permute.xlu2 %3869  ;;  %v3822_v6 = vrot.slane %v3820_v63, 4  ;;  %v7568_v53 = vld [vmem:[%s13225_s0 + $0x60] sm:$0xf] }
 0x317   :  { %3444 = vst.msk [vmem:[#allocation2 + $0xe4] sm:$0xf] %vm3386_vm10, %v3309_v9 }
 0x318   :  { %4061 = vst.msk [vmem:[#allocation2 + $0x4] sm:$0xf] %vm4059_vm11, %v3870_v12  ;;  %v3824_v13 = vsel %vm8874_vm7, %v3822_v6, %v3823_v57  ;;  %v7523_v57 = vld [vmem:[%s13225_s0 + $0x1a0] sm:$0x1] }
 0x31b   :  { %3945 = vrot.lane.b32.xlu1 %v3782_v55, %s8094_s22  ;;  %v7549_v55 = vrot.slane %v7503_v7, 9 }
 0x31c   :  { %3943 = vrot.lane.b32.xlu0 %v3779_v59, %s8094_s22  ;;  %3941 = vrot.lane.b32.xlu2 %v3775_v18, %s8094_s22  ;;  %v7507_v59 = vld [vmem:[%s13225_s0 + $0x160] sm:$0xf]  ;;  %v7509_v18 = vld [vmem:[%s13225_s0 + $0x168] sm:$0xe] }
 0x31d   :  { %v3317_v23 = vpop.permute.xlu1 %3316  ;;  %v3821_v21 = vsel %vm8874_vm7, %v7549_v55, %v3820_v63  ;;  %v3827_v20 = vrot.slane %v7507_v59, 5  ;;  %v3851_v63 = vrot.slane %v7517_v47, 5  ;;  %v3865_v55 = vrot.slane %v7523_v57, 5  ;;  %v7571_v47 = vld [vmem:[%s13225_s0 + $0x70] sm:$0xf] }
 0x31e   :  { %3448 = vst.msk [vmem:[#allocation2 + $0xf4] sm:$0xf] %vm3386_vm10, %v3317_v23  ;;  %v3315_v17 = vpop.permute.xlu0 %3314  ;;  %v3876_v19 = vpop.permute.xlu2 %3875  ;;  %v7551_v23 = vrot.slane %v7509_v18, 9  ;;  %v3857_v59 = vrot.slane %v3855_v49, 4  ;;  %v7578_v57 = vld [vmem:[%s13225_s0 + $0x9c] sm:$0xf] }
 0x31f   :  { %3447 = vst.msk [vmem:[#allocation2 + $0xf0] sm:$0xf] %vm3386_vm10, %v3315_v17  ;;  %v7513_v17 = vld [vmem:[%s13225_s0 + $0x178] sm:$0xf] }
 0x320   :  { %4064 = vst.msk [vmem:[#allocation2 + $0x10] sm:$0xf] %vm4059_vm11, %v3876_v19  ;;  %v7550_v19 = vrot.slane %v7506_v27, 9 }
 0x322   :  { %v3828_v39 = vsel %vm8874_vm7, %v7550_v19, %v3827_v20  ;;  %v7561_v19 = vld [vmem:[%s13225_s0 + $0x34] sm:$0xf] }
 0x323   :  { %3951 = vrot.lane.b32.xlu1 %v3793_v29, %s8094_s22  ;;  %v3829_v29 = vrot.slane %v3827_v20, 4 }
 0x324   :  { %3949 = vrot.lane.b32.xlu0 %v3789_v35, %s8094_s22  ;;  %3947 = vrot.lane.b32.xlu2 %v3786_v2, %s8094_s22  ;;  %v3835_v35 = vsel %vm8874_vm7, %v7551_v23, %v3834_v26  ;;  %v3841_v2 = vrot.slane %v7513_v17, 5  ;;  %v7556_v17 = vld [vmem:[%s13225_s0 + $0x18] sm:$0xf] }
 0x325   :  { %v3868_v42 = vpop.permute.xlu1 %3867  ;;  %v3831_v38 = vsel %vm8874_vm7, %v3829_v29, %v3830_v30 }
 0x326   :  { %4060 = vst.msk [vmem:[#allocation2] sm:$0xf] %vm4059_vm11, %v3868_v42  ;;  %v3321_v48 = vpop.permute.xlu0 %3320  ;;  %v3882_v41 = vpop.permute.xlu2 %3881  ;;  %v3843_v42 = vrot.slane %v3841_v2, 4 }
 0x327   :  { %3450 = vst.msk [vmem:[#allocation2 + $0xfc] sm:$0xf] %vm3386_vm10, %v3321_v48 }
 0x328   :  { %4067 = vst.msk [vmem:[#allocation2 + $0x1c] sm:$0xf] %vm4059_vm11, %v3882_v41  ;;  %v3837_v41 = vrot.slane %v7511_v46, 5  ;;  %v3845_v37 = vsel %vm8874_vm7, %v3843_v42, %v3844_v43  ;;  %v7563_v42 = vld [vmem:[%s13225_s0 + $0x40] sm:$0xf] }
 0x329   :  { %v7562_v43 = vld [vmem:[%s13225_s0 + $0x3c] sm:$0xf] }
 0x32a   :  { %v3838_v31 = vsel %vm8874_vm7, %v3836_v14, %v3837_v41  ;;  %v7566_v14 = vld [vmem:[%s13225_s0 + $0x54] sm:$0xf]  ;;  %v7565_v41 = vld [vmem:[%s13225_s0 + $0x4c] sm:$0xf] }
 0x32b   :  { %3957 = vrot.lane.b32.xlu1 %v3803_v36, %s8094_s22  ;;  %v7552_v36 = vrot.slane %v7512_v44, 9 }
 0x32c   :  { %3955 = vrot.lane.b32.xlu0 %v3800_v51, %s8094_s22  ;;  %3953 = vrot.lane.b32.xlu2 %v3796_v40, %s8094_s22  ;;  %v7516_v51 = vld [vmem:[%s13225_s0 + $0x184] sm:$0xf]  ;;  %v7518_v40 = vld [vmem:[%s13225_s0 + $0x18c] sm:$0xe] }
 0x32d   :  { %v3874_v56 = vpop.permute.xlu1 %3873  ;;  %v3842_v45 = vsel %vm8874_vm7, %v7552_v36, %v3841_v2  ;;  %v3848_v54 = vrot.slane %v7516_v51, 5  ;;  %v7559_v2 = vld [vmem:[%s13225_s0 + $0x28] sm:$0xf]  ;;  %v7570_v51 = vld [vmem:[%s13225_s0 + $0x6c] sm:$0xf] }
 0x32e   :  { %4063 = vst.msk [vmem:[#allocation2 + $0xc] sm:$0xf] %vm4059_vm11, %v3874_v56  ;;  %v3872_v61 = vpop.permute.xlu0 %3871  ;;  %v3888_v0 = vpop.permute.xlu2 %3887  ;;  %v7554_v56 = vrot.slane %v7518_v40, 9  ;;  %v7569_v40 = vld [vmem:[%s13225_s0 + $0x64] sm:$0xf] }
 0x32f   :  { %4062 = vst.msk [vmem:[#allocation2 + $0x8] sm:$0xf] %vm4059_vm11, %v3872_v61  ;;  %v7522_v61 = vld [vmem:[%s13225_s0 + $0x19c] sm:$0xf] }
 0x330   :  { %4070 = vst.msk [vmem:[#allocation2 + $0x28] sm:$0xf] %vm4059_vm11, %v3888_v0  ;;  %v7553_v0 = vrot.slane %v7515_v58, 9 }
 0x332   :  { %v3849_v8 = vsel %vm8874_vm7, %v7553_v0, %v3848_v54  ;;  %v7574_v0 = vld [vmem:[%s13225_s0 + $0x84] sm:$0xf] }
 0x333   :  { %3963 = vrot.lane.b32.xlu1 %v3814_v62, %s8094_s22  ;;  %v3850_v62 = vrot.slane %v3848_v54, 4 }
 0x334   :  { %3961 = vrot.lane.b32.xlu0 %v3810_v5, %s8094_s22  ;;  %3959 = vrot.lane.b32.xlu2 %v3807_v3, %s8094_s22  ;;  %v3856_v5 = vsel %vm8874_vm7, %v7554_v56, %v3855_v49  ;;  %v3862_v3 = vrot.slane %v7522_v61, 5  ;;  %v7572_v49 = vld [vmem:[%s13225_s0 + $0x78] sm:$0xf]  ;;  %v7576_v61 = vld [vmem:[%s13225_s0 + $0x90] sm:$0xf] }
 0x335   :  { %v3880_v9 = vpop.permute.xlu1 %3879  ;;  %v3852_v7 = vsel %vm8874_vm7, %v3850_v62, %v3851_v63  ;;  %v7575_v63 = vld [vmem:[%s13225_s0 + $0x88] sm:$0xf] }
 0x336   :  { %4066 = vst.msk [vmem:[#allocation2 + $0x18] sm:$0xf] %vm4059_vm11, %v3880_v9  ;;  %v3878_v12 = vpop.permute.xlu0 %3877  ;;  %v3894_v15 = vpop.permute.xlu2 %3893  ;;  %v3864_v9 = vrot.slane %v3862_v3, 4 }
 0x337   :  { %4065 = vst.msk [vmem:[#allocation2 + $0x14] sm:$0xf] %vm4059_vm11, %v3878_v12 }
 0x338   :  { %4073 = vst.msk [vmem:[#allocation2 + $0x34] sm:$0xf] %vm4059_vm11, %v3894_v15  ;;  %v3858_v15 = vrot.slane %v7520_v11, 5  ;;  %v3866_v16 = vsel %vm8874_vm7, %v3864_v9, %v3865_v55  ;;  %v7582_v55 = vld [vmem:[%s13225_s0 + $0xb4] sm:$0xf] }
 0x339   :  { %v7581_v11 = vld [vmem:[%s13225_s0 + $0xac] sm:$0xf] }
 0x33b   :  { %3969 = vrot.lane.b32.xlu1 %v3824_v13, %s8094_s22  ;;  %v7555_v13 = vrot.slane %v7521_v10, 9 }
 0x33c   :  { %3967 = vrot.lane.b32.xlu0 %v3821_v21, %s8094_s22  ;;  %3965 = vrot.lane.b32.xlu2 %v3817_v24, %s8094_s22  ;;  %v3859_v24 = vsel %vm8874_vm7, %v3857_v59, %v3858_v15  ;;  %v7585_v15 = vld [vmem:[%s13225_s0 + $0xc4] sm:$0xf] }
 0x33d   :  { %v3886_v28 = vpop.permute.xlu1 %3885  ;;  %v3863_v20 = vsel %vm8874_vm7, %v7555_v13, %v3862_v3  ;;  %v7579_v3 = vld [vmem:[%s13225_s0 + $0xa0] sm:$0xf] }
 0x33e   :  { %4069 = vst.msk [vmem:[#allocation2 + $0x24] sm:$0xf] %vm4059_vm11, %v3886_v28  ;;  %v3884_v32 = vpop.permute.xlu0 %3883  ;;  %v3900_v4 = vpop.permute.xlu2 %3899  ;;  %v7557_v28 = vld [vmem:[%s13225_s0 + $0x1c] sm:$0xf] }
 0x33f   :  { %4068 = vst.msk [vmem:[#allocation2 + $0x20] sm:$0xf] %vm4059_vm11, %v3884_v32 }
 0x340   :  { %4076 = vst.msk [vmem:[#allocation2 + $0x40] sm:$0xf] %vm4059_vm11, %v3900_v4 }
 0x343   :  { %3975 = vrot.lane.b32.xlu1 %v3835_v35, %s8094_s22  ;;  %v7560_v35 = vld [vmem:[%s13225_s0 + $0x30] sm:$0xf] }
 0x344   :  { %3973 = vrot.lane.b32.xlu0 %v3831_v38, %s8094_s22  ;;  %3971 = vrot.lane.b32.xlu2 %v3828_v39, %s8094_s22  ;;  %v7564_v38 = vld [vmem:[%s13225_s0 + $0x48] sm:$0xf] }
 0x345   :  { %v3892_v48 = vpop.permute.xlu1 %3891 }
 0x346   :  { %4072 = vst.msk [vmem:[#allocation2 + $0x30] sm:$0xf] %vm4059_vm11, %v3892_v48  ;;  %v3890_v50 = vpop.permute.xlu0 %3889  ;;  %v3906_v52 = vpop.permute.xlu2 %3905  ;;  %v7567_v48 = vld [vmem:[%s13225_s0 + $0x58] sm:$0xf] }
 0x347   :  { %4071 = vst.msk [vmem:[#allocation2 + $0x2c] sm:$0xf] %vm4059_vm11, %v3890_v50 }
 0x348   :  { %4079 = vst.msk [vmem:[#allocation2 + $0x4c] sm:$0xf] %vm4059_vm11, %v3906_v52 }
 0x34b   :  { %3981 = vrot.lane.b32.xlu1 %v3845_v37, %s8094_s22 }
 0x34c   :  { %3979 = vrot.lane.b32.xlu0 %v3842_v45, %s8094_s22  ;;  %3977 = vrot.lane.b32.xlu2 %v3838_v31, %s8094_s22  ;;  %v7573_v31 = vld [vmem:[%s13225_s0 + $0x7c] sm:$0xf] }
 0x34d   :  { %v3898_v60 = vpop.permute.xlu1 %3897 }
 0x34e   :  { %4075 = vst.msk [vmem:[#allocation2 + $0x3c] sm:$0xf] %vm4059_vm11, %v3898_v60  ;;  %v3896_v1 = vpop.permute.xlu0 %3895  ;;  %v3912_v6 = vpop.permute.xlu2 %3911 }
 0x34f   :  { %4074 = vst.msk [vmem:[#allocation2 + $0x38] sm:$0xf] %vm4059_vm11, %v3896_v1 }
 0x350   :  { %4082 = vst.msk [vmem:[#allocation2 + $0x58] sm:$0xf] %vm4059_vm11, %v3912_v6 }
 0x353   :  { %3987 = vrot.lane.b32.xlu1 %v3856_v5, %s8094_s22 }
 0x354   :  { %3985 = vrot.lane.b32.xlu0 %v3852_v7, %s8094_s22  ;;  %3983 = vrot.lane.b32.xlu2 %v3849_v8, %s8094_s22  ;;  %v7577_v7 = vld [vmem:[%s13225_s0 + $0x94] sm:$0xf] }
 0x355   :  { %v3904_v12 = vpop.permute.xlu1 %3903 }
 0x356   :  { %4078 = vst.msk [vmem:[#allocation2 + $0x48] sm:$0xf] %vm4059_vm11, %v3904_v12  ;;  %v3902_v18 = vpop.permute.xlu0 %3901  ;;  %v3918_v21 = vpop.permute.xlu2 %3917  ;;  %v7580_v12 = vld [vmem:[%s13225_s0 + $0xa8] sm:$0xf] }
 0x357   :  { %4077 = vst.msk [vmem:[#allocation2 + $0x44] sm:$0xf] %vm4059_vm11, %v3902_v18 }
 0x358   :  { %4085 = vst.msk [vmem:[#allocation2 + $0x64] sm:$0xf] %vm4059_vm11, %v3918_v21  ;;  %v7583_v21 = vld [vmem:[%s13225_s0 + $0xb8] sm:$0xf] }
 0x35b   :  { %3993 = vrot.lane.b32.xlu1 %v3866_v16, %s8094_s22  ;;  %v7584_v16 = vld [vmem:[%s13225_s0 + $0xc0] sm:$0xf] }
 0x35c   :  { %3991 = vrot.lane.b32.xlu0 %v3863_v20, %s8094_s22  ;;  %3989 = vrot.lane.b32.xlu2 %v3859_v24, %s8094_s22  ;;  %s8098_s22 = smov [#allocation3]  }
 0x35d   :  { %v3910_v23 = vpop.permute.xlu1 %3909 }
 0x35e   :  { %4081 = vst.msk [vmem:[#allocation2 + $0x54] sm:$0xf] %vm4059_vm11, %v3910_v23  ;;  %v3908_v26 = vpop.permute.xlu0 %3907  ;;  %v3924_v27 = vpop.permute.xlu2 %3923  ;;  %v7588_v23 = vld [vmem:[%s13225_s0 + $0xf0] sm:$0xf] }
 0x35f   :  { %4080 = vst.msk [vmem:[#allocation2 + $0x50] sm:$0xf] %vm4059_vm11, %v3908_v26 }
 0x360   :  { %4088 = vst.msk [vmem:[#allocation2 + $0x70] sm:$0xf] %vm4059_vm11, %v3924_v27  ;;  %v7586_v27 = vld [vmem:[%s13225_s0 + $0xcc] sm:$0xf] }
 0x363   :  { %4257 = vrot.lane.b32.xlu1 %v7558_v25, %s8095_s27  ;;  %v7587_v25 = vld [vmem:[%s13225_s0 + $0xd0] sm:$0xf] }
 0x364   :  { %4255 = vrot.lane.b32.xlu0 %v7557_v28, %s8095_s27  ;;  %4253 = vrot.lane.b32.xlu2 %v7556_v17, %s8095_s27 }
 0x365   :  { %v3916_v29 = vpop.permute.xlu1 %3915 }
 0x366   :  { %4084 = vst.msk [vmem:[#allocation2 + $0x60] sm:$0xf] %vm4059_vm11, %v3916_v29  ;;  %v3914_v30 = vpop.permute.xlu0 %3913  ;;  %v3930_v32 = vpop.permute.xlu2 %3929  ;;  %v7591_v29 = vld [vmem:[%s13225_s0 + $0x100] sm:$0xf] }
 0x367   :  { %4083 = vst.msk [vmem:[#allocation2 + $0x5c] sm:$0xf] %vm4059_vm11, %v3914_v30 }
 0x368   :  { %4091 = vst.msk [vmem:[#allocation2 + $0x7c] sm:$0xf] %vm4059_vm11, %v3930_v32  ;;  %v7589_v32 = vld [vmem:[%s13225_s0 + $0xf4] sm:$0xf] }
 0x36b   :  { %4263 = vrot.lane.b32.xlu1 %v7561_v19, %s8095_s27  ;;  %v7590_v19 = vld [vmem:[%s13225_s0 + $0xfc] sm:$0xf] }
 0x36c   :  { %4261 = vrot.lane.b32.xlu0 %v7560_v35, %s8095_s27  ;;  %4259 = vrot.lane.b32.xlu2 %v7559_v2, %s8095_s27 }
 0x36d   :  { %v3922_v4 = vpop.permute.xlu1 %3921 }
 0x36e   :  { %4087 = vst.msk [vmem:[#allocation2 + $0x6c] sm:$0xf] %vm4059_vm11, %v3922_v4  ;;  %v3920_v33 = vpop.permute.xlu0 %3919  ;;  %v3936_v39 = vpop.permute.xlu2 %3935  ;;  %v7594_v4 = vld [vmem:[%s13225_s0 + $0x114] sm:$0xf] }
 0x36f   :  { %4086 = vst.msk [vmem:[#allocation2 + $0x68] sm:$0xf] %vm4059_vm11, %v3920_v33 }
 0x370   :  { %4094 = vst.msk [vmem:[#allocation2 + $0x88] sm:$0xf] %vm4059_vm11, %v3936_v39  ;;  %v7592_v39 = vld [vmem:[%s13225_s0 + $0x108] sm:$0xf] }
 0x373   :  { %4269 = vrot.lane.b32.xlu1 %v7564_v38, %s8095_s27  ;;  %v7593_v38 = vld [vmem:[%s13225_s0 + $0x10c] sm:$0xf] }
 0x374   :  { %4267 = vrot.lane.b32.xlu0 %v7563_v42, %s8095_s27  ;;  %4265 = vrot.lane.b32.xlu2 %v7562_v43, %s8095_s27 }
 0x375   :  { %v3928_v44 = vpop.permute.xlu1 %3927 }
 0x376   :  { %4090 = vst.msk [vmem:[#allocation2 + $0x78] sm:$0xf] %vm4059_vm11, %v3928_v44  ;;  %v3926_v46 = vpop.permute.xlu0 %3925  ;;  %v3942_v36 = vpop.permute.xlu2 %3941  ;;  %v7597_v44 = vld [vmem:[%s13225_s0 + $0x124] sm:$0xf] }
 0x377   :  { %4089 = vst.msk [vmem:[#allocation2 + $0x74] sm:$0xf] %vm4059_vm11, %v3926_v46 }
 0x378   :  { %4097 = vst.msk [vmem:[#allocation2 + $0x94] sm:$0xf] %vm4059_vm11, %v3942_v36  ;;  %v7595_v36 = vld [vmem:[%s13225_s0 + $0x118] sm:$0xf] }
 0x37b   :  { %4275 = vrot.lane.b32.xlu1 %v7567_v48, %s8095_s27  ;;  %v7596_v48 = vld [vmem:[%s13225_s0 + $0x120] sm:$0xf] }
 0x37c   :  { %4273 = vrot.lane.b32.xlu0 %v7566_v14, %s8095_s27  ;;  %4271 = vrot.lane.b32.xlu2 %v7565_v41, %s8095_s27 }
 0x37d   :  { %v3934_v50 = vpop.permute.xlu1 %3933 }
 0x37e   :  { %4093 = vst.msk [vmem:[#allocation2 + $0x84] sm:$0xf] %vm4059_vm11, %v3934_v50  ;;  %v3932_v37 = vpop.permute.xlu0 %3931  ;;  %v3948_v52 = vpop.permute.xlu2 %3947  ;;  %v7600_v50 = vld [vmem:[%s13225_s0 + $0x138] sm:$0xf] }
 0x37f   :  { %4092 = vst.msk [vmem:[#allocation2 + $0x80] sm:$0xf] %vm4059_vm11, %v3932_v37 }
 0x380   :  { %4100 = vst.msk [vmem:[#allocation2 + $0xa0] sm:$0xf] %vm4059_vm11, %v3948_v52  ;;  %v7598_v52 = vld [vmem:[%s13225_s0 + $0x12c] sm:$0xf] }
 0x383   :  { %4281 = vrot.lane.b32.xlu1 %v7570_v51, %s8095_s27  ;;  %v7599_v51 = vld [vmem:[%s13225_s0 + $0x130] sm:$0xf] }
 0x384   :  { %4279 = vrot.lane.b32.xlu0 %v7569_v40, %s8095_s27  ;;  %4277 = vrot.lane.b32.xlu2 %v7568_v53, %s8095_s27 }
 0x385   :  { %v3940_v45 = vpop.permute.xlu1 %3939 }
 0x386   :  { %4096 = vst.msk [vmem:[#allocation2 + $0x90] sm:$0xf] %vm4059_vm11, %v3940_v45  ;;  %v3938_v54 = vpop.permute.xlu0 %3937  ;;  %v3954_v56 = vpop.permute.xlu2 %3953  ;;  %v7603_v45 = vld [vmem:[%s13225_s0 + $0x148] sm:$0xf] }
 0x387   :  { %4095 = vst.msk [vmem:[#allocation2 + $0x8c] sm:$0xf] %vm4059_vm11, %v3938_v54 }
 0x388   :  { %4103 = vst.msk [vmem:[#allocation2 + $0xac] sm:$0xf] %vm4059_vm11, %v3954_v56  ;;  %v7601_v56 = vld [vmem:[%s13225_s0 + $0x13c] sm:$0xf] }
 0x38b   :  { %4287 = vrot.lane.b32.xlu1 %v7573_v31, %s8095_s27  ;;  %v7602_v31 = vld [vmem:[%s13225_s0 + $0x144] sm:$0xf] }
 0x38c   :  { %4285 = vrot.lane.b32.xlu0 %v7572_v49, %s8095_s27  ;;  %4283 = vrot.lane.b32.xlu2 %v7571_v47, %s8095_s27  ;;  %v7620_v47 = vld [vmem:[%s13225_s0 + $0x18] sm:$0xf] }
 0x38d   :  { %v3946_v58 = vpop.permute.xlu1 %3945 }
 0x38e   :  { %4099 = vst.msk [vmem:[#allocation2 + $0x9c] sm:$0xf] %vm4059_vm11, %v3946_v58  ;;  %v3944_v60 = vpop.permute.xlu0 %3943  ;;  %v3960_v62 = vpop.permute.xlu2 %3959 }
 0x38f   :  { %4098 = vst.msk [vmem:[#allocation2 + $0x98] sm:$0xf] %vm4059_vm11, %v3944_v60  ;;  %v7606_v60 = vld [vmem:[%s13225_s0 + $0x15c] sm:$0xf] }
 0x390   :  { %4106 = vst.msk [vmem:[#allocation2 + $0xb8] sm:$0xf] %vm4059_vm11, %v3960_v62  ;;  %v4607_v62 = vshrl.u32 %v7620_v47, 16 }
 0x393   :  { %4293 = vrot.lane.b32.xlu1 %v7576_v61, %s8095_s27 }
 0x394   :  { %4291 = vrot.lane.b32.xlu0 %v7575_v63, %s8095_s27  ;;  %4289 = vrot.lane.b32.xlu2 %v7574_v0, %s8095_s27  ;;  %v4610_v63 = vshll.u32 %v7620_v47, 16  ;;  %v7605_v0 = vld [vmem:[%s13225_s0 + $0x154] sm:$0xf] }
 0x395   :  { %v3952_v1 = vpop.permute.xlu1 %3951 }
 0x396   :  { %4102 = vst.msk [vmem:[#allocation2 + $0xa8] sm:$0xf] %vm4059_vm11, %v3952_v1  ;;  %v3950_v5 = vpop.permute.xlu0 %3949  ;;  %v3966_v6 = vpop.permute.xlu2 %3965  ;;  %v7604_v1 = vld [vmem:[%s13225_s0 + $0x150] sm:$0xf] }
 0x397   :  { %4101 = vst.msk [vmem:[#allocation2 + $0xa4] sm:$0xf] %vm4059_vm11, %v3950_v5  ;;  %v4609_v5 = vrot.slane %v4607_v62, 4  ;;  %v7720_v62 = vld [vmem:[%s13225_s0 + $0x28] sm:$0xf] }
 0x398   :  { %4109 = vst.msk [vmem:[#allocation2 + $0xc4] sm:$0xf] %vm4059_vm11, %v3966_v6 }
 0x39b   :  { %4299 = vrot.lane.b32.xlu1 %v7579_v3, %s8095_s27  ;;  %v4612_v3 = vrot.slane %v4610_v63, 5  ;;  %v7627_v63 = vld [vmem:[%s13225_s0 + $0x34] sm:$0xf] }
 0x39c   :  { %4297 = vrot.lane.b32.xlu0 %v7578_v57, %s8095_s27  ;;  %4295 = vrot.lane.b32.xlu2 %v7577_v7, %s8095_s27  ;;  %v7621_v57 = vld [vmem:[%s13225_s0 + $0x1c] sm:$0xf] }
 0x39d   :  { %v3958_v8 = vpop.permute.xlu1 %3957 }
 0x39e   :  { %4105 = vst.msk [vmem:[#allocation2 + $0xb4] sm:$0xf] %vm4059_vm11, %v3958_v8  ;;  %v3956_v9 = vpop.permute.xlu0 %3955  ;;  %v3972_v10 = vpop.permute.xlu2 %3971  ;;  %v7609_v8 = vld [vmem:[%s13225_s0 + $0x16c] sm:$0xf] }
 0x39f   :  { %4104 = vst.msk [vmem:[#allocation2 + $0xb0] sm:$0xf] %vm4059_vm11, %v3956_v9  ;;  %v4613_v9 = vor.u32 %v4612_v3, %v4609_v5 }
 0x3a0   :  { %4112 = vst.msk [vmem:[#allocation2 + $0xd0] sm:$0xf] %vm4059_vm11, %v3972_v10 }
 0x3a3   :  { %4305 = vrot.lane.b32.xlu1 %v7582_v55, %s8095_s27  ;;  %v4616_v55 = vshll.u32 %v7621_v57, 16 }
 0x3a4   :  { %4303 = vrot.lane.b32.xlu0 %v7581_v11, %s8095_s27  ;;  %4301 = vrot.lane.b32.xlu2 %v7580_v12, %s8095_s27  ;;  %v7608_v11 = vld [vmem:[%s13225_s0 + $0x168] sm:$0xf]  ;;  %v4620_v12 = vshrl.u32 %v7621_v57, 16  ;;  %v7626_v57 = vld [vmem:[%s13225_s0 + $0x30] sm:$0xf] }
 0x3a5   :  { %v3964_v13 = vpop.permute.xlu1 %3963 }
 0x3a6   :  { %4108 = vst.msk [vmem:[#allocation2 + $0xc0] sm:$0xf] %vm4059_vm11, %v3964_v13  ;;  %v3962_v59 = vpop.permute.xlu0 %3961  ;;  %v3978_v18 = vpop.permute.xlu2 %3977  ;;  %v7607_v13 = vld [vmem:[%s13225_s0 + $0x160] sm:$0xf] }
 0x3a7   :  { %4107 = vst.msk [vmem:[#allocation2 + $0xbc] sm:$0xf] %vm4059_vm11, %v3962_v59  ;;  %v4614_v59 = vrot.slane %v4613_v9, 4  ;;  %v4668_v9 = vshrl.u32 %v7627_v63, 16 }
 0x3a8   :  { %4115 = vst.msk [vmem:[#allocation2 + $0xdc] sm:$0xf] %vm4059_vm11, %v3978_v18  ;;  %v7717_v18 = vld [vmem:[%s13225_s0 + $0x1c] sm:$0xf] }
 0x3ab   :  { %4311 = vrot.lane.b32.xlu1 %v7585_v15, %s8095_s27  ;;  %v4618_v15 = vrot.slane %v4616_v55, 5 }
 0x3ac   :  { %4309 = vrot.lane.b32.xlu0 %v7584_v16, %s8095_s27  ;;  %4307 = vrot.lane.b32.xlu2 %v7583_v21, %s8095_s27  ;;  %v7624_v21 = vld [vmem:[%s13225_s0 + $0x28] sm:$0xf] }
 0x3ad   :  { %v3970_v20 = vpop.permute.xlu1 %3969 }
 0x3ae   :  { %4111 = vst.msk [vmem:[#allocation2 + $0xcc] sm:$0xf] %vm4059_vm11, %v3970_v20  ;;  %v3968_v24 = vpop.permute.xlu0 %3967  ;;  %v3984_v26 = vpop.permute.xlu2 %3983  ;;  %v5825_v20 = vrot.slane %v7717_v18, 5  ;;  %v7719_v18 = vld [vmem:[%s13225_s0 + $0x24] sm:$0xe] }
 0x3af   :  { %4110 = vst.msk [vmem:[#allocation2 + $0xc8] sm:$0xf] %vm4059_vm11, %v3968_v24  ;;  %v4622_v24 = vrot.slane %v4620_v12, 4  ;;  %v4658_v12 = vshll.u32 %v7626_v57, 16 }
 0x3b0   :  { %4118 = vst.msk [vmem:[#allocation2 + $0xe8] sm:$0xf] %vm4059_vm11, %v3984_v26  ;;  %v4619_v26 = vsel %vm8142_vm2, %v4614_v59, %v4618_v15 }
 0x3b3   :  { %4317 = vrot.lane.b32.xlu1 %v7588_v23, %s8095_s27 }
 0x3b4   :  { %4315 = vrot.lane.b32.xlu0 %v7587_v25, %s8095_s27  ;;  %4313 = vrot.lane.b32.xlu2 %v7586_v27, %s8095_s27  ;;  %v4640_v27 = vshll.u32 %v7624_v21, 16 }
 0x3b5   :  { %v3976_v28 = vpop.permute.xlu1 %3975 }
 0x3b6   :  { %4114 = vst.msk [vmem:[#allocation2 + $0xd8] sm:$0xf] %vm4059_vm11, %v3976_v28  ;;  %v3974_v17 = vpop.permute.xlu0 %3973  ;;  %v3990_v30 = vpop.permute.xlu2 %3989  ;;  %v4644_v28 = vshrl.u32 %v7624_v21, 16  ;;  %v7645_v21 = vld [vmem:[%s13225_s0 + $0x7c] sm:$0xf] }
 0x3b7   :  { %4113 = vst.msk [vmem:[#allocation2 + $0xd4] sm:$0xf] %vm4059_vm11, %v3974_v17  ;;  %v7623_v17 = vld [vmem:[%s13225_s0 + $0x24] sm:$0xf] }
 0x3b8   :  { %4121 = vst.msk [vmem:[#allocation2 + $0xf4] sm:$0xf] %vm4059_vm11, %v3990_v30  ;;  %v7718_v30 = vld [vmem:[%s13225_s0 + $0x20] sm:$0x1] }
 0x3bb   :  { %4323 = vrot.lane.b32.xlu1 %v7591_v29, %s8095_s27  ;;  %v7622_v29 = vld [vmem:[%s13225_s0 + $0x20] sm:$0x1] }
 0x3bc   :  { %4321 = vrot.lane.b32.xlu0 %v7590_v19, %s8095_s27  ;;  %4319 = vrot.lane.b32.xlu2 %v7589_v32, %s8095_s27  ;;  %v7611_v19 = vld [vmem:[%s13225_s0 + $0x178] sm:$0xf] }
 0x3bd   :  { %v3982_v35 = vpop.permute.xlu1 %3981  ;;  %v7716_v32 = vld [vmem:[%s13225_s0 + $0x18] sm:$0xe] }
 0x3be   :  { %4117 = vst.msk [vmem:[#allocation2 + $0xe4] sm:$0xf] %vm4059_vm11, %v3982_v35  ;;  %v3980_v2 = vpop.permute.xlu0 %3979  ;;  %v4254_v33 = vpop.permute.xlu2 %4253  ;;  %v7610_v35 = vld [vmem:[%s13225_s0 + $0x174] sm:$0xf] }
 0x3bf   :  { %4116 = vst.msk [vmem:[#allocation2 + $0xe0] sm:$0xf] %vm4059_vm11, %v3980_v2  ;;  %v4631_v2 = vshrl.u32 %v7623_v17, 16 }
 0x3c0   :  { %4446 = vst.msk [vmem:[#allocation2] sm:$0xf] %vm4445_vm12, %v4254_v33  ;;  %v4623_v33 = vor.u32 %v4622_v24, %v4618_v15 }
 0x3c3   :  { %4329 = vrot.lane.b32.xlu1 %v7594_v4, %s8095_s27  ;;  %v4634_v4 = vshll.u32 %v7623_v17, 16  ;;  %v4660_v17 = vrot.slane %v4658_v12, 5 }
 0x3c4   :  { %4327 = vrot.lane.b32.xlu0 %v7593_v38, %s8095_s27  ;;  %4325 = vrot.lane.b32.xlu2 %v7592_v39, %s8095_s27  ;;  %v4626_v38 = vshll.u32 %v7622_v29, 16  ;;  %v5827_v39 = vrot.slane %v5825_v20, 4 }
 0x3c5   :  { %v3988_v42 = vpop.permute.xlu1 %3987 }
 0x3c6   :  { %4120 = vst.msk [vmem:[#allocation2 + $0xf0] sm:$0xf] %vm4059_vm11, %v3988_v42  ;;  %v3986_v43 = vpop.permute.xlu0 %3985  ;;  %v4260_v46 = vpop.permute.xlu2 %4259  ;;  %v5828_v42 = vrot.slane %v7718_v30, 5  ;;  %v7613_v30 = vld [vmem:[%s13225_s0 + $0x184] sm:$0xf] }
 0x3c7   :  { %4119 = vst.msk [vmem:[#allocation2 + $0xec] sm:$0xf] %vm4059_vm11, %v3986_v43  ;;  %v4642_v43 = vrot.slane %v4640_v27, 5  ;;  %v7813_v27 = vrot.slane %v7719_v18, 9 }
 0x3c8   :  { %4449 = vst.msk [vmem:[#allocation2 + $0xc] sm:$0xf] %vm4445_vm12, %v4260_v46 }
 0x3cb   :  { %4335 = vrot.lane.b32.xlu1 %v7597_v44, %s8095_s27  ;;  %v4646_v44 = vrot.slane %v4644_v28, 4 }
 0x3cc   :  { %4333 = vrot.lane.b32.xlu0 %v7596_v48, %s8095_s27  ;;  %4331 = vrot.lane.b32.xlu2 %v7595_v36, %s8095_s27  ;;  %v7625_v48 = vld [vmem:[%s13225_s0 + $0x2c] sm:$0x1]  ;;  %v7812_v36 = vrot.slane %v7716_v32, 9  ;;  %v4808_v32 = vshll.u32 %v7645_v21, 16 }
 0x3cd   :  { %v3994_v14 = vpop.permute.xlu1 %3993 }
 0x3ce   :  { %4123 = vst.msk [vmem:[#allocation2 + $0xfc] sm:$0xf] %vm4059_vm11, %v3994_v14  ;;  %v3992_v41 = vpop.permute.xlu0 %3991  ;;  %v4266_v37 = vpop.permute.xlu2 %4265  ;;  %v4633_v14 = vrot.slane %v4631_v2, 4 }
 0x3cf   :  { %4122 = vst.msk [vmem:[#allocation2 + $0xf8] sm:$0xf] %vm4059_vm11, %v3992_v41  ;;  %v4636_v41 = vrot.slane %v4634_v4, 5 }
 0x3d0   :  { %4452 = vst.msk [vmem:[#allocation2 + $0x18] sm:$0xf] %vm4445_vm12, %v4266_v37  ;;  %v4628_v37 = vrot.slane %v4626_v38, 5  ;;  %v4812_v38 = vshrl.u32 %v7645_v21, 16 }
 0x3d3   :  { %4341 = vrot.lane.b32.xlu1 %v7600_v50, %s8095_s27  ;;  %v4624_v50 = vrot.slane %v4623_v33, 4 }
 0x3d4   :  { %4339 = vrot.lane.b32.xlu0 %v7599_v51, %s8095_s27  ;;  %4337 = vrot.lane.b32.xlu2 %v7598_v52, %s8095_s27  ;;  %v5829_v52 = vsel %vm8874_vm7, %v5827_v39, %v5828_v42 }
 0x3d5   :  { %v4258_v40 = vpop.permute.xlu1 %4257 }
 0x3d6   :  { %4448 = vst.msk [vmem:[#allocation2 + $0x8] sm:$0xf] %vm4445_vm12, %v4258_v40  ;;  %v4256_v53 = vpop.permute.xlu0 %4255  ;;  %v4272_v54 = vpop.permute.xlu2 %4271  ;;  %v4647_v40 = vor.u32 %v4646_v44, %v4642_v43  ;;  %v4810_v44 = vrot.slane %v4808_v32, 5  ;;  %v7649_v32 = vld [vmem:[%s13225_s0 + $0x8c] sm:$0x1] }
 0x3d7   :  { %4447 = vst.msk [vmem:[#allocation2 + $0x4] sm:$0xf] %vm4445_vm12, %v4256_v53  ;;  %v4650_v53 = vshll.u32 %v7625_v48, 16 }
 0x3d8   :  { %4455 = vst.msk [vmem:[#allocation2 + $0x24] sm:$0xf] %vm4445_vm12, %v4272_v54  ;;  %v5826_v54 = vsel %vm8874_vm7, %v7812_v36, %v5825_v20  ;;  %v7629_v36 = vld [vmem:[%s13225_s0 + $0x3c] sm:$0xf] }
 0x3d9   :  { %v4652_v47 = vrot.slane %v4650_v53, 5 }
 0x3db   :  { %4347 = vrot.lane.b32.xlu1 %v7603_v45, %s8095_s27 }
 0x3dc   :  { %4345 = vrot.lane.b32.xlu0 %v7602_v31, %s8095_s27  ;;  %4343 = vrot.lane.b32.xlu2 %v7601_v56, %s8095_s27  ;;  %v4637_v31 = vor.u32 %v4636_v41, %v4633_v14  ;;  %v4629_v56 = vsel %vm8142_vm2, %v4624_v50, %v4628_v37  ;;  %v7724_v50 = vld [vmem:[%s13225_s0 + $0x38] sm:$0x1] }
 0x3dd   :  { %v4264_v49 = vpop.permute.xlu1 %4263 }
 0x3de   :  { %4451 = vst.msk [vmem:[#allocation2 + $0x14] sm:$0xf] %vm4445_vm12, %v4264_v49  ;;  %v4262_v58 = vpop.permute.xlu0 %4261  ;;  %v4278_v61 = vpop.permute.xlu2 %4277  ;;  %v4648_v49 = vrot.slane %v4647_v40, 4 }
 0x3df   :  { %4450 = vst.msk [vmem:[#allocation2 + $0x10] sm:$0xf] %vm4445_vm12, %v4262_v58 }
 0x3e0   :  { %4458 = vst.msk [vmem:[#allocation2 + $0x30] sm:$0xf] %vm4445_vm12, %v4278_v61  ;;  %v4638_v61 = vrot.slane %v4637_v31, 4  ;;  %v4682_v31 = vshll.u32 %v7629_v36, 16 }
 0x3e2   :  { %v4643_v55 = vsel %vm8142_vm2, %v4638_v61, %v4642_v43 }
 0x3e3   :  { %4353 = vrot.lane.b32.xlu1 %v7606_v60, %s8095_s27  ;;  %v7644_v60 = vld [vmem:[%s13225_s0 + $0x78] sm:$0xf] }
 0x3e4   :  { %4351 = vrot.lane.b32.xlu0 %v7605_v0, %s8095_s27  ;;  %4349 = vrot.lane.b32.xlu2 %v7604_v1, %s8095_s27  ;;  %v4653_v1 = vsel %vm8142_vm2, %v4648_v49, %v4652_v47  ;;  %v4799_v3 = vshrl.u32 %v7644_v60, 16  ;;  %v5842_v47 = vrot.slane %v7724_v50, 5 }
 0x3e5   :  { %v4270_v6 = vpop.permute.xlu1 %4269 }
 0x3e6   :  { %4454 = vst.msk [vmem:[#allocation2 + $0x20] sm:$0xf] %vm4445_vm12, %v4270_v6  ;;  %v4268_v7 = vpop.permute.xlu0 %4267  ;;  %v4284_v10 = vpop.permute.xlu2 %4283  ;;  %v4802_v6 = vshll.u32 %v7644_v60, 16  ;;  %v4801_v59 = vrot.slane %v4799_v3, 4  ;;  %v7630_v3 = vld [vmem:[%s13225_s0 + $0x40] sm:$0xf] }
 0x3e7   :  { %4453 = vst.msk [vmem:[#allocation2 + $0x1c] sm:$0xf] %vm4445_vm12, %v4268_v7  ;;  %v5832_v7 = vrot.slane %v7720_v62, 5  ;;  %v4688_v12 = vshll.u32 %v7630_v3, 16 }
 0x3e8   :  { %4461 = vst.msk [vmem:[#allocation2 + $0x3c] sm:$0xf] %vm4445_vm12, %v4284_v10  ;;  %v7612_v10 = vld [vmem:[%s13225_s0 + $0x180] sm:$0xf]  ;;  %v4804_v15 = vrot.slane %v4802_v6, 5 }
 0x3e9   :  { %v5834_v20 = vrot.slane %v5832_v7, 4  ;;  %v5833_v39 = vsel %vm8874_vm7, %v7813_v27, %v5832_v7  ;;  %v7648_v6 = vld [vmem:[%s13225_s0 + $0x88] sm:$0xf] }
 0x3ea   :  { %v4836_v18 = vshrl.u32 %v7648_v6, 16 }
 0x3eb   :  { %4359 = vrot.lane.b32.xlu1 %v7609_v8, %s8095_s27  ;;  %v4664_v8 = vshll.u32 %v7627_v63, 16  ;;  %v7722_v63 = vld [vmem:[%s13225_s0 + $0x30] sm:$0xe] }
 0x3ec   :  { %4357 = vrot.lane.b32.xlu0 %v7608_v11, %s8095_s27  ;;  %4355 = vrot.lane.b32.xlu2 %v7607_v13, %s8095_s27  ;;  %v4655_v11 = vshrl.u32 %v7626_v57, 16  ;;  %v7721_v13 = vld [vmem:[%s13225_s0 + $0x2c] sm:$0x1]  ;;  %v7814_v7 = vrot.slane %v7722_v63, 9 }
 0x3ed   :  { %v4276_v16 = vpop.permute.xlu1 %4275  ;;  %v4666_v24 = vrot.slane %v4664_v8, 5 }
 0x3ee   :  { %4457 = vst.msk [vmem:[#allocation2 + $0x2c] sm:$0xf] %vm4445_vm12, %v4276_v16  ;;  %v4274_v23 = vpop.permute.xlu0 %4273  ;;  %v4290_v25 = vpop.permute.xlu2 %4289  ;;  %v4657_v28 = vrot.slane %v4655_v11, 4 }
 0x3ef   :  { %4456 = vst.msk [vmem:[#allocation2 + $0x28] sm:$0xf] %vm4445_vm12, %v4274_v23  ;;  %v4670_v23 = vrot.slane %v4668_v9, 4 }
 0x3f0   :  { %4464 = vst.msk [vmem:[#allocation2 + $0x48] sm:$0xf] %vm4445_vm12, %v4290_v25  ;;  %v7628_v25 = vld [vmem:[%s13225_s0 + $0x38] sm:$0x1]  ;;  %v4661_v42 = vor.u32 %v4660_v17, %v4657_v28  ;;  %v4690_v28 = vrot.slane %v4688_v12, 5 }
 0x3f1   :  { %v4671_v2 = vor.u32 %v4670_v23, %v4666_v24  ;;  %v4674_v4 = vshll.u32 %v7628_v25, 16  ;;  %v7742_v23 = vld [vmem:[%s13225_s0 + $0x80] sm:$0x1]  ;;  %v7670_v12 = vld [vmem:[%s13225_s0 + $0xf8] sm:$0x1] }
 0x3f3   :  { %5374 = vrot.lane.b32.xlu1 %v4619_v26, %s8096_s19  ;;  %v5835_v26 = vrot.slane %v7721_v13, 5  ;;  %v4672_v14 = vrot.slane %v4671_v2, 4  ;;  %v4676_v41 = vrot.slane %v4674_v4, 5  ;;  %v7741_v13 = vld [vmem:[%s13225_s0 + $0x7c] sm:$0xf] }
 0x3f4   :  { %4363 = vrot.lane.b32.xlu0 %v7611_v19, %s8095_s27  ;;  %4361 = vrot.lane.b32.xlu2 %v7610_v35, %s8095_s27  ;;  %v4805_v19 = vor.u32 %v4804_v15, %v4801_v59  ;;  %v4832_v15 = vshll.u32 %v7648_v6, 16 }
 0x3f5   :  { %v4282_v46 = vpop.permute.xlu1 %4281  ;;  %v5836_v33 = vsel %vm8874_vm7, %v5834_v20, %v5835_v26  ;;  %v4677_v49 = vsel %vm8142_vm2, %v4672_v14, %v4676_v41  ;;  %v5881_v26 = vrot.slane %v7741_v13, 5  ;;  %v7725_v13 = vld [vmem:[%s13225_s0 + $0x3c] sm:$0xe] }
 0x3f6   :  { %4460 = vst.msk [vmem:[#allocation2 + $0x38] sm:$0xf] %vm4445_vm12, %v4282_v46  ;;  %v4280_v51 = vpop.permute.xlu0 %4279  ;;  %v4296_v45 = vpop.permute.xlu2 %4295  ;;  %v4806_v43 = vrot.slane %v4805_v19, 4  ;;  %v7723_v46 = vld [vmem:[%s13225_s0 + $0x34] sm:$0xf]  ;;  %v11480_v17 = vrot.slane %v4832_v15, 5 }
 0x3f7   :  { %4459 = vst.msk [vmem:[#allocation2 + $0x34] sm:$0xf] %vm4445_vm12, %v4280_v51  ;;  %v5839_v37 = vrot.slane %v7723_v46, 5  ;;  %v4662_v51 = vrot.slane %v4661_v42, 4  ;;  %v5883_v4 = vrot.slane %v5881_v26, 4  ;;  %v4842_v46 = vshll.u32 %v7649_v32, 16 }
 0x3f8   :  { %4467 = vst.msk [vmem:[#allocation2 + $0x54] sm:$0xf] %vm4445_vm12, %v4296_v45  ;;  %v4811_v53 = vsel %vm8142_vm2, %v4806_v43, %v4810_v44  ;;  %v7632_v15 = vld [vmem:[%s13225_s0 + $0x48] sm:$0xf] }
 0x3f9   :  { %v4667_v60 = vsel %vm8142_vm2, %v4662_v51, %v4666_v24  ;;  %v5840_v20 = vsel %vm8874_vm7, %v7814_v7, %v5839_v37  ;;  %v4692_v24 = vshrl.u32 %v7630_v3, 16 }
 0x3fb   :  { %6049 = vrot.lane.b32.xlu1 %v5829_v52, %s8097_s26  ;;  %v4814_v52 = vrot.slane %v4812_v38, 4 }
 0x3fc   :  { %6047 = vrot.lane.b32.xlu0 %v5826_v54, %s8097_s26  ;;  %5376 = vrot.lane.b32.xlu2 %v4629_v56, %s8096_s19  ;;  %v4679_v54 = vshrl.u32 %v7629_v36, 16  ;;  %v7646_v56 = vld [vmem:[%s13225_s0 + $0x80] sm:$0x1]  ;;  %v7631_v36 = vld [vmem:[%s13225_s0 + $0x44] sm:$0x1] }
 0x3fd   :  { %v4288_v58 = vpop.permute.xlu1 %4287  ;;  %v4815_v61 = vor.u32 %v4814_v52, %v4810_v44  ;;  %v4818_v62 = vshll.u32 %v7646_v56, 16  ;;  %v4698_v51 = vshll.u32 %v7631_v36, 16 }
 0x3fe   :  { %4463 = vst.msk [vmem:[#allocation2 + $0x44] sm:$0xf] %vm4445_vm12, %v4288_v58  ;;  %v4286_v0 = vpop.permute.xlu0 %4285  ;;  %v4302_v5 = vpop.permute.xlu2 %4301  ;;  %v5841_v58 = vrot.slane %v5839_v37, 4 }
 0x3ff   :  { %4462 = vst.msk [vmem:[#allocation2 + $0x40] sm:$0xf] %vm4445_vm12, %v4286_v0  ;;  %v4681_v0 = vrot.slane %v4679_v54, 4  ;;  %v4816_v8 = vrot.slane %v4815_v61, 4  ;;  %v4820_v9 = vrot.slane %v4818_v62, 5 }
 0x400   :  { %4470 = vst.msk [vmem:[#allocation2 + $0x60] sm:$0xf] %vm4445_vm12, %v4302_v5  ;;  %v5843_v57 = vsel %vm8874_vm7, %v5841_v58, %v5842_v47 }
 0x401   :  { %v4821_v25 = vsel %vm8142_vm2, %v4816_v8, %v4820_v9 }
 0x403   :  { %5380 = vrot.lane.b32.xlu1 %v4653_v1, %s8096_s19  ;;  %v4684_v1 = vrot.slane %v4682_v31, 5  ;;  %v7726_v31 = vld [vmem:[%s13225_s0 + $0x40] sm:$0xf] }
 0x404   :  { %5378 = vrot.lane.b32.xlu0 %v4643_v55, %s8096_s19  ;;  %4365 = vrot.lane.b32.xlu2 %v7612_v10, %s8095_s27  ;;  %v7647_v55 = vld [vmem:[%s13225_s0 + $0x84] sm:$0xf]  ;;  %v5846_v3 = vrot.slane %v7726_v31, 5 }
 0x405   :  { %v4294_v16 = vpop.permute.xlu1 %4293  ;;  %v4685_v11 = vor.u32 %v4684_v1, %v4681_v0  ;;  %v4826_v21 = vshll.u32 %v7647_v55, 16  ;;  %v7743_v0 = vld [vmem:[%s13225_s0 + $0x84] sm:$0xe]  ;;  %v7744_v1 = vld [vmem:[%s13225_s0 + $0x88] sm:$0xf] }
 0x406   :  { %4466 = vst.msk [vmem:[#allocation2 + $0x50] sm:$0xf] %vm4445_vm12, %v4294_v16  ;;  %v4292_v29 = vpop.permute.xlu0 %4291  ;;  %v4308_v35 = vpop.permute.xlu2 %4307  ;;  %v4823_v16 = vshrl.u32 %v7647_v55, 16 }
 0x407   :  { %4465 = vst.msk [vmem:[#allocation2 + $0x4c] sm:$0xf] %vm4445_vm12, %v4292_v29  ;;  %v4686_v27 = vrot.slane %v4685_v11, 4  ;;  %v4838_v29 = vrot.slane %v4836_v18, 4  ;;  %v4828_v2 = vrot.slane %v4826_v21, 5  ;;  %v5888_v11 = vrot.slane %v7744_v1, 5 }
 0x408   :  { %4473 = vst.msk [vmem:[#allocation2 + $0x6c] sm:$0xf] %vm4445_vm12, %v4308_v35  ;;  %v4825_v35 = vrot.slane %v4823_v16, 4  ;;  %v5848_v18 = vrot.slane %v5846_v3, 4 }
 0x409   :  { %v4691_v43 = vsel %vm8142_vm2, %v4686_v27, %v4690_v28  ;;  %v4839_v44 = vor.u32 %v4838_v29, %v11480_v17  ;;  %v4706_v29 = vshll.u32 %v7632_v15, 16 }
 0x40a   :  { %v4829_v14 = vor.u32 %v4828_v2, %v4825_v35 }
 0x40b   :  { %4367 = vrot.lane.b32.xlu1 %v7613_v30, %s8095_s27  ;;  %v7740_v30 = vld [vmem:[%s13225_s0 + $0x78] sm:$0xe]  ;;  %v4840_v52 = vrot.slane %v4839_v44, 4 }
 0x40c   :  { %6053 = vrot.lane.b32.xlu0 %v5836_v33, %s8097_s26  ;;  %6051 = vrot.lane.b32.xlu2 %v5833_v39, %s8097_s26  ;;  %v5884_v33 = vrot.slane %v7742_v23, 5  ;;  %v7820_v38 = vrot.slane %v7740_v30, 9  ;;  %v4694_v39 = vrot.slane %v4692_v24, 4  ;;  %v4830_v54 = vrot.slane %v4829_v14, 4  ;;  %v7650_v14 = vld [vmem:[%s13225_s0 + $0x90] sm:$0xf] }
 0x40d   :  { %v4300_v48 = vpop.permute.xlu1 %4299  ;;  %v5010_v24 = vshll.u32 %v7670_v12, 16 }
 0x40e   :  { %4469 = vst.msk [vmem:[#allocation2 + $0x5c] sm:$0xf] %vm4445_vm12, %v4300_v48  ;;  %v4298_v40 = vpop.permute.xlu0 %4297  ;;  %v4314_v45 = vpop.permute.xlu2 %4313  ;;  %v5885_v41 = vsel %vm8874_vm7, %v5883_v4, %v5884_v33  ;;  %v5882_v50 = vsel %vm8874_vm7, %v7820_v38, %v5881_v26  ;;  %v4695_v37 = vor.u32 %v4694_v39, %v4690_v28  ;;  %v7815_v26 = vrot.slane %v7725_v13, 9  ;;  %v7745_v38 = vld [vmem:[%s13225_s0 + $0x8c] sm:$0x1] }
 0x40f   :  { %4468 = vst.msk [vmem:[#allocation2 + $0x58] sm:$0xf] %vm4445_vm12, %v4298_v40  ;;  %v4844_v40 = vrot.slane %v4842_v46, 5  ;;  %v5012_v32 = vrot.slane %v5010_v24, 5  ;;  %v4708_v33 = vrot.slane %v4706_v29, 5  ;;  %v5891_v36 = vrot.slane %v7745_v38, 5 }
 0x410   :  { %4476 = vst.msk [vmem:[#allocation2 + $0x78] sm:$0xf] %vm4445_vm12, %v4314_v45  ;;  %v4696_v56 = vrot.slane %v4695_v37, 4  ;;  %v5847_v2 = vsel %vm8874_vm7, %v7815_v26, %v5846_v3  ;;  %v7672_v26 = vld [vmem:[%s13225_s0 + $0x100] sm:$0xf] }
 0x411   :  { %v4845_v62 = vsel %vm8142_vm2, %v4840_v52, %v4844_v40  ;;  %v11635_v38 = vld [vmem:[%s13225_s0 + $0x94] sm:$0xf] }
 0x413   :  { %5406 = vrot.lane.b32.xlu1 %v4811_v53, %s8096_s19  ;;  %v7669_v53 = vld [vmem:[%s13225_s0 + $0xf4] sm:$0xf] }
 0x414   :  { %5384 = vrot.lane.b32.xlu0 %v4677_v49, %s8096_s19  ;;  %5382 = vrot.lane.b32.xlu2 %v4667_v60, %s8096_s19  ;;  %v4700_v49 = vrot.slane %v4698_v51, 5  ;;  %v5000_v47 = vshll.u32 %v7669_v53, 16  ;;  %v5004_v58 = vshrl.u32 %v7669_v53, 16  ;;  %v7668_v60 = vld [vmem:[%s13225_s0 + $0xf0] sm:$0xf] }
 0x415   :  { %v4306_v5 = vpop.permute.xlu1 %4305  ;;  %v4991_v6 = vshrl.u32 %v7668_v60, 16  ;;  %v4994_v55 = vshll.u32 %v7668_v60, 16  ;;  %v7765_v51 = vld [vmem:[%s13225_s0 + $0xf4] sm:$0xf] }
 0x416   :  { %4472 = vst.msk [vmem:[#allocation2 + $0x68] sm:$0xf] %vm4445_vm12, %v4306_v5  ;;  %v4304_v10 = vpop.permute.xlu0 %4303  ;;  %v4320_v59 = vpop.permute.xlu2 %4319  ;;  %v4835_v5 = vsel %vm8142_vm2, %v4830_v54, %v11480_v17  ;;  %v4701_v7 = vsel %vm8142_vm2, %v4696_v56, %v4700_v49  ;;  %v11535_v8 = vrot.slane %v5000_v47, 5  ;;  %v5006_v9 = vrot.slane %v5004_v58, 4  ;;  %v7766_v49 = vld [vmem:[%s13225_s0 + $0xf8] sm:$0x1] }
 0x417   :  { %4471 = vst.msk [vmem:[#allocation2 + $0x64] sm:$0xf] %vm4445_vm12, %v4304_v10  ;;  %v7821_v10 = vrot.slane %v7743_v0, 9  ;;  %v4993_v21 = vrot.slane %v4991_v6, 4  ;;  %v4996_v23 = vrot.slane %v4994_v55, 5  ;;  %v4703_v17 = vshrl.u32 %v7632_v15, 16 }
 0x418   :  { %4479 = vst.msk [vmem:[#allocation2 + $0x84] sm:$0xf] %vm4445_vm12, %v4320_v59  ;;  %v4850_v54 = vshll.u32 %v7650_v14, 16  ;;  %v5937_v47 = vrot.slane %v7765_v51, 5  ;;  %v7764_v0 = vld [vmem:[%s13225_s0 + $0xf0] sm:$0xe] }
 0x419   :  { %v5889_v27 = vsel %vm8874_vm7, %v7821_v10, %v5888_v11  ;;  %v4997_v35 = vor.u32 %v4996_v23, %v4993_v21  ;;  %v4705_v4 = vrot.slane %v4703_v17, 4  ;;  %v5895_v51 = vrot.slane %v11635_v38, 5 }
 0x41a   :  { %v4852_v6 = vrot.slane %v4850_v54, 5 }
 0x41b   :  { %6057 = vrot.lane.b32.xlu1 %v5843_v57, %s8097_s26  ;;  %v7727_v57 = vld [vmem:[%s13225_s0 + $0x44] sm:$0x1]  ;;  %v4998_v46 = vrot.slane %v4997_v35, 4 }
 0x41c   :  { %6055 = vrot.lane.b32.xlu0 %v5840_v20, %s8097_s26  ;;  %5408 = vrot.lane.b32.xlu2 %v4821_v25, %s8096_s19  ;;  %v5849_v16 = vrot.slane %v7727_v57, 5  ;;  %v5007_v20 = vor.u32 %v5006_v9, %v11535_v8  ;;  %v5939_v57 = vrot.slane %v5937_v47, 4 }
 0x41d   :  { %v4312_v19 = vpop.permute.xlu1 %4311  ;;  %v5003_v31 = vsel %vm8142_vm2, %v4998_v46, %v11535_v8  ;;  %v7828_v8 = vrot.slane %v7764_v0, 9  ;;  %v6372_v46 = vld [vmem:[%s13226_s1 + $0x10] sm:$0x3] }
 0x41e   :  { %4475 = vst.msk [vmem:[#allocation2 + $0x74] sm:$0xf] %vm4445_vm12, %v4312_v19  ;;  %v4310_v42 = vpop.permute.xlu0 %4309  ;;  %v4326_v48 = vpop.permute.xlu2 %4325  ;;  %v5850_v30 = vsel %vm8874_vm7, %v5848_v18, %v5849_v16  ;;  %v5008_v19 = vrot.slane %v5007_v20, 4 }
 0x41f   :  { %4474 = vst.msk [vmem:[#allocation2 + $0x70] sm:$0xf] %vm4445_vm12, %v4310_v42  ;;  %v7633_v42 = vld [vmem:[%s13225_s0 + $0x4c] sm:$0xf]  ;;  %v5938_v16 = vsel %vm8874_vm7, %v7828_v8, %v5937_v47 }
 0x420   :  { %4482 = vst.msk [vmem:[#allocation2 + $0x90] sm:$0xf] %vm4445_vm12, %v4326_v48  ;;  %v5013_v44 = vsel %vm8142_vm2, %v5008_v19, %v5012_v32  ;;  %v5890_v48 = vrot.slane %v5888_v11, 4  ;;  %v4712_v37 = vshll.u32 %v7633_v42, 16  ;;  %v4716_v56 = vshrl.u32 %v7633_v42, 16 }
 0x421   :  { %v5028_v19 = vshrl.u32 %v7672_v26, 16  ;;  %v7671_v32 = vld [vmem:[%s13225_s0 + $0xfc] sm:$0xf] }
 0x422   :  { %v5892_v58 = vsel %vm8874_vm7, %v5890_v48, %v5891_v36  ;;  %v4718_v9 = vrot.slane %v4716_v56, 4  ;;  %v7730_v48 = vld [vmem:[%s13225_s0 + $0x50] sm:$0x1] }
 0x423   :  { %5386 = vrot.lane.b32.xlu1 %v4691_v43, %s8096_s19  ;;  %v7651_v43 = vld [vmem:[%s13225_s0 + $0x94] sm:$0xf]  ;;  %v5856_v56 = vrot.slane %v7730_v48, 5 }
 0x424   :  { %6081 = vrot.lane.b32.xlu0 %v5885_v41, %s8097_s26  ;;  %6079 = vrot.lane.b32.xlu2 %v5882_v50, %s8097_s26  ;;  %v4709_v50 = vor.u32 %v4708_v33, %v4705_v4  ;;  %v4856_v40 = vshll.u32 %v7651_v43, 16  ;;  %v4860_v53 = vshrl.u32 %v7651_v43, 16  ;;  %v7746_v4 = vld [vmem:[%s13225_s0 + $0x90] sm:$0xe]  ;;  %v5015_v43 = vshrl.u32 %v7671_v32, 16 }
 0x425   :  { %v4318_v45 = vpop.permute.xlu1 %4317 }
 0x426   :  { %4478 = vst.msk [vmem:[#allocation2 + $0x80] sm:$0xf] %vm4445_vm12, %v4318_v45  ;;  %v4316_v61 = vpop.permute.xlu0 %4315  ;;  %v4332_v63 = vpop.permute.xlu2 %4331  ;;  %v4847_v45 = vshrl.u32 %v7650_v14, 16  ;;  %v4710_v60 = vrot.slane %v4709_v50, 4  ;;  %v6542_v50 = vunpack.c.l.b16 %v6372_v46  ;;  %v7767_v46 = vld [vmem:[%s13225_s0 + $0xfc] sm:$0xe] }
 0x427   :  { %4477 = vst.msk [vmem:[#allocation2 + $0x7c] sm:$0xf] %vm4445_vm12, %v4316_v61  ;;  %v4714_v61 = vrot.slane %v4712_v37, 5  ;;  %v7822_v37 = vrot.slane %v7746_v4, 9 }
 0x428   :  { %4485 = vst.msk [vmem:[#allocation2 + $0x9c] sm:$0xf] %vm4445_vm12, %v4332_v63  ;;  %v4862_v63 = vrot.slane %v4860_v53, 4  ;;  %v4849_v3 = vrot.slane %v4847_v45, 4  ;;  %v7635_v45 = vld [vmem:[%s13225_s0 + $0x54] sm:$0xf]  ;;  %v6545_v54 = vpack.c.b16 %v6542_v50, %v6542_v50 }
 0x429   :  { %v4715_v10 = vsel %vm8142_vm2, %v4710_v60, %v4714_v61  ;;  %v4719_v21 = vor.u32 %v4718_v9, %v4714_v61  ;;  %v5896_v0 = vsel %vm8874_vm7, %v7822_v37, %v5895_v51 }
 0x42a   :  { %v4853_v15 = vor.u32 %v4852_v6, %v4849_v3  ;;  %v4730_v3 = vshll.u32 %v7635_v45, 16  ;;  %v8045_v6 = vld [vmem:[%s13226_s1 + $0x8] sm:$0xff] }
 0x42b   :  { %5412 = vrot.lane.b32.xlu1 %v4845_v62, %s8096_s19  ;;  %v11590_v62 = vrot.slane %v4856_v40, 5  ;;  %v4720_v17 = vrot.slane %v4719_v21, 4  ;;  %v7728_v40 = vld [vmem:[%s13225_s0 + $0x48] sm:$0xe] }
 0x42c   :  { %5410 = vrot.lane.b32.xlu0 %v4835_v5, %s8096_s19  ;;  %5388 = vrot.lane.b32.xlu2 %v4701_v7, %s8096_s19  ;;  %v7652_v5 = vld [vmem:[%s13225_s0 + $0x98] sm:$0x1]  ;;  %v5940_v7 = vrot.slane %v7766_v49, 5  ;;  %v5017_v49 = vrot.slane %v5015_v43, 4  ;;  %v7816_v61 = vrot.slane %v7728_v40, 9 }
 0x42d   :  { %v4324_v59 = vpop.permute.xlu1 %4323  ;;  %v4863_v11 = vor.u32 %v4862_v63, %v11590_v62  ;;  %v4866_v12 = vshll.u32 %v7652_v5, 16  ;;  %v4727_v5 = vshrl.u32 %v7635_v45, 16 }
 0x42e   :  { %4481 = vst.msk [vmem:[#allocation2 + $0x8c] sm:$0xf] %vm4445_vm12, %v4324_v59  ;;  %v4322_v25 = vpop.permute.xlu0 %4321  ;;  %v4338_v28 = vpop.permute.xlu2 %4337  ;;  %v7634_v59 = vld [vmem:[%s13225_s0 + $0x50] sm:$0x1]  ;;  %v5941_v18 = vsel %vm8874_vm7, %v5939_v57, %v5940_v7 }
 0x42f   :  { %4480 = vst.msk [vmem:[#allocation2 + $0x88] sm:$0xf] %vm4445_vm12, %v4322_v25  ;;  %v4722_v20 = vshll.u32 %v7634_v59, 16  ;;  %v4864_v24 = vrot.slane %v4863_v11, 4  ;;  %v4868_v23 = vrot.slane %v4866_v12, 5  ;;  %v4732_v11 = vrot.slane %v4730_v3, 5 }
 0x430   :  { %4488 = vst.msk [vmem:[#allocation2 + $0xa8] sm:$0xf] %vm4445_vm12, %v4338_v28  ;;  %v7729_v28 = vld [vmem:[%s13225_s0 + $0x4c] sm:$0xf]  ;;  %v7748_v12 = vld [vmem:[%s13225_s0 + $0x98] sm:$0x1] }
 0x431   :  { %v4724_v29 = vrot.slane %v4722_v20, 5  ;;  %v7636_v59 = vld [vmem:[%s13225_s0 + $0x58] sm:$0xf]  ;;  %v7768_v20 = vld [vmem:[%s13225_s0 + $0x100] sm:$0xf] }
 0x433   :  { %6083 = vrot.lane.b32.xlu1 %v5889_v27, %s8097_s26  ;;  %v4854_v27 = vrot.slane %v4853_v15, 4  ;;  %v4725_v36 = vsel %vm8142_vm2, %v4720_v17, %v4724_v29  ;;  %v7654_v15 = vld [vmem:[%s13225_s0 + $0xa0] sm:$0xf] }
 0x434   :  { %6061 = vrot.lane.b32.xlu0 %v5850_v30, %s8097_s26  ;;  %6059 = vrot.lane.b32.xlu2 %v5847_v2, %s8097_s26  ;;  %v5024_v30 = vshll.u32 %v7672_v26, 16  ;;  %v4869_v2 = vsel %vm8142_vm2, %v4864_v24, %v4868_v23  ;;  %v5897_v24 = vrot.slane %v5895_v51, 4  ;;  %v5898_v23 = vrot.slane %v7748_v12, 5  ;;  %v7749_v12 = vld [vmem:[%s13225_s0 + $0x9c] sm:$0xe] }
 0x435   :  { %v4330_v39 = vpop.permute.xlu1 %4329  ;;  %v4859_v42 = vsel %vm8142_vm2, %v4854_v27, %v11590_v62  ;;  %v6647_v62 = vsel %vm6645_vm13, %v6545_v54, 0  ;;  %v4736_v27 = vshll.u32 %v7636_v59, 16  ;;  %v4880_v17 = vshll.u32 %v7654_v15, 16 }
 0x436   :  { %4484 = vst.msk [vmem:[#allocation2 + $0x98] sm:$0xf] %vm4445_vm12, %v4330_v39  ;;  %v4328_v41 = vpop.permute.xlu0 %4327  ;;  %v4344_v52 = vpop.permute.xlu2 %4343  ;;  %v5853_v39 = vrot.slane %v7729_v28, 5  ;;  %v11650_v14 = vrot.slane %v5024_v30, 5  ;;  %6654 = vmatpush.bf16.msra.mxu0 %v6647_v62  ;;  %8046 = vmatpush.bf16.msra.mxu1 %v6647_v62  ;;  %v4884_v29 = vshrl.u32 %v7654_v15, 16  ;;  %v5899_v4 = vsel %vm8874_vm7, %v5897_v24, %v5898_v23 }
 0x437   :  { %4483 = vst.msk [vmem:[#allocation2 + $0x94] sm:$0xf] %vm4445_vm12, %v4328_v41  ;;  %v5030_v41 = vrot.slane %v5028_v19, 4  ;;  %8047 = vmatpush.bf16.msra.mxu2 %v6647_v62  ;;  %8048 = vmatpush.bf16.msra.mxu3 %v6647_v62  ;;  %v7653_v30 = vld [vmem:[%s13225_s0 + $0x9c] sm:$0xf]  ;;  %v11712_v43 = vrot.slane %v4880_v17, 5 }
 0x438   :  { %4491 = vst.msk [vmem:[#allocation2 + $0xb4] sm:$0xf] %vm4445_vm12, %v4344_v52  ;;  %v7673_v52 = vld [vmem:[%s13225_s0 + $0x104] sm:$0x1]  ;;  %v4874_v38 = vshll.u32 %v7653_v30, 16  ;;  %v7829_v51 = vrot.slane %v7767_v46, 9 }
 0x439   :  { %v5034_v60 = vshll.u32 %v7673_v52, 16  ;;  %v7823_v24 = vrot.slane %v7749_v12, 9  ;;  %v7676_v17 = vld [vmem:[%s13225_s0 + $0x110] sm:$0x1] }
 0x43a   :  { %6655 = vmatpush.bf16.msra.mxu0 %v8045_v6  ;;  %8049 = vmatpush.bf16.msra.mxu1 %v8045_v6  ;;  %v4876_v37 = vrot.slane %v4874_v38, 5 }
 0x43b   :  { %5440 = vrot.lane.b32.xlu1 %v5013_v44, %s8096_s19  ;;  %v5018_v44 = vshll.u32 %v7671_v32, 16  ;;  %v5036_v9 = vrot.slane %v5034_v60, 5  ;;  %8050 = vmatpush.bf16.msra.mxu2 %v8045_v6  ;;  %v5944_v32 = vrot.slane %v7768_v20, 5 }
 0x43c   :  { %5438 = vrot.lane.b32.xlu0 %v5003_v31, %s8096_s19  ;;  %6085 = vrot.lane.b32.xlu2 %v5892_v58, %s8097_s26  ;;  %v5855_v31 = vrot.slane %v5853_v39, 4  ;;  %v5031_v58 = vor.u32 %v5030_v41, %v11650_v14 }
 0x43d   :  { %v4336_v1 = vpop.permute.xlu1 %4335  ;;  %v5020_v47 = vrot.slane %v5018_v44, 5  ;;  %8051 = vmatpush.bf16.msra.mxu3 %v8045_v6  ;;  %v4886_v44 = vrot.slane %v4884_v29, 4 }
 0x43e   :  { %4487 = vst.msk [vmem:[#allocation2 + $0xa4] sm:$0xf] %vm4445_vm12, %v4336_v1  ;;  %v4334_v55 = vpop.permute.xlu0 %4333  ;;  %v4350_v13 = vpop.permute.xlu2 %4349  ;;  %v5857_v7 = vsel %vm8874_vm7, %v5855_v31, %v5856_v56  ;;  %v5032_v8 = vrot.slane %v5031_v58, 4  ;;  %v7637_v56 = vld [vmem:[%s13225_s0 + $0x5c] sm:$0x1]  ;;  %v5945_v58 = vsel %vm8874_vm7, %v7829_v51, %v5944_v32 }
 0x43f   :  { %4486 = vst.msk [vmem:[#allocation2 + $0xa0] sm:$0xf] %vm4445_vm12, %v4334_v55  ;;  %v5021_v57 = vor.u32 %v5020_v47, %v5017_v49  ;;  %v5854_v55 = vsel %vm8874_vm7, %v7816_v61, %v5853_v39  ;;  %v4887_v45 = vor.u32 %v4886_v44, %v11712_v43  ;;  %v4746_v61 = vshll.u32 %v7637_v56, 16 }
 0x440   :  { %4494 = vst.msk [vmem:[#allocation2 + $0xc0] sm:$0xf] %vm4445_vm12, %v4350_v13  ;;  %v5037_v21 = vsel %vm8142_vm2, %v5032_v8, %v5036_v9  ;;  %v7732_v9 = vld [vmem:[%s13225_s0 + $0x58] sm:$0xf] }
 0x441   :  { %v4888_v62 = vrot.slane %v4887_v45, 4  ;;  %v4748_v6 = vrot.slane %v4746_v61, 5 }
 0x443   :  { %5390 = vrot.lane.b32.xlu1 %v4715_v10, %s8096_s19  ;;  %v4729_v10 = vrot.slane %v4727_v5, 4 }
 0x444   :  { %6113 = vrot.lane.b32.xlu0 %v5941_v18, %s8097_s26  ;;  %6111 = vrot.lane.b32.xlu2 %v5938_v16, %s8097_s26  ;;  %v8044_v18 = vld [vmem:[%s13226_s1] sm:$0xff]  ;;  %v5022_v16 = vrot.slane %v5021_v57, 4  ;;  %v7674_v57 = vld [vmem:[%s13225_s0 + $0x108] sm:$0xf] }
 0x445   :  { %v4342_v25 = vpop.permute.xlu1 %4341  ;;  %6656 = vmatpush.bf16.msra.mxu0 %v8044_v18  ;;  %8052 = vmatpush.bf16.msra.mxu1 %v8044_v18  ;;  %v5042_v15 = vshll.u32 %v7674_v57, 16 }
 0x446   :  { %4490 = vst.msk [vmem:[#allocation2 + $0xb0] sm:$0xf] %vm4445_vm12, %v4342_v25  ;;  %v4340_v35 = vpop.permute.xlu0 %4339  ;;  %v4356_v33 = vpop.permute.xlu2 %4355  ;;  %v4733_v25 = vor.u32 %v4732_v11, %v4729_v10  ;;  %8053 = vmatpush.bf16.msra.mxu2 %v8044_v18  ;;  %8054 = vmatpush.bf16.msra.mxu3 %v8044_v18  ;;  %v5027_v19 = vsel %vm8142_vm2, %v5022_v16, %v11650_v14  ;;  %v5946_v14 = vrot.slane %v5944_v32, 4  ;;  %v7733_v16 = vld [vmem:[%s13225_s0 + $0x5c] sm:$0x1] }
 0x447   :  { %4489 = vst.msk [vmem:[#allocation2 + $0xac] sm:$0xf] %vm4445_vm12, %v4340_v35  ;;  %v4740_v35 = vshrl.u32 %v7636_v59, 16  ;;  %v5039_v59 = vshrl.u32 %v7674_v57, 16  ;;  %v5863_v32 = vrot.slane %v7733_v16, 5 }
 0x448   :  { %4497 = vst.msk [vmem:[#allocation2 + $0xcc] sm:$0xf] %vm4445_vm12, %v4356_v33  ;;  %v4871_v33 = vshrl.u32 %v7653_v30, 16  ;;  %v4734_v39 = vrot.slane %v4733_v25, 4  ;;  %v5044_v30 = vrot.slane %v5042_v15, 5 }
 0x449   :  { %v4742_v52 = vrot.slane %v4740_v35, 4  ;;  %v5041_v29 = vrot.slane %v5039_v59, 4  ;;  %v7639_v15 = vld [vmem:[%s13225_s0 + $0x64] sm:$0xf] }
 0x44a   :  { %v4873_v50 = vrot.slane %v4871_v33, 4 }
 0x44b   :  { %5416 = vrot.lane.b32.xlu1 %v4869_v2, %s8096_s19  ;;  %v7769_v2 = vld [vmem:[%s13225_s0 + $0x104] sm:$0x1]  ;;  %v5045_v44 = vor.u32 %v5044_v30, %v5041_v29 }
 0x44c   :  { %5414 = vrot.lane.b32.xlu0 %v4859_v42, %s8096_s19  ;;  %5392 = vrot.lane.b32.xlu2 %v4725_v36, %s8096_s19  ;;  %v4738_v42 = vrot.slane %v4736_v27, 5  ;;  %v7655_v36 = vld [vmem:[%s13225_s0 + $0xa4] sm:$0x1]  ;;  %v5947_v41 = vrot.slane %v7769_v2, 5  ;;  %v4877_v47 = vor.u32 %v4876_v37, %v4873_v50  ;;  %v7731_v27 = vld [vmem:[%s13225_s0 + $0x54] sm:$0xe] }
 0x44d   :  { %v4348_v53 = vpop.permute.xlu1 %4347  ;;  %v4890_v54 = vshll.u32 %v7655_v36, 16  ;;  %v7817_v35 = vrot.slane %v7731_v27, 9  ;;  %v7693_v2 = vld [vmem:[%s13225_s0 + $0x154] sm:$0xf]  ;;  %v7788_v27 = vld [vmem:[%s13225_s0 + $0x150] sm:$0xe] }
 0x44e   :  { %4493 = vst.msk [vmem:[#allocation2 + $0xbc] sm:$0xf] %vm4445_vm12, %v4348_v53  ;;  %v4346_v63 = vpop.permute.xlu0 %4345  ;;  %v4362_v1 = vpop.permute.xlu2 %4361  ;;  %v4739_v53 = vsel %vm8142_vm2, %v4734_v39, %v4738_v42  ;;  %v5948_v49 = vsel %vm8874_vm7, %v5946_v14, %v5947_v41  ;;  %v4743_v60 = vor.u32 %v4742_v52, %v4738_v42  ;;  %v4878_v5 = vrot.slane %v4877_v47, 4  ;;  %v7751_v52 = vld [vmem:[%s13225_s0 + $0xa4] sm:$0x1] }
 0x44f   :  { %4492 = vst.msk [vmem:[#allocation2 + $0xb8] sm:$0xf] %vm4445_vm12, %v4346_v63  ;;  %v4892_v63 = vrot.slane %v4890_v54, 5  ;;  %v5058_v39 = vshll.u32 %v7676_v17, 16  ;;  %v5192_v46 = vshll.u32 %v7693_v2, 16  ;;  %v5905_v56 = vrot.slane %v7751_v52, 5 }
 0x450   :  { %4500 = vst.msk [vmem:[#allocation2 + $0xd8] sm:$0xf] %vm4445_vm12, %v4362_v1  ;;  %v7675_v1 = vld [vmem:[%s13225_s0 + $0x10c] sm:$0xf]  ;;  %v4744_v3 = vrot.slane %v4743_v60, 4  ;;  %v4883_v18 = vsel %vm8142_vm2, %v4878_v5, %v11712_v43  ;;  %v4764_v17 = vshrl.u32 %v7639_v15, 16 }
 0x451   :  { %v4893_v8 = vsel %vm8142_vm2, %v4888_v62, %v4892_v63  ;;  %v5048_v10 = vshll.u32 %v7675_v1, 16  ;;  %v5052_v11 = vshrl.u32 %v7675_v1, 16  ;;  %v7692_v43 = vld [vmem:[%s13225_s0 + $0x150] sm:$0xf]  ;;  %v5060_v51 = vrot.slane %v5058_v39, 5 }
 0x452   :  { %v4749_v20 = vsel %vm8142_vm2, %v4744_v3, %v4748_v6  ;;  %v5183_v41 = vshrl.u32 %v7692_v43, 16  ;;  %v5186_v50 = vshll.u32 %v7692_v43, 16  ;;  %v5194_v45 = vrot.slane %v5192_v46, 5  ;;  %v7694_v62 = vld [vmem:[%s13225_s0 + $0x158] sm:$0x1] }
 0x453   :  { %6087 = vrot.lane.b32.xlu1 %v5896_v0, %s8097_s26  ;;  %v5054_v25 = vrot.slane %v5052_v11, 4  ;;  %v7771_v1 = vld [vmem:[%s13225_s0 + $0x10c] sm:$0xf]  ;;  %v5202_v6 = vshll.u32 %v7694_v62, 16  ;;  %v7656_v11 = vld [vmem:[%s13225_s0 + $0xa8] sm:$0xf] }
 0x454   :  { %6065 = vrot.lane.b32.xlu0 %v5857_v7, %s8097_s26  ;;  %6063 = vrot.lane.b32.xlu2 %v5854_v55, %s8097_s26  ;;  %v5188_v47 = vrot.slane %v5186_v50, 5  ;;  %v7657_v43 = vld [vmem:[%s13225_s0 + $0xac] sm:$0xf] }
 0x455   :  { %v4354_v13 = vpop.permute.xlu1 %4353 }
 0x456   :  { %4496 = vst.msk [vmem:[#allocation2 + $0xc8] sm:$0xf] %vm4445_vm12, %v4354_v13  ;;  %v4352_v26 = vpop.permute.xlu0 %4351  ;;  %v5377_v28 = vpop.permute.xlu2 %5376  ;;  %v7750_v13 = vld [vmem:[%s13225_s0 + $0xa0] sm:$0xf] }
 0x457   :  { %4495 = vst.msk [vmem:[#allocation2 + $0xc4] sm:$0xf] %vm4445_vm12, %v4352_v26  ;;  %v5902_v23 = vrot.slane %v7750_v13, 5  ;;  %v11768_v26 = vrot.slane %v5048_v10, 5  ;;  %v5204_v13 = vrot.slane %v5202_v6, 5 }
 0x458   :  { %5568 = vst.msk [vmem:[#allocation2 + $0x4] sm:$0xf] %vm5566_vm14, %v5377_v28 }
 0x459   :  { %v5903_v33 = vsel %vm8874_vm7, %v7823_v24, %v5902_v23  ;;  %v5055_v38 = vor.u32 %v5054_v25, %v11768_v26  ;;  %v4895_v24 = vshrl.u32 %v7656_v11, 16  ;;  %v7790_v25 = vld [vmem:[%s13225_s0 + $0x158] sm:$0x1] }
 0x45b   :  { %5444 = vrot.lane.b32.xlu1 %v5037_v21, %s8096_s19  ;;  %v5860_v21 = vrot.slane %v7732_v9, 5  ;;  %v5056_v37 = vrot.slane %v5055_v38, 4  ;;  %v5951_v9 = vrot.slane %v7771_v1, 5  ;;  %v7772_v38 = vld [vmem:[%s13225_s0 + $0x110] sm:$0x1] }
 0x45c   :  { %5442 = vrot.lane.b32.xlu0 %v5027_v19, %s8096_s19  ;;  %6089 = vrot.lane.b32.xlu2 %v5899_v4, %s8097_s26 }
 0x45d   :  { %v4360_v48 = vpop.permute.xlu1 %4359  ;;  %v5862_v19 = vrot.slane %v5860_v21, 4  ;;  %v5861_v14 = vsel %vm8874_vm7, %v7817_v35, %v5860_v21  ;;  %v5061_v61 = vsel %vm8142_vm2, %v5056_v37, %v5060_v51 }
 0x45e   :  { %4499 = vst.msk [vmem:[#allocation2 + $0xd4] sm:$0xf] %vm4445_vm12, %v4360_v48  ;;  %v4358_v40 = vpop.permute.xlu0 %4357  ;;  %v4366_v31 = vpop.permute.xlu2 %4365  ;;  %v5196_v48 = vshrl.u32 %v7693_v2, 16  ;;  %v5996_v2 = vrot.slane %v7790_v25, 5  ;;  %v7678_v25 = vld [vmem:[%s13225_s0 + $0x118] sm:$0xf] }
 0x45f   :  { %4498 = vst.msk [vmem:[#allocation2 + $0xd0] sm:$0xf] %vm4445_vm12, %v4358_v40  ;;  %v5864_v36 = vsel %vm8874_vm7, %v5862_v19, %v5863_v32 }
 0x460   :  { %4502 = vst.msk [vmem:[#allocation2 + $0xe0] sm:$0xf] %vm4445_vm12, %v4366_v31  ;;  %v5198_v54 = vrot.slane %v5196_v48, 4  ;;  %v5904_v31 = vrot.slane %v5902_v23, 4  ;;  %v4898_v23 = vshll.u32 %v7656_v11, 16  ;;  %v4766_v48 = vrot.slane %v4764_v17, 4 }
 0x462   :  { %v5199_v3 = vor.u32 %v5198_v54, %v5194_v45  ;;  %v5906_v57 = vsel %vm8874_vm7, %v5904_v31, %v5905_v56 }
 0x463   :  { %5394 = vrot.lane.b32.xlu1 %v4739_v53, %s8096_s19  ;;  %v5046_v53 = vrot.slane %v5045_v44, 4  ;;  %v7640_v44 = vld [vmem:[%s13225_s0 + $0x68] sm:$0x1] }
 0x464   :  { %6117 = vrot.lane.b32.xlu0 %v5948_v49, %s8097_s26  ;;  %6115 = vrot.lane.b32.xlu2 %v5945_v58, %s8097_s26  ;;  %v5185_v49 = vrot.slane %v5183_v41, 4  ;;  %v5200_v12 = vrot.slane %v5199_v3, 4  ;;  %v4770_v31 = vshll.u32 %v7640_v44, 16 }
 0x465   :  { %v5375_v0 = vpop.permute.xlu1 %5374  ;;  %v5051_v5 = vsel %vm8142_vm2, %v5046_v53, %v11768_v26  ;;  %v7638_v26 = vld [vmem:[%s13225_s0 + $0x60] sm:$0xf]  ;;  %v4904_v53 = vshll.u32 %v7657_v43, 16 }
 0x466   :  { %5567 = vst.msk [vmem:[#allocation2] sm:$0xf] %vm5566_vm14, %v5375_v0  ;;  %v4364_v7 = vpop.permute.xlu0 %4363  ;;  %v11750_v55 = vpop.permute.xlu2 %6051  ;;  %v7770_v0 = vld [vmem:[%s13225_s0 + $0x108] sm:$0xe]  ;;  %v5205_v29 = vsel %vm8142_vm2, %v5200_v12, %v5204_v13  ;;  %v4751_v19 = vshrl.u32 %v7638_v26, 16  ;;  %v4754_v32 = vshll.u32 %v7638_v26, 16 }
 0x467   :  { %4501 = vst.msk [vmem:[#allocation2 + $0xdc] sm:$0xf] %vm4445_vm12, %v4364_v7  ;;  %v5189_v7 = vor.u32 %v5188_v47, %v5185_v49  ;;  %v4908_v49 = vshrl.u32 %v7657_v43, 16  ;;  %v4906_v62 = vrot.slane %v4904_v53, 5  ;;  %v7658_v12 = vld [vmem:[%s13225_s0 + $0xb0] sm:$0x1] }
 0x468   :  { %v4753_v41 = vrot.slane %v4751_v19, 4  ;;  %v4756_v50 = vrot.slane %v4754_v32, 5  ;;  %v7695_v19 = vld [vmem:[%s13225_s0 + $0x15c] sm:$0xf] }
 0x469   :  { %v5190_v59 = vrot.slane %v5189_v7, 4  ;;  %v5207_v43 = vshrl.u32 %v7695_v19, 16  ;;  %v5210_v44 = vshll.u32 %v7695_v19, 16 }
 0x46b   :  { %5420 = vrot.lane.b32.xlu1 %v4893_v8, %s8096_s19  ;;  %v7830_v8 = vrot.slane %v7770_v0, 9  ;;  %v5195_v30 = vsel %vm8142_vm2, %v5190_v59, %v5194_v45  ;;  %v7677_v0 = vld [vmem:[%s13225_s0 + $0x114] sm:$0xf] }
 0x46c   :  { %5418 = vrot.lane.b32.xlu0 %v4883_v18, %s8096_s19  ;;  %5396 = vrot.lane.b32.xlu2 %v4749_v20, %s8096_s19  ;;  %v5066_v11 = vshll.u32 %v7677_v0, 16 }
 0x46d   :  { %v6050_v28 = vpop.permute.xlu1 %6049  ;;  %v5952_v16 = vsel %vm8874_vm7, %v7830_v8, %v5951_v9 }
 0x46e   :  { %6241 = vst.msk [vmem:[#allocation2 + $0x4] sm:$0xf] %vm6239_vm15, %v6050_v28  ;;  %v6048_v4 = vpop.permute.xlu0 %6047  ;;  %v5383_v42 = vpop.permute.xlu2 %5382  ;;  %v4760_v28 = vshll.u32 %v7639_v15, 16 }
 0x46f   :  { %6240 = vst.msk [vmem:[#allocation2] sm:$0xf] %vm6239_vm15, %v6048_v4  ;;  %v4897_v4 = vrot.slane %v4895_v24, 4 }
 0x470   :  { %5571 = vst.msk [vmem:[#allocation2 + $0x10] sm:$0xf] %vm5566_vm14, %v5383_v42  ;;  %v7836_v42 = vrot.slane %v7788_v27, 9  ;;  %v4762_v46 = vrot.slane %v4760_v28, 5  ;;  %v7696_v27 = vld [vmem:[%s13225_s0 + $0x160] sm:$0xf] }
 0x472   :  { %v4767_v54 = vor.u32 %v4766_v48, %v4762_v46  ;;  %v5076_v48 = vshrl.u32 %v7678_v25, 16 }
 0x473   :  { %6091 = vrot.lane.b32.xlu1 %v5903_v33, %s8097_s26  ;;  %v4900_v33 = vrot.slane %v4898_v23, 5  ;;  %v5068_v23 = vrot.slane %v5066_v11, 5  ;;  %v7642_v11 = vld [vmem:[%s13225_s0 + $0x70] sm:$0xf] }
 0x474   :  { %6069 = vrot.lane.b32.xlu0 %v5864_v36, %s8097_s26  ;;  %6067 = vrot.lane.b32.xlu2 %v5861_v14, %s8097_s26  ;;  %v5953_v36 = vrot.slane %v5951_v9, 4  ;;  %v5954_v14 = vrot.slane %v7772_v38, 5  ;;  %v4768_v1 = vrot.slane %v4767_v54, 4  ;;  %v7736_v9 = vld [vmem:[%s13225_s0 + $0x68] sm:$0x1]  ;;  %v5209_v54 = vrot.slane %v5207_v43, 4 }
 0x475   :  { %v5381_v40 = vpop.permute.xlu1 %5380  ;;  %v5870_v15 = vrot.slane %v7736_v9, 5 }
 0x476   :  { %5570 = vst.msk [vmem:[#allocation2 + $0xc] sm:$0xf] %vm5566_vm14, %v5381_v40  ;;  %v5379_v58 = vpop.permute.xlu0 %5378  ;;  %v8012_v60 = vld [vmem:[#allocation2] sm:$0xff]  ;;  %v5409_v63 = vpop.permute.xlu2 %5408  ;;  %v4901_v40 = vor.u32 %v4900_v33, %v4897_v4  ;;  %v5955_v47 = vsel %vm8874_vm7, %v5953_v36, %v5954_v14  ;;  %v5072_v4 = vshll.u32 %v7678_v25, 16  ;;  %v7753_v33 = vld [vmem:[%s13225_s0 + $0xac] sm:$0xf] }
 0x477   :  { %5569 = vst.msk [vmem:[#allocation2 + $0x8] sm:$0xf] %vm5566_vm14, %v5379_v58  ;;  %7980 = vmatmul.msk.bf16.vlgmr.msra.gmra.mxu0 %vm6548_vm0, %v8012_v60  ;;  %v7735_v58 = vld [vmem:[%s13225_s0 + $0x64] sm:$0xf]  ;;  %v4757_v60 = vor.u32 %v4756_v50, %v4753_v41  ;;  %v7754_v36 = vld [vmem:[%s13225_s0 + $0xb0] sm:$0x1] }
 0x478   :  { %6242 = vst.msk [vmem:[#allocation2 + $0x8] sm:$0xf] %vm6239_vm15, %v11750_v55  ;;  %v7789_v55 = vld [vmem:[%s13225_s0 + $0x154] sm:$0xf]  ;;  %v5867_v3 = vrot.slane %v7735_v58, 5  ;;  %v5909_v14 = vrot.slane %v7753_v33, 5 }
 0x479   :  { %5584 = vst.msk [vmem:[#allocation2 + $0x44] sm:$0xf] %vm5566_vm14, %v5409_v63  ;;  %v5993_v21 = vrot.slane %v7789_v55, 5  ;;  %v4758_v6 = vrot.slane %v4757_v60, 4  ;;  %v5063_v55 = vshrl.u32 %v7677_v0, 16  ;;  %v5078_v58 = vrot.slane %v5076_v48, 4 }
 0x47a   :  { %v5869_v59 = vrot.slane %v5867_v3, 4  ;;  %v4788_v25 = vshrl.u32 %v7642_v11, 16  ;;  %v7773_v33 = vld [vmem:[%s13225_s0 + $0x114] sm:$0xe] }
 0x47b   :  { %5448 = vrot.lane.b32.xlu1 %v5061_v61, %s8096_s19  ;;  %v5995_v35 = vrot.slane %v5993_v21, 4  ;;  %v5994_v56 = vsel %vm8874_vm7, %v7836_v42, %v5993_v21  ;;  %v4902_v61 = vrot.slane %v4901_v40, 4  ;;  %v5065_v24 = vrot.slane %v5063_v55, 4  ;;  %v7752_v40 = vld [vmem:[%s13225_s0 + $0xa8] sm:$0xe] }
 0x47c   :  { %5446 = vrot.lane.b32.xlu0 %v5051_v5, %s8096_s19  ;;  %6093 = vrot.lane.b32.xlu2 %v5906_v57, %s8097_s26  ;;  %v4772_v5 = vrot.slane %v4770_v31, 5  ;;  %v4910_v57 = vrot.slane %v4908_v49, 4  ;;  %v5871_v17 = vsel %vm8874_vm7, %v5869_v59, %v5870_v15  ;;  %v5220_v42 = vshrl.u32 %v7696_v27, 16 }
 0x47d   :  { %v4368_v10 = vpop.permute.xlu1 %4367  ;;  %v5997_v52 = vsel %vm8874_vm7, %v5995_v35, %v5996_v2  ;;  %v4907_v8 = vsel %vm8142_vm2, %v4902_v61, %v4906_v62  ;;  %v5069_v2 = vor.u32 %v5068_v23, %v5065_v24  ;;  %v5212_v31 = vrot.slane %v5210_v44, 5  ;;  %v7792_v24 = vld [vmem:[%s13225_s0 + $0x160] sm:$0xf] }
 0x47e   :  { %4503 = vst.msk [vmem:[#allocation2 + $0xe4] sm:$0xf] %vm4445_vm12, %v4368_v10  ;;  %v6054_v18 = vpop.permute.xlu0 %6053  ;;  %v6080_v20 = vpop.permute.xlu2 %6079  ;;  %v4773_v13 = vsel %vm8142_vm2, %v4768_v1, %v4772_v5  ;;  %v4911_v21 = vor.u32 %v4910_v57, %v4906_v62  ;;  %v5912_v49 = vrot.slane %v7754_v36, 5  ;;  %v7679_v5 = vld [vmem:[%s13225_s0 + $0x11c] sm:$0x1]  ;;  %v7831_v36 = vrot.slane %v7773_v33, 9 }
 0x47f   :  { %6243 = vst.msk [vmem:[#allocation2 + $0xc] sm:$0xf] %vm6239_vm15, %v6054_v18  ;;  %v7734_v18 = vld [vmem:[%s13225_s0 + $0x60] sm:$0xe]  ;;  %v5070_v50 = vrot.slane %v5069_v2, 4 }
 0x480   :  { %v7818_v28 = vrot.slane %v7734_v18, 9  ;;  %v7641_v18 = vld [vmem:[%s13225_s0 + $0x6c] sm:$0xf]  ;;  %v7680_v33 = vld [vmem:[%s13225_s0 + $0x120] sm:$0xf] }
 0x483   :  { %6119 = vrot.lane.b32.xlu1 %v5952_v16, %s8097_s26  ;;  %v4763_v16 = vsel %vm8142_vm2, %v4758_v6, %v4762_v46  ;;  %v5868_v46 = vsel %vm8874_vm7, %v7818_v28, %v5867_v3  ;;  %v5213_v3 = vor.u32 %v5212_v31, %v5209_v54  ;;  %v4775_v28 = vshrl.u32 %v7641_v18, 16 }
 0x484   :  { %5472 = vrot.lane.b32.xlu0 %v5205_v29, %s8096_s19  ;;  %5470 = vrot.lane.b32.xlu2 %v5195_v30, %s8096_s19  ;;  %v4912_v29 = vrot.slane %v4911_v21, 4 }
 0x485   :  { %v5407_v39 = vpop.permute.xlu1 %5406  ;;  %v4777_v43 = vrot.slane %v4775_v28, 4 }
 0x486   :  { %5583 = vst.msk [vmem:[#allocation2 + $0x40] sm:$0xf] %vm5566_vm14, %v5407_v39  ;;  %v5385_v37 = vpop.permute.xlu0 %5384  ;;  %v8013_v51 = vld [vmem:[#allocation2 + $0x8] sm:$0xff]  ;;  %v5389_v45 = vpop.permute.xlu2 %5388  ;;  %v5216_v39 = vshll.u32 %v7696_v27, 16 }
 0x487   :  { %6256 = vst.msk [vmem:[#allocation2 + $0x40] sm:$0xf] %vm6239_vm15, %v6080_v20  ;;  %7981 = vmatmul.msk.bf16.gmra.mxu0 %vm6548_vm0, %v8013_v51  ;;  %v4914_v20 = vshll.u32 %v7658_v12, 16  ;;  %v5214_v12 = vrot.slane %v5213_v3, 4 }
 0x488   :  { %5572 = vst.msk [vmem:[#allocation2 + $0x14] sm:$0xf] %vm5566_vm14, %v5385_v37  ;;  %v5074_v37 = vrot.slane %v5072_v4, 5  ;;  %v11929_v51 = vrot.slane %v5216_v39, 5  ;;  %v4790_v4 = vrot.slane %v4788_v25, 4 }
 0x489   :  { %5574 = vst.msk [vmem:[#allocation2 + $0x1c] sm:$0xf] %vm5566_vm14, %v5389_v45  ;;  %v4916_v30 = vrot.slane %v4914_v20, 5  ;;  %v7697_v45 = vld [vmem:[%s13225_s0 + $0x164] sm:$0x1] }
 0x48a   :  { %v5075_v62 = vsel %vm8142_vm2, %v5070_v50, %v5074_v37  ;;  %v5226_v0 = vshll.u32 %v7697_v45, 16  ;;  %v7791_v20 = vld [vmem:[%s13225_s0 + $0x15c] sm:$0xe]  ;;  %v5219_v27 = vsel %vm8142_vm2, %v5214_v12, %v11929_v51  ;;  %v7643_v39 = vld [vmem:[%s13225_s0 + $0x74] sm:$0x1] }
 0x48b   :  { %6145 = vrot.lane.b32.xlu1 %v5997_v52, %s8097_s26  ;;  %v4917_v41 = vsel %vm8142_vm2, %v4912_v29, %v4916_v30  ;;  %v5222_v52 = vrot.slane %v5220_v42, 4  ;;  %v7837_v29 = vrot.slane %v7791_v20, 9  ;;  %v6000_v30 = vrot.slane %v7792_v24, 5  ;;  %v7738_v12 = vld [vmem:[%s13225_s0 + $0x70] sm:$0xf] }
 0x48c   :  { %6143 = vrot.lane.b32.xlu0 %v5994_v56, %s8097_s26  ;;  %6121 = vrot.lane.b32.xlu2 %v5955_v47, %s8097_s26  ;;  %v5911_v56 = vrot.slane %v5909_v14, 4  ;;  %v7824_v47 = vrot.slane %v7752_v40, 9  ;;  %v5874_v20 = vrot.slane %v7738_v12, 5  ;;  %v7662_v12 = vld [vmem:[%s13225_s0 + $0xc0] sm:$0xf] }
 0x48d   :  { %v6058_v63 = vpop.permute.xlu1 %6057  ;;  %v6002_v3 = vrot.slane %v6000_v30, 4 }
 0x48e   :  { %6245 = vst.msk [vmem:[#allocation2 + $0x14] sm:$0xf] %vm6239_vm15, %v6058_v63  ;;  %v6056_v7 = vpop.permute.xlu0 %6055  ;;  %v6060_v10 = vpop.permute.xlu2 %6059  ;;  %v5223_v63 = vor.u32 %v5222_v52, %v11929_v51  ;;  %v5913_v6 = vsel %vm8874_vm7, %v5911_v56, %v5912_v49  ;;  %v5910_v57 = vsel %vm8874_vm7, %v7824_v47, %v5909_v14  ;;  %v7660_v14 = vld [vmem:[%s13225_s0 + $0xb8] sm:$0xf]  ;;  %v4794_v52 = vshll.u32 %v7643_v39, 16 }
 0x48f   :  { %6244 = vst.msk [vmem:[#allocation2 + $0x10] sm:$0xf] %vm6239_vm15, %v6056_v7  ;;  %v5079_v7 = vor.u32 %v5078_v58, %v5074_v37  ;;  %v6001_v37 = vsel %vm8874_vm7, %v7837_v29, %v6000_v30  ;;  %v4928_v54 = vshll.u32 %v7660_v14, 16  ;;  %v4932_v31 = vshrl.u32 %v7660_v14, 16 }
 0x490   :  { %v5224_v9 = vrot.slane %v5223_v63, 4 }
 0x491   :  { %v5080_v59 = vrot.slane %v5079_v7, 4 }
 0x493   :  { %5422 = vrot.lane.b32.xlu1 %v4907_v8, %s8096_s19  ;;  %v5082_v8 = vshll.u32 %v7679_v5, 16  ;;  %v4934_v5 = vrot.slane %v4932_v31, 4  ;;  %v5876_v31 = vrot.slane %v5874_v20, 4 }
 0x494   :  { %5400 = vrot.lane.b32.xlu0 %v4773_v13, %s8096_s19  ;;  %5398 = vrot.lane.b32.xlu2 %v4763_v16, %s8096_s19  ;;  %v7774_v13 = vld [vmem:[%s13225_s0 + $0x118] sm:$0xf] }
 0x495   :  { %v5387_v26 = vpop.permute.xlu1 %5386  ;;  %v5084_v15 = vrot.slane %v5082_v8, 5  ;;  %v5958_v19 = vrot.slane %v7774_v13, 5 }
 0x496   :  { %5573 = vst.msk [vmem:[#allocation2 + $0x18] sm:$0xf] %vm5566_vm14, %v5387_v26  ;;  %v6082_v32 = vpop.permute.xlu0 %6081  ;;  %v8014_v35 = vld [vmem:[#allocation2 + $0x10] sm:$0xff]  ;;  %v6086_v38 = vpop.permute.xlu2 %6085  ;;  %v4784_v26 = vshll.u32 %v7642_v11, 16  ;;  %v7737_v11 = vld [vmem:[%s13225_s0 + $0x6c] sm:$0xe] }
 0x497   :  { %6246 = vst.msk [vmem:[#allocation2 + $0x18] sm:$0xf] %vm6239_vm15, %v6060_v10  ;;  %7982 = vmatmul.msk.bf16.gmra.mxu0 %vm6548_vm0, %v8014_v35  ;;  %v5228_v10 = vrot.slane %v5226_v0, 5  ;;  %v7775_v35 = vld [vmem:[%s13225_s0 + $0x11c] sm:$0x1]  ;;  %v5959_v49 = vsel %vm8874_vm7, %v7831_v36, %v5958_v19  ;;  %v5090_v36 = vshll.u32 %v7680_v33, 16 }
 0x498   :  { %6257 = vst.msk [vmem:[#allocation2 + $0x44] sm:$0xf] %vm6239_vm15, %v6082_v32  ;;  %v5085_v32 = vsel %vm8142_vm2, %v5080_v59, %v5084_v15  ;;  %v11987_v2 = vrot.slane %v4784_v26, 5  ;;  %v5961_v48 = vrot.slane %v7775_v35, 5  ;;  %v7698_v26 = vld [vmem:[%s13225_s0 + $0x168] sm:$0xf] }
 0x499   :  { %v5229_v21 = vsel %vm8142_vm2, %v5224_v9, %v5228_v10  ;;  %v7661_v10 = vld [vmem:[%s13225_s0 + $0xbc] sm:$0x1] }
 0x49a   :  { %v4791_v51 = vor.u32 %v4790_v4, %v11987_v2  ;;  %v4938_v15 = vshll.u32 %v7661_v10, 16  ;;  %v5234_v4 = vshll.u32 %v7698_v26, 16 }
 0x49b   :  { %6073 = vrot.lane.b32.xlu1 %v5871_v17, %s8097_s26  ;;  %v4778_v17 = vshll.u32 %v7641_v18, 16 }
 0x49c   :  { %6071 = vrot.lane.b32.xlu0 %v5868_v46, %s8097_s26  ;;  %5424 = vrot.lane.b32.xlu2 %v4917_v41, %s8096_s19  ;;  %v5960_v46 = vrot.slane %v5958_v19, 4 }
 0x49d   :  { %v5413_v53 = vpop.permute.xlu1 %5412  ;;  %v4780_v44 = vrot.slane %v4778_v17, 5  ;;  %v7681_v17 = vld [vmem:[%s13225_s0 + $0x124] sm:$0xf] }
 0x49e   :  { %5586 = vst.msk [vmem:[#allocation2 + $0x4c] sm:$0xf] %vm5566_vm14, %v5413_v53  ;;  %v5411_v60 = vpop.permute.xlu0 %5410  ;;  %v11944_v1 = vpop.permute.xlu2 %6111  ;;  %v7659_v53 = vld [vmem:[%s13225_s0 + $0xb4] sm:$0xf]  ;;  %v5962_v56 = vsel %vm8874_vm7, %v5960_v46, %v5961_v48  ;;  %v5096_v39 = vshll.u32 %v7681_v17, 16  ;;  %v5087_v48 = vshrl.u32 %v7680_v33, 16 }
 0x49f   :  { %6259 = vst.msk [vmem:[#allocation2 + $0x4c] sm:$0xf] %vm6239_vm15, %v6086_v38  ;;  %v8020_v61 = vld [vmem:[#allocation2 + $0x40] sm:$0xff]  ;;  %v4781_v45 = vor.u32 %v4780_v44, %v4777_v43  ;;  %v4919_v47 = vshrl.u32 %v7659_v53, 16  ;;  %v4922_v58 = vshll.u32 %v7659_v53, 16 }
 0x4a0   :  { %5585 = vst.msk [vmem:[#allocation2 + $0x48] sm:$0xf] %vm5566_vm14, %v5411_v60  ;;  %7988 = vmatmul.msk.bf16.vlgmr.msra.gmra.mxu1 %vm6548_vm0, %v8020_v61  ;;  %v4792_v60 = vrot.slane %v4791_v51, 4  ;;  %v4796_v61 = vrot.slane %v4794_v52, 5  ;;  %v7755_v44 = vld [vmem:[%s13225_s0 + $0xb4] sm:$0xe] }
 0x4a1   :  { %v4782_v0 = vrot.slane %v4781_v45, 4  ;;  %v4924_v7 = vrot.slane %v4922_v58, 5  ;;  %v7739_v51 = vld [vmem:[%s13225_s0 + $0x74] sm:$0x1]  ;;  %v7825_v53 = vrot.slane %v7755_v44, 9  ;;  %v5098_v45 = vrot.slane %v5096_v39, 5 }
 0x4a2   :  { %v4797_v9 = vsel %vm8142_vm2, %v4792_v60, %v4796_v61  ;;  %v7663_v39 = vld [vmem:[%s13225_s0 + $0xc4] sm:$0xf] }
 0x4a3   :  { %5450 = vrot.lane.b32.xlu1 %v5075_v62, %s8096_s19  ;;  %v7793_v62 = vld [vmem:[%s13225_s0 + $0x164] sm:$0x1]  ;;  %v4787_v59 = vsel %vm8142_vm2, %v4782_v0, %v11987_v2  ;;  %v5231_v2 = vshrl.u32 %v7698_v26, 16  ;;  %v4943_v26 = vshrl.u32 %v7662_v12, 16 }
 0x4a4   :  { %6097 = vrot.lane.b32.xlu0 %v5913_v6, %s8097_s26  ;;  %6095 = vrot.lane.b32.xlu2 %v5910_v57, %s8097_s26  ;;  %v6003_v6 = vrot.slane %v7793_v62, 5  ;;  %v4921_v57 = vrot.slane %v4919_v47, 4  ;;  %v5092_v47 = vrot.slane %v5090_v36, 5 }
 0x4a5   :  { %v6084_v55 = vpop.permute.xlu1 %6083  ;;  %v4945_v33 = vrot.slane %v4943_v26, 4 }
 0x4a6   :  { %6258 = vst.msk [vmem:[#allocation2 + $0x48] sm:$0xf] %vm6239_vm15, %v6084_v55  ;;  %v6062_v16 = vpop.permute.xlu0 %6061  ;;  %v5393_v23 = vpop.permute.xlu2 %5392  ;;  %v6004_v18 = vsel %vm8874_vm7, %v6002_v3, %v6003_v6 }
 0x4a7   :  { %6247 = vst.msk [vmem:[#allocation2 + $0x1c] sm:$0xf] %vm6239_vm15, %v6062_v16  ;;  %v4925_v16 = vor.u32 %v4924_v7, %v4921_v57 }
 0x4a8   :  { %5576 = vst.msk [vmem:[#allocation2 + $0x24] sm:$0xf] %vm5566_vm14, %v5393_v23  ;;  %v7756_v23 = vld [vmem:[%s13225_s0 + $0xb8] sm:$0xf] }
 0x4a9   :  { %v4926_v28 = vrot.slane %v4925_v16, 4 }
 0x4ab   :  { %5476 = vrot.lane.b32.xlu1 %v5229_v21, %s8096_s19  ;;  %v7819_v21 = vrot.slane %v7737_v11, 9  ;;  %v7777_v11 = vld [vmem:[%s13225_s0 + $0x124] sm:$0xf] }
 0x4ac   :  { %5474 = vrot.lane.b32.xlu0 %v5219_v27, %s8096_s19  ;;  %5452 = vrot.lane.b32.xlu2 %v5085_v32, %s8096_s19  ;;  %v4940_v27 = vrot.slane %v4938_v15, 5  ;;  %v5916_v32 = vrot.slane %v7756_v23, 5 }
 0x4ad   :  { %v5441_v38 = vpop.permute.xlu1 %5440  ;;  %v8021_v42 = vld [vmem:[#allocation2 + $0x48] sm:$0xff]  ;;  %v5875_v19 = vsel %vm8874_vm7, %v7819_v21, %v5874_v20 }
 0x4ae   :  { %5600 = vst.msk [vmem:[#allocation2 + $0x84] sm:$0xf] %vm5566_vm14, %v5441_v38  ;;  %v5439_v41 = vpop.permute.xlu0 %5438  ;;  %v8015_v50 = vld [vmem:[#allocation2 + $0x18] sm:$0xff]  ;;  %v6064_v40 = vpop.permute.xlu2 %6063  ;;  %v5918_v14 = vrot.slane %v5916_v32, 4 }
 0x4af   :  { %5599 = vst.msk [vmem:[#allocation2 + $0x80] sm:$0xf] %vm5566_vm14, %v5439_v41  ;;  %7983 = vmatmul.msk.bf16.gmra.mxu0 %vm6548_vm0, %v8015_v50  ;;  %v7757_v38 = vld [vmem:[%s13225_s0 + $0xbc] sm:$0x1]  ;;  %v5233_v50 = vrot.slane %v5231_v2, 4 }
 0x4b0   :  { %6272 = vst.msk [vmem:[#allocation2 + $0x80] sm:$0xf] %vm6239_vm15, %v11944_v1  ;;  %7989 = vmatmul.msk.bf16.gmra.mxu1 %vm6548_vm0, %v8021_v42  ;;  %v4930_v1 = vrot.slane %v4928_v54, 5  ;;  %v5100_v42 = vshrl.u32 %v7681_v17, 16  ;;  %v5919_v41 = vrot.slane %v7757_v38, 5 }
 0x4b2   :  { %v4935_v13 = vor.u32 %v4934_v5, %v4930_v1  ;;  %v4931_v46 = vsel %vm8142_vm2, %v4926_v28, %v4930_v1  ;;  %v5102_v54 = vrot.slane %v5100_v42, 4  ;;  %v5920_v60 = vsel %vm8874_vm7, %v5918_v14, %v5919_v41  ;;  %v7778_v28 = vld [vmem:[%s13225_s0 + $0x128] sm:$0x1] }
 0x4b3   :  { %6147 = vrot.lane.b32.xlu1 %v6001_v37, %s8097_s26  ;;  %v5236_v37 = vrot.slane %v5234_v4, 5  ;;  %v5917_v1 = vsel %vm8874_vm7, %v7825_v53, %v5916_v32  ;;  %v5968_v4 = vrot.slane %v7778_v28, 5  ;;  %v4952_v41 = vshll.u32 %v7663_v39, 16 }
 0x4b4   :  { %6125 = vrot.lane.b32.xlu0 %v5962_v56, %s8097_s26  ;;  %6123 = vrot.lane.b32.xlu2 %v5959_v49, %s8097_s26  ;;  %v4936_v25 = vrot.slane %v4935_v13, 4  ;;  %v5877_v56 = vrot.slane %v7739_v51, 5  ;;  %v5089_v49 = vrot.slane %v5087_v48, 4  ;;  %v5103_v3 = vor.u32 %v5102_v54, %v5098_v45  ;;  %v7794_v54 = vld [vmem:[%s13225_s0 + $0x168] sm:$0xe] }
 0x4b5   :  { %v5391_v63 = vpop.permute.xlu1 %5390  ;;  %v5237_v61 = vor.u32 %v5236_v37, %v5233_v50  ;;  %v4956_v37 = vshrl.u32 %v7663_v39, 16 }
 0x4b6   :  { %5575 = vst.msk [vmem:[#allocation2 + $0x20] sm:$0xf] %vm5566_vm14, %v5391_v63  ;;  %v6114_v8 = vpop.permute.xlu0 %6113  ;;  %v6090_v55 = vpop.permute.xlu2 %6089  ;;  %v4941_v43 = vsel %vm8142_vm2, %v4936_v25, %v4940_v27  ;;  %v7682_v63 = vld [vmem:[%s13225_s0 + $0x128] sm:$0x1]  ;;  %v5878_v57 = vsel %vm8874_vm7, %v5876_v31, %v5877_v56  ;;  %v5093_v7 = vor.u32 %v5092_v47, %v5089_v49  ;;  %v5104_v13 = vrot.slane %v5103_v3, 4 }
 0x4b7   :  { %6248 = vst.msk [vmem:[#allocation2 + $0x20] sm:$0xf] %vm6239_vm15, %v6064_v40  ;;  %v7699_v40 = vld [vmem:[%s13225_s0 + $0x16c] sm:$0xf]  ;;  %v5106_v6 = vshll.u32 %v7682_v63, 16  ;;  %v4946_v25 = vshll.u32 %v7662_v12, 16 }
 0x4b8   :  { %6273 = vst.msk [vmem:[#allocation2 + $0x84] sm:$0xf] %vm6239_vm15, %v6114_v8  ;;  %v5240_v62 = vshll.u32 %v7699_v40, 16  ;;  %v5244_v5 = vshrl.u32 %v7699_v40, 16  ;;  %v5238_v8 = vrot.slane %v5237_v61, 4  ;;  %v5094_v15 = vrot.slane %v5093_v7, 4 }
 0x4b9   :  { %v7700_v27 = vld [vmem:[%s13225_s0 + $0x170] sm:$0x1]  ;;  %v4954_v56 = vrot.slane %v4952_v41, 5  ;;  %v7701_v49 = vld [vmem:[%s13225_s0 + $0x174] sm:$0xf] }
 0x4ba   :  { %v5250_v32 = vshll.u32 %v7700_v27, 16  ;;  %v7796_v40 = vld [vmem:[%s13225_s0 + $0x170] sm:$0x1]  ;;  %v5255_v63 = vshrl.u32 %v7701_v49, 16  ;;  %v5258_v7 = vshll.u32 %v7701_v49, 16 }
 0x4bb   :  { %5404 = vrot.lane.b32.xlu1 %v4797_v9, %s8096_s19  ;;  %v5242_v9 = vrot.slane %v5240_v62, 5  ;;  %v7838_v62 = vrot.slane %v7794_v54, 9  ;;  %v7702_v27 = vld [vmem:[%s13225_s0 + $0x178] sm:$0xf] }
 0x4bc   :  { %5402 = vrot.lane.b32.xlu0 %v4787_v59, %s8096_s19  ;;  %6149 = vrot.lane.b32.xlu2 %v6004_v18, %s8097_s26  ;;  %v5108_v59 = vrot.slane %v5106_v6, 5  ;;  %v5246_v18 = vrot.slane %v5244_v5, 4  ;;  %v5260_v26 = vrot.slane %v5258_v7, 5  ;;  %v5264_v39 = vshll.u32 %v7702_v27, 16 }
 0x4bd   :  { %v5417_v24 = vpop.permute.xlu1 %5416  ;;  %v5243_v20 = vsel %vm8142_vm2, %v5238_v8, %v5242_v9  ;;  %v7664_v8 = vld [vmem:[%s13225_s0 + $0xc8] sm:$0x1] }
 0x4be   :  { %5588 = vst.msk [vmem:[#allocation2 + $0x54] sm:$0xf] %vm5566_vm14, %v5417_v24  ;;  %v5415_v29 = vpop.permute.xlu0 %5414  ;;  %v12057_v35 = vpop.permute.xlu2 %6115  ;;  %v5965_v24 = vrot.slane %v7777_v11, 5  ;;  %v5109_v17 = vsel %vm8142_vm2, %v5104_v13, %v5108_v59  ;;  %v7758_v59 = vld [vmem:[%s13225_s0 + $0xc0] sm:$0xe] }
 0x4bf   :  { %6261 = vst.msk [vmem:[#allocation2 + $0x54] sm:$0xf] %vm6239_vm15, %v6090_v55  ;;  %v8028_v30 = vld [vmem:[#allocation2 + $0x80] sm:$0xff]  ;;  %v7826_v28 = vrot.slane %v7758_v59, 9 }
 0x4c0   :  { %5587 = vst.msk [vmem:[#allocation2 + $0x50] sm:$0xf] %vm5566_vm14, %v5415_v29  ;;  %7996 = vmatmul.msk.bf16.vlgmr.msra.gmra.mxu2 %vm6548_vm0, %v8028_v30  ;;  %v7776_v29 = vld [vmem:[%s13225_s0 + $0x120] sm:$0xe]  ;;  %v5099_v30 = vsel %vm8142_vm2, %v5094_v15, %v5098_v45  ;;  %v5967_v2 = vrot.slane %v5965_v24, 4 }
 0x4c1   :  { %v7832_v42 = vrot.slane %v7776_v29, 9  ;;  %v12150_v45 = vld [vmem:[%s13225_s0 + $0xc4] sm:$0xf] }
 0x4c2   :  { %v5969_v36 = vsel %vm8874_vm7, %v5967_v2, %v5968_v4  ;;  %v5923_v61 = vrot.slane %v12150_v45, 5 }
 0x4c3   :  { %6075 = vrot.lane.b32.xlu1 %v5875_v19, %s8097_s26  ;;  %v5247_v19 = vor.u32 %v5246_v18, %v5242_v9  ;;  %v7683_v9 = vld [vmem:[%s13225_s0 + $0x12c] sm:$0xf]  ;;  %v4962_v18 = vshll.u32 %v7664_v8, 16 }
 0x4c4   :  { %5428 = vrot.lane.b32.xlu0 %v4941_v43, %s8096_s19  ;;  %5426 = vrot.lane.b32.xlu2 %v4931_v46, %s8096_s19  ;;  %v7795_v43 = vld [vmem:[%s13225_s0 + $0x16c] sm:$0xf]  ;;  %v5252_v46 = vrot.slane %v5250_v32, 5 }
 0x4c5   :  { %v6088_v52 = vpop.permute.xlu1 %6087  ;;  %v5248_v44 = vrot.slane %v5247_v19, 4  ;;  %v6007_v51 = vrot.slane %v7795_v43, 5  ;;  %v4964_v32 = vrot.slane %v4962_v18, 5  ;;  %v5924_v43 = vsel %vm8874_vm7, %v7826_v28, %v5923_v61  ;;  %v7779_v8 = vld [vmem:[%s13225_s0 + $0x12c] sm:$0xe] }
 0x4c6   :  { %6260 = vst.msk [vmem:[#allocation2 + $0x50] sm:$0xf] %vm6239_vm15, %v6088_v52  ;;  %v6066_v58 = vpop.permute.xlu0 %6065  ;;  %v5397_v0 = vpop.permute.xlu2 %5396  ;;  %v5966_v52 = vsel %vm8874_vm7, %v7832_v42, %v5965_v24  ;;  %v7833_v59 = vrot.slane %v7779_v8, 9 }
 0x4c7   :  { %6249 = vst.msk [vmem:[#allocation2 + $0x24] sm:$0xf] %vm6239_vm15, %v6066_v58  ;;  %v5253_v53 = vsel %vm8142_vm2, %v5248_v44, %v5252_v46  ;;  %v6009_v58 = vrot.slane %v6007_v51, 4  ;;  %v6008_v11 = vsel %vm8874_vm7, %v7838_v62, %v6007_v51  ;;  %v5268_v46 = vshrl.u32 %v7702_v27, 16  ;;  %v7799_v27 = vld [vmem:[%s13225_s0 + $0x17c] sm:$0x1] }
 0x4c8   :  { %5578 = vst.msk [vmem:[#allocation2 + $0x2c] sm:$0xf] %vm5566_vm14, %v5397_v0  ;;  %v7684_v0 = vld [vmem:[%s13225_s0 + $0x130] sm:$0xf] }
 0x4c9   :  { %v5120_v12 = vshll.u32 %v7684_v0, 16  ;;  %v5124_v13 = vshrl.u32 %v7684_v0, 16  ;;  %v7781_v0 = vld [vmem:[%s13225_s0 + $0x134] sm:$0x1] }
 0x4ca   :  { %v5975_v7 = vrot.slane %v7781_v0, 5 }
 0x4cb   :  { %6101 = vrot.lane.b32.xlu1 %v5920_v60, %s8097_s26  ;;  %v6010_v60 = vrot.slane %v7796_v40, 5  ;;  %v5126_v29 = vrot.slane %v5124_v13, 4  ;;  %v7665_v40 = vld [vmem:[%s13225_s0 + $0xcc] sm:$0xf] }
 0x4cc   :  { %6099 = vrot.lane.b32.xlu0 %v5917_v1, %s8097_s26  ;;  %6077 = vrot.lane.b32.xlu2 %v5878_v57, %s8097_s26  ;;  %v4958_v1 = vrot.slane %v4956_v37, 4  ;;  %v4970_v62 = vshll.u32 %v7665_v40, 16 }
 0x4cd   :  { %v5445_v10 = vpop.permute.xlu1 %5444  ;;  %v8022_v55 = vld [vmem:[#allocation2 + $0x50] sm:$0xff] }
 0x4ce   :  { %5602 = vst.msk [vmem:[#allocation2 + $0x8c] sm:$0xf] %vm5566_vm14, %v5445_v10  ;;  %7990 = vmatmul.msk.bf16.gmra.mxu1 %vm6548_vm0, %v8022_v55  ;;  %v5443_v16 = vpop.permute.xlu0 %5442  ;;  %v8016_v21 = vld [vmem:[#allocation2 + $0x20] sm:$0xff]  ;;  %v6068_v23 = vpop.permute.xlu2 %6067  ;;  %v7760_v10 = vld [vmem:[%s13225_s0 + $0xc8] sm:$0x1]  ;;  %v6011_v55 = vsel %vm8874_vm7, %v6009_v58, %v6010_v60  ;;  %v4959_v15 = vor.u32 %v4958_v1, %v4954_v56 }
 0x4cf   :  { %5601 = vst.msk [vmem:[#allocation2 + $0x88] sm:$0xf] %vm5566_vm14, %v5443_v16  ;;  %7984 = vmatmul.msk.bf16.gmra.mxu0 %vm6548_vm0, %v8016_v21  ;;  %v5111_v16 = vshrl.u32 %v7683_v9, 16  ;;  %v5114_v21 = vshll.u32 %v7683_v9, 16  ;;  %v5926_v24 = vrot.slane %v7760_v10, 5  ;;  %v4972_v10 = vrot.slane %v4970_v62, 5 }
 0x4d0   :  { %6274 = vst.msk [vmem:[#allocation2 + $0x88] sm:$0xf] %vm6239_vm15, %v12057_v35  ;;  %v4948_v35 = vrot.slane %v4946_v25, 5  ;;  %v4960_v19 = vrot.slane %v4959_v15, 4 }
 0x4d1   :  { %v5113_v2 = vrot.slane %v5111_v16, 4  ;;  %v5116_v4 = vrot.slane %v5114_v21, 5 }
 0x4d2   :  { %v4949_v14 = vor.u32 %v4948_v35, %v4945_v33 }
 0x4d3   :  { %5478 = vrot.lane.b32.xlu1 %v5243_v20, %s8096_s19  ;;  %v5925_v20 = vrot.slane %v5923_v61, 4  ;;  %v4967_v61 = vshrl.u32 %v7665_v40, 16 }
 0x4d4   :  { %5456 = vrot.lane.b32.xlu0 %v5109_v17, %s8096_s19  ;;  %5454 = vrot.lane.b32.xlu2 %v5099_v30, %s8096_s19  ;;  %v4950_v31 = vrot.slane %v4949_v14, 4  ;;  %v12194_v17 = vrot.slane %v5120_v12, 5  ;;  %v7685_v30 = vld [vmem:[%s13225_s0 + $0x134] sm:$0x1]  ;;  %v5117_v14 = vor.u32 %v5116_v4, %v5113_v2  ;;  %v12245_v12 = vld [vmem:[%s13225_s0 + $0x178] sm:$0xf] }
 0x4d5   :  { %v5395_v38 = vpop.permute.xlu1 %5394  ;;  %v5927_v35 = vsel %vm8874_vm7, %v5925_v20, %v5926_v24  ;;  %v5130_v44 = vshll.u32 %v7685_v30, 16  ;;  %v4969_v9 = vrot.slane %v4967_v61, 4 }
 0x4d6   :  { %5577 = vst.msk [vmem:[#allocation2 + $0x28] sm:$0xf] %vm5566_vm14, %v5395_v38  ;;  %v6118_v48 = vpop.permute.xlu0 %6117  ;;  %v6094_v50 = vpop.permute.xlu2 %6093  ;;  %v4955_v6 = vsel %vm8142_vm2, %v4950_v31, %v4954_v56  ;;  %v5118_v54 = vrot.slane %v5117_v14, 4  ;;  %v5270_v31 = vrot.slane %v5268_v46, 4  ;;  %v7687_v46 = vld [vmem:[%s13225_s0 + $0x13c] sm:$0xf] }
 0x4d7   :  { %6250 = vst.msk [vmem:[#allocation2 + $0x28] sm:$0xf] %vm6239_vm15, %v6068_v23  ;;  %v5257_v23 = vrot.slane %v5255_v63, 4  ;;  %v5132_v45 = vrot.slane %v5130_v44, 5  ;;  %v7703_v63 = vld [vmem:[%s13225_s0 + $0x17c] sm:$0x1]  ;;  %v4973_v20 = vor.u32 %v4972_v10, %v4969_v9 }
 0x4d8   :  { %6275 = vst.msk [vmem:[#allocation2 + $0x8c] sm:$0xf] %vm6239_vm15, %v6118_v48  ;;  %v5127_v48 = vor.u32 %v5126_v29, %v12194_v17 }
 0x4d9   :  { %v5261_v38 = vor.u32 %v5260_v26, %v5257_v23  ;;  %v6014_v23 = vrot.slane %v12245_v12, 5  ;;  %v7688_v12 = vld [vmem:[%s13225_s0 + $0x140] sm:$0x1] }
 0x4db   :  { %6129 = vrot.lane.b32.xlu1 %v5969_v36, %s8097_s26  ;;  %v4965_v36 = vsel %vm8142_vm2, %v4960_v19, %v4964_v32  ;;  %v5262_v41 = vrot.slane %v5261_v38, 4  ;;  %v7797_v19 = vld [vmem:[%s13225_s0 + $0x174] sm:$0xe]  ;;  %v4974_v32 = vrot.slane %v4973_v20, 4  ;;  %v6016_v4 = vrot.slane %v6014_v23, 4 }
 0x4dc   :  { %6127 = vrot.lane.b32.xlu0 %v5966_v52, %s8097_s26  ;;  %5480 = vrot.lane.b32.xlu2 %v5253_v53, %s8096_s19  ;;  %v7780_v52 = vld [vmem:[%s13225_s0 + $0x130] sm:$0xf]  ;;  %v5128_v53 = vrot.slane %v5127_v48, 4  ;;  %v7839_v44 = vrot.slane %v7797_v19, 9 }
 0x4dd   :  { %v5421_v47 = vpop.permute.xlu1 %5420  ;;  %v5972_v58 = vrot.slane %v7780_v52, 5 }
 0x4de   :  { %5590 = vst.msk [vmem:[#allocation2 + $0x5c] sm:$0xf] %vm5566_vm14, %v5421_v47  ;;  %v5419_v5 = vpop.permute.xlu0 %5418  ;;  %v5471_v57 = vpop.permute.xlu2 %5470  ;;  %v5133_v1 = vsel %vm8142_vm2, %v5128_v53, %v5132_v45  ;;  %v6015_v0 = vsel %vm8874_vm7, %v7839_v44, %v6014_v23 }
 0x4df   :  { %6263 = vst.msk [vmem:[#allocation2 + $0x5c] sm:$0xf] %vm6239_vm15, %v6094_v50  ;;  %v8029_v3 = vld [vmem:[#allocation2 + $0x88] sm:$0xff]  ;;  %v5266_v50 = vrot.slane %v5264_v39, 5 }
 0x4e0   :  { %5589 = vst.msk [vmem:[#allocation2 + $0x58] sm:$0xf] %vm5566_vm14, %v5419_v5  ;;  %7997 = vmatmul.msk.bf16.gmra.mxu2 %vm6548_vm0, %v8029_v3  ;;  %v5123_v5 = vsel %vm8142_vm2, %v5118_v54, %v12194_v17  ;;  %v5973_v17 = vsel %vm8874_vm7, %v7833_v59, %v5972_v58 }
 0x4e1   :  { %5615 = vst.msk [vmem:[#allocation2 + $0xc0] sm:$0xf] %vm5566_vm14, %v5471_v57  ;;  %v5267_v47 = vsel %vm8142_vm2, %v5262_v41, %v5266_v50  ;;  %v5271_v3 = vor.u32 %v5270_v31, %v5266_v50  ;;  %v5974_v57 = vrot.slane %v5972_v58, 4  ;;  %v7667_v31 = vld [vmem:[%s13225_s0 + $0xd4] sm:$0x1]  ;;  %v5144_v58 = vshll.u32 %v7687_v46, 16 }
 0x4e3   :  { %5430 = vrot.lane.b32.xlu1 %v4955_v6, %s8096_s19  ;;  %v5274_v6 = vshll.u32 %v7703_v63, 16  ;;  %v5272_v15 = vrot.slane %v5271_v3, 4  ;;  %v5976_v21 = vsel %vm8874_vm7, %v5974_v57, %v5975_v7  ;;  %v7761_v63 = vld [vmem:[%s13225_s0 + $0xcc] sm:$0xe]  ;;  %v4986_v3 = vshll.u32 %v7667_v31, 16 }
 0x4e4   :  { %6153 = vrot.lane.b32.xlu0 %v6011_v55, %s8097_s26  ;;  %6151 = vrot.lane.b32.xlu2 %v6008_v11, %s8097_s26  ;;  %v7666_v11 = vld [vmem:[%s13225_s0 + $0xd0] sm:$0xf]  ;;  %v7827_v10 = vrot.slane %v7761_v63, 9 }
 0x4e5   :  { %v6092_v25 = vpop.permute.xlu1 %6091  ;;  %v5276_v18 = vrot.slane %v5274_v6, 5  ;;  %v4976_v24 = vshll.u32 %v7666_v11, 16  ;;  %v4980_v28 = vshrl.u32 %v7666_v11, 16 }
 0x4e6   :  { %6262 = vst.msk [vmem:[#allocation2 + $0x58] sm:$0xf] %vm6239_vm15, %v6092_v25  ;;  %v6070_v33 = vpop.permute.xlu0 %6069  ;;  %v6122_v42 = vpop.permute.xlu2 %6121  ;;  %v12260_v25 = vld [vmem:[%s13225_s0 + $0xd0] sm:$0xf] }
 0x4e7   :  { %6251 = vst.msk [vmem:[#allocation2 + $0x2c] sm:$0xf] %vm6239_vm15, %v6070_v33  ;;  %v5277_v29 = vsel %vm8142_vm2, %v5272_v15, %v5276_v18  ;;  %v5930_v30 = vrot.slane %v12260_v25, 5  ;;  %v4978_v2 = vrot.slane %v4976_v24, 5  ;;  %v6017_v33 = vrot.slane %v7799_v27, 5 }
 0x4e8   :  { %v4982_v48 = vrot.slane %v4980_v28, 4 }
 0x4e9   :  { %v5932_v41 = vrot.slane %v5930_v30, 4  ;;  %v4979_v53 = vsel %vm8142_vm2, %v4974_v32, %v4978_v2  ;;  %v6018_v45 = vsel %vm8874_vm7, %v6016_v4, %v6017_v33  ;;  %v5154_v33 = vshll.u32 %v7688_v12, 16 }
 0x4eb   :  { %6105 = vrot.lane.b32.xlu1 %v5927_v35, %s8097_s26  ;;  %v7704_v35 = vld [vmem:[%s13225_s0 + $0x180] sm:$0xf] }
 0x4ec   :  { %6103 = vrot.lane.b32.xlu0 %v5924_v43, %s8097_s26  ;;  %5432 = vrot.lane.b32.xlu2 %v4965_v36, %s8096_s19  ;;  %v5279_v50 = vshrl.u32 %v7704_v35, 16 }
 0x4ed   :  { %v5449_v37 = vpop.permute.xlu1 %5448  ;;  %v8023_v51 = vld [vmem:[#allocation2 + $0x58] sm:$0xff] }
 0x4ee   :  { %5604 = vst.msk [vmem:[#allocation2 + $0x94] sm:$0xf] %vm5566_vm14, %v5449_v37  ;;  %7991 = vmatmul.msk.bf16.gmra.mxu1 %vm6548_vm0, %v8023_v51  ;;  %v5447_v56 = vpop.permute.xlu0 %5446  ;;  %v8017_v49 = vld [vmem:[#allocation2 + $0x28] sm:$0xff]  ;;  %v5399_v60 = vpop.permute.xlu2 %5398  ;;  %v5282_v37 = vshll.u32 %v7704_v35, 16  ;;  %v5281_v7 = vrot.slane %v5279_v50, 4 }
 0x4ef   :  { %6277 = vst.msk [vmem:[#allocation2 + $0x94] sm:$0xf] %vm6239_vm15, %v6122_v42  ;;  %7985 = vmatmul.msk.bf16.gmra.mxu0 %vm6548_vm0, %v8017_v49  ;;  %v7763_v42 = vld [vmem:[%s13225_s0 + $0xd4] sm:$0x1] }
 0x4f0   :  { %5603 = vst.msk [vmem:[#allocation2 + $0x90] sm:$0xf] %vm5566_vm14, %v5447_v56  ;;  %v7686_v56 = vld [vmem:[%s13225_s0 + $0x138] sm:$0xf]  ;;  %v5284_v8 = vrot.slane %v5282_v37, 5 }
 0x4f1   :  { %5579 = vst.msk [vmem:[#allocation2 + $0x30] sm:$0xf] %vm5566_vm14, %v5399_v60  ;;  %v5148_v60 = vshrl.u32 %v7687_v46, 16  ;;  %v5135_v6 = vshrl.u32 %v7686_v56, 16  ;;  %v5138_v57 = vshll.u32 %v7686_v56, 16 }
 0x4f2   :  { %v5285_v28 = vor.u32 %v5284_v8, %v5281_v7 }
 0x4f3   :  { %5482 = vrot.lane.b32.xlu1 %v5267_v47, %s8096_s19  ;;  %v5933_v47 = vrot.slane %v7763_v42, 5  ;;  %v5150_v59 = vrot.slane %v5148_v60, 4  ;;  %v5140_v20 = vrot.slane %v5138_v57, 5  ;;  %v12350_v42 = vld [vmem:[%s13225_s0 + $0x13c] sm:$0xf] }
 0x4f4   :  { %5460 = vrot.lane.b32.xlu0 %v5133_v1, %s8096_s19  ;;  %5458 = vrot.lane.b32.xlu2 %v5123_v5, %s8096_s19  ;;  %v6658_v13 = vpop.f32.mrf.mxu0  ;;  %v4983_v1 = vor.u32 %v4982_v48, %v4978_v2  ;;  %v5931_v2 = vsel %vm8874_vm7, %v7827_v10, %v5930_v30  ;;  %v5156_v48 = vrot.slane %v5154_v33, 5  ;;  %v7689_v10 = vld [vmem:[%s13225_s0 + $0x144] sm:$0xf] }
 0x4f5   :  { %v6120_v55 = vpop.permute.xlu1 %6119  ;;  %6819 = vst.msk [vmem:[%s13227_s2] sm:$0xff] %vm6818_vm1, %v6658_v13  ;;  %v7018_v43 = vmul.f32 %v6658_v13, %v6658_v13  ;;  %v6883_v36 = vsel %vm6818_vm1, %v6658_v13, 0.0  ;;  %v5934_v11 = vsel %vm8874_vm7, %v5932_v41, %v5933_v47  ;;  %v12327_v13 = vrot.slane %v5144_v58, 5  ;;  %v7784_v41 = vld [vmem:[%s13225_s0 + $0x140] sm:$0x1] }
 0x4f6   :  { %6276 = vst.msk [vmem:[#allocation2 + $0x90] sm:$0xf] %vm6239_vm15, %v6120_v55  ;;  %v5473_v16 = vpop.permute.xlu0 %5472  ;;  %v5425_v26 = vpop.permute.xlu2 %5424  ;;  %v7705_v55 = vld [vmem:[%s13225_s0 + $0x184] sm:$0xf]  ;;  %v4984_v18 = vrot.slane %v4983_v1, 4  ;;  %v5982_v58 = vrot.slane %v7784_v41, 5 }
 0x4f7   :  { %5616 = vst.msk [vmem:[#allocation2 + $0xc4] sm:$0xf] %vm5566_vm14, %v5473_v16  ;;  %v7082_v61 = vsel %vm6818_vm1, %v7018_v43, 0.0  ;;  %v4988_v16 = vrot.slane %v4986_v3, 5  ;;  %v5151_v4 = vor.u32 %v5150_v59, %v12327_v13  ;;  %v5286_v43 = vrot.slane %v5285_v28, 4 }
 0x4f8   :  { %5592 = vst.msk [vmem:[#allocation2 + $0x64] sm:$0xf] %vm5566_vm14, %v5425_v26 }
 0x4f9   :  { %v5152_v46 = vrot.slane %v5151_v4, 4 }
 0x4fb   :  { %6133 = vrot.lane.b32.xlu1 %v5976_v21, %s8097_s26  ;;  %v5137_v21 = vrot.slane %v5135_v6, 4  ;;  %v12389_v6 = vld [vmem:[%s13225_s0 + $0x184] sm:$0xf] }
 0x4fc   :  { %6131 = vrot.lane.b32.xlu0 %v5973_v17, %s8097_s26  ;;  %5484 = vrot.lane.b32.xlu2 %v5277_v29, %s8096_s19  ;;  %v6660_v14 = vpop.f32.mrf.mxu0  ;;  %v5288_v17 = vshll.u32 %v7705_v55, 16 }
 0x4fd   :  { %v6146_v38 = vpop.permute.xlu1 %6145  ;;  %v8030_v39 = vld [vmem:[#allocation2 + $0x90] sm:$0xff]  ;;  %6820 = vst.msk [vmem:[%s13227_s2 + $0x8] sm:$0xff] %vm6818_vm1, %v6660_v14  ;;  %v6884_v52 = vsel %vm6818_vm1, %v6660_v14, 0.0  ;;  %v7019_v40 = vmul.f32 %v6660_v14, %v6660_v14  ;;  %v5141_v25 = vor.u32 %v5140_v20, %v5137_v21  ;;  %v6021_v21 = vrot.slane %v12389_v6, 5 }
 0x4fe   :  { %6289 = vst.msk [vmem:[#allocation2 + $0xc4] sm:$0xf] %vm6239_vm15, %v6146_v38  ;;  %7998 = vmatmul.msk.bf16.gmra.mxu2 %vm6548_vm0, %v8030_v39  ;;  %v6144_v51 = vpop.permute.xlu0 %6143  ;;  %v6096_v54 = vpop.permute.xlu2 %6095  ;;  %v6885_v49 = vadd.f32 %v6884_v52, %v6883_v36  ;;  %v5292_v38 = vshrl.u32 %v7705_v55, 16  ;;  %v4989_v39 = vsel %vm8142_vm2, %v4984_v18, %v4988_v16  ;;  %v5290_v30 = vrot.slane %v5288_v17, 5 }
 0x4ff   :  { %6288 = vst.msk [vmem:[#allocation2 + $0xc0] sm:$0xf] %vm6239_vm15, %v6144_v51  ;;  %v7083_v62 = vsel %vm6818_vm1, %v7019_v40, 0.0  ;;  %v5979_v36 = vrot.slane %v12350_v42, 5  ;;  %v5142_v50 = vrot.slane %v5141_v25, 4  ;;  %v6023_v4 = vrot.slane %v6021_v21, 4 }
 0x500   :  { %v7084_v5 = vadd.f32 %v7083_v62, %v7082_v61  ;;  %v5294_v37 = vrot.slane %v5292_v38, 4  ;;  %v7782_v61 = vld [vmem:[%s13225_s0 + $0x138] sm:$0xe]  ;;  %v7614_v38 = vld [vmem:[%s13225_s0 + $0x18c] sm:$0xf] }
 0x501   :  { %v5981_v47 = vrot.slane %v5979_v36, 4  ;;  %v5147_v62 = vsel %vm8142_vm2, %v5142_v50, %v12327_v13  ;;  %v7834_v3 = vrot.slane %v7782_v61, 9 }
 0x502   :  { %v5295_v63 = vor.u32 %v5294_v37, %v5290_v30 }
 0x503   :  { %5434 = vrot.lane.b32.xlu1 %v4979_v53, %s8096_s19  ;;  %v5291_v53 = vsel %vm8142_vm2, %v5286_v43, %v5290_v30  ;;  %v5983_v7 = vsel %vm8874_vm7, %v5981_v47, %v5982_v58  ;;  %v5980_v28 = vsel %vm8874_vm7, %v7834_v3, %v5979_v36  ;;  %v7709_v3 = vld [vmem:[%s13225_s0 + $0x194] sm:$0x1] }
 0x504   :  { %6157 = vrot.lane.b32.xlu0 %v6018_v45, %s8097_s26  ;;  %6155 = vrot.lane.b32.xlu2 %v6015_v0, %s8097_s26  ;;  %v6663_v15 = vpop.f32.mrf.mxu0  ;;  %v5296_v8 = vrot.slane %v5295_v63, 4 }
 0x505   :  { %v5423_v9 = vpop.permute.xlu1 %5422  ;;  %6821 = vst.msk [vmem:[%s13227_s2 + $0x10] sm:$0xff] %vm6818_vm1, %v6663_v15  ;;  %v6886_v23 = vsel %vm6818_vm1, %v6663_v15, 0.0  ;;  %v7020_v26 = vmul.f32 %v6663_v15, %v6663_v15 }
 0x506   :  { %5591 = vst.msk [vmem:[#allocation2 + $0x60] sm:$0xf] %vm5566_vm14, %v5423_v9  ;;  %v5401_v24 = vpop.permute.xlu0 %5400  ;;  %v8036_v27 = vld [vmem:[#allocation2 + $0xc0] sm:$0xff]  ;;  %v5453_v29 = vpop.permute.xlu2 %5452  ;;  %v6887_v19 = vadd.f32 %v6886_v23, %v6885_v49  ;;  %v5157_v49 = vsel %vm8142_vm2, %v5152_v46, %v5156_v48  ;;  %v5159_v23 = vshrl.u32 %v7689_v10, 16 }
 0x507   :  { %6264 = vst.msk [vmem:[#allocation2 + $0x60] sm:$0xf] %vm6239_vm15, %v6096_v54  ;;  %v7085_v32 = vsel %vm6818_vm1, %v7020_v26, 0.0  ;;  %8004 = vmatmul.msk.bf16.vlgmr.msra.gmra.mxu3 %vm6548_vm0, %v8036_v27  ;;  %v7706_v54 = vld [vmem:[%s13225_s0 + $0x188] sm:$0x1]  ;;  %v5162_v26 = vshll.u32 %v7689_v10, 16 }
 0x508   :  { %5580 = vst.msk [vmem:[#allocation2 + $0x34] sm:$0xf] %vm5566_vm14, %v5401_v24  ;;  %v7086_v35 = vadd.f32 %v7085_v32, %v7084_v5  ;;  %v5298_v0 = vshll.u32 %v7706_v54, 16  ;;  %v7690_v5 = vld [vmem:[%s13225_s0 + $0x148] sm:$0xf] }
 0x509   :  { %5606 = vst.msk [vmem:[#allocation2 + $0x9c] sm:$0xf] %vm5566_vm14, %v5453_v29  ;;  %v5168_v15 = vshll.u32 %v7690_v5, 16  ;;  %v5172_v18 = vshrl.u32 %v7690_v5, 16  ;;  %v7802_v24 = vld [vmem:[%s13225_s0 + $0x188] sm:$0x1] }
 0x50a   :  { %v5300_v9 = vrot.slane %v5298_v0, 5  ;;  %v7800_v32 = vld [vmem:[%s13225_s0 + $0x180] sm:$0xe]  ;;  %v6024_v33 = vrot.slane %v7802_v24, 5  ;;  %v5164_v42 = vrot.slane %v5162_v26, 5 }
 0x50b   :  { %6109 = vrot.lane.b32.xlu1 %v5934_v11, %s8097_s26  ;;  %v12414_v29 = vrot.slane %v5168_v15, 5  ;;  %v7840_v30 = vrot.slane %v7800_v32, 9  ;;  %v7786_v10 = vld [vmem:[%s13225_s0 + $0x148] sm:$0xf] }
 0x50c   :  { %6107 = vrot.lane.b32.xlu0 %v5931_v2, %s8097_s26  ;;  %5436 = vrot.lane.b32.xlu2 %v4989_v39, %s8096_s19  ;;  %v6665_v14 = vpop.f32.mrf.mxu0  ;;  %v5301_v17 = vsel %vm8142_vm2, %v5296_v8, %v5300_v9  ;;  %v5161_v39 = vrot.slane %v5159_v23, 4  ;;  %v7785_v9 = vld [vmem:[%s13225_s0 + $0x144] sm:$0xe]  ;;  %v5986_v15 = vrot.slane %v7786_v10, 5  ;;  %v7710_v23 = vld [vmem:[%s13225_s0 + $0x198] sm:$0xf] }
 0x50d   :  { %v6074_v44 = vpop.permute.xlu1 %6073  ;;  %6822 = vst.msk [vmem:[%s13227_s2 + $0x18] sm:$0xff] %vm6818_vm1, %v6665_v14  ;;  %v6888_v52 = vsel %vm6818_vm1, %v6665_v14, 0.0  ;;  %v7021_v40 = vmul.f32 %v6665_v14, %v6665_v14 }
 0x50e   :  { %6253 = vst.msk [vmem:[#allocation2 + $0x34] sm:$0xf] %vm6239_vm15, %v6074_v44  ;;  %v6072_v51 = vpop.permute.xlu0 %6071  ;;  %v6124_v45 = vpop.permute.xlu2 %6123  ;;  %v6889_v31 = vadd.f32 %v6888_v52, %v6887_v19  ;;  %v5174_v19 = vrot.slane %v5172_v18, 4  ;;  %v7708_v44 = vld [vmem:[%s13225_s0 + $0x190] sm:$0xf] }
 0x50f   :  { %6252 = vst.msk [vmem:[#allocation2 + $0x30] sm:$0xf] %vm6239_vm15, %v6072_v51  ;;  %v7087_v56 = vsel %vm6818_vm1, %v7021_v40, 0.0  ;;  %v7707_v51 = vld [vmem:[%s13225_s0 + $0x18c] sm:$0xf]  ;;  %v6025_v40 = vsel %vm8874_vm7, %v6023_v4, %v6024_v33  ;;  %v5312_v54 = vshll.u32 %v7708_v44, 16 }
 0x510   :  { %v7088_v60 = vadd.f32 %v7087_v56, %v7086_v35  ;;  %v7691_v35 = vld [vmem:[%s13225_s0 + $0x14c] sm:$0x1]  ;;  %v5175_v41 = vor.u32 %v5174_v19, %v12414_v29  ;;  %v5303_v47 = vshrl.u32 %v7707_v51, 16  ;;  %v5306_v58 = vshll.u32 %v7707_v51, 16  ;;  %v7615_v18 = vld [vmem:[%s13225_s0 + $0x190] sm:$0xf] }
 0x511   :  { %v5178_v50 = vshll.u32 %v7691_v35, 16  ;;  %v12464_v63 = vrot.slane %v5312_v54, 5  ;;  %v7805_v19 = vld [vmem:[%s13225_s0 + $0x194] sm:$0x1] }
 0x512   :  { %v5305_v6 = vrot.slane %v5303_v47, 4 }
 0x513   :  { %5486 = vrot.lane.b32.xlu1 %v5291_v53, %s8096_s19  ;;  %v5180_v61 = vrot.slane %v5178_v50, 5  ;;  %v7803_v50 = vld [vmem:[%s13225_s0 + $0x18c] sm:$0xe] }
 0x514   :  { %5464 = vrot.lane.b32.xlu0 %v5157_v49, %s8096_s19  ;;  %5462 = vrot.lane.b32.xlu2 %v5147_v62, %s8096_s19  ;;  %v6668_v57 = vpop.f32.mrf.mxu0  ;;  %v6022_v49 = vsel %vm8874_vm7, %v7840_v30, %v6021_v21  ;;  %v12496_v21 = vld [vmem:[%s13225_s0 + $0x190] sm:$0xf] }
 0x515   :  { %v5451_v1 = vpop.permute.xlu1 %5450  ;;  %6823 = vst.msk [vmem:[%s13227_s2 + $0x20] sm:$0xff] %vm6818_vm1, %v6668_v57  ;;  %v6890_v11 = vsel %vm6818_vm1, %v6668_v57, 0.0  ;;  %v7022_v12 = vmul.f32 %v6668_v57, %v6668_v57  ;;  %v5308_v57 = vrot.slane %v5306_v58, 5  ;;  %v6028_v32 = vrot.slane %v12496_v21, 5 }
 0x516   :  { %5605 = vst.msk [vmem:[#allocation2 + $0x98] sm:$0xf] %vm5566_vm14, %v5451_v1  ;;  %v6098_v55 = vpop.permute.xlu0 %6097  ;;  %v8018_v13 = vld [vmem:[#allocation2 + $0x30] sm:$0xff]  ;;  %v6150_v59 = vpop.permute.xlu2 %6149  ;;  %v6891_v16 = vadd.f32 %v6890_v11, %v6889_v31  ;;  %v5316_v31 = vshrl.u32 %v7708_v44, 16 }
 0x517   :  { %6278 = vst.msk [vmem:[#allocation2 + $0x98] sm:$0xf] %vm6239_vm15, %v6124_v45  ;;  %v7089_v20 = vsel %vm6818_vm1, %v7022_v12, 0.0  ;;  %7986 = vmatmul.msk.bf16.gmra.mxu0 %vm6548_vm0, %v8018_v13  ;;  %v5165_v45 = vor.u32 %v5164_v42, %v5161_v39  ;;  %v5322_v12 = vshll.u32 %v7709_v3, 16  ;;  %v5327_v42 = vshrl.u32 %v7710_v23, 16 }
 0x518   :  { %6265 = vst.msk [vmem:[#allocation2 + $0x64] sm:$0xf] %vm6239_vm15, %v6098_v55  ;;  %v7090_v27 = vadd.f32 %v7089_v20, %v7088_v60  ;;  %v5176_v60 = vrot.slane %v5175_v41, 4  ;;  %v5318_v0 = vrot.slane %v5316_v31, 4 }
 0x519   :  { %v5166_v5 = vrot.slane %v5165_v45, 4 }
 0x51a   :  { %v5181_v8 = vsel %vm8142_vm2, %v5176_v60, %v5180_v61  ;;  %v5319_v11 = vor.u32 %v5318_v0, %v12464_v63 }
 0x51b   :  { %6137 = vrot.lane.b32.xlu1 %v5983_v7, %s8097_s26  ;;  %v5171_v13 = vsel %vm8142_vm2, %v5166_v5, %v12414_v29 }
 0x51c   :  { %6135 = vrot.lane.b32.xlu0 %v5980_v28, %s8097_s26  ;;  %5488 = vrot.lane.b32.xlu2 %v5301_v17, %s8096_s19  ;;  %v6670_v25 = vpop.f32.mrf.mxu0  ;;  %v5320_v26 = vrot.slane %v5319_v11, 4 }
 0x51d   :  { %v5477_v2 = vpop.permute.xlu1 %5476  ;;  %v12428_v43 = vpop.f32.mrf.mxu1  ;;  %6824 = vst.msk [vmem:[%s13227_s2 + $0x28] sm:$0xff] %vm6818_vm1, %v6670_v25  ;;  %v6892_v48 = vsel %vm6818_vm1, %v6670_v25, 0.0  ;;  %v7023_v36 = vmul.f32 %v6670_v25, %v6670_v25  ;;  %v5330_v25 = vshll.u32 %v7710_v23, 16  ;;  %v7808_v23 = vld [vmem:[%s13225_s0 + $0x1a0] sm:$0x1] }
 0x51e   :  { %5618 = vst.msk [vmem:[#allocation2 + $0xcc] sm:$0xf] %vm5566_vm14, %v5477_v2  ;;  %v5475_v46 = vpop.permute.xlu0 %5474  ;;  %v5427_v37 = vpop.permute.xlu2 %5426  ;;  %v12444_v52 = vadd.f32 %v6892_v48, %v6891_v16  ;;  %v5309_v16 = vor.u32 %v5308_v57, %v5305_v6 }
 0x51f   :  { %6291 = vst.msk [vmem:[#allocation2 + $0xcc] sm:$0xf] %vm6239_vm15, %v6150_v59  ;;  %v8024_v14 = vld [vmem:[#allocation2 + $0x60] sm:$0xff]  ;;  %v7091_v53 = vsel %vm6818_vm1, %v7023_v36, 0.0  ;;  %v7835_v59 = vrot.slane %v7785_v9, 9  ;;  %v6030_v36 = vrot.slane %v6028_v32, 4 }
 0x520   :  { %5617 = vst.msk [vmem:[#allocation2 + $0xc8] sm:$0xf] %vm5566_vm14, %v5475_v46  ;;  %7992 = vmatmul.msk.bf16.gmra.mxu1 %vm6548_vm0, %v8024_v14  ;;  %v12455_v56 = vadd.f32 %v7091_v53, %v7090_v27  ;;  %v5324_v27 = vrot.slane %v5322_v12, 5  ;;  %v5310_v2 = vrot.slane %v5309_v16, 4  ;;  %v6031_v14 = vrot.slane %v7805_v19, 5 }
 0x521   :  { %6835 = vst.msk [vmem:[%s13227_s2 + $0x80] sm:$0xff] %vm6818_vm1, %v12428_v43  ;;  %v5987_v29 = vsel %vm8874_vm7, %v7835_v59, %v5986_v15  ;;  %v5332_v51 = vrot.slane %v5330_v25, 5  ;;  %v7711_v53 = vld [vmem:[%s13225_s0 + $0x19c] sm:$0xf] }
 0x522   :  { %5593 = vst.msk [vmem:[#allocation2 + $0x68] sm:$0xf] %vm5566_vm14, %v5427_v37  ;;  %v5325_v46 = vsel %vm8142_vm2, %v5320_v26, %v5324_v27  ;;  %v5315_v41 = vsel %vm8142_vm2, %v5310_v2, %v12464_v63  ;;  %v5329_v37 = vrot.slane %v5327_v42, 4  ;;  %v6032_v31 = vsel %vm8874_vm7, %v6030_v36, %v6031_v14  ;;  %v7712_v26 = vld [vmem:[%s13225_s0 + $0x1a0] sm:$0x1] }
 0x523   :  { %4369 = vrot.lane.b32.xlu1 %v7614_v38, %s8095_s27  ;;  %v5336_v63 = vshll.u32 %v7711_v53, 16  ;;  %v5340_v10 = vshrl.u32 %v7711_v53, 16  ;;  %v7617_v27 = vld [vmem:[%s13225_s0 + $0x19c] sm:$0xf] }
 0x524   :  { %6161 = vrot.lane.b32.xlu0 %v6025_v40, %s8097_s26  ;;  %6159 = vrot.lane.b32.xlu2 %v6022_v49, %s8097_s26  ;;  %v5988_v49 = vrot.slane %v5986_v15, 4 }
 0x525   :  { %v6148_v62 = vpop.permute.xlu1 %6147  ;;  %v12466_v1 = vpop.f32.mrf.mxu1  ;;  %v5338_v9 = vrot.slane %v5336_v63, 5 }
 0x526   :  { %6290 = vst.msk [vmem:[#allocation2 + $0xc8] sm:$0xf] %vm6239_vm15, %v6148_v62  ;;  %v6126_v7 = vpop.permute.xlu0 %6125  ;;  %v6078_v55 = vpop.permute.xlu2 %6077  ;;  %v5333_v62 = vor.u32 %v5332_v51, %v5329_v37 }
 0x527   :  { %6836 = vst.msk [vmem:[%s13227_s2 + $0x88] sm:$0xff] %vm6818_vm1, %v12466_v1 }
 0x528   :  { %6279 = vst.msk [vmem:[#allocation2 + $0x9c] sm:$0xf] %vm6239_vm15, %v6126_v7 }
 0x52b   :  { %5468 = vrot.lane.b32.xlu1 %v5181_v8, %s8096_s19  ;;  %v5334_v8 = vrot.slane %v5333_v62, 4 }
 0x52c   :  { %5466 = vrot.lane.b32.xlu0 %v5171_v13, %s8096_s19  ;;  %4371 = vrot.lane.b32.xlu2 %v7615_v18, %s8095_s27  ;;  %v6673_v28 = vpop.f32.mrf.mxu0  ;;  %v7807_v13 = vld [vmem:[%s13225_s0 + $0x19c] sm:$0xf] }
 0x52d   :  { %v5405_v20 = vpop.permute.xlu1 %5404  ;;  %v8037_v24 = vld [vmem:[#allocation2 + $0xc8] sm:$0xff]  ;;  %v12504_v17 = vpop.f32.mrf.mxu1  ;;  %6825 = vst.msk [vmem:[%s13227_s2 + $0x30] sm:$0xff] %vm6818_vm1, %v6673_v28  ;;  %v6894_v33 = vsel %vm6818_vm1, %v6673_v28, 0.0  ;;  %v7024_v35 = vmul.f32 %v6673_v28, %v6673_v28  ;;  %v5339_v16 = vsel %vm8142_vm2, %v5334_v8, %v5338_v9  ;;  %v6035_v21 = vrot.slane %v7807_v13, 5  ;;  %v7806_v28 = vld [vmem:[%s13225_s0 + $0x198] sm:$0xe] }
 0x52e   :  { %5582 = vst.msk [vmem:[#allocation2 + $0x3c] sm:$0xf] %vm5566_vm14, %v5405_v20  ;;  %8005 = vmatmul.msk.bf16.gmra.mxu3 %vm6548_vm0, %v8037_v24  ;;  %v5403_v4 = vpop.permute.xlu0 %5402  ;;  %v5455_v39 = vpop.permute.xlu2 %5454  ;;  %v6895_v30 = vadd.f32 %v6894_v33, %v12444_v52  ;;  %v7787_v52 = vld [vmem:[%s13225_s0 + $0x14c] sm:$0x1]  ;;  %v5342_v24 = vrot.slane %v5340_v10, 4  ;;  %v7842_v25 = vrot.slane %v7806_v28, 9 }
 0x52f   :  { %6255 = vst.msk [vmem:[#allocation2 + $0x3c] sm:$0xf] %vm6239_vm15, %v6078_v55  ;;  %v8031_v38 = vld [vmem:[#allocation2 + $0x98] sm:$0xff]  ;;  %v7093_v44 = vsel %vm6818_vm1, %v7024_v35, 0.0  ;;  %v5989_v47 = vrot.slane %v7787_v52, 5  ;;  %v6037_v33 = vrot.slane %v6035_v21, 4 }
 0x530   :  { %5581 = vst.msk [vmem:[#allocation2 + $0x38] sm:$0xf] %vm5566_vm14, %v5403_v4  ;;  %7999 = vmatmul.msk.bf16.gmra.mxu2 %vm6548_vm0, %v8031_v38  ;;  %v7094_v48 = vadd.f32 %v7093_v44, %v12455_v56  ;;  %v7841_v56 = vrot.slane %v7803_v50, 9  ;;  %v7713_v55 = vld [vmem:[%s13225_s0 + $0x1a4] sm:$0xf]  ;;  %v5343_v2 = vor.u32 %v5342_v24, %v5338_v9  ;;  %v5346_v4 = vshll.u32 %v7712_v26, 16 }
 0x531   :  { %6837 = vst.msk [vmem:[%s13227_s2 + $0x90] sm:$0xff] %vm6818_vm1, %v12504_v17  ;;  %v5990_v7 = vsel %vm8874_vm7, %v5988_v49, %v5989_v47  ;;  %v5351_v59 = vshrl.u32 %v7713_v55, 16  ;;  %v5354_v15 = vshll.u32 %v7713_v55, 16  ;;  %v6038_v35 = vrot.slane %v7808_v23, 5  ;;  %v7714_v38 = vld [vmem:[%s13225_s0 + $0x1a8] sm:$0xf] }
 0x532   :  { %5607 = vst.msk [vmem:[#allocation2 + $0xa0] sm:$0xf] %vm5566_vm14, %v5455_v39  ;;  %v6029_v57 = vsel %vm8874_vm7, %v7841_v56, %v6028_v32  ;;  %v7616_v32 = vld [vmem:[%s13225_s0 + $0x198] sm:$0xf]  ;;  %v5360_v44 = vshll.u32 %v7714_v38, 16  ;;  %v6036_v37 = vsel %vm8874_vm7, %v7842_v25, %v6035_v21 }
 0x533   :  { %6139 = vrot.lane.b32.xlu1 %v5987_v29, %s8097_s26  ;;  %v5353_v29 = vrot.slane %v5351_v59, 4  ;;  %v5356_v19 = vrot.slane %v5354_v15, 5  ;;  %v7810_v49 = vld [vmem:[%s13225_s0 + $0x1a8] sm:$0xf]  ;;  %v7715_v8 = vld [vmem:[%s13225_s0 + $0x1ac] sm:$0x1] }
 0x534   :  { %5492 = vrot.lane.b32.xlu0 %v5325_v46, %s8096_s19  ;;  %5490 = vrot.lane.b32.xlu2 %v5315_v41, %s8096_s19  ;;  %v6675_v45 = vpop.f32.mrf.mxu0  ;;  %v5344_v46 = vrot.slane %v5343_v2, 4  ;;  %v6039_v41 = vsel %vm8874_vm7, %v6037_v33, %v6038_v35  ;;  %v5362_v52 = vrot.slane %v5360_v44, 5  ;;  %v6042_v63 = vrot.slane %v7810_v49, 5  ;;  %v7618_v55 = vld [vmem:[%s13225_s0 + $0x1a4] sm:$0xf] }
 0x535   :  { %v6076_v40 = vpop.permute.xlu1 %6075  ;;  %v12548_v54 = vpop.f32.mrf.mxu1  ;;  %6826 = vst.msk [vmem:[%s13227_s2 + $0x38] sm:$0xff] %vm6818_vm1, %v6675_v45  ;;  %v6896_v60 = vsel %vm6818_vm1, %v6675_v45, 0.0  ;;  %v7025_v61 = vmul.f32 %v6675_v45, %v6675_v45  ;;  %v5364_v45 = vshrl.u32 %v7714_v38, 16 }
 0x536   :  { %6254 = vst.msk [vmem:[#allocation2 + $0x38] sm:$0xf] %vm6239_vm15, %v6076_v40  ;;  %v5429_v58 = vpop.permute.xlu0 %5428  ;;  %v5481_v0 = vpop.permute.xlu2 %5480  ;;  %v12558_v5 = vadd.f32 %v6896_v60, %v6895_v30  ;;  %v5357_v30 = vor.u32 %v5356_v19, %v5353_v29  ;;  %v6044_v59 = vrot.slane %v6042_v63, 4 }
 0x537   :  { %5594 = vst.msk [vmem:[#allocation2 + $0x6c] sm:$0xf] %vm5566_vm14, %v5429_v58  ;;  %v7095_v3 = vsel %vm6818_vm1, %v7025_v61, 0.0 }
 0x538   :  { %6838 = vst.msk [vmem:[%s13227_s2 + $0x98] sm:$0xff] %vm6818_vm1, %v12548_v54  ;;  %v12566_v6 = vadd.f32 %v7095_v3, %v7094_v48  ;;  %v5348_v48 = vrot.slane %v5346_v4, 5  ;;  %v5358_v51 = vrot.slane %v5357_v30, 4  ;;  %v5366_v3 = vrot.slane %v5364_v45, 4 }
 0x539   :  { %5620 = vst.msk [vmem:[#allocation2 + $0xd4] sm:$0xf] %vm5566_vm14, %v5481_v0 }
 0x53a   :  { %v5349_v40 = vsel %vm8142_vm2, %v5344_v46, %v5348_v48  ;;  %v5363_v58 = vsel %vm8142_vm2, %v5358_v51, %v5362_v52 }
 0x53b   :  { %6165 = vrot.lane.b32.xlu1 %v6032_v31, %s8097_s26 }
 0x53c   :  { %6163 = vrot.lane.b32.xlu0 %v6029_v57, %s8097_s26  ;;  %6141 = vrot.lane.b32.xlu2 %v5990_v7, %s8097_s26  ;;  %v7811_v7 = vld [vmem:[%s13225_s0 + $0x1ac] sm:$0x1] }
 0x53d   :  { %v6102_v11 = vpop.permute.xlu1 %6101  ;;  %v8019_v12 = vld [vmem:[#allocation2 + $0x38] sm:$0xff]  ;;  %v6045_v15 = vrot.slane %v7811_v7, 5 }
 0x53e   :  { %6267 = vst.msk [vmem:[#allocation2 + $0x6c] sm:$0xf] %vm6239_vm15, %v6102_v11  ;;  %7987 = vmatmul.msk.bf16.gmra.mxu0 %vm6548_vm0, %v8019_v12  ;;  %v6100_v18 = vpop.permute.xlu0 %6099  ;;  %v6152_v20 = vpop.permute.xlu2 %6151  ;;  %v5367_v11 = vor.u32 %v5366_v3, %v5362_v52  ;;  %v5370_v12 = vshll.u32 %v7715_v8, 16 }
 0x53f   :  { %6266 = vst.msk [vmem:[#allocation2 + $0x68] sm:$0xf] %vm6239_vm15, %v6100_v18  ;;  %v6046_v29 = vsel %vm8874_vm7, %v6044_v59, %v6045_v15 }
 0x540   :  { %v5372_v24 = vrot.slane %v5370_v12, 5 }
 0x543   :  { %5494 = vrot.lane.b32.xlu1 %v5339_v16, %s8096_s19  ;;  %v12606_v39 = vpop.f32.mrf.mxu2 }
 0x544   :  { %4375 = vrot.lane.b32.xlu0 %v7617_v27, %s8095_s27  ;;  %6851 = vst.msk [vmem:[%s13227_s2 + $0x100] sm:$0xff] %vm6818_vm1, %v12606_v39  ;;  %4373 = vrot.lane.b32.xlu2 %v7616_v32, %s8095_s27 }
 0x545   :  { %v5479_v42 = vpop.permute.xlu1 %5478 }
 0x546   :  { %5619 = vst.msk [vmem:[#allocation2 + $0xd0] sm:$0xf] %vm5566_vm14, %v5479_v42  ;;  %v5457_v36 = vpop.permute.xlu0 %5456  ;;  %v8025_v14 = vld [vmem:[#allocation2 + $0x68] sm:$0xff]  ;;  %v5433_v50 = vpop.permute.xlu2 %5432 }
 0x547   :  { %6292 = vst.msk [vmem:[#allocation2 + $0xd0] sm:$0xf] %vm6239_vm15, %v6152_v20  ;;  %7993 = vmatmul.msk.bf16.gmra.mxu1 %vm6548_vm0, %v8025_v14  ;;  %v5368_v20 = vrot.slane %v5367_v11, 4 }
 0x548   :  { %5608 = vst.msk [vmem:[#allocation2 + $0xa4] sm:$0xf] %vm5566_vm14, %v5457_v36 }
 0x549   :  { %5596 = vst.msk [vmem:[#allocation2 + $0x74] sm:$0xf] %vm5566_vm14, %v5433_v50  ;;  %v5373_v35 = vsel %vm8142_vm2, %v5368_v20, %v5372_v24  ;;  %vm7016_vm2 = vcmask 24576  }
 0x54b   :  { %6169 = vrot.lane.b32.xlu1 %v6039_v41, %s8097_s26  ;;  %v12627_v53 = vpop.f32.mrf.mxu1  ;;  %v12629_v31 = vpop.f32.mrf.mxu2 }
 0x54c   :  { %6839 = vst.msk [vmem:[%s13227_s2 + $0xa0] sm:$0xff] %vm6818_vm1, %v12627_v53  ;;  %6167 = vrot.lane.b32.xlu0 %v6036_v37, %s8097_s26  ;;  %5496 = vrot.lane.b32.xlu2 %v5349_v40, %s8096_s19  ;;  %v6678_v47 = vpop.f32.mrf.mxu0 }
 0x54d   :  { %v6130_v56 = vpop.permute.xlu1 %6129  ;;  %6852 = vst.msk [vmem:[%s13227_s2 + $0x108] sm:$0xff] %vm6818_vm1, %v12629_v31  ;;  %v6898_v61 = vsel %vm6818_vm1, %v6678_v47, 0.0  ;;  %v7026_v62 = vmul.f32 %v6678_v47, %v6678_v47 }
 0x54e   :  { %6281 = vst.msk [vmem:[#allocation2 + $0xa4] sm:$0xf] %vm6239_vm15, %v6130_v56  ;;  %v6128_v60 = vpop.permute.xlu0 %6127  ;;  %v5459_v0 = vpop.permute.xlu2 %5458  ;;  %v6899_v57 = vadd.f32 %v6898_v61, %v12558_v5  ;;  %v7619_v5 = vld [vmem:[%s13225_s0 + $0x1a8] sm:$0xf] }
 0x54f   :  { %6827 = vst.msk [vmem:[%s13227_s2 + $0x40] sm:$0xff] %vm6818_vm1, %v6678_v47  ;;  %v7097_v9 = vsel %vm6818_vm1, %v7026_v62, 0.0 }
 0x550   :  { %6280 = vst.msk [vmem:[#allocation2 + $0xa0] sm:$0xf] %vm6239_vm15, %v6128_v60  ;;  %v7098_v10 = vadd.f32 %v7097_v9, %v12566_v6  ;;  %v7809_v6 = vld [vmem:[%s13225_s0 + $0x1a4] sm:$0xe] }
 0x551   :  { %5609 = vst.msk [vmem:[#allocation2 + $0xa8] sm:$0xf] %vm5566_vm14, %v5459_v0  ;;  %v7843_v21 = vrot.slane %v7809_v6, 9 }
 0x553   :  { %5498 = vrot.lane.b32.xlu1 %v5363_v58, %s8096_s19  ;;  %v12672_v13 = vpop.f32.mrf.mxu1  ;;  %v6043_v33 = vsel %vm8874_vm7, %v7843_v21, %v6042_v63 }
 0x554   :  { %6840 = vst.msk [vmem:[%s13227_s2 + $0xa8] sm:$0xff] %vm6818_vm1, %v12672_v13  ;;  %4379 = vrot.lane.b32.xlu0 %v7619_v5, %s8095_s27  ;;  %4377 = vrot.lane.b32.xlu2 %v7618_v55, %s8095_s27  ;;  %v6680_v16 = vpop.f32.mrf.mxu0 }
 0x555   :  { %v5431_v18 = vpop.permute.xlu1 %5430  ;;  %6828 = vst.msk [vmem:[%s13227_s2 + $0x48] sm:$0xff] %vm6818_vm1, %v6680_v16  ;;  %v6900_v26 = vsel %vm6818_vm1, %v6680_v16, 0.0  ;;  %v7027_v27 = vmul.f32 %v6680_v16, %v6680_v16 }
 0x556   :  { %5595 = vst.msk [vmem:[#allocation2 + $0x70] sm:$0xf] %vm5566_vm14, %v5431_v18  ;;  %v6154_v23 = vpop.permute.xlu0 %6153  ;;  %v5485_v19 = vpop.permute.xlu2 %5484  ;;  %v6901_v32 = vadd.f32 %v6900_v26, %v6899_v57 }
 0x557   :  { %v8032_v28 = vld [vmem:[#allocation2 + $0xa0] sm:$0xff]  ;;  %6293 = vst.msk [vmem:[#allocation2 + $0xd4] sm:$0xf] %vm6239_vm15, %v6154_v23  ;;  %v7099_v2 = vsel %vm6818_vm1, %v7027_v27, 0.0 }
 0x558   :  { %8000 = vmatmul.msk.bf16.gmra.mxu2 %vm6548_vm0, %v8032_v28  ;;  %5622 = vst.msk [vmem:[#allocation2 + $0xdc] sm:$0xf] %vm5566_vm14, %v5485_v19  ;;  %v7100_v4 = vadd.f32 %v7099_v2, %v7098_v10 }
 0x55b   :  { %6173 = vrot.lane.b32.xlu1 %v6046_v29, %s8097_s26 }
 0x55c   :  { %6171 = vrot.lane.b32.xlu0 %v6043_v33, %s8097_s26  ;;  %5500 = vrot.lane.b32.xlu2 %v5373_v35, %s8096_s19 }
 0x55d   :  { %v6106_v38 = vpop.permute.xlu1 %6105 }
 0x55e   :  { %6269 = vst.msk [vmem:[#allocation2 + $0x74] sm:$0xf] %vm6239_vm15, %v6106_v38  ;;  %v6104_v42 = vpop.permute.xlu0 %6103  ;;  %v8038_v25 = vld [vmem:[#allocation2 + $0xd0] sm:$0xff]  ;;  %v6156_v30 = vpop.permute.xlu2 %6155 }
 0x55f   :  { %6268 = vst.msk [vmem:[#allocation2 + $0x70] sm:$0xf] %vm6239_vm15, %v6104_v42  ;;  %8006 = vmatmul.msk.bf16.gmra.mxu3 %vm6548_vm0, %v8038_v25 }
 0x563   :  { %v12706_v44 = vpop.f32.mrf.mxu2 }
 0x564   :  { %6853 = vst.msk [vmem:[%s13227_s2 + $0x110] sm:$0xff] %vm6818_vm1, %v12706_v44 }
 0x565   :  { %v5483_v34 = vpop.permute.xlu1 %5482 }
 0x566   :  { %5621 = vst.msk [vmem:[#allocation2 + $0xd8] sm:$0xf] %vm5566_vm14, %v5483_v34  ;;  %v5461_v22 = vpop.permute.xlu0 %5460  ;;  %v8026_v46 = vld [vmem:[#allocation2 + $0x70] sm:$0xff]  ;;  %v5437_v48 = vpop.permute.xlu2 %5436 }
 0x567   :  { %6294 = vst.msk [vmem:[#allocation2 + $0xd8] sm:$0xf] %vm6239_vm15, %v6156_v30  ;;  %7994 = vmatmul.msk.bf16.gmra.mxu1 %vm6548_vm0, %v8026_v46 }
 0x568   :  { %5610 = vst.msk [vmem:[#allocation2 + $0xac] sm:$0xf] %vm5566_vm14, %v5461_v22 }
 0x569   :  { %5598 = vst.msk [vmem:[#allocation2 + $0x7c] sm:$0xf] %vm5566_vm14, %v5437_v48 }
 0x56b   :  { %v12718_v36 = vpop.f32.mrf.mxu1  ;;  %v12720_v14 = vpop.f32.mrf.mxu2 }
 0x56c   :  { %6841 = vst.msk [vmem:[%s13227_s2 + $0xb0] sm:$0xff] %vm6818_vm1, %v12718_v36  ;;  %v6683_v50 = vpop.f32.mrf.mxu0 }
 0x56d   :  { %v6134_v41 = vpop.permute.xlu1 %6133  ;;  %6854 = vst.msk [vmem:[%s13227_s2 + $0x118] sm:$0xff] %vm6818_vm1, %v12720_v14  ;;  %v6902_v51 = vsel %vm6818_vm1, %v6683_v50, 0.0  ;;  %v7028_v52 = vmul.f32 %v6683_v50, %v6683_v50 }
 0x56e   :  { %6283 = vst.msk [vmem:[#allocation2 + $0xac] sm:$0xf] %vm6239_vm15, %v6134_v41  ;;  %v6132_v37 = vpop.permute.xlu0 %6131  ;;  %v5463_v40 = vpop.permute.xlu2 %5462  ;;  %v6903_v45 = vadd.f32 %v6902_v51, %v6901_v32 }
 0x56f   :  { %6829 = vst.msk [vmem:[%s13227_s2 + $0x50] sm:$0xff] %vm6818_vm1, %v6683_v50  ;;  %v7101_v56 = vsel %vm6818_vm1, %v7028_v52, 0.0 }
 0x570   :  { %6282 = vst.msk [vmem:[#allocation2 + $0xa8] sm:$0xf] %vm6239_vm15, %v6132_v37  ;;  %v7102_v49 = vadd.f32 %v7101_v56, %v7100_v4 }
 0x571   :  { %5611 = vst.msk [vmem:[#allocation2 + $0xb0] sm:$0xf] %vm5566_vm14, %v5463_v40 }
 0x573   :  { %v12741_v47 = vpop.f32.mrf.mxu1 }
 0x574   :  { %6842 = vst.msk [vmem:[%s13227_s2 + $0xb8] sm:$0xff] %vm6818_vm1, %v12741_v47  ;;  %v6685_v60 = vpop.f32.mrf.mxu0 }
 0x575   :  { %v5435_v58 = vpop.permute.xlu1 %5434  ;;  %6830 = vst.msk [vmem:[%s13227_s2 + $0x58] sm:$0xff] %vm6818_vm1, %v6685_v60  ;;  %v6904_v62 = vsel %vm6818_vm1, %v6685_v60, 0.0  ;;  %v7029_v63 = vmul.f32 %v6685_v60, %v6685_v60 }
 0x576   :  { %5597 = vst.msk [vmem:[#allocation2 + $0x78] sm:$0xf] %vm5566_vm14, %v5435_v58  ;;  %v6158_v61 = vpop.permute.xlu0 %6157  ;;  %v5489_v3 = vpop.permute.xlu2 %5488  ;;  %v6905_v57 = vadd.f32 %v6904_v62, %v6903_v45 }
 0x577   :  { %v8033_v0 = vld [vmem:[#allocation2 + $0xa8] sm:$0xff]  ;;  %6295 = vst.msk [vmem:[#allocation2 + $0xdc] sm:$0xf] %vm6239_vm15, %v6158_v61  ;;  %v7103_v7 = vsel %vm6818_vm1, %v7029_v63, 0.0 }
 0x578   :  { %8001 = vmatmul.msk.bf16.gmra.mxu2 %vm6548_vm0, %v8033_v0  ;;  %5624 = vst.msk [vmem:[#allocation2 + $0xe4] sm:$0xf] %vm5566_vm14, %v5489_v3  ;;  %v7104_v8 = vadd.f32 %v7103_v7, %v7102_v49 }
 0x57d   :  { %v6110_v9 = vpop.permute.xlu1 %6109 }
 0x57e   :  { %6271 = vst.msk [vmem:[#allocation2 + $0x7c] sm:$0xf] %vm6239_vm15, %v6110_v9  ;;  %v6108_v10 = vpop.permute.xlu0 %6107  ;;  %v8039_v5 = vld [vmem:[#allocation2 + $0xd8] sm:$0xff]  ;;  %v6160_v55 = vpop.permute.xlu2 %6159 }
 0x57f   :  { %6270 = vst.msk [vmem:[#allocation2 + $0x78] sm:$0xf] %vm6239_vm15, %v6108_v10  ;;  %8007 = vmatmul.msk.bf16.gmra.mxu3 %vm6548_vm0, %v8039_v5 }
 0x581   :  { %v12761_v11 = vpop.f32.mrf.mxu2 }
 0x582   :  { %6855 = vst.msk [vmem:[%s13227_s2 + $0x120] sm:$0xff] %vm6818_vm1, %v12761_v11 }
 0x585   :  { %v5487_v12 = vpop.permute.xlu1 %5486 }
 0x586   :  { %5623 = vst.msk [vmem:[#allocation2 + $0xe0] sm:$0xf] %vm5566_vm14, %v5487_v12  ;;  %v5465_v59 = vpop.permute.xlu0 %5464  ;;  %v8027_v15 = vld [vmem:[#allocation2 + $0x78] sm:$0xff]  ;;  %v4372_v6 = vpop.permute.xlu2 %4371 }
 0x587   :  { %6296 = vst.msk [vmem:[#allocation2 + $0xe0] sm:$0xf] %vm6239_vm15, %v6160_v55  ;;  %7995 = vmatmul.msk.bf16.gmra.mxu1 %vm6548_vm0, %v8027_v15 }
 0x588   :  { %5612 = vst.msk [vmem:[#allocation2 + $0xb4] sm:$0xf] %vm5566_vm14, %v5465_v59 }
 0x589   :  { %v12772_v18 = vpop.f32.mrf.mxu2  ;;  %4505 = vst.msk [vmem:[#allocation2 + $0xec] sm:$0xf] %vm4445_vm12, %v4372_v6 }
 0x58a   :  { %6856 = vst.msk [vmem:[%s13227_s2 + $0x128] sm:$0xff] %vm6818_vm1, %v12772_v18  ;;  %v12780_v16 = vpop.f32.mrf.mxu3 }
 0x58b   :  { %6867 = vst.msk [vmem:[%s13227_s2 + $0x180] sm:$0xff] %vm6818_vm1, %v12780_v16 }
 0x58d   :  { %v6138_v21 = vpop.permute.xlu1 %6137 }
 0x58e   :  { %6285 = vst.msk [vmem:[#allocation2 + $0xb4] sm:$0xf] %vm6239_vm15, %v6138_v21  ;;  %v6136_v20 = vpop.permute.xlu0 %6135  ;;  %v5491_v24 = vpop.permute.xlu2 %5490  ;;  %v7034_v21 = vmul.f32 %v12428_v43, %v12428_v43 }
 0x58f   :  { %6284 = vst.msk [vmem:[#allocation2 + $0xb0] sm:$0xf] %vm6239_vm15, %v6136_v20 }
 0x592   :  { %v12789_v23 = vpop.f32.mrf.mxu3 }
 0x593   :  { %6868 = vst.msk [vmem:[%s13227_s2 + $0x188] sm:$0xff] %vm6818_vm1, %v12789_v23 }
 0x594   :  { %v6688_v27 = vpop.f32.mrf.mxu0 }
 0x595   :  { %v4370_v26 = vpop.permute.xlu1 %4369  ;;  %6831 = vst.msk [vmem:[%s13227_s2 + $0x60] sm:$0xff] %vm6818_vm1, %v6688_v27  ;;  %v6906_v29 = vsel %vm6818_vm1, %v6688_v27, 0.0  ;;  %v7030_v19 = vmul.f32 %v6688_v27, %v6688_v27 }
 0x596   :  { %4504 = vst.msk [vmem:[#allocation2 + $0xe8] sm:$0xf] %vm4445_vm12, %v4370_v26  ;;  %v6162_v28 = vpop.permute.xlu0 %6161  ;;  %v8034_v32 = vld [vmem:[#allocation2 + $0xb0] sm:$0xff]  ;;  %v6142_v2 = vpop.permute.xlu2 %6141  ;;  %v6907_v4 = vadd.f32 %v6906_v29, %v6905_v57  ;;  %v7035_v29 = vmul.f32 %v12466_v1, %v12466_v1 }
 0x597   :  { %6297 = vst.msk [vmem:[#allocation2 + $0xe4] sm:$0xf] %vm6239_vm15, %v6162_v28  ;;  %v7105_v33 = vsel %vm6818_vm1, %v7030_v19, 0.0  ;;  %8002 = vmatmul.msk.bf16.gmra.mxu2 %vm6548_vm0, %v8034_v32  ;;  %v6914_v28 = vsel %vm6818_vm1, %v12428_v43, 0.0  ;;  %v7113_v43 = vsel %vm6818_vm1, %v7034_v21, 0.0 }
 0x598   :  { %5625 = vst.msk [vmem:[#allocation2 + $0xe8] sm:$0xf] %vm5566_vm14, %v5491_v24  ;;  %v7106_v35 = vadd.f32 %v7105_v33, %v7104_v8 }
 0x59c   :  { %v6690_v42 = vpop.f32.mrf.mxu0 }
 0x59d   :  { %v5469_v38 = vpop.permute.xlu1 %5468  ;;  %v12807_v25 = vpop.f32.mrf.mxu1  ;;  %6832 = vst.msk [vmem:[%s13227_s2 + $0x68] sm:$0xff] %vm6818_vm1, %v6690_v42  ;;  %v6908_v34 = vsel %vm6818_vm1, %v6690_v42, 0.0  ;;  %v7031_v22 = vmul.f32 %v6690_v42, %v6690_v42  ;;  %v6916_v42 = vsel %vm6818_vm1, %v12466_v1, 0.0 }
 0x59e   :  { %5614 = vst.msk [vmem:[#allocation2 + $0xbc] sm:$0xf] %vm5566_vm14, %v5469_v38  ;;  %v5467_v30 = vpop.permute.xlu0 %5466  ;;  %v8040_v46 = vld [vmem:[#allocation2 + $0xe0] sm:$0xff]  ;;  %v4374_v48 = vpop.permute.xlu2 %4373  ;;  %v6909_v41 = vadd.f32 %v6908_v34, %v6907_v4 }
 0x59f   :  { %6287 = vst.msk [vmem:[#allocation2 + $0xbc] sm:$0xf] %vm6239_vm15, %v6142_v2  ;;  %v7107_v50 = vsel %vm6818_vm1, %v7031_v22, 0.0  ;;  %8008 = vmatmul.msk.bf16.gmra.mxu3 %vm6548_vm0, %v8040_v46  ;;  %v7115_v46 = vsel %vm6818_vm1, %v7035_v29, 0.0 }
 0x5a0   :  { %5613 = vst.msk [vmem:[#allocation2 + $0xb8] sm:$0xf] %vm5566_vm14, %v5467_v30  ;;  %v7108_v37 = vadd.f32 %v7107_v50, %v7106_v35  ;;  %v7036_v30 = vmul.f32 %v12504_v17, %v12504_v17 }
 0x5a1   :  { %6843 = vst.msk [vmem:[%s13227_s2 + $0xc0] sm:$0xff] %vm6818_vm1, %v12807_v25 }
 0x5a2   :  { %4506 = vst.msk [vmem:[#allocation2 + $0xf0] sm:$0xf] %vm4445_vm12, %v4374_v48  ;;  %v6918_v48 = vsel %vm6818_vm1, %v12504_v17, 0.0 }
 0x5a5   :  { %v6140_v51 = vpop.permute.xlu1 %6139  ;;  %v12825_v52 = vpop.f32.mrf.mxu1 }
 0x5a6   :  { %6286 = vst.msk [vmem:[#allocation2 + $0xb8] sm:$0xf] %vm6239_vm15, %v6140_v51  ;;  %v5493_v40 = vpop.permute.xlu0 %5492  ;;  %v5497_v45 = vpop.permute.xlu2 %5496  ;;  %v6920_v51 = vsel %vm6818_vm1, %v12548_v54, 0.0 }
 0x5a7   :  { %6844 = vst.msk [vmem:[%s13227_s2 + $0xc8] sm:$0xff] %vm6818_vm1, %v12825_v52 }
 0x5a8   :  { %5626 = vst.msk [vmem:[#allocation2 + $0xec] sm:$0xf] %vm5566_vm14, %v5493_v40  ;;  %v7038_v40 = vmul.f32 %v12627_v53, %v12627_v53 }
 0x5ad   :  { %v6166_v56 = vpop.permute.xlu1 %6165  ;;  %v8035_v49 = vld [vmem:[#allocation2 + $0xb8] sm:$0xff] }
 0x5ae   :  { %6299 = vst.msk [vmem:[#allocation2 + $0xec] sm:$0xf] %vm6239_vm15, %v6166_v56  ;;  %8003 = vmatmul.msk.bf16.gmra.mxu2 %vm6548_vm0, %v8035_v49  ;;  %v6164_v58 = vpop.permute.xlu0 %6163  ;;  %v4378_v60 = vpop.permute.xlu2 %4377 }
 0x5af   :  { %6298 = vst.msk [vmem:[#allocation2 + $0xe8] sm:$0xf] %vm6239_vm15, %v6164_v58  ;;  %v6922_v58 = vsel %vm6818_vm1, %v12627_v53, 0.0  ;;  %v7040_v53 = vmul.f32 %v12718_v36, %v12718_v36 }
 0x5b0   :  { %4508 = vst.msk [vmem:[#allocation2 + $0xf8] sm:$0xf] %vm4445_vm12, %v4378_v60  ;;  %v7039_v60 = vmul.f32 %v12672_v13, %v12672_v13 }
 0x5b1   :  { %v12836_v61 = vpop.f32.mrf.mxu3  ;;  %v7125_v21 = vsel %vm6818_vm1, %v7040_v53, 0.0 }
 0x5b2   :  { %6869 = vst.msk [vmem:[%s13227_s2 + $0x190] sm:$0xff] %vm6818_vm1, %v12836_v61 }
 0x5b3   :  { %v12844_v62 = vpop.f32.mrf.mxu2 }
 0x5b4   :  { %6857 = vst.msk [vmem:[%s13227_s2 + $0x130] sm:$0xff] %vm6818_vm1, %v12844_v62 }
 0x5b5   :  { %v5495_v63 = vpop.permute.xlu1 %5494 }
 0x5b6   :  { %5627 = vst.msk [vmem:[#allocation2 + $0xf0] sm:$0xf] %vm5566_vm14, %v5495_v63  ;;  %v4376_v0 = vpop.permute.xlu0 %4375  ;;  %v8041_v3 = vld [vmem:[#allocation2 + $0xe8] sm:$0xff]  ;;  %v5501_v2 = vpop.permute.xlu2 %5500 }
 0x5b7   :  { %4507 = vst.msk [vmem:[#allocation2 + $0xf4] sm:$0xf] %vm4445_vm12, %v4376_v0  ;;  %8009 = vmatmul.msk.bf16.gmra.mxu3 %vm6548_vm0, %v8041_v3 }
 0x5b8   :  { %5628 = vst.msk [vmem:[#allocation2 + $0xf4] sm:$0xf] %vm5566_vm14, %v5497_v45 }
 0x5b9   :  { %v12854_v57 = vpop.f32.mrf.mxu3 }
 0x5ba   :  { %6870 = vst.msk [vmem:[%s13227_s2 + $0x198] sm:$0xff] %vm6818_vm1, %v12854_v57 }
 0x5bb   :  { %v6693_v7 = vpop.f32.mrf.mxu0  ;;  %v12862_v8 = vpop.f32.mrf.mxu2 }
 0x5bc   :  { %6833 = vst.msk [vmem:[%s13227_s2 + $0x70] sm:$0xff] %vm6818_vm1, %v6693_v7  ;;  %v6910_v10 = vsel %vm6818_vm1, %v6693_v7, 0.0  ;;  %v7032_v5 = vmul.f32 %v6693_v7, %v6693_v7  ;;  %v7121_v7 = vsel %vm6818_vm1, %v7038_v40, 0.0 }
 0x5bd   :  { %v6170_v9 = vpop.permute.xlu1 %6169  ;;  %6858 = vst.msk [vmem:[%s13227_s2 + $0x138] sm:$0xff] %vm6818_vm1, %v12862_v8  ;;  %v6911_v55 = vadd.f32 %v6910_v10, %v6909_v41  ;;  %v7037_v41 = vmul.f32 %v12548_v54, %v12548_v54 }
 0x5be   :  { %6301 = vst.msk [vmem:[#allocation2 + $0xf4] sm:$0xf] %vm6239_vm15, %v6170_v9  ;;  %v7109_v12 = vsel %vm6818_vm1, %v7032_v5, 0.0  ;;  %v6168_v59 = vpop.permute.xlu0 %6167  ;;  %v6924_v9 = vsel %vm6818_vm1, %v12672_v13, 0.0  ;;  %v6928_v13 = vsel %vm6818_vm1, %v12741_v47, 0.0 }
 0x5bf   :  { %v7110_v15 = vadd.f32 %v7109_v12, %v7108_v37  ;;  %6300 = vst.msk [vmem:[#allocation2 + $0xf0] sm:$0xf] %vm6239_vm15, %v6168_v59  ;;  %v7117_v37 = vsel %vm6818_vm1, %v7036_v30, 0.0  ;;  %v7119_v17 = vsel %vm6818_vm1, %v7037_v41, 0.0  ;;  %v6926_v12 = vsel %vm6818_vm1, %v12718_v36, 0.0 }
 0x5c0   :  { %v7041_v59 = vmul.f32 %v12741_v47, %v12741_v47  ;;  %v6930_v36 = vsel %vm6818_vm1, %v12807_v25, 0.0  ;;  %v6932_v47 = vsel %vm6818_vm1, %v12825_v52, 0.0 }
 0x5c3   :  { %v6695_v6 = vpop.f32.mrf.mxu0 }
 0x5c4   :  { %6834 = vst.msk [vmem:[%s13227_s2 + $0x78] sm:$0xff] %vm6818_vm1, %v6695_v6  ;;  %v6912_v24 = vsel %vm6818_vm1, %v6695_v6, 0.0  ;;  %v7033_v26 = vmul.f32 %v6695_v6, %v6695_v6  ;;  %v12890_v32 = vpop.f32.mrf.mxu1 }
 0x5c5   :  { %v5499_v20 = vpop.permute.xlu1 %5498  ;;  %v6913_v27 = vadd.f32 %v6912_v24, %v6911_v55  ;;  %6845 = vst.msk [vmem:[%s13227_s2 + $0xd0] sm:$0xff] %vm6818_vm1, %v12890_v32  ;;  %v7123_v55 = vsel %vm6818_vm1, %v7039_v60, 0.0 }
 0x5c6   :  { %5629 = vst.msk [vmem:[#allocation2 + $0xf8] sm:$0xf] %vm5566_vm14, %v5499_v20  ;;  %v7111_v19 = vsel %vm6818_vm1, %v7033_v26, 0.0  ;;  %v4380_v4 = vpop.permute.xlu0 %4379  ;;  %v8042_v38 = vld [vmem:[#allocation2 + $0xf0] sm:$0xff]  ;;  %v7042_v20 = vmul.f32 %v12807_v25, %v12807_v25 }
 0x5c7   :  { %v6915_v33 = vadd.f32 %v6914_v28, %v6913_v27  ;;  %v7112_v35 = vadd.f32 %v7111_v19, %v7110_v15  ;;  %4509 = vst.msk [vmem:[#allocation2 + $0xfc] sm:$0xf] %vm4445_vm12, %v4380_v4  ;;  %8010 = vmatmul.msk.bf16.gmra.mxu3 %vm6548_vm0, %v8042_v38  ;;  %v7127_v27 = vsel %vm6818_vm1, %v7041_v59, 0.0  ;;  %v7043_v28 = vmul.f32 %v12825_v52, %v12825_v52 }
 0x5c8   :  { %5630 = vst.msk [vmem:[#allocation2 + $0xfc] sm:$0xf] %vm5566_vm14, %v5501_v2  ;;  %v7129_v4 = vsel %vm6818_vm1, %v7042_v20, 0.0 }
 0x5c9   :  { %v6917_v34 = vadd.f32 %v6916_v42, %v6915_v33  ;;  %v7114_v22 = vadd.f32 %v7113_v43, %v7112_v35  ;;  %v7044_v33 = vmul.f32 %v12890_v32, %v12890_v32  ;;  %v7131_v25 = vsel %vm6818_vm1, %v7043_v28, 0.0 }
 0x5ca   :  { %v6934_v43 = vsel %vm6818_vm1, %v12890_v32, 0.0  ;;  %v7051_v28 = vmul.f32 %v12629_v31, %v12629_v31 }
 0x5cb   :  { %v6919_v1 = vadd.f32 %v6918_v48, %v6917_v34  ;;  %v7116_v50 = vadd.f32 %v7115_v46, %v7114_v22  ;;  %v7133_v22 = vsel %vm6818_vm1, %v7044_v33, 0.0  ;;  %v7052_v33 = vmul.f32 %v12706_v44, %v12706_v44 }
 0x5cc   :  { %v6725_v63 = vpop.f32.mrf.mxu1 }
 0x5cd   :  { %v6174_v45 = vpop.permute.xlu1 %6173  ;;  %v6921_v56 = vadd.f32 %v6920_v51, %v6919_v1  ;;  %v7118_v49 = vadd.f32 %v7117_v37, %v7116_v50  ;;  %6846 = vst.msk [vmem:[%s13227_s2 + $0xd8] sm:$0xff] %vm6818_vm1, %v6725_v63  ;;  %v7045_v42 = vmul.f32 %v6725_v63, %v6725_v63  ;;  %v6936_v46 = vsel %vm6818_vm1, %v6725_v63, 0.0 }
 0x5ce   :  { %6303 = vst.msk [vmem:[#allocation2 + $0xfc] sm:$0xf] %vm6239_vm15, %v6174_v45  ;;  %v6172_v54 = vpop.permute.xlu0 %6171 }
 0x5cf   :  { %v6923_v0 = vadd.f32 %v6922_v58, %v6921_v56  ;;  %v7120_v3 = vadd.f32 %v7119_v17, %v7118_v49  ;;  %6302 = vst.msk [vmem:[#allocation2 + $0xf8] sm:$0xf] %vm6239_vm15, %v6172_v54  ;;  %v7135_v1 = vsel %vm6818_vm1, %v7045_v42, 0.0 }
 0x5d1   :  { %v7122_v10 = vadd.f32 %v7121_v7, %v7120_v3  ;;  %v6925_v5 = vadd.f32 %v6924_v9, %v6923_v0 }
 0x5d3   :  { %v6927_v15 = vadd.f32 %v6926_v12, %v6925_v5  ;;  %v7124_v6 = vadd.f32 %v7123_v55, %v7122_v10 }
 0x5d5   :  { %v6929_v24 = vadd.f32 %v6928_v13, %v6927_v15  ;;  %v7126_v26 = vadd.f32 %v7125_v21, %v7124_v6  ;;  %v7050_v13 = vmul.f32 %v12606_v39, %v12606_v39 }
 0x5d6   :  { %v8043_v2 = vld [vmem:[#allocation2 + $0xf8] sm:$0xff] }
 0x5d7   :  { %v6931_v29 = vadd.f32 %v6930_v36, %v6929_v24  ;;  %v7128_v19 = vadd.f32 %v7127_v27, %v7126_v26  ;;  %8011 = vmatmul.msk.bf16.gmra.mxu3 %vm6548_vm0, %v8043_v2  ;;  %v6946_v36 = vsel %vm6818_vm1, %v12606_v39, 0.0  ;;  %v6950_v39 = vsel %vm6818_vm1, %v12706_v44, 0.0 }
 0x5d8   :  { %v6954_v44 = vsel %vm6818_vm1, %v12761_v11, 0.0 }
 0x5d9   :  { %v6933_v35 = vadd.f32 %v6932_v47, %v6931_v29  ;;  %v7130_v38 = vadd.f32 %v7129_v4, %v7128_v19  ;;  %v7145_v4 = vsel %vm6818_vm1, %v7050_v13, 0.0  ;;  %v6948_v47 = vsel %vm6818_vm1, %v12629_v31, 0.0 }
 0x5da   :  { %v6952_v31 = vsel %vm6818_vm1, %v12720_v14, 0.0 }
 0x5db   :  { %v6935_v30 = vadd.f32 %v6934_v43, %v6933_v35  ;;  %v7132_v34 = vadd.f32 %v7131_v25, %v7130_v38  ;;  %v12957_v52 = vpop.f32.mrf.mxu2  ;;  %v7147_v25 = vsel %vm6818_vm1, %v7051_v28, 0.0  ;;  %v7053_v43 = vmul.f32 %v12720_v14, %v12720_v14 }
 0x5dc   :  { %6859 = vst.msk [vmem:[%s13227_s2 + $0x140] sm:$0xff] %vm6818_vm1, %v12957_v52  ;;  %v6956_v14 = vsel %vm6818_vm1, %v12772_v18, 0.0 }
 0x5dd   :  { %v7134_v48 = vadd.f32 %v7133_v22, %v7132_v34  ;;  %v6937_v41 = vadd.f32 %v6936_v46, %v6935_v30  ;;  %v7149_v34 = vsel %vm6818_vm1, %v7052_v33, 0.0  ;;  %v7054_v22 = vmul.f32 %v12761_v11, %v12761_v11 }
 0x5de   :  { %v6958_v11 = vsel %vm6818_vm1, %v12844_v62, 0.0 }
 0x5df   :  { %v7136_v32 = vadd.f32 %v7135_v1, %v7134_v48  ;;  %v7055_v1 = vmul.f32 %v12772_v18, %v12772_v18 }
 0x5e2   :  { %v12967_v37 = vpop.f32.mrf.mxu3 }
 0x5e3   :  { %v12965_v50 = vpop.f32.mrf.mxu2  ;;  %6871 = vst.msk [vmem:[%s13227_s2 + $0x1a0] sm:$0xff] %vm6818_vm1, %v12967_v37 }
 0x5e4   :  { %6860 = vst.msk [vmem:[%s13227_s2 + $0x148] sm:$0xff] %vm6818_vm1, %v12965_v50  ;;  %v6728_v51 = vpop.f32.mrf.mxu1 }
 0x5e5   :  { %6847 = vst.msk [vmem:[%s13227_s2 + $0xe0] sm:$0xff] %vm6818_vm1, %v6728_v51  ;;  %v7046_v58 = vmul.f32 %v6728_v51, %v6728_v51  ;;  %v6938_v63 = vsel %vm6818_vm1, %v6728_v51, 0.0 }
 0x5e6   :  { %v6939_v9 = vadd.f32 %v6938_v63, %v6937_v41  ;;  %v7151_v41 = vsel %vm6818_vm1, %v7053_v43, 0.0 }
 0x5e7   :  { %v7137_v3 = vsel %vm6818_vm1, %v7046_v58, 0.0  ;;  %v7056_v58 = vmul.f32 %v12844_v62, %v12844_v62 }
 0x5e8   :  { %v7138_v5 = vadd.f32 %v7137_v3, %v7136_v32  ;;  %v7155_v3 = vsel %vm6818_vm1, %v7055_v1, 0.0 }
 0x5ea   :  { %v12983_v40 = vpop.f32.mrf.mxu3 }
 0x5eb   :  { %6872 = vst.msk [vmem:[%s13227_s2 + $0x1a8] sm:$0xff] %vm6818_vm1, %v12983_v40 }
 0x5ec   :  { %v6730_v45 = vpop.f32.mrf.mxu1 }
 0x5ed   :  { %6848 = vst.msk [vmem:[%s13227_s2 + $0xe8] sm:$0xff] %vm6818_vm1, %v6730_v45  ;;  %v7047_v0 = vmul.f32 %v6730_v45, %v6730_v45  ;;  %v6940_v54 = vsel %vm6818_vm1, %v6730_v45, 0.0  ;;  %v7153_v45 = vsel %vm6818_vm1, %v7054_v22, 0.0 }
 0x5ee   :  { %v6941_v55 = vadd.f32 %v6940_v54, %v6939_v9  ;;  %v7057_v54 = vmul.f32 %v12862_v8, %v12862_v8  ;;  %v7157_v9 = vsel %vm6818_vm1, %v7056_v58, 0.0 }
 0x5ef   :  { %v7139_v53 = vsel %vm6818_vm1, %v7047_v0, 0.0 }
 0x5f0   :  { %v7140_v15 = vadd.f32 %v7139_v53, %v7138_v5  ;;  %v6960_v53 = vsel %vm6818_vm1, %v12862_v8, 0.0  ;;  %v6964_v8 = vsel %vm6818_vm1, %v12965_v50, 0.0 }
 0x5fb   :  { %v12994_v56 = vpop.f32.mrf.mxu2 }
 0x5fc   :  { %6861 = vst.msk [vmem:[%s13227_s2 + $0x150] sm:$0xff] %vm6818_vm1, %v12994_v56  ;;  %v6966_v28 = vsel %vm6818_vm1, %v12994_v56, 0.0 }
 0x602   :  { %v13003_v17 = vpop.f32.mrf.mxu3 }
 0x603   :  { %v13001_v49 = vpop.f32.mrf.mxu2  ;;  %6873 = vst.msk [vmem:[%s13227_s2 + $0x1b0] sm:$0xff] %vm6818_vm1, %v13003_v17 }
 0x604   :  { %6862 = vst.msk [vmem:[%s13227_s2 + $0x158] sm:$0xff] %vm6818_vm1, %v13001_v49  ;;  %v6733_v60 = vpop.f32.mrf.mxu1  ;;  %v6968_v33 = vsel %vm6818_vm1, %v13001_v49, 0.0 }
 0x605   :  { %6849 = vst.msk [vmem:[%s13227_s2 + $0xf0] sm:$0xff] %vm6818_vm1, %v6733_v60  ;;  %v7048_v7 = vmul.f32 %v6733_v60, %v6733_v60  ;;  %v6942_v10 = vsel %vm6818_vm1, %v6733_v60, 0.0 }
 0x606   :  { %v6943_v6 = vadd.f32 %v6942_v10, %v6941_v55  ;;  %v7058_v10 = vmul.f32 %v12957_v52, %v12957_v52  ;;  %v7159_v55 = vsel %vm6818_vm1, %v7057_v54, 0.0 }
 0x607   :  { %v7141_v59 = vsel %vm6818_vm1, %v7048_v7, 0.0 }
 0x608   :  { %v7142_v26 = vadd.f32 %v7141_v59, %v7140_v15  ;;  %v6962_v59 = vsel %vm6818_vm1, %v12957_v52, 0.0  ;;  %v7059_v15 = vmul.f32 %v12965_v50, %v12965_v50  ;;  %v7161_v13 = vsel %vm6818_vm1, %v7058_v10, 0.0 }
 0x609   :  { %v7060_v50 = vmul.f32 %v12994_v56, %v12994_v56 }
 0x60a   :  { %v13024_v12 = vpop.f32.mrf.mxu3 }
 0x60b   :  { %6874 = vst.msk [vmem:[%s13227_s2 + $0x1b8] sm:$0xff] %vm6818_vm1, %v13024_v12 }
 0x60c   :  { %v6735_v21 = vpop.f32.mrf.mxu1 }
 0x60d   :  { %6850 = vst.msk [vmem:[%s13227_s2 + $0xf8] sm:$0xff] %vm6818_vm1, %v6735_v21  ;;  %v6944_v20 = vsel %vm6818_vm1, %v6735_v21, 0.0  ;;  %v7049_v24 = vmul.f32 %v6735_v21, %v6735_v21 }
 0x60e   :  { %v6945_v27 = vadd.f32 %v6944_v20, %v6943_v6 }
 0x60f   :  { %v7143_v29 = vsel %vm6818_vm1, %v7049_v24, 0.0 }
 0x610   :  { %v6947_v19 = vadd.f32 %v6946_v36, %v6945_v27  ;;  %v7144_v2 = vadd.f32 %v7143_v29, %v7142_v26  ;;  %v7163_v36 = vsel %vm6818_vm1, %v7059_v15, 0.0 }
 0x612   :  { %v6949_v35 = vadd.f32 %v6948_v47, %v6947_v19  ;;  %v7146_v38 = vadd.f32 %v7145_v4, %v7144_v2  ;;  %v7165_v19 = vsel %vm6818_vm1, %v7060_v50, 0.0  ;;  %v7061_v2 = vmul.f32 %v13001_v49, %v13001_v49 }
 0x614   :  { %v6951_v42 = vadd.f32 %v6950_v39, %v6949_v35  ;;  %v7148_v30 = vadd.f32 %v7147_v25, %v7146_v38  ;;  %v7167_v56 = vsel %vm6818_vm1, %v7061_v2, 0.0 }
 0x616   :  { %v6953_v46 = vadd.f32 %v6952_v31, %v6951_v42  ;;  %v7150_v48 = vadd.f32 %v7149_v34, %v7148_v30 }
 0x618   :  { %v6955_v32 = vadd.f32 %v6954_v44, %v6953_v46  ;;  %v7152_v51 = vadd.f32 %v7151_v41, %v7150_v48 }
 0x61a   :  { %v6957_v60 = vadd.f32 %v6956_v14, %v6955_v32  ;;  %v7154_v63 = vadd.f32 %v7153_v45, %v7152_v51  ;;  %v6768_v0 = vpop.f32.mrf.mxu2  ;;  %v7066_v45 = vmul.f32 %v12780_v16, %v12780_v16 }
 0x61b   :  { %6863 = vst.msk [vmem:[%s13227_s2 + $0x160] sm:$0xff] %vm6818_vm1, %v6768_v0  ;;  %v7062_v38 = vmul.f32 %v6768_v0, %v6768_v0  ;;  %v6970_v43 = vsel %vm6818_vm1, %v6768_v0, 0.0  ;;  %v6978_v0 = vsel %vm6818_vm1, %v12780_v16, 0.0  ;;  %v7068_v16 = vmul.f32 %v12836_v61, %v12836_v61 }
 0x61c   :  { %v7156_v18 = vadd.f32 %v7155_v3, %v7154_v63  ;;  %v6959_v7 = vadd.f32 %v6958_v11, %v6957_v60  ;;  %v7067_v3 = vmul.f32 %v12789_v23, %v12789_v23 }
 0x61d   :  { %v7169_v30 = vsel %vm6818_vm1, %v7062_v38, 0.0 }
 0x61e   :  { %v6961_v5 = vadd.f32 %v6960_v53, %v6959_v7  ;;  %v7158_v62 = vadd.f32 %v7157_v9, %v7156_v18  ;;  %v7177_v9 = vsel %vm6818_vm1, %v7066_v45, 0.0  ;;  %v6980_v53 = vsel %vm6818_vm1, %v12789_v23, 0.0 }
 0x61f   :  { %v6984_v23 = vsel %vm6818_vm1, %v12854_v57, 0.0 }
 0x620   :  { %v6963_v6 = vadd.f32 %v6962_v59, %v6961_v5  ;;  %v7160_v21 = vadd.f32 %v7159_v55, %v7158_v62  ;;  %v7179_v62 = vsel %vm6818_vm1, %v7067_v3, 0.0  ;;  %v6982_v55 = vsel %vm6818_vm1, %v12836_v61, 0.0 }
 0x621   :  { %v7069_v59 = vmul.f32 %v12854_v57, %v12854_v57  ;;  %v6986_v61 = vsel %vm6818_vm1, %v12967_v37, 0.0 }
 0x622   :  { %v6965_v20 = vadd.f32 %v6964_v8, %v6963_v6  ;;  %v7162_v24 = vadd.f32 %v7161_v13, %v7160_v21  ;;  %v6770_v26 = vpop.f32.mrf.mxu2  ;;  %v13091_v27 = vpop.f32.mrf.mxu3  ;;  %v7181_v21 = vsel %vm6818_vm1, %v7068_v16, 0.0  ;;  %v7070_v13 = vmul.f32 %v12967_v37, %v12967_v37 }
 0x623   :  { %6864 = vst.msk [vmem:[%s13227_s2 + $0x168] sm:$0xff] %vm6818_vm1, %v6770_v26  ;;  %v7063_v34 = vmul.f32 %v6770_v26, %v6770_v26  ;;  %v6972_v49 = vsel %vm6818_vm1, %v6770_v26, 0.0  ;;  %v7071_v26 = vmul.f32 %v12983_v40, %v12983_v40 }
 0x624   :  { %v7164_v52 = vadd.f32 %v7163_v36, %v7162_v24  ;;  %6875 = vst.msk [vmem:[%s13227_s2 + $0x1c0] sm:$0xff] %vm6818_vm1, %v13091_v27  ;;  %v6967_v29 = vadd.f32 %v6966_v28, %v6965_v20  ;;  %v7183_v24 = vsel %vm6818_vm1, %v7069_v59, 0.0  ;;  %v7185_v57 = vsel %vm6818_vm1, %v7070_v13, 0.0 }
 0x625   :  { %v7171_v41 = vsel %vm6818_vm1, %v7063_v34, 0.0  ;;  %v6988_v28 = vsel %vm6818_vm1, %v12983_v40, 0.0  ;;  %v7187_v2 = vsel %vm6818_vm1, %v7071_v26, 0.0  ;;  %v6992_v40 = vsel %vm6818_vm1, %v13024_v12, 0.0 }
 0x626   :  { %v7166_v47 = vadd.f32 %v7165_v19, %v7164_v52  ;;  %v6969_v35 = vadd.f32 %v6968_v33, %v6967_v29  ;;  %v7072_v29 = vmul.f32 %v13003_v17, %v13003_v17  ;;  %v7073_v33 = vmul.f32 %v13024_v12, %v13024_v12 }
 0x628   :  { %v7168_v25 = vadd.f32 %v7167_v56, %v7166_v47  ;;  %v6971_v42 = vadd.f32 %v6970_v43, %v6969_v35  ;;  %v6990_v47 = vsel %vm6818_vm1, %v13003_v17, 0.0  ;;  %v7189_v38 = vsel %vm6818_vm1, %v7072_v29, 0.0 }
 0x629   :  { %v6994_v17 = vsel %vm6818_vm1, %v13091_v27, 0.0 }
 0x62a   :  { %v13110_v4 = vpop.f32.mrf.mxu3  ;;  %v7170_v22 = vadd.f32 %v7169_v30, %v7168_v25  ;;  %v6973_v48 = vadd.f32 %v6972_v49, %v6971_v42  ;;  %v7074_v25 = vmul.f32 %v13091_v27, %v13091_v27  ;;  %v7191_v42 = vsel %vm6818_vm1, %v7073_v33, 0.0 }
 0x62b   :  { %6876 = vst.msk [vmem:[%s13227_s2 + $0x1c8] sm:$0xff] %vm6818_vm1, %v13110_v4 }
 0x62c   :  { %v7172_v1 = vadd.f32 %v7171_v41, %v7170_v22  ;;  %v7193_v12 = vsel %vm6818_vm1, %v7074_v25, 0.0  ;;  %v7075_v22 = vmul.f32 %v13110_v4, %v13110_v4 }
 0x62e   :  { %v7195_v41 = vsel %vm6818_vm1, %v7075_v22, 0.0 }
 0x631   :  { %v6773_v39 = vpop.f32.mrf.mxu2 }
 0x632   :  { %6865 = vst.msk [vmem:[%s13227_s2 + $0x170] sm:$0xff] %vm6818_vm1, %v6773_v39  ;;  %v7064_v31 = vmul.f32 %v6773_v39, %v6773_v39  ;;  %v6974_v46 = vsel %vm6818_vm1, %v6773_v39, 0.0 }
 0x633   :  { %v6975_v32 = vadd.f32 %v6974_v46, %v6973_v48  ;;  %v6996_v46 = vsel %vm6818_vm1, %v13110_v4, 0.0 }
 0x634   :  { %v7173_v44 = vsel %vm6818_vm1, %v7064_v31, 0.0 }
 0x635   :  { %v7174_v60 = vadd.f32 %v7173_v44, %v7172_v1 }
 0x639   :  { %v6775_v51 = vpop.f32.mrf.mxu2 }
 0x63a   :  { %6866 = vst.msk [vmem:[%s13227_s2 + $0x178] sm:$0xff] %vm6818_vm1, %v6775_v51  ;;  %v6976_v14 = vsel %vm6818_vm1, %v6775_v51, 0.0  ;;  %v7065_v58 = vmul.f32 %v6775_v51, %v6775_v51  ;;  %v6803_v54 = vpop.f32.mrf.mxu3 }
 0x63b   :  { %v6977_v63 = vadd.f32 %v6976_v14, %v6975_v32  ;;  %6877 = vst.msk [vmem:[%s13227_s2 + $0x1d0] sm:$0xff] %vm6818_vm1, %v6803_v54  ;;  %v7076_v27 = vmul.f32 %v6803_v54, %v6803_v54  ;;  %v6998_v32 = vsel %vm6818_vm1, %v6803_v54, 0.0 }
 0x63c   :  { %v7175_v11 = vsel %vm6818_vm1, %v7065_v58, 0.0 }
 0x63d   :  { %v6979_v18 = vadd.f32 %v6978_v0, %v6977_v63  ;;  %v7176_v7 = vadd.f32 %v7175_v11, %v7174_v60  ;;  %v7197_v45 = vsel %vm6818_vm1, %v7076_v27, 0.0 }
 0x63f   :  { %v6981_v10 = vadd.f32 %v6980_v53, %v6979_v18  ;;  %v7178_v5 = vadd.f32 %v7177_v9, %v7176_v7 }
 0x641   :  { %v6983_v15 = vadd.f32 %v6982_v55, %v6981_v10  ;;  %v7180_v6 = vadd.f32 %v7179_v62, %v7178_v5 }
 0x642   :  { %v6805_v36 = vpop.f32.mrf.mxu3 }
 0x643   :  { %v6985_v8 = vadd.f32 %v6984_v23, %v6983_v15  ;;  %v7182_v20 = vadd.f32 %v7181_v21, %v7180_v6  ;;  %6878 = vst.msk [vmem:[%s13227_s2 + $0x1d8] sm:$0xff] %vm6818_vm1, %v6805_v36  ;;  %v7077_v14 = vmul.f32 %v6805_v36, %v6805_v36  ;;  %v7000_v4 = vsel %vm6818_vm1, %v6805_v36, 0.0 }
 0x645   :  { %v6987_v52 = vadd.f32 %v6986_v61, %v6985_v8  ;;  %v7184_v50 = vadd.f32 %v7183_v24, %v7182_v20  ;;  %v7199_v63 = vsel %vm6818_vm1, %v7077_v14, 0.0 }
 0x647   :  { %v7186_v37 = vadd.f32 %v7185_v57, %v7184_v50  ;;  %v6989_v19 = vadd.f32 %v6988_v28, %v6987_v52 }
 0x649   :  { %v6991_v35 = vadd.f32 %v6990_v47, %v6989_v19  ;;  %v7188_v56 = vadd.f32 %v7187_v2, %v7186_v37 }
 0x64a   :  { %v6808_v30 = vpop.f32.mrf.mxu3 }
 0x64b   :  { %v6993_v39 = vadd.f32 %v6992_v40, %v6991_v35  ;;  %v7190_v43 = vadd.f32 %v7189_v38, %v7188_v56  ;;  %6879 = vst.msk [vmem:[%s13227_s2 + $0x1e0] sm:$0xff] %vm6818_vm1, %v6808_v30  ;;  %v7078_v0 = vmul.f32 %v6808_v30, %v6808_v30  ;;  %v7002_v54 = vsel %vm6818_vm1, %v6808_v30, 0.0 }
 0x64d   :  { %v7192_v34 = vadd.f32 %v7191_v42, %v7190_v43  ;;  %v6995_v31 = vadd.f32 %v6994_v17, %v6993_v39  ;;  %v7201_v7 = vsel %vm6818_vm1, %v7078_v0, 0.0 }
 0x64f   :  { %v7194_v49 = vadd.f32 %v7193_v12, %v7192_v34  ;;  %v6997_v48 = vadd.f32 %v6996_v46, %v6995_v31 }
 0x651   :  { %v7196_v44 = vadd.f32 %v7195_v41, %v7194_v49  ;;  %v6999_v51 = vadd.f32 %v6998_v32, %v6997_v48 }
 0x652   :  { %v6810_v1 = vpop.f32.mrf.mxu3 }
 0x653   :  { %6880 = vst.msk [vmem:[%s13227_s2 + $0x1e8] sm:$0xff] %vm6818_vm1, %v6810_v1  ;;  %v7198_v58 = vadd.f32 %v7197_v45, %v7196_v44  ;;  %v7001_v60 = vadd.f32 %v7000_v4, %v6999_v51  ;;  %v7079_v9 = vmul.f32 %v6810_v1, %v6810_v1  ;;  %v7004_v10 = vsel %vm6818_vm1, %v6810_v1, 0.0 }
 0x655   :  { %v7200_v3 = vadd.f32 %v7199_v63, %v7198_v58  ;;  %v7003_v18 = vadd.f32 %v7002_v54, %v7001_v60  ;;  %v7203_v55 = vsel %vm6818_vm1, %v7079_v9, 0.0 }
 0x657   :  { %v7202_v16 = vadd.f32 %v7201_v7, %v7200_v3  ;;  %v7005_v62 = vadd.f32 %v7004_v10, %v7003_v18 }
 0x659   :  { %v7204_v15 = vadd.f32 %v7203_v55, %v7202_v16 }
 0x65a   :  { %v6813_v11 = vpop.f32.mrf.mxu3 }
 0x65b   :  { %6881 = vst.msk [vmem:[%s13227_s2 + $0x1f0] sm:$0xff] %vm6818_vm1, %v6813_v11  ;;  %v7080_v53 = vmul.f32 %v6813_v11, %v6813_v11  ;;  %v7006_v5 = vsel %vm6818_vm1, %v6813_v11, 0.0 }
 0x65c   :  { %v7007_v6 = vadd.f32 %v7006_v5, %v7005_v62 }
 0x65d   :  { %v7205_v59 = vsel %vm6818_vm1, %v7080_v53, 0.0 }
 0x65e   :  { %v7206_v8 = vadd.f32 %v7205_v59, %v7204_v15 }
 0x662   :  { %v6815_v21 = vpop.f32.mrf.mxu3 }
 0x663   :  { %6882 = vst.msk [vmem:[%s13227_s2 + $0x1f8] sm:$0xff] %vm6818_vm1, %v6815_v21  ;;  %v7008_v23 = vsel %vm6818_vm1, %v6815_v21, 0.0  ;;  %v7081_v13 = vmul.f32 %v6815_v21, %v6815_v21  ;;  %s7223_s2 = sshll.u32 %s8098_s22, 4  ;;  %s7224_s2 = int_to_ptr.vmem [resolvable:$true] %s7223_s2 }
 0x664   :  { %v7009_v20 = vadd.f32 %v7008_v23, %v7007_v6 }
 0x665   :  { %v7207_v24 = vsel %vm6818_vm1, %v7081_v13, 0.0 }
 0x666   :  { %v7010_v61 = vrot.slane %v7009_v20, 4  ;;  %v7208_v26 = vadd.f32 %v7207_v24, %v7206_v8 }
 0x668   :  { %v7011_v36 = vadd.f32 %v7010_v61, %v7009_v20  ;;  %v7209_v52 = vrot.slane %v7208_v26, 4 }
 0x66a   :  { %v7012_v50 = vrot.slane %v7011_v36, 2  ;;  %v7210_v57 = vadd.f32 %v7209_v52, %v7208_v26 }
 0x66c   :  { %v7013_v28 = vadd.f32 %v7012_v50, %v7011_v36  ;;  %v7211_v29 = vrot.slane %v7210_v57, 2 }
 0x66e   :  { %v7014_v37 = vrot.slane %v7013_v28, 1  ;;  %v7212_v19 = vadd.f32 %v7211_v29, %v7210_v57 }
 0x670   :  { %v7015_v2 = vadd.f32 %v7014_v37, %v7013_v28  ;;  %v7213_v47 = vrot.slane %v7212_v19, 1 }
 0x672   :  { %7017 = vst.msk [vmem:[#allocation3] sm:$0x1] %vm7016_vm2, %v7015_v2  ;;  %v7214_v33 = vadd.f32 %v7213_v47, %v7212_v19 }
 0x674   :  { %7215 = vst.msk [vmem:[#allocation3 + $0x1] sm:$0x1] %vm7016_vm2, %v7214_v33 }
 0x675   :  { %7228 = dma.vmem_to_hbm [thread:$0]  %s7224_s2, 32, %s7226_s4, [#allocation4]  }
 0x676   :  { %8088 = dma.done.wait [#allocation4], 32  }
 0x677   :  { %8089 = vsyncadd [#allocation4], 4294967264 }
 0x678   :  { %7235 = vsyncpa [#allocation4], 1 }

</bundles_post_ra>
